<compile_context>
chip_gen: v7x
topology: tpu7x:2x2x1
jax: 0.10.0
libtpu: 0.0.40
codegen_flags: <defaults>
</compile_context>

<pallas_src>
import functools

import jax
import jax.numpy as jnp
from jax.experimental import pallas as pl
from jax.experimental.pallas import tpu as pltpu


def _default_vmem_limit():
    """~3/4 of physical VMEM (48 MiB on v7x, 96 MiB on v5e/v6e), safe fallback."""
    try:
        info = pltpu.get_tpu_info()
        cap = int(getattr(info, "vmem_capacity_bytes", 0) or 0)
        if cap >= 64 * 1024 * 1024:
            return min(cap * 3 // 4, 100 * 1024 * 1024)
    except Exception:
        pass
    return 48 * 1024 * 1024


_VMEM_LIMIT = _default_vmem_limit()


def _pick_tile(dim, cap):
    """Largest 128-multiple tile <= cap dividing dim; full dim otherwise."""
    if dim <= cap or dim % 128 != 0:
        return dim
    t = cap - cap % 128
    while t >= 128:
        if dim % t == 0:
            return t
        t -= 128
    return dim


def _pick_row_tile(dim, cap):
    """Largest multiple-of-8 tile <= cap dividing dim (sublane axis); else full."""
    if dim <= cap or dim % 8 != 0:
        return dim
    t = cap - cap % 8
    while t >= 8:
        if dim % t == 0:
            return t
        t -= 8
    return dim


# ---------------------------------------------------------------------------
# Fused (phased) matmul kernel:  act(x @ w + b)  [+ per-(phase,mtile) stats]
# ---------------------------------------------------------------------------
def _mm_kernel(*refs, activation, with_stats):
    if with_stats:
        x_ref, w_ref, b_ref, o_ref, s_ref, q_ref, acc_ref = refs
    else:
        x_ref, w_ref, b_ref, o_ref, acc_ref = refs

    k = pl.program_id(3)                      # reduction axis (innermost)

    @pl.when(k == 0)
    def _():
        acc_ref[...] = jnp.zeros_like(acc_ref)

    acc_ref[...] += jnp.dot(x_ref[...], w_ref[...],
                            preferred_element_type=jnp.float32)

    @pl.when(k == pl.num_programs(3) - 1)
    def _():
        y = acc_ref[...] + b_ref[...]
        if with_stats:
            # Write-once per (phase, m-tile) block: no race when the phase/m
            # axes are 'parallel'.  Reduced to per-channel sums in JAX.
            s_ref[...] = jnp.sum(y, axis=0, keepdims=True)
            q_ref[...] = jnp.sum(y * y, axis=0, keepdims=True)
        if activation == "relu":
            y = jnp.maximum(y, 0.0)
        elif activation == "sigmoid":
            y = jax.nn.sigmoid(y)
        o_ref[...] = y.astype(o_ref.dtype)


def fused_matmul(x, w, b, *, activation="none", with_stats=False,
                 out_dtype=jnp.bfloat16, tm_cap=512, tk_cap=2048, tn_cap=512):
    """x: [P, M, K], w: [P, K, N] (bf16 MXU operands), b: [N] f32.
    Returns out [P, M, N] (+ per-channel sum / sum-of-squares over P*M rows)."""
    P, M, K = x.shape
    _, _, N = w.shape
    tm = _pick_row_tile(M, tm_cap)
    tk = _pick_tile(K, tk_cap)
    tn = _pick_tile(N, tn_cap)
    nm, nj, nk = M // tm, N // tn, K // tk

    out_shapes = [jax.ShapeDtypeStruct((P, M, N), out_dtype)]
    out_specs = [pl.BlockSpec((None, tm, tn), lambda m, j, p, k: (p, m, j))]
    if with_stats:
        out_shapes += [jax.ShapeDtypeStruct((P, nm, 1, N), jnp.float32),
                       jax.ShapeDtypeStruct((P, nm, 1, N), jnp.float32)]
        out_specs += [pl.BlockSpec((None, None, 1, tn),
                                   lambda m, j, p, k: (p, m, 0, j)),
                      pl.BlockSpec((None, None, 1, tn),
                                   lambda m, j, p, k: (p, m, 0, j))]

    res = pl.pallas_call(
        functools.partial(_mm_kernel, activation=activation,
                          with_stats=with_stats),
        out_shape=tuple(out_shapes),
        grid=(nm, nj, P, nk),
        in_specs=[
            pl.BlockSpec((None, tm, tk), lambda m, j, p, k: (p, m, k)),
            pl.BlockSpec((None, tk, tn), lambda m, j, p, k: (p, k, j)),
            pl.BlockSpec((1, tn), lambda m, j, p, k: (0, j)),
        ],
        out_specs=tuple(out_specs),
        scratch_shapes=[pltpu.VMEM((tm, tn), jnp.float32)],
        compiler_params=pltpu.CompilerParams(
            dimension_semantics=("parallel", "parallel", "parallel",
                                 "arbitrary"),
            vmem_limit_bytes=_VMEM_LIMIT),
    )(x.astype(jnp.bfloat16), w.astype(jnp.bfloat16),
      b.reshape(1, N).astype(jnp.float32))

    if with_stats:
        out, s, q = res
        return out, s.sum(axis=(0, 1, 2)), q.sum(axis=(0, 1, 2))
    return res[0]


# ---------------------------------------------------------------------------
# BN-apply (scale/shift, f32 math) + ReLU elementwise kernel, bf16 in / bf16 out
# ---------------------------------------------------------------------------
def _ssr_kernel(y_ref, sc_ref, sh_ref, o_ref):
    y = y_ref[...].astype(jnp.float32)
    o_ref[...] = jnp.maximum(y * sc_ref[...] + sh_ref[...],
                             0.0).astype(o_ref.dtype)


def scale_shift_relu(y2d, scale, shift, out_dtype=jnp.bfloat16, tm_cap=1024):
    M, C = y2d.shape
    tm = _pick_row_tile(M, tm_cap)
    return pl.pallas_call(
        _ssr_kernel,
        out_shape=jax.ShapeDtypeStruct((M, C), out_dtype),
        grid=(M // tm,),
        in_specs=[pl.BlockSpec((tm, C), lambda i: (i, 0)),
                  pl.BlockSpec((1, C), lambda i: (0, 0)),
                  pl.BlockSpec((1, C), lambda i: (0, 0))],
        out_specs=pl.BlockSpec((tm, C), lambda i: (i, 0)),
        compiler_params=pltpu.CompilerParams(
            dimension_semantics=("parallel",),
            vmem_limit_bytes=_VMEM_LIMIT),
    )(y2d, scale.reshape(1, C).astype(jnp.float32),
      shift.reshape(1, C).astype(jnp.float32))


# ---------------------------------------------------------------------------
# Final conv (k=3, s=1, p=1, tiny Cout) + sigmoid: MXU dot, lane-dense output
# ---------------------------------------------------------------------------
def _conv_out_kernel(x_ref, w_ref, b_ref, o_ref):
    y = jnp.dot(x_ref[...], w_ref[...], preferred_element_type=jnp.float32)
    o_ref[...] = jax.nn.sigmoid(y + b_ref[...]).astype(o_ref.dtype)


def conv3x3_sigmoid(x_nhwc, w_mat, b, tm_cap=1024):
    """ConvTranspose2d(k=3, s=1, p=1) + Sigmoid.  w_mat: [9*Cin, Cout] (prepped)."""
    n, H, W, Cin = x_nhwc.shape
    K, Cout = w_mat.shape
    xpad = jnp.pad(x_nhwc, ((0, 0), (1, 1), (1, 1), (0, 0)))
    # TODO(synk): drive the 9 taps from inside the kernel (k-axis index_map) to
    # avoid the 9x patch materialization; negligible at these sizes.
    taps = [xpad[:, a:a + H, bb:bb + W, :] for a in range(3) for bb in range(3)]
    patches = jnp.concatenate(taps, axis=-1).reshape(n * H * W, K)
    M = n * H * W
    tm = _pick_row_tile(M, tm_cap)

    # Zero-pad Cout to a full 128-lane column block: unmasked lane-dense stores
    # and a well-formed MXU matmul; the extra compute/HBM is negligible.
    cpad = ((Cout + 127) // 128) * 128
    w_p = jnp.zeros((K, cpad), jnp.bfloat16).at[:, :Cout].set(
        w_mat.astype(jnp.bfloat16))
    b_p = jnp.zeros((1, cpad), jnp.float32).at[0, :Cout].set(
        b.astype(jnp.float32))

    out = pl.pallas_call(
        _conv_out_kernel,
        out_shape=jax.ShapeDtypeStruct((M, cpad), jnp.float32),
        grid=(M // tm,),
        in_specs=[pl.BlockSpec((tm, K), lambda i: (i, 0)),
                  pl.BlockSpec((K, cpad), lambda i: (0, 0)),
                  pl.BlockSpec((1, cpad), lambda i: (0, 0))],
        out_specs=pl.BlockSpec((tm, cpad), lambda i: (i, 0)),
        compiler_params=pltpu.CompilerParams(
            dimension_semantics=("parallel",),
            vmem_limit_bytes=_VMEM_LIMIT),
    )(patches.astype(jnp.bfloat16), w_p, b_p)
    return out[:, :Cout].reshape(n, H, W, Cout)


# ---------------------------------------------------------------------------
# Deconv(k=4, s=2, p=1) via sub-pixel phase decomposition + fused BN + ReLU
# ---------------------------------------------------------------------------
def deconv_bn_relu_block(x_nhwc, w_phases, b, gamma, beta, eps=1e-5):
    """x_nhwc: [N, H, W, Cin] bf16; w_phases: [4, 4*Cin, Cout] (pre-arranged).
    Returns ReLU(BatchNorm(deconv(x))) in NHWC [N, 2H, 2W, Cout] (bf16)."""
    n, H, W, Cin = x_nhwc.shape
    Cout = w_phases.shape[-1]
    xpad = jnp.pad(x_nhwc, ((0, 0), (1, 1), (1, 1), (0, 0)))

    # 2x2 im2col per output phase over the UN-dilated input (no zero MACs).
    # TODO(synk): move this im2col into the matmul kernel (tap-driven k axis)
    # to remove the 4x activation read amplification at large batch.
    def phase_patches(r, c):
        taps = [xpad[:, r + da:r + da + H, c + db:c + db + W, :]
                for da in (0, 1) for db in (0, 1)]
        return jnp.concatenate(taps, axis=-1).reshape(n * H * W, 4 * Cin)

    patches = jnp.stack([phase_patches(r, c) for r in (0, 1) for c in (0, 1)])

    # One Pallas call: 4 phase matmuls + bias + fused BN statistics (f32 inside
    # the epilogue); the pre-activation is written back as bf16.
    y, s, q = fused_matmul(patches, w_phases, b, activation="none",
                           with_stats=True, out_dtype=jnp.bfloat16)

    # Tiny per-channel scalar math (train-mode BatchNorm, biased variance).
    cnt = float(4 * n * H * W)
    mean = s / cnt
    var = jnp.maximum(q / cnt - mean * mean, 0.0)   # clamp cancellation
    invstd = jax.lax.rsqrt(var + eps)
    scale = gamma * invstd
    shift = beta - mean * scale

    # BN apply + ReLU on all phases at once (Pallas), emit bf16 for next layer.
    act = scale_shift_relu(y.reshape(4 * n * H * W, Cout), scale, shift)

    # Interleave phases: out[n, 2i+r, 2j+c, :] = phase[(r, c)][n, i, j, :]
    act = act.reshape(2, 2, n, H, W, Cout).transpose(2, 3, 0, 4, 1, 5)
    return act.reshape(n, 2 * H, 2 * W, Cout)


# ---------------------------------------------------------------------------
# Parameters (PyTorch layout) and one-time relayout into kernel-friendly form
# ---------------------------------------------------------------------------
def init_decoder_params(key, latent_dim=8, ch_mult=16, conv_filter_size=4,
                        channels=1, init_size=7):
    c0 = latent_dim * ch_mult              # original module: ch_mult=128 -> 1024
    c1, c2 = c0 // 2, c0 // 4
    ks = jax.random.split(key, 6)

    def nrm(k, shape, scale):
        return (scale * jax.random.normal(k, shape)).astype(jnp.float32)

    kf = conv_filter_size
    return dict(
        # fc weight in [in, out] layout; out columns ordered (c, i, j) like the
        # PyTorch out.view(-1, c0, init, init).
        fc_w=nrm(ks[0], (latent_dim, init_size * init_size * c0),
                 1.0 / jnp.sqrt(latent_dim)),
        fc_b=nrm(ks[1], (init_size * init_size * c0,), 0.01),
        w1=nrm(ks[2], (c0, c1, kf, kf), 1.0 / jnp.sqrt(c0 * kf * kf)),
        b1=jnp.zeros((c1,), jnp.float32),
        gamma1=jnp.ones((c1,), jnp.float32),
        beta1=jnp.zeros((c1,), jnp.float32),
        w2=nrm(ks[3], (c1, c2, kf, kf), 1.0 / jnp.sqrt(c1 * kf * kf)),
        b2=jnp.zeros((c2,), jnp.float32),
        gamma2=jnp.ones((c2,), jnp.float32),
        beta2=jnp.zeros((c2,), jnp.float32),
        w3=nrm(ks[4], (c2, channels, 3, 3), 1.0 / jnp.sqrt(c2 * 9.0)),
        b3=nrm(ks[5], (channels,), 0.01),
    )


def _phase_weight(W):
    """W: [Cin, Cout, 4, 4] (ConvTranspose2d) -> [4 phases, 4*Cin, Cout]."""
    phases = []
    for r in (0, 1):
        for c in (0, 1):
            rows = [W[:, :, 3 - r - 2 * da, 3 - c - 2 * db]
                    for da in (0, 1) for db in (0, 1)]
            phases.append(jnp.concatenate(rows, axis=0))
    return jnp.stack(phases)


def _conv3x3_weight(W):
    """W: [Cin, Cout, 3, 3] -> [9*Cin, Cout] (spatially flipped, im2col order)."""
    rows = [W[:, :, 2 - a, 2 - b] for a in range(3) for b in range(3)]
    return jnp.concatenate(rows, axis=0)


def prepare_decoder_params(params, latent_dim=8, ch_mult=16, init_size=7):
    """One-time relayout: fc columns -> NHWC order, conv weights -> matmul form."""
    c0 = latent_dim * ch_mult
    fc_w = params["fc_w"].reshape(latent_dim, c0, init_size, init_size)
    fc_w = fc_w.transpose(0, 2, 3, 1).reshape(latent_dim, -1)
    fc_b = params["fc_b"].reshape(c0, init_size, init_size)
    fc_b = fc_b.transpose(1, 2, 0).reshape(-1)
    return dict(
        fc_w=fc_w.astype(jnp.bfloat16),
        fc_b=fc_b,
        w1=_phase_weight(params["w1"]).astype(jnp.bfloat16),
        b1=params["b1"], gamma1=params["gamma1"], beta1=params["beta1"],
        w2=_phase_weight(params["w2"]).astype(jnp.bfloat16),
        b2=params["b2"], gamma2=params["gamma2"], beta2=params["beta2"],
        w3=_conv3x3_weight(params["w3"]).astype(jnp.bfloat16),   # [9*Cin, Cout]
        b3=params["b3"],
    )


# ---------------------------------------------------------------------------
# Decoder forward
# ---------------------------------------------------------------------------
def decoder_forward(z, p, *, latent_dim=8, ch_mult=16, init_size=7, channels=1):
    n = z.shape[0]
    c0 = latent_dim * ch_mult

    # fc1: Linear + ReLU. Columns pre-permuted -> output already NHWC.
    # Large tn cap collapses the grid for this tiny-K matmul.
    h = fused_matmul(z[None], p["fc_w"][None], p["fc_b"], activation="relu",
                     out_dtype=jnp.bfloat16, tm_cap=512, tn_cap=8192)
    h = h.reshape(n, init_size, init_size, c0)

    # deconv_block(c0 -> c0/2): ConvTranspose2d(k=4,s=2,p=1) + BN + ReLU
    y = deconv_bn_relu_block(h, p["w1"], p["b1"], p["gamma1"], p["beta1"])
    # deconv_block(c0/2 -> c0/4)
    y = deconv_bn_relu_block(y, p["w2"], p["b2"], p["gamma2"], p["beta2"])
    # final ConvTranspose2d(k=3, s=1, p=1) + Sigmoid
    y = conv3x3_sigmoid(y, p["w3"], p["b3"])

    return jnp.transpose(y, (0, 3, 1, 2))   # NHWC -> NCHW (match PyTorch)


# ---------------------------------------------------------------------------
# Pure-JAX f32 reference (dilate + flipped conv identity) for verification
# ---------------------------------------------------------------------------
def reference_decoder(z, params, *, latent_dim=8, ch_mult=16, init_size=7,
                      channels=1, eps=1e-5):
    n = z.shape[0]
    c0 = latent_dim * ch_mult
    h = jnp.maximum(
        jnp.dot(z, params["fc_w"], precision=jax.lax.Precision.HIGHEST)
        + params["fc_b"], 0.0)
    x = h.reshape(n, c0, init_size, init_size)

    def deconv(x, W, b, stride, padding):
        k = W.shape[2]
        Wf = jnp.flip(W, (2, 3)).transpose(1, 0, 2, 3)
        pad = k - 1 - padding
        y = jax.lax.conv_general_dilated(
            x, Wf, window_strides=(1, 1), padding=[(pad, pad), (pad, pad)],
            lhs_dilation=(stride, stride),
            dimension_numbers=("NCHW", "OIHW", "NCHW"),
            precision=jax.lax.Precision.HIGHEST)
        return y + b.reshape(1, -1, 1, 1)

    def bn_relu(y, gamma, beta):
        mean = y.mean(axis=(0, 2, 3), keepdims=True)
        var = y.var(axis=(0, 2, 3), keepdims=True)
        yhat = (y - mean) * jax.lax.rsqrt(var + eps)
        return jnp.maximum(yhat * gamma.reshape(1, -1, 1, 1)
                           + beta.reshape(1, -1, 1, 1), 0.0)

    y = bn_relu(deconv(x, params["w1"], params["b1"], 2, 1),
                params["gamma1"], params["beta1"])
    y = bn_relu(deconv(y, params["w2"], params["b2"], 2, 1),
                params["gamma2"], params["beta2"])
    y = deconv(y, params["w3"], params["b3"], 1, 1)
    return jax.nn.sigmoid(y)


if __name__ == "__main__":
    key = jax.random.PRNGKey(0)
    kz, kp = jax.random.split(key)

    latent_dim, batch, ch_mult, channels, init_size = 8, 2, 16, 1, 7

    z = jax.random.normal(kz, (batch, latent_dim), dtype=jnp.float32)
    raw = init_decoder_params(kp, latent_dim=latent_dim, ch_mult=ch_mult,
                              channels=channels, init_size=init_size)
    params = prepare_decoder_params(raw, latent_dim=latent_dim,
                                    ch_mult=ch_mult, init_size=init_size)

    fwd = jax.jit(functools.partial(decoder_forward, latent_dim=latent_dim,
                                    ch_mult=ch_mult, init_size=init_size,
                                    channels=channels))
    out = jax.block_until_ready(fwd(z, params))

    assert out.shape == (batch, channels, 4 * init_size, 4 * init_size), out.shape
    assert bool(jnp.all(jnp.isfinite(out)))
    assert bool(jnp.all((out >= 0.0) & (out <= 1.0)))

    ref = reference_decoder(z, raw, latent_dim=latent_dim, ch_mult=ch_mult,
                            init_size=init_size, channels=channels)
    err = jnp.abs(out - ref)
    max_err = float(jnp.max(err))
    mean_err = float(jnp.mean(err))
    # bf16 MXU operands + bf16 intermediates through two BN layers.
    assert max_err < 8e-2, f"max abs error vs f32 reference: {max_err}"
    assert mean_err < 1.5e-2, f"mean abs error vs f32 reference: {mean_err}"

    print("KERNEL_OK")
</pallas_src>

<mosaic_0001>
module attributes {stable_mosaic.version = 11 : i64} {
  func.func @_mm_kernel(%arg0: i32, %arg1: i32, %arg2: i32, %arg3: i32, %arg4: memref<1x2x8xbf16, #tpu.memory_space<vmem>>, %arg5: memref<1x8x6272xbf16, #tpu.memory_space<vmem>>, %arg6: memref<1x6272xf32, #tpu.memory_space<vmem>>, %arg7: memref<1x2x6272xbf16, #tpu.memory_space<vmem>>, %arg8: memref<2x6272xf32, #tpu.memory_space<vmem>>) attributes {dimension_semantics = [#tpu.dimension_semantics<parallel>, #tpu.dimension_semantics<parallel>, #tpu.dimension_semantics<parallel>, #tpu.dimension_semantics<arbitrary>], iteration_bounds = array<i64: 1, 1, 1, 1>, scalar_prefetch = 0 : i64, scratch_operands = 1 : i64, tpu.core_type = #tpu.core_type<tc>, window_params = [{transform_indices = @transform_0, window_bounds = array<i64: 1, 2, 8>}, {transform_indices = @transform_1, window_bounds = array<i64: 1, 8, 6272>}, {transform_indices = @transform_2, window_bounds = array<i64: 1, 6272>}, {transform_indices = @transform_3, window_bounds = array<i64: 1, 2, 6272>}]} {
    %c0_i32 = arith.constant 0 : i32
    %0 = arith.cmpi eq, %arg3, %c0_i32 : i32
    %1 = arith.extui %0 : i1 to i32
    %c0_i32_0 = arith.constant 0 : i32
    %2 = arith.cmpi ne, %1, %c0_i32_0 : i32
    scf.if %2 {
      %cst_12 = arith.constant 0.000000e+00 : f32
      %14 = vector.broadcast %cst_12 : f32 to vector<2x6272xf32>
      %c0_13 = arith.constant 0 : index
      %c0_14 = arith.constant 0 : index
      %15 = vector.load %arg8[%c0_13, %c0_14] : memref<2x6272xf32, #tpu.memory_space<vmem>>, vector<2x6272xf32>
      tpu.vector_store %arg8[%c0_13, %c0_14], %14 {strides = array<i32>} : memref<2x6272xf32, #tpu.memory_space<vmem>>, vector<2x6272xf32>,
    } else {
    }
    %c0 = arith.constant 0 : index
    %c0_1 = arith.constant 0 : index
    %3 = vector.load %arg8[%c0, %c0_1] : memref<2x6272xf32, #tpu.memory_space<vmem>>, vector<2x6272xf32>
    %c0_2 = arith.constant 0 : index
    %c0_3 = arith.constant 0 : index
    %c0_4 = arith.constant 0 : index
    %4 = vector.load %arg4[%c0_2, %c0_3, %c0_4] : memref<1x2x8xbf16, #tpu.memory_space<vmem>>, vector<1x2x8xbf16>
    %5 = vector.shape_cast %4 : vector<1x2x8xbf16> to vector<2x8xbf16>
    %c0_5 = arith.constant 0 : index
    %c0_6 = arith.constant 0 : index
    %c0_7 = arith.constant 0 : index
    %6 = vector.load %arg5[%c0_5, %c0_6, %c0_7] : memref<1x8x6272xbf16, #tpu.memory_space<vmem>>, vector<1x8x6272xbf16>
    %7 = vector.shape_cast %6 : vector<1x8x6272xbf16> to vector<8x6272xbf16>
    %cst = arith.constant dense<0.000000e+00> : vector<2x6272xf32>
    %8 = tpu.matmul %5, %7, %cst {dimension_numbers = #tpu.dot_dimension_numbers<[1], [0], [0], [1], [0, 0, 1, 1], [], []>} : vector<2x8xbf16>, vector<8x6272xbf16>, vector<2x6272xf32> -> vector<2x6272xf32>
    %9 = arith.addf %3, %8 : vector<2x6272xf32>
    %c0_8 = arith.constant 0 : index
    %c0_9 = arith.constant 0 : index
    %10 = vector.load %arg8[%c0_8, %c0_9] : memref<2x6272xf32, #tpu.memory_space<vmem>>, vector<2x6272xf32>
    tpu.vector_store %arg8[%c0_8, %c0_9], %9 {strides = array<i32>} : memref<2x6272xf32, #tpu.memory_space<vmem>>, vector<2x6272xf32>,
    %c0_i32_10 = arith.constant 0 : i32
    %11 = arith.cmpi eq, %arg3, %c0_i32_10 : i32
    %12 = arith.extui %11 : i1 to i32
    %c0_i32_11 = arith.constant 0 : i32
    %13 = arith.cmpi ne, %12, %c0_i32_11 : i32
    scf.if %13 {
      %c0_12 = arith.constant 0 : index
      %c0_13 = arith.constant 0 : index
      %14 = vector.load %arg8[%c0_12, %c0_13] : memref<2x6272xf32, #tpu.memory_space<vmem>>, vector<2x6272xf32>
      %c0_14 = arith.constant 0 : index
      %c0_15 = arith.constant 0 : index
      %15 = vector.load %arg6[%c0_14, %c0_15] : memref<1x6272xf32, #tpu.memory_space<vmem>>, vector<1x6272xf32>
      %16 = vector.broadcast %15 : vector<1x6272xf32> to vector<2x6272xf32>
      %17 = arith.addf %14, %16 : vector<2x6272xf32>
      %cst_16 = arith.constant 0.000000e+00 : f32
      %18 = vector.broadcast %cst_16 : f32 to vector<2x6272xf32>
      %19 = arith.maximumf %17, %18 : vector<2x6272xf32>
      %20 = arith.truncf %19 : vector<2x6272xf32> to vector<2x6272xbf16>
      %c0_17 = arith.constant 0 : index
      %c0_18 = arith.constant 0 : index
      %c0_19 = arith.constant 0 : index
      %21 = vector.load %arg7[%c0_17, %c0_18, %c0_19] : memref<1x2x6272xbf16, #tpu.memory_space<vmem>>, vector<1x2x6272xbf16>
      %22 = vector.shape_cast %21 : vector<1x2x6272xbf16> to vector<2x6272xbf16>
      %23 = vector.shape_cast %20 : vector<2x6272xbf16> to vector<1x2x6272xbf16>
      tpu.vector_store %arg7[%c0_17, %c0_18, %c0_19], %23 {strides = array<i32>} : memref<1x2x6272xbf16, #tpu.memory_space<vmem>>, vector<1x2x6272xbf16>,
    } else {
    }
    return
  }
  func.func @transform_0(%arg0: i32, %arg1: i32, %arg2: i32, %arg3: i32) -> (i32, i32, i32) {
    %c0_i32 = arith.constant 0 : i32
    return %arg2, %arg0, %arg3 : i32, i32, i32
  }
  func.func @transform_1(%arg0: i32, %arg1: i32, %arg2: i32, %arg3: i32) -> (i32, i32, i32) {
    %c0_i32 = arith.constant 0 : i32
    return %arg2, %arg3, %arg1 : i32, i32, i32
  }
  func.func @transform_2(%arg0: i32, %arg1: i32, %arg2: i32, %arg3: i32) -> (i32, i32) {
    %c0_i32 = arith.constant 0 : i32
    %c0_i32_0 = arith.constant 0 : i32
    return %c0_i32, %arg1 : i32, i32
  }
  func.func @transform_3(%arg0: i32, %arg1: i32, %arg2: i32, %arg3: i32) -> (i32, i32, i32) {
    %c0_i32 = arith.constant 0 : i32
    return %arg2, %arg0, %arg1 : i32, i32, i32
  }
}

module attributes {stable_mosaic.version = 11 : i64} {
  func.func @_mm_kernel(%arg0: i32, %arg1: i32, %arg2: i32, %arg3: i32, %arg4: memref<1x98x512xbf16, #tpu.memory_space<vmem>>, %arg5: memref<1x512x64xbf16, #tpu.memory_space<vmem>>, %arg6: memref<1x64xf32, #tpu.memory_space<vmem>>, %arg7: memref<1x98x64xbf16, #tpu.memory_space<vmem>>, %arg8: memref<1x1x1x64xf32, #tpu.memory_space<vmem>>, %arg9: memref<1x1x1x64xf32, #tpu.memory_space<vmem>>, %arg10: memref<98x64xf32, #tpu.memory_space<vmem>>) attributes {dimension_semantics = [#tpu.dimension_semantics<parallel>, #tpu.dimension_semantics<parallel>, #tpu.dimension_semantics<parallel>, #tpu.dimension_semantics<arbitrary>], iteration_bounds = array<i64: 1, 1, 4, 1>, scalar_prefetch = 0 : i64, scratch_operands = 1 : i64, tpu.core_type = #tpu.core_type<tc>, window_params = [{transform_indices = @transform_0, window_bounds = array<i64: 1, 98, 512>}, {transform_indices = @transform_1, window_bounds = array<i64: 1, 512, 64>}, {transform_indices = @transform_2, window_bounds = array<i64: 1, 64>}, {transform_indices = @transform_3, window_bounds = array<i64: 1, 98, 64>}, {transform_indices = @transform_4, window_bounds = array<i64: 1, 1, 1, 64>}, {transform_indices = @transform_5, window_bounds = array<i64: 1, 1, 1, 64>}]} {
    %c0_i32 = arith.constant 0 : i32
    %0 = arith.cmpi eq, %arg3, %c0_i32 : i32
    %1 = arith.extui %0 : i1 to i32
    %c0_i32_0 = arith.constant 0 : i32
    %2 = arith.cmpi ne, %1, %c0_i32_0 : i32
    scf.if %2 {
      %cst_12 = arith.constant 0.000000e+00 : f32
      %14 = vector.broadcast %cst_12 : f32 to vector<98x64xf32>
      %c0_13 = arith.constant 0 : index
      %c0_14 = arith.constant 0 : index
      %15 = vector.load %arg10[%c0_13, %c0_14] : memref<98x64xf32, #tpu.memory_space<vmem>>, vector<98x64xf32>
      tpu.vector_store %arg10[%c0_13, %c0_14], %14 {strides = array<i32>} : memref<98x64xf32, #tpu.memory_space<vmem>>, vector<98x64xf32>,
    } else {
    }
    %c0 = arith.constant 0 : index
    %c0_1 = arith.constant 0 : index
    %3 = vector.load %arg10[%c0, %c0_1] : memref<98x64xf32, #tpu.memory_space<vmem>>, vector<98x64xf32>
    %c0_2 = arith.constant 0 : index
    %c0_3 = arith.constant 0 : index
    %c0_4 = arith.constant 0 : index
    %4 = vector.load %arg4[%c0_2, %c0_3, %c0_4] : memref<1x98x512xbf16, #tpu.memory_space<vmem>>, vector<1x98x512xbf16>
    %5 = vector.shape_cast %4 : vector<1x98x512xbf16> to vector<98x512xbf16>
    %c0_5 = arith.constant 0 : index
    %c0_6 = arith.constant 0 : index
    %c0_7 = arith.constant 0 : index
    %6 = vector.load %arg5[%c0_5, %c0_6, %c0_7] : memref<1x512x64xbf16, #tpu.memory_space<vmem>>, vector<1x512x64xbf16>
    %7 = vector.shape_cast %6 : vector<1x512x64xbf16> to vector<512x64xbf16>
    %cst = arith.constant dense<0.000000e+00> : vector<98x64xf32>
    %8 = tpu.matmul %5, %7, %cst {dimension_numbers = #tpu.dot_dimension_numbers<[1], [0], [0], [1], [0, 0, 1, 1], [], []>} : vector<98x512xbf16>, vector<512x64xbf16>, vector<98x64xf32> -> vector<98x64xf32>
    %9 = arith.addf %3, %8 : vector<98x64xf32>
    %c0_8 = arith.constant 0 : index
    %c0_9 = arith.constant 0 : index
    %10 = vector.load %arg10[%c0_8, %c0_9] : memref<98x64xf32, #tpu.memory_space<vmem>>, vector<98x64xf32>
    tpu.vector_store %arg10[%c0_8, %c0_9], %9 {strides = array<i32>} : memref<98x64xf32, #tpu.memory_space<vmem>>, vector<98x64xf32>,
    %c0_i32_10 = arith.constant 0 : i32
    %11 = arith.cmpi eq, %arg3, %c0_i32_10 : i32
    %12 = arith.extui %11 : i1 to i32
    %c0_i32_11 = arith.constant 0 : i32
    %13 = arith.cmpi ne, %12, %c0_i32_11 : i32
    scf.if %13 {
      %c0_12 = arith.constant 0 : index
      %c0_13 = arith.constant 0 : index
      %14 = vector.load %arg10[%c0_12, %c0_13] : memref<98x64xf32, #tpu.memory_space<vmem>>, vector<98x64xf32>
      %c0_14 = arith.constant 0 : index
      %c0_15 = arith.constant 0 : index
      %15 = vector.load %arg6[%c0_14, %c0_15] : memref<1x64xf32, #tpu.memory_space<vmem>>, vector<1x64xf32>
      %16 = vector.broadcast %15 : vector<1x64xf32> to vector<98x64xf32>
      %17 = arith.addf %14, %16 : vector<98x64xf32>
      %cst_16 = arith.constant dense<0.000000e+00> : vector<64xf32>
      %18 = vector.multi_reduction <add>, %17, %cst_16 [0] : vector<98x64xf32> to vector<64xf32>
      %19 = vector.shape_cast %18 : vector<64xf32> to vector<1x64xf32>
      %c0_17 = arith.constant 0 : index
      %c0_18 = arith.constant 0 : index
      %c0_19 = arith.constant 0 : index
      %c0_20 = arith.constant 0 : index
      %20 = vector.load %arg8[%c0_17, %c0_18, %c0_19, %c0_20] : memref<1x1x1x64xf32, #tpu.memory_space<vmem>>, vector<1x1x1x64xf32>
      %21 = vector.shape_cast %20 : vector<1x1x1x64xf32> to vector<1x64xf32>
      %22 = vector.shape_cast %19 : vector<1x64xf32> to vector<1x1x1x64xf32>
      tpu.vector_store %arg8[%c0_17, %c0_18, %c0_19, %c0_20], %22 {strides = array<i32>} : memref<1x1x1x64xf32, #tpu.memory_space<vmem>>, vector<1x1x1x64xf32>,
      %23 = arith.mulf %17, %17 : vector<98x64xf32>
      %cst_21 = arith.constant dense<0.000000e+00> : vector<64xf32>
      %24 = vector.multi_reduction <add>, %23, %cst_21 [0] : vector<98x64xf32> to vector<64xf32>
      %25 = vector.shape_cast %24 : vector<64xf32> to vector<1x64xf32>
      %c0_22 = arith.constant 0 : index
      %c0_23 = arith.constant 0 : index
      %c0_24 = arith.constant 0 : index
      %c0_25 = arith.constant 0 : index
      %26 = vector.load %arg9[%c0_22, %c0_23, %c0_24, %c0_25] : memref<1x1x1x64xf32, #tpu.memory_space<vmem>>, vector<1x1x1x64xf32>
      %27 = vector.shape_cast %26 : vector<1x1x1x64xf32> to vector<1x64xf32>
      %28 = vector.shape_cast %25 : vector<1x64xf32> to vector<1x1x1x64xf32>
      tpu.vector_store %arg9[%c0_22, %c0_23, %c0_24, %c0_25], %28 {strides = array<i32>} : memref<1x1x1x64xf32, #tpu.memory_space<vmem>>, vector<1x1x1x64xf32>,
      %29 = arith.truncf %17 : vector<98x64xf32> to vector<98x64xbf16>
      %c0_26 = arith.constant 0 : index
      %c0_27 = arith.constant 0 : index
      %c0_28 = arith.constant 0 : index
      %30 = vector.load %arg7[%c0_26, %c0_27, %c0_28] : memref<1x98x64xbf16, #tpu.memory_space<vmem>>, vector<1x98x64xbf16>
      %31 = vector.shape_cast %30 : vector<1x98x64xbf16> to vector<98x64xbf16>
      %32 = vector.shape_cast %29 : vector<98x64xbf16> to vector<1x98x64xbf16>
      tpu.vector_store %arg7[%c0_26, %c0_27, %c0_28], %32 {strides = array<i32>} : memref<1x98x64xbf16, #tpu.memory_space<vmem>>, vector<1x98x64xbf16>,
    } else {
    }
    return
  }
  func.func @transform_0(%arg0: i32, %arg1: i32, %arg2: i32, %arg3: i32) -> (i32, i32, i32) {
    %c0_i32 = arith.constant 0 : i32
    return %arg2, %arg0, %arg3 : i32, i32, i32
  }
  func.func @transform_1(%arg0: i32, %arg1: i32, %arg2: i32, %arg3: i32) -> (i32, i32, i32) {
    %c0_i32 = arith.constant 0 : i32
    return %arg2, %arg3, %arg1 : i32, i32, i32
  }
  func.func @transform_2(%arg0: i32, %arg1: i32, %arg2: i32, %arg3: i32) -> (i32, i32) {
    %c0_i32 = arith.constant 0 : i32
    %c0_i32_0 = arith.constant 0 : i32
    return %c0_i32, %arg1 : i32, i32
  }
  func.func @transform_3(%arg0: i32, %arg1: i32, %arg2: i32, %arg3: i32) -> (i32, i32, i32) {
    %c0_i32 = arith.constant 0 : i32
    return %arg2, %arg0, %arg1 : i32, i32, i32
  }
  func.func @transform_4(%arg0: i32, %arg1: i32, %arg2: i32, %arg3: i32) -> (i32, i32, i32, i32) {
    %c0_i32 = arith.constant 0 : i32
    %c0_i32_0 = arith.constant 0 : i32
    return %arg2, %arg0, %c0_i32, %arg1 : i32, i32, i32, i32
  }
  func.func @transform_5(%arg0: i32, %arg1: i32, %arg2: i32, %arg3: i32) -> (i32, i32, i32, i32) {
    %c0_i32 = arith.constant 0 : i32
    %c0_i32_0 = arith.constant 0 : i32
    return %arg2, %arg0, %c0_i32, %arg1 : i32, i32, i32, i32
  }
}

module attributes {stable_mosaic.version = 11 : i64} {
  func.func @_ssr_kernel(%arg0: i32, %arg1: memref<392x64xbf16, #tpu.memory_space<vmem>>, %arg2: memref<1x64xf32, #tpu.memory_space<vmem>>, %arg3: memref<1x64xf32, #tpu.memory_space<vmem>>, %arg4: memref<392x64xbf16, #tpu.memory_space<vmem>>) attributes {dimension_semantics = [#tpu.dimension_semantics<parallel>], iteration_bounds = array<i64: 1>, scalar_prefetch = 0 : i64, scratch_operands = 0 : i64, tpu.core_type = #tpu.core_type<tc>, window_params = [{transform_indices = @transform_0, window_bounds = array<i64: 392, 64>}, {pipeline_mode = #tpu.pipeline_mode<synchronous>, transform_indices = @transform_1, window_bounds = array<i64: 1, 64>}, {pipeline_mode = #tpu.pipeline_mode<synchronous>, transform_indices = @transform_2, window_bounds = array<i64: 1, 64>}, {transform_indices = @transform_3, window_bounds = array<i64: 392, 64>}]} {
    %c0 = arith.constant 0 : index
    %c0_0 = arith.constant 0 : index
    %0 = vector.load %arg1[%c0, %c0_0] : memref<392x64xbf16, #tpu.memory_space<vmem>>, vector<392x64xbf16>
    %1 = arith.extf %0 : vector<392x64xbf16> to vector<392x64xf32>
    %c0_1 = arith.constant 0 : index
    %c0_2 = arith.constant 0 : index
    %2 = vector.load %arg2[%c0_1, %c0_2] : memref<1x64xf32, #tpu.memory_space<vmem>>, vector<1x64xf32>
    %3 = vector.broadcast %2 : vector<1x64xf32> to vector<392x64xf32>
    %4 = arith.mulf %1, %3 : vector<392x64xf32>
    %c0_3 = arith.constant 0 : index
    %c0_4 = arith.constant 0 : index
    %5 = vector.load %arg3[%c0_3, %c0_4] : memref<1x64xf32, #tpu.memory_space<vmem>>, vector<1x64xf32>
    %6 = vector.broadcast %5 : vector<1x64xf32> to vector<392x64xf32>
    %7 = arith.addf %4, %6 : vector<392x64xf32>
    %cst = arith.constant 0.000000e+00 : f32
    %8 = vector.broadcast %cst : f32 to vector<392x64xf32>
    %9 = arith.maximumf %7, %8 : vector<392x64xf32>
    %10 = arith.truncf %9 : vector<392x64xf32> to vector<392x64xbf16>
    %c0_5 = arith.constant 0 : index
    %c0_6 = arith.constant 0 : index
    %11 = vector.load %arg4[%c0_5, %c0_6] : memref<392x64xbf16, #tpu.memory_space<vmem>>, vector<392x64xbf16>
    tpu.vector_store %arg4[%c0_5, %c0_6], %10 {strides = array<i32>} : memref<392x64xbf16, #tpu.memory_space<vmem>>, vector<392x64xbf16>,
    return
  }
  func.func @transform_0(%arg0: i32) -> (i32, i32) {
    %c0_i32 = arith.constant 0 : i32
    %c0_i32_0 = arith.constant 0 : i32
    return %arg0, %c0_i32 : i32, i32
  }
  func.func @transform_1(%arg0: i32) -> (i32, i32) {
    %c0_i32 = arith.constant 0 : i32
    %c0_i32_0 = arith.constant 0 : i32
    %c0_i32_1 = arith.constant 0 : i32
    return %c0_i32, %c0_i32_0 : i32, i32
  }
  func.func @transform_2(%arg0: i32) -> (i32, i32) {
    %c0_i32 = arith.constant 0 : i32
    %c0_i32_0 = arith.constant 0 : i32
    %c0_i32_1 = arith.constant 0 : i32
    return %c0_i32, %c0_i32_0 : i32, i32
  }
  func.func @transform_3(%arg0: i32) -> (i32, i32) {
    %c0_i32 = arith.constant 0 : i32
    %c0_i32_0 = arith.constant 0 : i32
    return %arg0, %c0_i32 : i32, i32
  }
}

module attributes {stable_mosaic.version = 11 : i64} {
  func.func @_mm_kernel(%arg0: i32, %arg1: i32, %arg2: i32, %arg3: i32, %arg4: memref<1x392x256xbf16, #tpu.memory_space<vmem>>, %arg5: memref<1x256x32xbf16, #tpu.memory_space<vmem>>, %arg6: memref<1x32xf32, #tpu.memory_space<vmem>>, %arg7: memref<1x392x32xbf16, #tpu.memory_space<vmem>>, %arg8: memref<1x1x1x32xf32, #tpu.memory_space<vmem>>, %arg9: memref<1x1x1x32xf32, #tpu.memory_space<vmem>>, %arg10: memref<392x32xf32, #tpu.memory_space<vmem>>) attributes {dimension_semantics = [#tpu.dimension_semantics<parallel>, #tpu.dimension_semantics<parallel>, #tpu.dimension_semantics<parallel>, #tpu.dimension_semantics<arbitrary>], iteration_bounds = array<i64: 1, 1, 4, 1>, scalar_prefetch = 0 : i64, scratch_operands = 1 : i64, tpu.core_type = #tpu.core_type<tc>, window_params = [{transform_indices = @transform_0, window_bounds = array<i64: 1, 392, 256>}, {transform_indices = @transform_1, window_bounds = array<i64: 1, 256, 32>}, {transform_indices = @transform_2, window_bounds = array<i64: 1, 32>}, {transform_indices = @transform_3, window_bounds = array<i64: 1, 392, 32>}, {transform_indices = @transform_4, window_bounds = array<i64: 1, 1, 1, 32>}, {transform_indices = @transform_5, window_bounds = array<i64: 1, 1, 1, 32>}]} {
    %c0_i32 = arith.constant 0 : i32
    %0 = arith.cmpi eq, %arg3, %c0_i32 : i32
    %1 = arith.extui %0 : i1 to i32
    %c0_i32_0 = arith.constant 0 : i32
    %2 = arith.cmpi ne, %1, %c0_i32_0 : i32
    scf.if %2 {
      %cst_12 = arith.constant 0.000000e+00 : f32
      %14 = vector.broadcast %cst_12 : f32 to vector<392x32xf32>
      %c0_13 = arith.constant 0 : index
      %c0_14 = arith.constant 0 : index
      %15 = vector.load %arg10[%c0_13, %c0_14] : memref<392x32xf32, #tpu.memory_space<vmem>>, vector<392x32xf32>
      tpu.vector_store %arg10[%c0_13, %c0_14], %14 {strides = array<i32>} : memref<392x32xf32, #tpu.memory_space<vmem>>, vector<392x32xf32>,
    } else {
    }
    %c0 = arith.constant 0 : index
    %c0_1 = arith.constant 0 : index
    %3 = vector.load %arg10[%c0, %c0_1] : memref<392x32xf32, #tpu.memory_space<vmem>>, vector<392x32xf32>
    %c0_2 = arith.constant 0 : index
    %c0_3 = arith.constant 0 : index
    %c0_4 = arith.constant 0 : index
    %4 = vector.load %arg4[%c0_2, %c0_3, %c0_4] : memref<1x392x256xbf16, #tpu.memory_space<vmem>>, vector<1x392x256xbf16>
    %5 = vector.shape_cast %4 : vector<1x392x256xbf16> to vector<392x256xbf16>
    %c0_5 = arith.constant 0 : index
    %c0_6 = arith.constant 0 : index
    %c0_7 = arith.constant 0 : index
    %6 = vector.load %arg5[%c0_5, %c0_6, %c0_7] : memref<1x256x32xbf16, #tpu.memory_space<vmem>>, vector<1x256x32xbf16>
    %7 = vector.shape_cast %6 : vector<1x256x32xbf16> to vector<256x32xbf16>
    %cst = arith.constant dense<0.000000e+00> : vector<392x32xf32>
    %8 = tpu.matmul %5, %7, %cst {dimension_numbers = #tpu.dot_dimension_numbers<[1], [0], [0], [1], [0, 0, 1, 1], [], []>} : vector<392x256xbf16>, vector<256x32xbf16>, vector<392x32xf32> -> vector<392x32xf32>
    %9 = arith.addf %3, %8 : vector<392x32xf32>
    %c0_8 = arith.constant 0 : index
    %c0_9 = arith.constant 0 : index
    %10 = vector.load %arg10[%c0_8, %c0_9] : memref<392x32xf32, #tpu.memory_space<vmem>>, vector<392x32xf32>
    tpu.vector_store %arg10[%c0_8, %c0_9], %9 {strides = array<i32>} : memref<392x32xf32, #tpu.memory_space<vmem>>, vector<392x32xf32>,
    %c0_i32_10 = arith.constant 0 : i32
    %11 = arith.cmpi eq, %arg3, %c0_i32_10 : i32
    %12 = arith.extui %11 : i1 to i32
    %c0_i32_11 = arith.constant 0 : i32
    %13 = arith.cmpi ne, %12, %c0_i32_11 : i32
    scf.if %13 {
      %c0_12 = arith.constant 0 : index
      %c0_13 = arith.constant 0 : index
      %14 = vector.load %arg10[%c0_12, %c0_13] : memref<392x32xf32, #tpu.memory_space<vmem>>, vector<392x32xf32>
      %c0_14 = arith.constant 0 : index
      %c0_15 = arith.constant 0 : index
      %15 = vector.load %arg6[%c0_14, %c0_15] : memref<1x32xf32, #tpu.memory_space<vmem>>, vector<1x32xf32>
      %16 = vector.broadcast %15 : vector<1x32xf32> to vector<392x32xf32>
      %17 = arith.addf %14, %16 : vector<392x32xf32>
      %cst_16 = arith.constant dense<0.000000e+00> : vector<32xf32>
      %18 = vector.multi_reduction <add>, %17, %cst_16 [0] : vector<392x32xf32> to vector<32xf32>
      %19 = vector.shape_cast %18 : vector<32xf32> to vector<1x32xf32>
      %c0_17 = arith.constant 0 : index
      %c0_18 = arith.constant 0 : index
      %c0_19 = arith.constant 0 : index
      %c0_20 = arith.constant 0 : index
      %20 = vector.load %arg8[%c0_17, %c0_18, %c0_19, %c0_20] : memref<1x1x1x32xf32, #tpu.memory_space<vmem>>, vector<1x1x1x32xf32>
      %21 = vector.shape_cast %20 : vector<1x1x1x32xf32> to vector<1x32xf32>
      %22 = vector.shape_cast %19 : vector<1x32xf32> to vector<1x1x1x32xf32>
      tpu.vector_store %arg8[%c0_17, %c0_18, %c0_19, %c0_20], %22 {strides = array<i32>} : memref<1x1x1x32xf32, #tpu.memory_space<vmem>>, vector<1x1x1x32xf32>,
      %23 = arith.mulf %17, %17 : vector<392x32xf32>
      %cst_21 = arith.constant dense<0.000000e+00> : vector<32xf32>
      %24 = vector.multi_reduction <add>, %23, %cst_21 [0] : vector<392x32xf32> to vector<32xf32>
      %25 = vector.shape_cast %24 : vector<32xf32> to vector<1x32xf32>
      %c0_22 = arith.constant 0 : index
      %c0_23 = arith.constant 0 : index
      %c0_24 = arith.constant 0 : index
      %c0_25 = arith.constant 0 : index
      %26 = vector.load %arg9[%c0_22, %c0_23, %c0_24, %c0_25] : memref<1x1x1x32xf32, #tpu.memory_space<vmem>>, vector<1x1x1x32xf32>
      %27 = vector.shape_cast %26 : vector<1x1x1x32xf32> to vector<1x32xf32>
      %28 = vector.shape_cast %25 : vector<1x32xf32> to vector<1x1x1x32xf32>
      tpu.vector_store %arg9[%c0_22, %c0_23, %c0_24, %c0_25], %28 {strides = array<i32>} : memref<1x1x1x32xf32, #tpu.memory_space<vmem>>, vector<1x1x1x32xf32>,
      %29 = arith.truncf %17 : vector<392x32xf32> to vector<392x32xbf16>
      %c0_26 = arith.constant 0 : index
      %c0_27 = arith.constant 0 : index
      %c0_28 = arith.constant 0 : index
      %30 = vector.load %arg7[%c0_26, %c0_27, %c0_28] : memref<1x392x32xbf16, #tpu.memory_space<vmem>>, vector<1x392x32xbf16>
      %31 = vector.shape_cast %30 : vector<1x392x32xbf16> to vector<392x32xbf16>
      %32 = vector.shape_cast %29 : vector<392x32xbf16> to vector<1x392x32xbf16>
      tpu.vector_store %arg7[%c0_26, %c0_27, %c0_28], %32 {strides = array<i32>} : memref<1x392x32xbf16, #tpu.memory_space<vmem>>, vector<1x392x32xbf16>,
    } else {
    }
    return
  }
  func.func @transform_0(%arg0: i32, %arg1: i32, %arg2: i32, %arg3: i32) -> (i32, i32, i32) {
    %c0_i32 = arith.constant 0 : i32
    return %arg2, %arg0, %arg3 : i32, i32, i32
  }
  func.func @transform_1(%arg0: i32, %arg1: i32, %arg2: i32, %arg3: i32) -> (i32, i32, i32) {
    %c0_i32 = arith.constant 0 : i32
    return %arg2, %arg3, %arg1 : i32, i32, i32
  }
  func.func @transform_2(%arg0: i32, %arg1: i32, %arg2: i32, %arg3: i32) -> (i32, i32) {
    %c0_i32 = arith.constant 0 : i32
    %c0_i32_0 = arith.constant 0 : i32
    return %c0_i32, %arg1 : i32, i32
  }
  func.func @transform_3(%arg0: i32, %arg1: i32, %arg2: i32, %arg3: i32) -> (i32, i32, i32) {
    %c0_i32 = arith.constant 0 : i32
    return %arg2, %arg0, %arg1 : i32, i32, i32
  }
  func.func @transform_4(%arg0: i32, %arg1: i32, %arg2: i32, %arg3: i32) -> (i32, i32, i32, i32) {
    %c0_i32 = arith.constant 0 : i32
    %c0_i32_0 = arith.constant 0 : i32
    return %arg2, %arg0, %c0_i32, %arg1 : i32, i32, i32, i32
  }
  func.func @transform_5(%arg0: i32, %arg1: i32, %arg2: i32, %arg3: i32) -> (i32, i32, i32, i32) {
    %c0_i32 = arith.constant 0 : i32
    %c0_i32_0 = arith.constant 0 : i32
    return %arg2, %arg0, %c0_i32, %arg1 : i32, i32, i32, i32
  }
}

module attributes {stable_mosaic.version = 11 : i64} {
  func.func @_ssr_kernel(%arg0: i32, %arg1: memref<784x32xbf16, #tpu.memory_space<vmem>>, %arg2: memref<1x32xf32, #tpu.memory_space<vmem>>, %arg3: memref<1x32xf32, #tpu.memory_space<vmem>>, %arg4: memref<784x32xbf16, #tpu.memory_space<vmem>>) attributes {dimension_semantics = [#tpu.dimension_semantics<parallel>], iteration_bounds = array<i64: 2>, scalar_prefetch = 0 : i64, scratch_operands = 0 : i64, tpu.core_type = #tpu.core_type<tc>, window_params = [{transform_indices = @transform_0, window_bounds = array<i64: 784, 32>}, {pipeline_mode = #tpu.pipeline_mode<synchronous>, transform_indices = @transform_1, window_bounds = array<i64: 1, 32>}, {pipeline_mode = #tpu.pipeline_mode<synchronous>, transform_indices = @transform_2, window_bounds = array<i64: 1, 32>}, {transform_indices = @transform_3, window_bounds = array<i64: 784, 32>}]} {
    %c0 = arith.constant 0 : index
    %c0_0 = arith.constant 0 : index
    %0 = vector.load %arg1[%c0, %c0_0] : memref<784x32xbf16, #tpu.memory_space<vmem>>, vector<784x32xbf16>
    %1 = arith.extf %0 : vector<784x32xbf16> to vector<784x32xf32>
    %c0_1 = arith.constant 0 : index
    %c0_2 = arith.constant 0 : index
    %2 = vector.load %arg2[%c0_1, %c0_2] : memref<1x32xf32, #tpu.memory_space<vmem>>, vector<1x32xf32>
    %3 = vector.broadcast %2 : vector<1x32xf32> to vector<784x32xf32>
    %4 = arith.mulf %1, %3 : vector<784x32xf32>
    %c0_3 = arith.constant 0 : index
    %c0_4 = arith.constant 0 : index
    %5 = vector.load %arg3[%c0_3, %c0_4] : memref<1x32xf32, #tpu.memory_space<vmem>>, vector<1x32xf32>
    %6 = vector.broadcast %5 : vector<1x32xf32> to vector<784x32xf32>
    %7 = arith.addf %4, %6 : vector<784x32xf32>
    %cst = arith.constant 0.000000e+00 : f32
    %8 = vector.broadcast %cst : f32 to vector<784x32xf32>
    %9 = arith.maximumf %7, %8 : vector<784x32xf32>
    %10 = arith.truncf %9 : vector<784x32xf32> to vector<784x32xbf16>
    %c0_5 = arith.constant 0 : index
    %c0_6 = arith.constant 0 : index
    %11 = vector.load %arg4[%c0_5, %c0_6] : memref<784x32xbf16, #tpu.memory_space<vmem>>, vector<784x32xbf16>
    tpu.vector_store %arg4[%c0_5, %c0_6], %10 {strides = array<i32>} : memref<784x32xbf16, #tpu.memory_space<vmem>>, vector<784x32xbf16>,
    return
  }
  func.func @transform_0(%arg0: i32) -> (i32, i32) {
    %c0_i32 = arith.constant 0 : i32
    %c0_i32_0 = arith.constant 0 : i32
    return %arg0, %c0_i32 : i32, i32
  }
  func.func @transform_1(%arg0: i32) -> (i32, i32) {
    %c0_i32 = arith.constant 0 : i32
    %c0_i32_0 = arith.constant 0 : i32
    %c0_i32_1 = arith.constant 0 : i32
    return %c0_i32, %c0_i32_0 : i32, i32
  }
  func.func @transform_2(%arg0: i32) -> (i32, i32) {
    %c0_i32 = arith.constant 0 : i32
    %c0_i32_0 = arith.constant 0 : i32
    %c0_i32_1 = arith.constant 0 : i32
    return %c0_i32, %c0_i32_0 : i32, i32
  }
  func.func @transform_3(%arg0: i32) -> (i32, i32) {
    %c0_i32 = arith.constant 0 : i32
    %c0_i32_0 = arith.constant 0 : i32
    return %arg0, %c0_i32 : i32, i32
  }
}

module attributes {stable_mosaic.version = 11 : i64} {
  func.func @_conv_out_kernel(%arg0: i32, %arg1: memref<784x288xbf16, #tpu.memory_space<vmem>>, %arg2: memref<288x128xbf16, #tpu.memory_space<vmem>>, %arg3: memref<1x128xf32, #tpu.memory_space<vmem>>, %arg4: memref<784x128xf32, #tpu.memory_space<vmem>>) attributes {dimension_semantics = [#tpu.dimension_semantics<parallel>], iteration_bounds = array<i64: 2>, scalar_prefetch = 0 : i64, scratch_operands = 0 : i64, tpu.core_type = #tpu.core_type<tc>, window_params = [{transform_indices = @transform_0, window_bounds = array<i64: 784, 288>}, {pipeline_mode = #tpu.pipeline_mode<synchronous>, transform_indices = @transform_1, window_bounds = array<i64: 288, 128>}, {pipeline_mode = #tpu.pipeline_mode<synchronous>, transform_indices = @transform_2, window_bounds = array<i64: 1, 128>}, {transform_indices = @transform_3, window_bounds = array<i64: 784, 128>}]} {
    %c0 = arith.constant 0 : index
    %c0_0 = arith.constant 0 : index
    %0 = vector.load %arg1[%c0, %c0_0] : memref<784x288xbf16, #tpu.memory_space<vmem>>, vector<784x288xbf16>
    %c0_1 = arith.constant 0 : index
    %c0_2 = arith.constant 0 : index
    %1 = vector.load %arg2[%c0_1, %c0_2] : memref<288x128xbf16, #tpu.memory_space<vmem>>, vector<288x128xbf16>
    %cst = arith.constant dense<0.000000e+00> : vector<784x128xf32>
    %2 = tpu.matmul %0, %1, %cst {dimension_numbers = #tpu.dot_dimension_numbers<[1], [0], [0], [1], [0, 0, 1, 1], [], []>} : vector<784x288xbf16>, vector<288x128xbf16>, vector<784x128xf32> -> vector<784x128xf32>
    %c0_3 = arith.constant 0 : index
    %c0_4 = arith.constant 0 : index
    %3 = vector.load %arg3[%c0_3, %c0_4] : memref<1x128xf32, #tpu.memory_space<vmem>>, vector<1x128xf32>
    %4 = vector.broadcast %3 : vector<1x128xf32> to vector<784x128xf32>
    %5 = arith.addf %2, %4 : vector<784x128xf32>
    %6 = arith.negf %5 : vector<784x128xf32>
    %7 = math.exp %6 : vector<784x128xf32>
    %cst_5 = arith.constant 1.000000e+00 : f32
    %8 = vector.broadcast %cst_5 : f32 to vector<784x128xf32>
    %9 = arith.addf %8, %7 : vector<784x128xf32>
    %10 = arith.divf %8, %9 : vector<784x128xf32>
    %c0_6 = arith.constant 0 : index
    %c0_7 = arith.constant 0 : index
    %11 = vector.load %arg4[%c0_6, %c0_7] : memref<784x128xf32, #tpu.memory_space<vmem>>, vector<784x128xf32>
    tpu.vector_store %arg4[%c0_6, %c0_7], %10 {strides = array<i32>} : memref<784x128xf32, #tpu.memory_space<vmem>>, vector<784x128xf32>,
    return
  }
  func.func @transform_0(%arg0: i32) -> (i32, i32) {
    %c0_i32 = arith.constant 0 : i32
    %c0_i32_0 = arith.constant 0 : i32
    return %arg0, %c0_i32 : i32, i32
  }
  func.func @transform_1(%arg0: i32) -> (i32, i32) {
    %c0_i32 = arith.constant 0 : i32
    %c0_i32_0 = arith.constant 0 : i32
    %c0_i32_1 = arith.constant 0 : i32
    return %c0_i32, %c0_i32_0 : i32, i32
  }
  func.func @transform_2(%arg0: i32) -> (i32, i32) {
    %c0_i32 = arith.constant 0 : i32
    %c0_i32_0 = arith.constant 0 : i32
    %c0_i32_1 = arith.constant 0 : i32
    return %c0_i32, %c0_i32_0 : i32, i32
  }
  func.func @transform_3(%arg0: i32) -> (i32, i32) {
    %c0_i32 = arith.constant 0 : i32
    %c0_i32_0 = arith.constant 0 : i32
    return %arg0, %c0_i32 : i32, i32
  }
}

</mosaic_0001>

<bundles_post_ra>
// kernel: decoder_forward.6
= control target key start
LH: loop header
LB: loop body
LE: loop exit
PB: predicated region body
PF: predicated region fallthrough
CT: control target
= control target key end

     0   :  { %8 = vsyncpa [#allocation4], 0  ;;  %s3066_s12 = smov [#allocation3]   ;;  %s3509_s0 = inlined_call_operand.vmem [shape: bf16[1,2,8], index: 0, kind: input, shape index: {}]   ;;  %s3510_s1 = inlined_call_operand.hbm [shape: bf16[1,8,6272], index: 1, kind: input, shape index: {}]   ;;  %s3511_s2 = inlined_call_operand.vmem [shape: f32[1,6272], index: 2, kind: input, shape index: {}]   ;;  %s3512_s3 = inlined_call_operand.vmem [shape: bf16[1,2,6272], index: 3, kind: output, shape index: {}]  }
   0x1   :  { %s17_s13 = sshll.u32 %s3066_s12, 4  ;;  %s3042_s16 = scalar_lea.hbm %s3510_s1, 3136  ;;  %s18_s13 = int_to_ptr.vmem [resolvable:$true] %s17_s13 }
   0x2   :  { %p3043_p0 = scmp.ne.s32.totalorder %s3510_s1, %s3042_s16  ;;  %p3046_p1 = scmp.lt.u32.totalorder %s3042_s16, %s3510_s1 }
   0x4   :  { %p3048_p2 = pnand %p3046_p1, %p3043_p0 }
   0x6   :  { %3051 = shalt.err (!%p3048_p2)
}
   0x7   :  { %s3052_s21 = scalar_lea.vmem %s18_s13, 3136  ;;  %p3057_p4 = scmp.lt.s32.totalorder %s18_s13, %s18_s13 }
   0x8   :  { %p3053_p3 = scmp.ne.s32.totalorder %s18_s13, %s3052_s21  ;;  %p3058_p5 = scmp.lt.s32.totalorder %s3052_s21, %s3052_s21 }
   0xa   :  { %p3059_p6 = por %p3058_p5, %p3057_p4 }
   0xc   :  { %p3060_p7 = pnand %p3059_p6, %p3053_p3 }
   0xe   :  { %3063 = shalt.err (!%p3060_p7)
}
   0xf   :  { %20 = dma.hbm_to_vmem [thread:$0]  %s3510_s1, 3136, %s18_s13, [#allocation4]  }
  0x10   :  { %3064 = dma.done.wait [#allocation4], 3136  }
  0x11   :  { %3065 = vsyncadd [#allocation4], 4294964160  ;;  %v3067_v0 = vmov 0   ;;  %v3068_v1 = vmov 0.0   ;;  %v58_v2 = vld [vmem:[#allocation3] sm:$0xff]  ;;  %vm210_vm0 = vcmask 1043456  }
  0x12   :  { %390 = vmatprep.mubr.bf16.mxu0 %v3067_v0  ;;  %431 = vmatprep.mubr.bf16.mxu1 %v3067_v0  ;;  %43 = vst [vmem:[#allocation2 + $0x60] sm:$0x3] %v3068_v1  ;;  %v59_v3 = vld [vmem:[#allocation3 + $0x8] sm:$0xff]  ;;  %v2856_v4 = vcombine.high %v58_v2, %v58_v2  ;;  %v2855_v6 = vcombine.low %v58_v2, %v58_v2  ;;  %v60_v8 = vld [vmem:[#allocation3 + $0x10] sm:$0xff]  ;;  %v61_v9 = vld [vmem:[#allocation3 + $0x18] sm:$0xff]  ;;  %vm206_vm1 = vcmask 64512  }
  0x13   :  { %v2858_v5 = vcombine.high %v59_v3, %v59_v3  ;;  %v2857_v7 = vcombine.low %v59_v3, %v59_v3  ;;  %v2860_v10 = vcombine.high %v60_v8, %v60_v8  ;;  %v2862_v11 = vcombine.high %v61_v9, %v61_v9  ;;  %v62_v16 = vld [vmem:[#allocation3 + $0x20] sm:$0xff]  ;;  %v63_v17 = vld [vmem:[#allocation3 + $0x28] sm:$0xff]  ;;  %v3114_v18 = vld [vmem:[%s3509_s0] sm:$0x1] }
  0x14   :  { %v2859_v12 = vcombine.low %v60_v8, %v60_v8  ;;  %v2861_v13 = vcombine.low %v61_v9, %v61_v9  ;;  %2904 = vmatprep.subr.msk.bf16.mxu0 %vm210_vm0, %v2856_v4  ;;  %v212_v14 = vsel %vm210_vm0, %v2855_v6, 0  ;;  %v2864_v21 = vcombine.high %v62_v16, %v62_v16  ;;  %v64_v25 = vld [vmem:[#allocation3 + $0x30] sm:$0xff]  ;;  %v65_v26 = vld [vmem:[#allocation3 + $0x38] sm:$0xff]  ;;  %v66_v33 = vld [vmem:[#allocation3 + $0x40] sm:$0xff] }
  0x15   :  { %2906 = vmatprep.subr.msk.bf16.mxu1 %vm210_vm0, %v2858_v5  ;;  %v218_v15 = vsel %vm210_vm0, %v2857_v7, 0  ;;  %359 = vmatpush1.bf16.msra.mxu0 %v212_v14  ;;  %v2866_v22 = vcombine.high %v63_v17, %v63_v17  ;;  %v2863_v23 = vcombine.low %v62_v16, %v62_v16  ;;  %v2865_v24 = vcombine.low %v63_v17, %v63_v17  ;;  %v67_v34 = vld [vmem:[#allocation3 + $0x48] sm:$0xff]  ;;  %v68_v41 = vld [vmem:[#allocation3 + $0x50] sm:$0xff]  ;;  %v69_v42 = vld [vmem:[#allocation3 + $0x58] sm:$0xff] }
  0x16   :  { %400 = vmatpush1.bf16.msra.mxu1 %v218_v15  ;;  %2908 = vmatprep.subr.msk.bf16.mxu0 %vm210_vm0, %v2860_v10  ;;  %v224_v19 = vsel %vm210_vm0, %v2859_v12, 0  ;;  %v230_v20 = vsel %vm210_vm0, %v2861_v13, 0  ;;  %v2868_v29 = vcombine.high %v64_v25, %v64_v25  ;;  %v2870_v30 = vcombine.high %v65_v26, %v65_v26  ;;  %v70_v49 = vld [vmem:[#allocation3 + $0x60] sm:$0xff]  ;;  %v71_v50 = vld [vmem:[#allocation3 + $0x68] sm:$0xff]  ;;  %v72_v57 = vld [vmem:[#allocation3 + $0x70] sm:$0xff] }
  0x17   :  { %2910 = vmatprep.subr.msk.bf16.mxu1 %vm210_vm0, %v2862_v11  ;;  %v236_v27 = vsel %vm210_vm0, %v2863_v23, 0  ;;  %v242_v28 = vsel %vm210_vm0, %v2865_v24, 0  ;;  %v2867_v31 = vcombine.low %v64_v25, %v64_v25  ;;  %v2869_v32 = vcombine.low %v65_v26, %v65_v26  ;;  %v73_v58 = vld [vmem:[#allocation3 + $0x78] sm:$0xff]  ;;  %v74_v3 = vld [vmem:[#allocation3 + $0x80] sm:$0xff]  ;;  %v75_v4 = vld [vmem:[#allocation3 + $0x88] sm:$0xff] }
  0x18   :  { %2905 = vmatmul.mubr.msk.bf16.vlgmr.msra.gmra.mrb[0].mxu0 %vm206_vm1, %v3114_v18  ;;  %v2872_v37 = vcombine.high %v66_v33, %v66_v33  ;;  %v2874_v38 = vcombine.high %v67_v34, %v67_v34  ;;  %v2871_v39 = vcombine.low %v66_v33, %v66_v33  ;;  %v2873_v40 = vcombine.low %v67_v34, %v67_v34  ;;  %v76_v11 = vld [vmem:[#allocation3 + $0x90] sm:$0xff]  ;;  %v77_v12 = vld [vmem:[#allocation3 + $0x98] sm:$0xff] }
  0x19   :  { %2907 = vmatmul.mubr.msk.bf16.vlgmr.msra.gmra.mrb[0].mxu1 %vm206_vm1, %v3114_v18  ;;  %441 = vmatpush1.bf16.msra.mxu0 %v224_v19  ;;  %v248_v35 = vsel %vm210_vm0, %v2867_v31, 0  ;;  %v254_v36 = vsel %vm210_vm0, %v2869_v32, 0  ;;  %v2876_v45 = vcombine.high %v68_v41, %v68_v41  ;;  %v2878_v46 = vcombine.high %v69_v42, %v69_v42 }
  0x1a   :  { %482 = vmatpush1.bf16.msra.mxu1 %v230_v20  ;;  %472 = vmatprep.mubr.bf16.mxu0 %v3067_v0  ;;  %v260_v43 = vsel %vm210_vm0, %v2871_v39, 0  ;;  %v266_v44 = vsel %vm210_vm0, %v2873_v40, 0  ;;  %v2875_v47 = vcombine.low %v68_v41, %v68_v41  ;;  %v2877_v48 = vcombine.low %v69_v42, %v69_v42  ;;  %v78_v20 = vld [vmem:[#allocation3 + $0xa0] sm:$0xff] }
  0x1b   :  { %513 = vmatprep.mubr.bf16.mxu1 %v3067_v0  ;;  %2912 = vmatprep.subr.msk.bf16.mxu0 %vm210_vm0, %v2864_v21  ;;  %v2880_v53 = vcombine.high %v70_v49, %v70_v49  ;;  %v2882_v54 = vcombine.high %v71_v50, %v71_v50  ;;  %v2879_v55 = vcombine.low %v70_v49, %v70_v49  ;;  %v79_v21 = vld [vmem:[#allocation3 + $0xa8] sm:$0xff]  ;;  %vm3069_vm2 = vmmov 0  }
  0x1c   :  { %2914 = vmatprep.subr.msk.bf16.mxu1 %vm210_vm0, %v2866_v22  ;;  %v272_v51 = vsel %vm210_vm0, %v2875_v47, 0  ;;  %v278_v52 = vsel %vm210_vm0, %v2877_v48, 0  ;;  %v2881_v56 = vcombine.low %v71_v50, %v71_v50  ;;  %v2884_v61 = vcombine.high %v72_v57, %v72_v57 }
  0x1d   :  { %v284_v59 = vsel %vm210_vm0, %v2879_v55, 0  ;;  %v2886_v62 = vcombine.high %v73_v58, %v73_v58  ;;  %v2883_v63 = vcombine.low %v72_v57, %v72_v57  ;;  %v2885_v2 = vcombine.low %v73_v58, %v73_v58 }
  0x1e   :  { %v290_v60 = vsel %vm210_vm0, %v2881_v56, 0  ;;  %v2888_v7 = vcombine.high %v74_v3, %v74_v3  ;;  %v2890_v8 = vcombine.high %v75_v4, %v75_v4  ;;  %v2887_v9 = vcombine.low %v74_v3, %v74_v3 }
  0x1f   :  { %v296_v5 = vsel %vm210_vm0, %v2883_v63, 0  ;;  %v302_v6 = vsel %vm210_vm0, %v2885_v2, 0  ;;  %v2889_v10 = vcombine.low %v75_v4, %v75_v4  ;;  %v2892_v15 = vcombine.high %v76_v11, %v76_v11 }
  0x20   :  { %2909 = vmatmul.mubr.msk.bf16.vlgmr.msra.gmra.mrb[4].mxu0 %vm206_vm1, %v3114_v18  ;;  %v308_v13 = vsel %vm210_vm0, %v2887_v9, 0  ;;  %v2894_v16 = vcombine.high %v77_v12, %v77_v12  ;;  %v2891_v17 = vcombine.low %v76_v11, %v76_v11  ;;  %v2893_v19 = vcombine.low %v77_v12, %v77_v12 }
  0x21   :  { %2911 = vmatmul.mubr.msk.bf16.vlgmr.msra.gmra.mrb[4].mxu1 %vm206_vm1, %v3114_v18  ;;  %523 = vmatpush1.bf16.msra.mxu0 %v236_v27  ;;  %v314_v14 = vsel %vm210_vm0, %v2889_v10, 0  ;;  %v2896_v24 = vcombine.high %v78_v20, %v78_v20  ;;  %v2898_v25 = vcombine.high %v79_v21, %v79_v21  ;;  %v2895_v26 = vcombine.low %v78_v20, %v78_v20 }
  0x22   :  { %564 = vmatpush1.bf16.msra.mxu1 %v242_v28  ;;  %554 = vmatprep.mubr.bf16.mxu0 %v3067_v0  ;;  %v320_v22 = vsel %vm210_vm0, %v2891_v17, 0  ;;  %v326_v23 = vsel %vm210_vm0, %v2893_v19, 0  ;;  %v2897_v27 = vcombine.low %v79_v21, %v79_v21  ;;  %v80_v28 = vld [vmem:[#allocation3 + $0xb0] sm:$0xff]  ;;  %v1436_v40 = vlaneseq  ;;  %v1698_v21 = vld [vmem:[%s3511_s2 + $0x8] sm:$0xff] }
  0x23   :  { %595 = vmatprep.mubr.bf16.mxu1 %v3067_v0  ;;  %2916 = vmatprep.subr.msk.bf16.mxu0 %vm210_vm0, %v2868_v29  ;;  %v81_v29 = vld [vmem:[#allocation3 + $0xb8] sm:$0xff]  ;;  %v2900_v32 = vcombine.high %v80_v28, %v80_v28  ;;  %v2899_v34 = vcombine.low %v80_v28, %v80_v28 }
  0x24   :  { %2918 = vmatprep.subr.msk.bf16.mxu1 %vm210_vm0, %v2870_v30  ;;  %v332_v30 = vsel %vm210_vm0, %v2895_v26, 0  ;;  %v338_v31 = vsel %vm210_vm0, %v2897_v27, 0  ;;  %v2902_v33 = vcombine.high %v81_v29, %v81_v29 }
  0x28   :  { %2913 = vmatmul.mubr.msk.bf16.vlgmr.msra.gmra.mrb[8].mxu0 %vm206_vm1, %v3114_v18 }
  0x29   :  { %2915 = vmatmul.mubr.msk.bf16.vlgmr.msra.gmra.mrb[8].mxu1 %vm206_vm1, %v3114_v18  ;;  %605 = vmatpush1.bf16.msra.mxu0 %v248_v35  ;;  %v2901_v35 = vcombine.low %v81_v29, %v81_v29 }
  0x2a   :  { %646 = vmatpush1.bf16.msra.mxu1 %v254_v36  ;;  %636 = vmatprep.mubr.bf16.mxu0 %v3067_v0  ;;  %v344_v36 = vsel %vm210_vm0, %v2899_v34, 0 }
  0x2b   :  { %677 = vmatprep.mubr.bf16.mxu1 %v3067_v0  ;;  %2920 = vmatprep.subr.msk.bf16.mxu0 %vm210_vm0, %v2872_v37  ;;  %v350_v37 = vsel %vm210_vm0, %v2901_v35, 0 }
  0x2c   :  { %2922 = vmatprep.subr.msk.bf16.mxu1 %vm210_vm0, %v2874_v38  ;;  %v3041_v38 = vld [vmem:[#allocation3 + $0xc0] ss:$0 sps:$4 sm:$0xff]  }
  0x2d   :  { %v356_v39 = vsel %vm210_vm0, %v3041_v38, 0 }
  0x30   :  { %2917 = vmatmul.mubr.msk.bf16.vlgmr.msra.gmra.mrb[12].mxu0 %vm206_vm1, %v3114_v18 }
  0x31   :  { %2919 = vmatmul.mubr.msk.bf16.vlgmr.msra.gmra.mrb[12].mxu1 %vm206_vm1, %v3114_v18  ;;  %687 = vmatpush1.bf16.msra.mxu0 %v260_v43 }
  0x32   :  { %728 = vmatpush1.bf16.msra.mxu1 %v266_v44  ;;  %718 = vmatprep.mubr.bf16.mxu0 %v3067_v0 }
  0x33   :  { %759 = vmatprep.mubr.bf16.mxu1 %v3067_v0  ;;  %2924 = vmatprep.subr.msk.bf16.mxu0 %vm210_vm0, %v2876_v45 }
  0x34   :  { %2926 = vmatprep.subr.msk.bf16.mxu1 %vm210_vm0, %v2878_v46 }
  0x38   :  { %2921 = vmatmul.mubr.msk.bf16.vlgmr.msra.gmra.mrb[16].mxu0 %vm206_vm1, %v3114_v18 }
  0x39   :  { %2923 = vmatmul.mubr.msk.bf16.vlgmr.msra.gmra.mrb[16].mxu1 %vm206_vm1, %v3114_v18  ;;  %769 = vmatpush1.bf16.msra.mxu0 %v272_v51 }
  0x3a   :  { %810 = vmatpush1.bf16.msra.mxu1 %v278_v52  ;;  %800 = vmatprep.mubr.bf16.mxu0 %v3067_v0 }
  0x3b   :  { %841 = vmatprep.mubr.bf16.mxu1 %v3067_v0  ;;  %2928 = vmatprep.subr.msk.bf16.mxu0 %vm210_vm0, %v2880_v53 }
  0x3c   :  { %2930 = vmatprep.subr.msk.bf16.mxu1 %vm210_vm0, %v2882_v54 }
  0x40   :  { %2925 = vmatmul.mubr.msk.bf16.vlgmr.msra.gmra.mrb[20].mxu0 %vm206_vm1, %v3114_v18 }
  0x41   :  { %2927 = vmatmul.mubr.msk.bf16.vlgmr.msra.gmra.mrb[20].mxu1 %vm206_vm1, %v3114_v18  ;;  %851 = vmatpush1.bf16.msra.mxu0 %v284_v59 }
  0x42   :  { %892 = vmatpush1.bf16.msra.mxu1 %v290_v60  ;;  %882 = vmatprep.mubr.bf16.mxu0 %v3067_v0 }
  0x43   :  { %923 = vmatprep.mubr.bf16.mxu1 %v3067_v0  ;;  %2932 = vmatprep.subr.msk.bf16.mxu0 %vm210_vm0, %v2884_v61 }
  0x44   :  { %2934 = vmatprep.subr.msk.bf16.mxu1 %vm210_vm0, %v2886_v62 }
  0x48   :  { %2929 = vmatmul.mubr.msk.bf16.vlgmr.msra.gmra.mrb[24].mxu0 %vm206_vm1, %v3114_v18 }
  0x49   :  { %2931 = vmatmul.mubr.msk.bf16.vlgmr.msra.gmra.mrb[24].mxu1 %vm206_vm1, %v3114_v18  ;;  %933 = vmatpush1.bf16.msra.mxu0 %v296_v5 }
  0x4a   :  { %974 = vmatpush1.bf16.msra.mxu1 %v302_v6  ;;  %964 = vmatprep.mubr.bf16.mxu0 %v3067_v0 }
  0x4b   :  { %1005 = vmatprep.mubr.bf16.mxu1 %v3067_v0  ;;  %2936 = vmatprep.subr.msk.bf16.mxu0 %vm210_vm0, %v2888_v7 }
  0x4c   :  { %2938 = vmatprep.subr.msk.bf16.mxu1 %vm210_vm0, %v2890_v8 }
  0x50   :  { %2933 = vmatmul.mubr.msk.bf16.vlgmr.msra.gmra.mrb[28].mxu0 %vm206_vm1, %v3114_v18 }
  0x51   :  { %2935 = vmatmul.mubr.msk.bf16.vlgmr.msra.gmra.mrb[28].mxu1 %vm206_vm1, %v3114_v18  ;;  %1015 = vmatpush1.bf16.msra.mxu0 %v308_v13 }
  0x52   :  { %1056 = vmatpush1.bf16.msra.mxu1 %v314_v14  ;;  %1046 = vmatprep.mubr.bf16.mxu0 %v3067_v0 }
  0x53   :  { %1087 = vmatprep.mubr.bf16.mxu1 %v3067_v0  ;;  %2940 = vmatprep.subr.msk.bf16.mxu0 %vm210_vm0, %v2892_v15 }
  0x54   :  { %2942 = vmatprep.subr.msk.bf16.mxu1 %vm210_vm0, %v2894_v16 }
  0x58   :  { %2937 = vmatmul.mubr.msk.bf16.vlgmr.msra.gmra.mrb[32].mxu0 %vm206_vm1, %v3114_v18 }
  0x59   :  { %2939 = vmatmul.mubr.msk.bf16.vlgmr.msra.gmra.mrb[32].mxu1 %vm206_vm1, %v3114_v18  ;;  %1097 = vmatpush1.bf16.msra.mxu0 %v320_v22 }
  0x5a   :  { %1138 = vmatpush1.bf16.msra.mxu1 %v326_v23  ;;  %1128 = vmatprep.mubr.bf16.mxu0 %v3067_v0 }
  0x5b   :  { %1169 = vmatprep.mubr.bf16.mxu1 %v3067_v0  ;;  %2944 = vmatprep.subr.msk.bf16.mxu0 %vm210_vm0, %v2896_v24 }
  0x5c   :  { %2946 = vmatprep.subr.msk.bf16.mxu1 %vm210_vm0, %v2898_v25 }
  0x60   :  { %2941 = vmatmul.mubr.msk.bf16.vlgmr.msra.gmra.mrb[36].mxu0 %vm206_vm1, %v3114_v18 }
  0x61   :  { %2943 = vmatmul.mubr.msk.bf16.vlgmr.msra.gmra.mrb[36].mxu1 %vm206_vm1, %v3114_v18  ;;  %1179 = vmatpush1.bf16.msra.mxu0 %v332_v30 }
  0x62   :  { %1220 = vmatpush1.bf16.msra.mxu1 %v338_v31  ;;  %1210 = vmatprep.mubr.bf16.mxu0 %v3067_v0 }
  0x63   :  { %1251 = vmatprep.mubr.bf16.mxu1 %v3067_v0  ;;  %2948 = vmatprep.subr.msk.bf16.mxu0 %vm210_vm0, %v2900_v32 }
  0x64   :  { %2950 = vmatprep.subr.msk.bf16.mxu1 %vm210_vm0, %v2902_v33 }
  0x68   :  { %2945 = vmatmul.mubr.msk.bf16.vlgmr.msra.gmra.mrb[40].mxu0 %vm206_vm1, %v3114_v18 }
  0x69   :  { %2947 = vmatmul.mubr.msk.bf16.vlgmr.msra.gmra.mrb[40].mxu1 %vm206_vm1, %v3114_v18  ;;  %1261 = vmatpush1.bf16.msra.mxu0 %v344_v36 }
  0x6a   :  { %1302 = vmatpush1.bf16.msra.mxu1 %v350_v37  ;;  %1292 = vmatprep.mubr.bf16.mxu0 %v3067_v0 }
  0x6b   :  { %1333 = vmatprep.mubr.bf16.mxu1 %v3067_v0  ;;  %2981 = vmatprep.subr.bf16.mxu0 %v3068_v1  ;;  %v3235_v0 = vshrl.u32 %v1436_v40, 7 }
  0x6d   :  { %v3238_v41 = vsub.s32 0, %v3235_v0  ;;  %v3241_v42 = vsub.s32 1, %v3235_v0  ;;  %v3244_v43 = vsub.s32 2, %v3235_v0  ;;  %v3247_v44 = vsub.s32 3, %v3235_v0 }
  0x6e   :  { %v3257_v53 = vsub.s32 4, %v3235_v0  ;;  %v3260_v54 = vsub.s32 5, %v3235_v0  ;;  %v3263_v55 = vsub.s32 6, %v3235_v0  ;;  %v3266_v56 = vsub.s32 7, %v3235_v0 }
  0x6f   :  { %v1746_v33 = vrot.slane %v1698_v21, %v3238_v41  ;;  %v1750_v34 = vrot.slane %v1698_v21, %v3241_v42  ;;  %v1754_v35 = vrot.slane %v1698_v21, %v3244_v43  ;;  %v1758_v36 = vrot.slane %v1698_v21, %v3247_v44 }
  0x70   :  { %2949 = vmatmul.mubr.msk.bf16.vlgmr.msra.gmra.mrb[44].mxu0 %vm206_vm1, %v3114_v18 }
  0x71   :  { %2951 = vmatmul.mubr.msk.bf16.vlgmr.msra.gmra.mrb[44].mxu1 %vm206_vm1, %v3114_v18  ;;  %2982 = vmatpush3.bf16.msra.mxu0 %v356_v39 }
  0x72   :  { %2983 = vmatprep.mubr.msk.bf16.mxu0 %vm3069_vm2, %v3068_v1  ;;  %v1697_v1 = vld [vmem:[%s3511_s2] sm:$0xff] }
  0x73   :  { %v1714_v46 = vrot.slane %v1697_v1, %v3238_v41  ;;  %v1718_v47 = vrot.slane %v1697_v1, %v3241_v42  ;;  %v1722_v48 = vrot.slane %v1697_v1, %v3244_v43  ;;  %v1726_v49 = vrot.slane %v1697_v1, %v3247_v44 }
  0x74   :  { %v1730_v2 = vrot.slane %v1697_v1, %v3257_v53  ;;  %v1734_v3 = vrot.slane %v1697_v1, %v3260_v54  ;;  %v1738_v8 = vrot.slane %v1697_v1, %v3263_v55  ;;  %v1742_v9 = vrot.slane %v1697_v1, %v3266_v56 }
  0x75   :  { %v1907_v51 = vcombine.low %v1714_v46, %v1718_v47  ;;  %v1908_v52 = vcombine.low %v1722_v48, %v1726_v49  ;;  %v3071_v1 = vmov 1966171168   ;;  %v1941_v47 = vcombine.low %v1746_v33, %v1750_v34 }
  0x76   :  { %v1924_v14 = vcombine.low %v1730_v2, %v1734_v3  ;;  %v1925_v17 = vcombine.low %v1738_v8, %v1742_v9  ;;  %v1942_v48 = vcombine.low %v1754_v35, %v1758_v36  ;;  %v1762_v49 = vrot.slane %v1698_v21, %v3257_v53 }
  0x78   :  { %2984 = vmatmul.mubr.msk.bf16.vlgmr.msra.gmra.mrb[48].mxu0 %vm206_vm1, %v3114_v18  ;;  %v3070_v18 = vmov 1983009808  }
  0x79   :  { %v1434_v45 = vunpack.c.l.s4 %v3070_v18  ;;  %v2533_v18 = vunpack.c.l.s4 %v3071_v1 }
  0x7b   :  { %v1435_v50 = vunpack.c.0.s8 %v1434_v45  ;;  %v2534_v3 = vunpack.c.0.s8 %v2533_v18 }
  0x7d   :  { %v3269_v57 = vsub.s32 %v1435_v50, %v3235_v0  ;;  %v1766_v50 = vrot.slane %v1698_v21, %v3260_v54 }
  0x7f   :  { %v1915_v62 = vrot.slane %v1907_v51, %v3269_v57  ;;  %v1922_v63 = vrot.slane %v1908_v52, %v3269_v57  ;;  %v1932_v24 = vrot.slane %v1924_v14, %v3269_v57  ;;  %v1939_v28 = vrot.slane %v1925_v17, %v3269_v57  ;;  %v3302_v17 = vld [vmem:[%s3511_s2 + $0x10] sm:$0xff] }
  0x80   :  { %v1949_v9 = vrot.slane %v1941_v47, %v3269_v57 }
  0x81   :  { %v1923_v16 = vcombine.low %v1915_v62, %v1922_v63  ;;  %v1940_v46 = vcombine.low %v1932_v24, %v1939_v28  ;;  %v1770_v62 = vrot.slane %v1698_v21, %v3263_v55  ;;  %v1774_v63 = vrot.slane %v1698_v21, %v3266_v56 }
  0x82   :  { %v1778_v28 = vrot.slane %v3302_v17, %v3238_v41 }
  0xeb   :  { %v392_v58 = vpop.f32.mrb[0].mxu0 }
  0xec   :  { %v433_v59 = vpop.f32.mrb[0].mxu1  ;;  %v394_v60 = vpop.f32.mrb[1].mxu0 }
  0xed   :  { %v435_v61 = vpop.f32.mrb[1].mxu1  ;;  %v1431_v4 = vcombine.low %v392_v58, %v394_v60  ;;  %v396_v6 = vpop.f32.mrb[2].mxu0 }
  0xee   :  { %v1432_v5 = vcombine.low %v433_v59, %v435_v61  ;;  %v437_v7 = vpop.f32.mrb[2].mxu1  ;;  %v397_v10 = vpop.f32.mrb[3].mxu0 }
  0xef   :  { %v438_v11 = vpop.f32.mrb[3].mxu1  ;;  %v1439_v12 = vrot.slane %v1431_v4, %v3269_v57  ;;  %v1956_v10 = vrot.slane %v1942_v48, %v3269_v57 }
  0xf0   :  { %v1446_v13 = vrot.slane %v1432_v5, %v3269_v57 }
  0xf2   :  { %v1447_v15 = vcombine.low %v1439_v12, %v1446_v13  ;;  %v1958_v13 = vcombine.low %v1762_v49, %v1766_v50 }
  0xf3   :  { %v474_v19 = vpop.f32.mrb[4].mxu0 }
  0xf4   :  { %v515_v20 = vpop.f32.mrb[4].mxu1  ;;  %v476_v22 = vpop.f32.mrb[5].mxu0  ;;  %v2131_v25 = vadd.f32 %v1923_v16, %v1447_v15 }
  0xf5   :  { %v517_v23 = vpop.f32.mrb[5].mxu1  ;;  %v1448_v26 = vcombine.low %v474_v19, %v476_v22  ;;  %v478_v29 = vpop.f32.mrb[6].mxu0  ;;  %v3306_v22 = vsub.s32 %v2534_v3, %v3235_v0  ;;  %v1782_v0 = vrot.slane %v3302_v17, %v3241_v42 }
  0xf6   :  { %v1449_v27 = vcombine.low %v515_v20, %v517_v23  ;;  %v519_v30 = vpop.f32.mrb[6].mxu1  ;;  %v479_v31 = vpop.f32.mrb[7].mxu0  ;;  %v2144_v37 = vmax.f32 %v2131_v25, 0.0  ;;  %v1959_v20 = vcombine.low %v1770_v62, %v1774_v63 }
  0xf7   :  { %v520_v32 = vpop.f32.mrb[7].mxu1  ;;  %v1456_v38 = vrot.slane %v1448_v26, %v3269_v57  ;;  %v1957_v26 = vcombine.low %v1949_v9, %v1956_v10 }
  0xf8   :  { %v1463_v39 = vrot.slane %v1449_v27, %v3269_v57  ;;  %v2170_v40 = vcombine.high %v2144_v37, %v2144_v37  ;;  %v2177_v51 = vrot.slane %v2144_v37, %v3269_v57  ;;  %v1966_v27 = vrot.slane %v1958_v13, %v3269_v57 }
  0xf9   :  { %v1973_v36 = vrot.slane %v1959_v20, %v3269_v57  ;;  %v1786_v37 = vrot.slane %v3302_v17, %v3244_v43  ;;  %v1802_v13 = vrot.slane %v3302_v17, %v3263_v55 }
  0xfa   :  { %v1464_v45 = vcombine.low %v1456_v38, %v1463_v39  ;;  %v2184_v52 = vrot.slane %v2170_v40, %v3269_v57  ;;  %v2185_v14 = vcombine.high %v2177_v51, %v2177_v51  ;;  %v1790_v38 = vrot.slane %v3302_v17, %v3247_v44 }
  0xfb   :  { %v556_v58 = vpop.f32.mrb[8].mxu0 }
  0xfc   :  { %v597_v59 = vpop.f32.mrb[8].mxu1  ;;  %v558_v60 = vpop.f32.mrb[9].mxu0  ;;  %v2186_v2 = vcombine.high %v2184_v52, %v2184_v52  ;;  %v2132_v4 = vadd.f32 %v1940_v46, %v1464_v45  ;;  %v2954_v29 = vpack.c.bf16 %v2185_v14, %v2177_v51  ;;  %v1976_v62 = vcombine.low %v1786_v37, %v1790_v38 }
  0xfd   :  { %v599_v61 = vpop.f32.mrb[9].mxu1  ;;  %v1465_v5 = vcombine.low %v556_v58, %v558_v60  ;;  %v560_v6 = vpop.f32.mrb[10].mxu0  ;;  %v1806_v14 = vrot.slane %v3302_v17, %v3266_v56 }
  0xfe   :  { %v601_v7 = vpop.f32.mrb[10].mxu1  ;;  %v1466_v8 = vcombine.low %v597_v59, %v599_v61  ;;  %v561_v11 = vpop.f32.mrb[11].mxu0  ;;  %v2145_v15 = vmax.f32 %v2132_v4, 0.0  ;;  %v2955_v21 = vpack.c.bf16 %v2186_v2, %v2184_v52  ;;  %v2538_v51 = vrot.slane %v2954_v29, %v3306_v22 }
  0xff   :  { %v602_v12 = vpop.f32.mrb[11].mxu1  ;;  %v1473_v16 = vrot.slane %v1465_v5, %v3269_v57  ;;  %v1975_v59 = vcombine.low %v1778_v28, %v1782_v0  ;;  %v1974_v4 = vcombine.low %v1966_v27, %v1973_v36  ;;  %v1794_v7 = vrot.slane %v3302_v17, %v3257_v53 }
 0x100   :  { %v1480_v19 = vrot.slane %v1466_v8, %v3269_v57  ;;  %v2187_v23 = vcombine.high %v2145_v15, %v2145_v15  ;;  %v2194_v24 = vrot.slane %v2145_v15, %v3269_v57  ;;  %v2545_v39 = vrot.slane %v2955_v21, %v3306_v22 }
 0x101   :  { %v1798_v8 = vrot.slane %v3302_v17, %v3260_v54  ;;  %v1983_v12 = vrot.slane %v1975_v59, %v3269_v57  ;;  %v1990_v21 = vrot.slane %v1976_v62, %v3269_v57  ;;  %v1993_v36 = vcombine.low %v1802_v13, %v1806_v14 }
 0x102   :  { %v1481_v25 = vcombine.low %v1473_v16, %v1480_v19  ;;  %v2201_v30 = vrot.slane %v2187_v23, %v3269_v57  ;;  %v2202_v31 = vcombine.high %v2194_v24, %v2194_v24  ;;  %v2560_v63 = vcombine.low %v2538_v51, %v2545_v39 }
 0x103   :  { %v638_v32 = vpop.f32.mrb[12].mxu0  ;;  %v2007_v51 = vrot.slane %v1993_v36, %v3269_v57 }
 0x104   :  { %v679_v33 = vpop.f32.mrb[12].mxu1  ;;  %v640_v34 = vpop.f32.mrb[13].mxu0  ;;  %v2203_v40 = vcombine.high %v2201_v30, %v2201_v30  ;;  %v2956_v1 = vpack.c.bf16 %v2202_v31, %v2194_v24  ;;  %v2133_v47 = vadd.f32 %v1957_v26, %v1481_v25  ;;  %v2568_v23 = vrot.slane %v2560_v63, %v3306_v22 }
 0x105   :  { %v681_v35 = vpop.f32.mrb[13].mxu1  ;;  %v1482_v18 = vcombine.low %v638_v32, %v640_v34  ;;  %v642_v45 = vpop.f32.mrb[14].mxu0  ;;  %v1992_v32 = vcombine.low %v1794_v7, %v1798_v8 }
 0x106   :  { %v683_v46 = vpop.f32.mrb[14].mxu1  ;;  %v1483_v48 = vcombine.low %v679_v33, %v681_v35  ;;  %v643_v49 = vpop.f32.mrb[15].mxu0  ;;  %v2957_v52 = vpack.c.bf16 %v2203_v40, %v2201_v30  ;;  %v2146_v60 = vmax.f32 %v2133_v47, 0.0  ;;  %v2552_v2 = vrot.slane %v2956_v1, %v3306_v22  ;;  %v3343_v33 = vld [vmem:[%s3511_s2 + $0x18] sm:$0xff] }
 0x107   :  { %v684_v50 = vpop.f32.mrb[15].mxu1  ;;  %v1490_v58 = vrot.slane %v1482_v18, %v3269_v57  ;;  %v1991_v40 = vcombine.low %v1983_v12, %v1990_v21  ;;  %v1810_v1 = vrot.slane %v3343_v33, %v3238_v41  ;;  %v1814_v47 = vrot.slane %v3343_v33, %v3241_v42 }
 0x108   :  { %v1497_v61 = vrot.slane %v1483_v48, %v3269_v57  ;;  %v2559_v3 = vrot.slane %v2957_v52, %v3306_v22  ;;  %v2204_v5 = vcombine.high %v2146_v60, %v2146_v60  ;;  %v2211_v15 = vrot.slane %v2146_v60, %v3269_v57 }
 0x109   :  { %v2000_v50 = vrot.slane %v1992_v32, %v3269_v57  ;;  %v1818_v62 = vrot.slane %v3343_v33, %v3244_v43  ;;  %v2009_v12 = vcombine.low %v1810_v1, %v1814_v47  ;;  %v1826_v32 = vrot.slane %v3343_v33, %v3257_v53 }
 0x10a   :  { %v1498_v6 = vcombine.low %v1490_v58, %v1497_v61  ;;  %v2561_v9 = vcombine.low %v2552_v2, %v2559_v3  ;;  %v2218_v16 = vrot.slane %v2204_v5, %v3269_v57  ;;  %v2219_v37 = vcombine.high %v2211_v15, %v2211_v15 }
 0x10b   :  { %v720_v10 = vpop.f32.mrb[16].mxu0  ;;  %v1830_v36 = vrot.slane %v3343_v33, %v3260_v54 }
 0x10c   :  { %v761_v11 = vpop.f32.mrb[16].mxu1  ;;  %v722_v19 = vpop.f32.mrb[17].mxu0  ;;  %v2575_v24 = vrot.slane %v2561_v9, %v3306_v22  ;;  %v2220_v29 = vcombine.high %v2218_v16, %v2218_v16  ;;  %v2134_v30 = vadd.f32 %v1974_v4, %v1498_v6  ;;  %v2958_v52 = vpack.c.bf16 %v2219_v37, %v2211_v15 }
 0x10d   :  { %v763_v20 = vpop.f32.mrb[17].mxu1  ;;  %v1499_v25 = vcombine.low %v720_v10, %v722_v19  ;;  %v724_v27 = vpop.f32.mrb[18].mxu0  ;;  %v1822_v6 = vrot.slane %v3343_v33, %v3247_v44  ;;  %v1834_v37 = vrot.slane %v3343_v33, %v3263_v55 }
 0x10e   :  { %v1500_v26 = vcombine.low %v761_v11, %v763_v20  ;;  %v765_v28 = vpop.f32.mrb[18].mxu1  ;;  %v725_v31 = vpop.f32.mrb[19].mxu0  ;;  %v2576_v0 = vcombine.low %v2568_v23, %v2575_v24  ;;  %v2147_v38 = vmax.f32 %v2134_v30, 0.0  ;;  %v2959_v18 = vpack.c.bf16 %v2220_v29, %v2218_v16 }
 0x10f   :  { %v766_v17 = vpop.f32.mrb[19].mxu1  ;;  %v1507_v34 = vrot.slane %v1499_v25, %v3269_v57  ;;  %v2587_v16 = vrot.slane %v2958_v52, %v3306_v22  ;;  %v2008_v23 = vcombine.low %v2000_v50, %v2007_v51  ;;  %v2010_v24 = vcombine.low %v1818_v62, %v1822_v6 }
 0x110   :  { %v1514_v35 = vrot.slane %v1500_v26, %v3269_v57  ;;  %2843 = vst [vmem:[%s3512_s3] sm:$0xff] %v2576_v0  ;;  %v2221_v45 = vcombine.high %v2147_v38, %v2147_v38  ;;  %v2228_v46 = vrot.slane %v2147_v38, %v3269_v57  ;;  %v2594_v7 = vrot.slane %v2959_v18, %v3306_v22 }
 0x111   :  { %v2017_v28 = vrot.slane %v2009_v12, %v3269_v57  ;;  %v1838_v38 = vrot.slane %v3343_v33, %v3266_v56  ;;  %v2024_v18 = vrot.slane %v2010_v24, %v3269_v57  ;;  %v3386_v33 = vld [vmem:[%s3511_s2 + $0x20] sm:$0xff]  ;;  %v2026_v62 = vcombine.low %v1826_v32, %v1830_v36 }
 0x112   :  { %v1515_v39 = vcombine.low %v1507_v34, %v1514_v35  ;;  %v2235_v58 = vrot.slane %v2221_v45, %v3269_v57  ;;  %v2236_v59 = vcombine.high %v2228_v46, %v2228_v46  ;;  %v2609_v25 = vcombine.low %v2587_v16, %v2594_v7 }
 0x113   :  { %v802_v48 = vpop.f32.mrb[20].mxu0  ;;  %v1842_v7 = vrot.slane %v3386_v33, %v3238_v41 }
 0x114   :  { %v843_v49 = vpop.f32.mrb[20].mxu1  ;;  %v804_v60 = vpop.f32.mrb[21].mxu0  ;;  %v2135_v63 = vadd.f32 %v1991_v40, %v1515_v39  ;;  %v2237_v8 = vcombine.high %v2235_v58, %v2235_v58  ;;  %v2960_v9 = vpack.c.bf16 %v2236_v59, %v2228_v46  ;;  %v2617_v47 = vrot.slane %v2609_v25, %v3306_v22 }
 0x115   :  { %v845_v61 = vpop.f32.mrb[21].mxu1  ;;  %v1516_v2 = vcombine.low %v802_v48, %v804_v60  ;;  %v806_v4 = vpop.f32.mrb[22].mxu0 }
 0x116   :  { %v1517_v3 = vcombine.low %v843_v49, %v845_v61  ;;  %v847_v5 = vpop.f32.mrb[22].mxu1  ;;  %v807_v10 = vpop.f32.mrb[23].mxu0  ;;  %v2148_v13 = vmax.f32 %v2135_v63, 0.0  ;;  %v2961_v19 = vpack.c.bf16 %v2237_v8, %v2235_v58  ;;  %v2601_v26 = vrot.slane %v2960_v9, %v3306_v22 }
 0x117   :  { %v848_v11 = vpop.f32.mrb[23].mxu1  ;;  %v1524_v14 = vrot.slane %v1516_v2, %v3269_v57  ;;  %v2027_v63 = vcombine.low %v1834_v37, %v1838_v38  ;;  %v2025_v5 = vcombine.low %v2017_v28, %v2024_v18  ;;  %v1846_v8 = vrot.slane %v3386_v33, %v3241_v42 }
 0x118   :  { %v1531_v15 = vrot.slane %v1517_v3, %v3269_v57  ;;  %v2238_v20 = vcombine.high %v2148_v13, %v2148_v13  ;;  %v2608_v27 = vrot.slane %v2961_v19, %v3306_v22  ;;  %v2245_v29 = vrot.slane %v2148_v13, %v3269_v57 }
 0x119   :  { %v1850_v9 = vrot.slane %v3386_v33, %v3244_v43  ;;  %v2043_v32 = vcombine.low %v1842_v7, %v1846_v8 }
 0x11a   :  { %v1532_v21 = vcombine.low %v1524_v14, %v1531_v15  ;;  %v2252_v30 = vrot.slane %v2238_v20, %v3269_v57  ;;  %v2610_v0 = vcombine.low %v2601_v26, %v2608_v27  ;;  %v2253_v52 = vcombine.high %v2245_v29, %v2245_v29 }
 0x11b   :  { %v884_v31 = vpop.f32.mrb[24].mxu0  ;;  %v1854_v15 = vrot.slane %v3386_v33, %v3247_v44  ;;  %v2034_v20 = vrot.slane %v2026_v62, %v3269_v57 }
 0x11c   :  { %v925_v17 = vpop.f32.mrb[24].mxu1  ;;  %v886_v34 = vpop.f32.mrb[25].mxu0  ;;  %v2254_v39 = vcombine.high %v2252_v30, %v2252_v30  ;;  %v2136_v40 = vadd.f32 %v2008_v23, %v1532_v21  ;;  %v2624_v48 = vrot.slane %v2610_v0, %v3306_v22  ;;  %v2962_v10 = vpack.c.bf16 %v2253_v52, %v2245_v29 }
 0x11d   :  { %v927_v35 = vpop.f32.mrb[25].mxu1  ;;  %v1533_v1 = vcombine.low %v884_v31, %v886_v34  ;;  %v888_v45 = vpop.f32.mrb[26].mxu0  ;;  %v2041_v21 = vrot.slane %v2027_v63, %v3269_v57  ;;  %v2044_v36 = vcombine.low %v1850_v9, %v1854_v15  ;;  %v2051_v52 = vrot.slane %v2043_v32, %v3269_v57 }
 0x11e   :  { %v929_v46 = vpop.f32.mrb[26].mxu1  ;;  %v1534_v49 = vcombine.low %v925_v17, %v927_v35  ;;  %v889_v50 = vpop.f32.mrb[27].mxu0  ;;  %v2149_v58 = vmax.f32 %v2136_v40, 0.0  ;;  %v2625_v60 = vcombine.low %v2617_v47, %v2624_v48  ;;  %v2963_v2 = vpack.c.bf16 %v2254_v39, %v2252_v30 }
 0x11f   :  { %v930_v51 = vpop.f32.mrb[27].mxu1  ;;  %v1541_v59 = vrot.slane %v1533_v1, %v3269_v57  ;;  %v2636_v0 = vrot.slane %v2962_v10, %v3306_v22  ;;  %v2042_v18 = vcombine.low %v2034_v20, %v2041_v21  ;;  %v1858_v47 = vrot.slane %v3386_v33, %v3257_v53  ;;  %v3429_v20 = vld [vmem:[%s3511_s2 + $0x28] sm:$0xff] }
 0x120   :  { %v1548_v61 = vrot.slane %v1534_v49, %v3269_v57  ;;  %v2255_v3 = vcombine.high %v2149_v58, %v2149_v58  ;;  %v2262_v4 = vrot.slane %v2149_v58, %v3269_v57  ;;  %2844 = vst [vmem:[%s3512_s3 + $0x8] sm:$0xff] %v2625_v60  ;;  %v2643_v23 = vrot.slane %v2963_v2, %v3306_v22 }
 0x121   :  { %v1862_v48 = vrot.slane %v3386_v33, %v3260_v54  ;;  %v2058_v58 = vrot.slane %v2044_v36, %v3269_v57  ;;  %v1870_v2 = vrot.slane %v3386_v33, %v3266_v56  ;;  %v1882_v32 = vrot.slane %v3429_v20, %v3244_v43 }
 0x122   :  { %v1549_v6 = vcombine.low %v1541_v59, %v1548_v61  ;;  %v2269_v11 = vrot.slane %v2255_v3, %v3269_v57  ;;  %v2270_v12 = vcombine.high %v2262_v4, %v2262_v4  ;;  %v2658_v39 = vcombine.low %v2636_v0, %v2643_v23 }
 0x123   :  { %v966_v13 = vpop.f32.mrb[28].mxu0  ;;  %v1866_v59 = vrot.slane %v3386_v33, %v3263_v55  ;;  %v2059_v23 = vcombine.low %v2051_v52, %v2058_v58 }
 0x124   :  { %v1007_v14 = vpop.f32.mrb[28].mxu1  ;;  %v968_v16 = vpop.f32.mrb[29].mxu0  ;;  %v2271_v24 = vcombine.high %v2269_v11, %v2269_v11  ;;  %v2964_v25 = vpack.c.bf16 %v2270_v12, %v2262_v4  ;;  %v2137_v29 = vadd.f32 %v2025_v5, %v1549_v6  ;;  %v2666_v3 = vrot.slane %v2658_v39, %v3306_v22 }
 0x125   :  { %v1009_v19 = vpop.f32.mrb[29].mxu1  ;;  %v1550_v26 = vcombine.low %v966_v13, %v968_v16  ;;  %v970_v27 = vpop.f32.mrb[30].mxu0  ;;  %v2060_v13 = vcombine.low %v1858_v47, %v1862_v48 }
 0x126   :  { %v1011_v28 = vpop.f32.mrb[30].mxu1  ;;  %v1551_v30 = vcombine.low %v1007_v14, %v1009_v19  ;;  %v971_v31 = vpop.f32.mrb[31].mxu0  ;;  %v2965_v34 = vpack.c.bf16 %v2271_v24, %v2269_v11  ;;  %v2150_v37 = vmax.f32 %v2137_v29, 0.0  ;;  %v2650_v40 = vrot.slane %v2964_v25, %v3306_v22 }
 0x127   :  { %v1012_v17 = vpop.f32.mrb[31].mxu1  ;;  %v1558_v35 = vrot.slane %v1550_v26, %v3269_v57  ;;  %v2061_v24 = vcombine.low %v1866_v59, %v1870_v2  ;;  %v2068_v28 = vrot.slane %v2060_v13, %v3269_v57  ;;  %v1874_v31 = vrot.slane %v3429_v20, %v3238_v41 }
 0x128   :  { %v1565_v38 = vrot.slane %v1551_v30, %v3269_v57  ;;  %v2657_v1 = vrot.slane %v2965_v34, %v3306_v22  ;;  %v2272_v45 = vcombine.high %v2150_v37, %v2150_v37  ;;  %v2279_v60 = vrot.slane %v2150_v37, %v3269_v57 }
 0x129   :  { %v1878_v17 = vrot.slane %v3429_v20, %v3241_v42  ;;  %v2075_v41 = vrot.slane %v2061_v24, %v3269_v57  ;;  %v1890_v13 = vrot.slane %v3429_v20, %v3257_v53  ;;  %v1902_v53 = vrot.slane %v3429_v20, %v3266_v56 }
 0x12a   :  { %v1566_v46 = vcombine.low %v1558_v35, %v1565_v38  ;;  %v2659_v49 = vcombine.low %v2650_v40, %v2657_v1  ;;  %v2286_v61 = vrot.slane %v2272_v45, %v3269_v57  ;;  %v2287_v19 = vcombine.high %v2279_v60, %v2279_v60 }
 0x12b   :  { %v1048_v50 = vpop.f32.mrb[32].mxu0  ;;  %v1886_v38 = vrot.slane %v3429_v20, %v3247_v44  ;;  %v2077_v52 = vcombine.low %v1874_v31, %v1878_v17 }
 0x12c   :  { %v1089_v51 = vpop.f32.mrb[32].mxu1  ;;  %v1050_v62 = vpop.f32.mrb[33].mxu0  ;;  %v2673_v4 = vrot.slane %v2659_v49, %v3306_v22  ;;  %v2288_v9 = vcombine.high %v2286_v61, %v2286_v61  ;;  %v2138_v10 = vadd.f32 %v2042_v18, %v1566_v46  ;;  %v2966_v0 = vpack.c.bf16 %v2287_v19, %v2279_v60 }
 0x12d   :  { %v1091_v63 = vpop.f32.mrb[33].mxu1  ;;  %v1567_v5 = vcombine.low %v1048_v50, %v1050_v62  ;;  %v1052_v7 = vpop.f32.mrb[34].mxu0  ;;  %v2078_v59 = vcombine.low %v1882_v32, %v1886_v38  ;;  %v2076_v62 = vcombine.low %v2068_v28, %v2075_v41 }
 0x12e   :  { %v1568_v6 = vcombine.low %v1089_v51, %v1091_v63  ;;  %v1093_v8 = vpop.f32.mrb[34].mxu1  ;;  %v1053_v11 = vpop.f32.mrb[35].mxu0  ;;  %v2674_v14 = vcombine.low %v2666_v3, %v2673_v4  ;;  %v2151_v33 = vmax.f32 %v2138_v10, 0.0  ;;  %v2967_v25 = vpack.c.bf16 %v2288_v9, %v2286_v61 }
 0x12f   :  { %v1094_v12 = vpop.f32.mrb[35].mxu1  ;;  %v1575_v15 = vrot.slane %v1567_v5, %v3269_v57  ;;  %v2685_v44 = vrot.slane %v2966_v0, %v3306_v22  ;;  %v2085_v8 = vrot.slane %v2077_v52, %v3269_v57 }
 0x130   :  { %v1582_v16 = vrot.slane %v1568_v6, %v3269_v57  ;;  %2845 = vst [vmem:[%s3512_s3 + $0x10] sm:$0xff] %v2674_v14  ;;  %v2289_v26 = vcombine.high %v2151_v33, %v2151_v33  ;;  %v2296_v27 = vrot.slane %v2151_v33, %v3269_v57  ;;  %v2692_v42 = vrot.slane %v2967_v25, %v3306_v22 }
 0x131   :  { %v2092_v12 = vrot.slane %v2078_v59, %v3269_v57  ;;  %v1894_v14 = vrot.slane %v3429_v20, %v3260_v54 }
 0x132   :  { %v1583_v21 = vcombine.low %v1575_v15, %v1582_v16  ;;  %v2303_v34 = vrot.slane %v2289_v26, %v3269_v57  ;;  %v2304_v35 = vcombine.high %v2296_v27, %v2296_v27  ;;  %v2707_v63 = vcombine.low %v2685_v44, %v2692_v42 }
 0x133   :  { %v1130_v29 = vpop.f32.mrb[36].mxu0 }
 0x134   :  { %v1171_v30 = vpop.f32.mrb[36].mxu1  ;;  %v1132_v36 = vpop.f32.mrb[37].mxu0  ;;  %v2139_v39 = vadd.f32 %v2059_v23, %v1583_v21  ;;  %v2305_v46 = vcombine.high %v2303_v34, %v2303_v34  ;;  %v2968_v43 = vpack.c.bf16 %v2304_v35, %v2296_v27  ;;  %v1898_v23 = vrot.slane %v3429_v20, %v3263_v55 }
 0x135   :  { %v1173_v37 = vpop.f32.mrb[37].mxu1  ;;  %v1584_v40 = vcombine.low %v1130_v29, %v1132_v36  ;;  %v1134_v18 = vpop.f32.mrb[38].mxu0  ;;  %v2715_v24 = vrot.slane %v2707_v63, %v3306_v22  ;;  %v2093_v35 = vcombine.low %v2085_v8, %v2092_v12  ;;  %v2094_v36 = vcombine.low %v1890_v13, %v1894_v14  ;;  %v56_v8 = vld [vmem:[#allocation2 + $0x60] sm:$0x3] }
 0x136   :  { %v1585_v1 = vcombine.low %v1171_v30, %v1173_v37  ;;  %v1175_v45 = vpop.f32.mrb[38].mxu1  ;;  %v1135_v47 = vpop.f32.mrb[39].mxu0  ;;  %v2152_v49 = vmax.f32 %v2139_v39, 0.0  ;;  %v2969_v58 = vpack.c.bf16 %v2305_v46, %v2303_v34  ;;  %v2699_v2 = vrot.slane %v2968_v43, %v3306_v22 }
 0x137   :  { %v1176_v48 = vpop.f32.mrb[39].mxu1  ;;  %v1592_v50 = vrot.slane %v1584_v40, %v3269_v57  ;;  %v2095_v37 = vcombine.low %v1898_v23, %v1902_v53 }
 0x138   :  { %v1599_v51 = vrot.slane %v1585_v1, %v3269_v57  ;;  %v2306_v60 = vcombine.high %v2152_v49, %v2152_v49  ;;  %v2706_v3 = vrot.slane %v2969_v58, %v3306_v22  ;;  %v2313_v4 = vrot.slane %v2152_v49, %v3269_v57 }
 0x13a   :  { %v1600_v61 = vcombine.low %v1592_v50, %v1599_v51  ;;  %v2320_v5 = vrot.slane %v2306_v60, %v3269_v57  ;;  %v2708_v9 = vcombine.low %v2699_v2, %v2706_v3  ;;  %v2321_v29 = vcombine.high %v2313_v4, %v2313_v4 }
 0x13b   :  { %v1212_v6 = vpop.f32.mrb[40].mxu0  ;;  %v2102_v50 = vrot.slane %v2094_v36, %v3269_v57  ;;  %v2109_v51 = vrot.slane %v2095_v37, %v3269_v57 }
 0x13c   :  { %v1253_v7 = vpop.f32.mrb[40].mxu1  ;;  %v1214_v10 = vpop.f32.mrb[41].mxu0  ;;  %v2322_v15 = vcombine.high %v2320_v5, %v2320_v5  ;;  %v2140_v16 = vadd.f32 %v2076_v62, %v1600_v61  ;;  %v2722_v25 = vrot.slane %v2708_v9, %v3306_v22  ;;  %v2970_v56 = vpack.c.bf16 %v2321_v29, %v2313_v4 }
 0x13d   :  { %v1255_v11 = vpop.f32.mrb[41].mxu1  ;;  %v1601_v19 = vcombine.low %v1212_v6, %v1214_v10  ;;  %v1216_v33 = vpop.f32.mrb[42].mxu0  ;;  %v2110_v6 = vcombine.low %v2102_v50, %v2109_v51 }
 0x13e   :  { %v1257_v21 = vpop.f32.mrb[42].mxu1  ;;  %v1602_v26 = vcombine.low %v1253_v7, %v1255_v11  ;;  %v1217_v27 = vpop.f32.mrb[43].mxu0  ;;  %v2153_v54 = vmax.f32 %v2140_v16, 0.0  ;;  %v2723_v31 = vcombine.low %v2715_v24, %v2722_v25  ;;  %v2971_v32 = vpack.c.bf16 %v2322_v15, %v2320_v5 }
 0x13f   :  { %v1258_v28 = vpop.f32.mrb[43].mxu1  ;;  %v1609_v30 = vrot.slane %v1601_v19, %v3269_v57  ;;  %v2734_v58 = vrot.slane %v2970_v56, %v3306_v22  ;;  %v2953_v27 = vld [vmem:[%s3511_s2 + $0x30] ss:$0 sm:$0xff] }
 0x140   :  { %v1616_v17 = vrot.slane %v1602_v26, %v3269_v57  ;;  %v2323_v0 = vcombine.high %v2153_v54, %v2153_v54  ;;  %v2330_v55 = vrot.slane %v2153_v54, %v3269_v57  ;;  %2846 = vst [vmem:[%s3512_s3 + $0x18] sm:$0xff] %v2723_v31  ;;  %v2741_v18 = vrot.slane %v2971_v32, %v3306_v22 }
 0x142   :  { %v1617_v34 = vcombine.low %v1609_v30, %v1616_v17  ;;  %v2337_v20 = vrot.slane %v2323_v0, %v3269_v57  ;;  %v2338_v38 = vcombine.high %v2330_v55, %v2330_v55  ;;  %v2756_v63 = vcombine.low %v2734_v58, %v2741_v18 }
 0x143   :  { %v1294_v39 = vpop.f32.mrb[44].mxu0  ;;  %v2117_v17 = vrot.slane %v2953_v27, %v3269_v57 }
 0x144   :  { %v1335_v40 = vpop.f32.mrb[44].mxu1  ;;  %v1296_v1 = vpop.f32.mrb[45].mxu0  ;;  %v2339_v45 = vcombine.high %v2337_v20, %v2337_v20  ;;  %v2972_v42 = vpack.c.bf16 %v2338_v38, %v2330_v55  ;;  %v2141_v48 = vadd.f32 %v2093_v35, %v1617_v34  ;;  %v2764_v14 = vrot.slane %v2756_v63, %v3306_v22 }
 0x145   :  { %v1337_v41 = vpop.f32.mrb[45].mxu1  ;;  %v1618_v46 = vcombine.low %v1294_v39, %v1296_v1  ;;  %v1298_v43 = vpop.f32.mrb[46].mxu0 }
 0x146   :  { %v1339_v47 = vpop.f32.mrb[46].mxu1  ;;  %v1619_v49 = vcombine.low %v1335_v40, %v1337_v41  ;;  %v1299_v52 = vpop.f32.mrb[47].mxu0  ;;  %v2973_v59 = vpack.c.bf16 %v2339_v45, %v2337_v20  ;;  %v2154_v61 = vmax.f32 %v2141_v48, 0.0  ;;  %v2748_v2 = vrot.slane %v2972_v42, %v3306_v22 }
 0x147   :  { %v1340_v44 = vpop.f32.mrb[47].mxu1  ;;  %v1626_v60 = vrot.slane %v1618_v46, %v3269_v57 }
 0x148   :  { %v1633_v62 = vrot.slane %v1619_v49, %v3269_v57  ;;  %v2755_v3 = vrot.slane %v2973_v59, %v3306_v22  ;;  %v2340_v4 = vcombine.high %v2154_v61, %v2154_v61  ;;  %v2347_v10 = vrot.slane %v2154_v61, %v3269_v57 }
 0x14a   :  { %v1634_v5 = vcombine.low %v1626_v60, %v1633_v62  ;;  %v2757_v7 = vcombine.low %v2748_v2, %v2755_v3  ;;  %v2354_v11 = vrot.slane %v2340_v4, %v3269_v57  ;;  %v2355_v25 = vcombine.high %v2347_v10, %v2347_v10 }
 0x14b   :  { %v1376_v9 = vpop.f32.mrb[48].mxu0 }
 0x14c   :  { %v1641_v12 = vrot.slane %v1376_v9, %v3269_v57  ;;  %v2985_v13 = vpop.f32.mrb[49].mxu0  ;;  %v2771_v15 = vrot.slane %v2757_v7, %v3306_v22  ;;  %v2356_v19 = vcombine.high %v2354_v11, %v2354_v11  ;;  %v2142_v33 = vadd.f32 %v2110_v6, %v1634_v5 }
 0x14d   :  { %v1379_v16 = vpop.f32.mrb[50].mxu0  ;;  %v2974_v54 = vpack.c.bf16 %v2355_v25, %v2347_v10 }
 0x14e   :  { %v1667_v21 = vadd.f32 %v1641_v12, %v56_v8  ;;  %v2986_v23 = vpop.f32.mrb[51].mxu0  ;;  %v2772_v24 = vcombine.low %v2764_v14, %v2771_v15  ;;  %v2155_v26 = vmax.f32 %v2142_v33, 0.0  ;;  %v2975_v28 = vpack.c.bf16 %v2356_v19, %v2354_v11 }
 0x14f   :  { %v2783_v35 = vrot.slane %v2974_v54, %v3306_v22 }
 0x150   :  { %1680 = vst [vmem:[#allocation2 + $0x60] sm:$0x3] %v1667_v21  ;;  %2847 = vst [vmem:[%s3512_s3 + $0x20] sm:$0xff] %v2772_v24  ;;  %v2357_v53 = vcombine.high %v2155_v26, %v2155_v26  ;;  %v2364_v29 = vrot.slane %v2155_v26, %v3269_v57  ;;  %v2790_v32 = vrot.slane %v2975_v28, %v3306_v22 }
 0x152   :  { %v2371_v30 = vrot.slane %v2357_v53, %v3269_v57  ;;  %v2372_v31 = vcombine.high %v2364_v29, %v2364_v29  ;;  %v2805_v56 = vcombine.low %v2783_v35, %v2790_v32 }
 0x154   :  { %v2373_v0 = vcombine.high %v2371_v30, %v2371_v30  ;;  %v2976_v55 = vpack.c.bf16 %v2372_v31, %v2364_v29  ;;  %v2813_v41 = vrot.slane %v2805_v56, %v3306_v22 }
 0x156   :  { %v2977_v36 = vpack.c.bf16 %v2373_v0, %v2371_v30  ;;  %v2797_v20 = vrot.slane %v2976_v55, %v3306_v22 }
 0x157   :  { %v1696_v34 = vld [vmem:[#allocation2 + $0x60] sm:$0x3] }
 0x158   :  { %v2143_v37 = vadd.f32 %v2117_v17, %v1696_v34  ;;  %v2804_v38 = vrot.slane %v2977_v36, %v3306_v22 }
 0x15a   :  { %v2156_v39 = vmax.f32 %v2143_v37, 0.0  ;;  %v2806_v40 = vcombine.low %v2797_v20, %v2804_v38 }
 0x15c   :  { %v2380_v1 = vrot.slane %v2156_v39, %v3269_v57  ;;  %v2820_v18 = vrot.slane %v2806_v40, %v3306_v22 }
 0x15e   :  { %v2478_v45 = vpack.c.bf16 %v2380_v1, %v2380_v1  ;;  %v2821_v42 = vcombine.low %v2813_v41, %v2820_v18 }
 0x160   :  { %v2828_v46 = vrot.slane %v2478_v45, %v3306_v22  ;;  %2848 = vst [vmem:[%s3512_s3 + $0x28] sm:$0xff] %v2821_v42 }
 0x162   :  { %2978 = vst.sshfl [vmem:[%s3512_s3 + $0x30] sm:$0x1 pattern:$0x73625140] %v2828_v46 }
 0x163   :  { %2854 = vsyncpa [#allocation4], 1 }

// kernel: decoder_forward.7
= control target key start
LH: loop header
LB: loop body
LE: loop exit
PB: predicated region body
PF: predicated region fallthrough
CT: control target
= control target key end

     0   :  { %s1851_s18 = smov 0   ;;  %s1853_s19 = smov 0   ;;  %s2069_s0 = inlined_call_operand.vmem [shape: bf16[4,98,512], index: 0, kind: input, shape index: {}]   ;;  %s2070_s1 = inlined_call_operand.vmem [shape: bf16[4,512,64], index: 1, kind: input, shape index: {}]   ;;  %s2071_s2 = inlined_call_operand.vmem [shape: f32[1,64], index: 2, kind: input, shape index: {}]   ;;  %s2072_s3 = inlined_call_operand.vmem [shape: bf16[4,98,64], index: 3, kind: output, shape index: {0}]   ;;  %s2073_s4 = inlined_call_operand.vmem [shape: f32[4,1,1,64], index: 4, kind: output, shape index: {1}]   ;;  %s2074_s5 = inlined_call_operand.vmem [shape: f32[4,1,1,64], index: 5, kind: output, shape index: {2}]  }
   0x1   :  { %s1855_s20 = smov 0  }
   0x2 LB: > { %s34_s21 = sadd.s32 1, %s1814_s19  ;;  %p1486_p0 = scmp.ge.s32.totalorder %s1818_s20, 1  ;;  %s1818_s20 = sphi %s1855_s20, %s16_s20   ;;  %s1814_s19 = sphi %s1853_s19, %s2076_s19   ;;  %s1810_s18 = sphi %s1851_s18, %s2075_s18  }
   0x3   : > { %p36_p1 = scmp.ge.s32.totalorder %s34_s21, 4  ;;  %p275_p2 = scmp.lt.s32.totalorder %s1818_s20, 5 }
   0x5   : > { %s2078_s21 = smov (%p36_p1, %s34_s21), 0  ;;  %p276_p3 = pnand %p1486_p0, %p275_p2 }
   0x6   : > { %p354_p4 = scmp.lt.s32.totalorder (!%p276_p3), %s1810_s18, 3  ;;  %vm420_vm0 = vcmask (!%p276_p3), 523264   ;;  %v1820_v62 = vmov (!%p276_p3), 0.0   ;;  %vm433_vm1 = vcmask (!%p276_p3), 517120   ;;  %vm1235_vm2 = vcmask (!%p276_p3), 519168  }
   0x7   : > { %279 = sbr.rel (%p276_p3) target bundleno = 347 (0x15b), region = 32  ;;  %421 = vst.msk [vmem:[#allocation2] sm:$0xff] (!%p276_p3), %vm420_vm0, %v1820_v62  ;;  %422 = vst.msk [vmem:[#allocation2 + $0x8] sm:$0xff] (!%p276_p3), %vm420_vm0, %v1820_v62  ;;  %vm1135_vm3 = vcmask (!%p276_p3), 516096  }
   0x8   : > { %423 = vst.msk [vmem:[#allocation2 + $0x10] sm:$0xff] (!%p276_p3), %vm420_vm0, %v1820_v62  ;;  %424 = vst.msk [vmem:[#allocation2 + $0x18] sm:$0xff] (!%p276_p3), %vm420_vm0, %v1820_v62 }
   0x9   : > { %425 = vst.msk [vmem:[#allocation2 + $0x20] sm:$0xff] (!%p276_p3), %vm420_vm0, %v1820_v62  ;;  %426 = vst.msk [vmem:[#allocation2 + $0x28] sm:$0xff] (!%p276_p3), %vm420_vm0, %v1820_v62 }
   0xa   : > { %427 = vst.msk [vmem:[#allocation2 + $0x30] sm:$0xff] (!%p276_p3), %vm420_vm0, %v1820_v62  ;;  %428 = vst.msk [vmem:[#allocation2 + $0x38] sm:$0xff] (!%p276_p3), %vm420_vm0, %v1820_v62 }
   0xb   : > { %429 = vst.msk [vmem:[#allocation2 + $0x40] sm:$0xff] (!%p276_p3), %vm420_vm0, %v1820_v62  ;;  %430 = vst.msk [vmem:[#allocation2 + $0x48] sm:$0xff] (!%p276_p3), %vm420_vm0, %v1820_v62 }
   0xc   : > { %431 = vst.msk [vmem:[#allocation2 + $0x50] sm:$0xff] (!%p276_p3), %vm420_vm0, %v1820_v62  ;;  %432 = vst.msk [vmem:[#allocation2 + $0x58] sm:$0xff] (!%p276_p3), %vm420_vm0, %v1820_v62 }
   0xd   : > { %434 = vst.msk [vmem:[#allocation2 + $0x60] sm:$0x3] (!%p276_p3), %vm433_vm1, %v1820_v62 }
   0xe   : > { %s2080_s18 = smov (!%p354_p4, %s1810_s18), 3 }
   0xf   : > { %s1567_s22 = sshll.u32 %s2080_s18, 8  ;;  %s1697_s26 = smul.u32 208, %s2080_s18 }
  0x10   : > { %s1875_s25 = scalar_lea.vmem %s2070_s1, %s1567_s22  ;;  %s1698_s30 = smul.u32 52, %s2080_s18 }
  0x11   : > { %v1724_v0 = vld [vmem:[%s1875_s25 + $0x40] sm:$0xff]   ;;  %v1728_v4 = vld [vmem:[%s1875_s25 + $0x48] sm:$0xff]   ;;  %v1732_v8 = vld [vmem:[%s1875_s25 + $0x50] sm:$0xff]   ;;  %s1911_s29 = scalar_lea.vmem %s2069_s0, %s1697_s26  ;;  %s405_s13 = scalar_lea.vmem %s2073_s4, %s2080_s18 }
  0x12   : > { %v1725_v1 = vld [vmem:[%s1875_s25 + $0xc0] sm:$0xff]   ;;  %1581 = vmatprep.subr.bf16.mxu0 %v1724_v0  ;;  %v1729_v5 = vld [vmem:[%s1875_s25 + $0xc8] sm:$0xff]   ;;  %v1733_v9 = vld [vmem:[%s1875_s25 + $0xd0] sm:$0xff]   ;;  %s1969_s10 = scalar_lea.vmem %s2072_s3, %s1698_s30  ;;  %s414_s16 = scalar_lea.vmem %s2074_s5, %s2080_s18 }
  0x13   : > { %v1726_v2 = vld [vmem:[%s1875_s25] sm:$0xff]   ;;  %1639 = vmatprep.subr.bf16.mxu1 %v1725_v1  ;;  %v1730_v6 = vld [vmem:[%s1875_s25 + $0x8] sm:$0xff]   ;;  %v1734_v10 = vld [vmem:[%s1875_s25 + $0x10] sm:$0xff]  }
  0x14   : > { %v1727_v3 = vld [vmem:[%s1875_s25 + $0x80] sm:$0xff]   ;;  %1582 = vmatpush3.bf16.msra.mxu0 %v1726_v2  ;;  %v1731_v7 = vld [vmem:[%s1875_s25 + $0x88] sm:$0xff]   ;;  %v1735_v11 = vld [vmem:[%s1875_s25 + $0x90] sm:$0xff]  }
  0x15   : > { %1640 = vmatpush3.bf16.msra.mxu1 %v1727_v3  ;;  %1583 = vmatprep.subr.bf16.mxu0 %v1728_v4  ;;  %v1736_v12 = vld [vmem:[%s1875_s25 + $0x58] sm:$0xff]   ;;  %v1740_v16 = vld [vmem:[%s1875_s25 + $0x60] sm:$0xff]   ;;  %v1744_v20 = vld [vmem:[%s1875_s25 + $0x68] sm:$0xff]  }
  0x16   : > { %1641 = vmatprep.subr.bf16.mxu1 %v1729_v5  ;;  %v1737_v13 = vld [vmem:[%s1875_s25 + $0xd8] sm:$0xff]   ;;  %v1741_v17 = vld [vmem:[%s1875_s25 + $0xe0] sm:$0xff]   ;;  %v1745_v21 = vld [vmem:[%s1875_s25 + $0xe8] sm:$0xff]  }
  0x17   : > { %v1738_v14 = vld [vmem:[%s1875_s25 + $0x18] sm:$0xff]   ;;  %v1742_v18 = vld [vmem:[%s1875_s25 + $0x20] sm:$0xff]   ;;  %v1746_v22 = vld [vmem:[%s1875_s25 + $0x28] sm:$0xff]  }
  0x18   : > { %1584 = vmatpush3.bf16.msra.mxu0 %v1730_v6  ;;  %v1739_v15 = vld [vmem:[%s1875_s25 + $0x98] sm:$0xff]   ;;  %v1743_v19 = vld [vmem:[%s1875_s25 + $0xa0] sm:$0xff]   ;;  %v1747_v23 = vld [vmem:[%s1875_s25 + $0xa8] sm:$0xff]  }
  0x19   : > { %1642 = vmatpush3.bf16.msra.mxu1 %v1731_v7  ;;  %1585 = vmatprep.subr.bf16.mxu0 %v1732_v8  ;;  %v1748_v24 = vld [vmem:[%s1875_s25 + $0x70] sm:$0xff]   ;;  %v1752_v28 = vld [vmem:[%s1875_s25 + $0x78] sm:$0xff]   ;;  %v472_v54 = vld [vmem:[%s1911_s29 + $0xc0] sm:$0x11] }
  0x1a   : > { %1643 = vmatprep.subr.bf16.mxu1 %v1733_v9  ;;  %v1749_v25 = vld [vmem:[%s1875_s25 + $0xf0] sm:$0xff]   ;;  %v1753_v29 = vld [vmem:[%s1875_s25 + $0xf8] sm:$0xff]   ;;  %v473_v55 = vld [vmem:[%s1911_s29 + $0xc8] sm:$0x11]  ;;  %v1516_v58 = vcombine.high %v472_v54, %v472_v54  ;;  %v1515_v60 = vcombine.low %v472_v54, %v472_v54 }
  0x1b   : > { %v1750_v26 = vld [vmem:[%s1875_s25 + $0x30] sm:$0xff]   ;;  %v1754_v30 = vld [vmem:[%s1875_s25 + $0x38] sm:$0xff]   ;;  %v1518_v59 = vcombine.high %v473_v55, %v473_v55  ;;  %v1517_v61 = vcombine.low %v473_v55, %v473_v55  ;;  %v435_v8 = vld [vmem:[#allocation2] sm:$0xff] }
  0x1c   : > { %1586 = vmatpush3.bf16.msra.mxu0 %v1734_v10  ;;  %v1751_v27 = vld [vmem:[%s1875_s25 + $0xb0] sm:$0xff]   ;;  %v1755_v31 = vld [vmem:[%s1875_s25 + $0xb8] sm:$0xff]  }
  0x1d   : > { %1644 = vmatpush3.bf16.msra.mxu1 %v1735_v11  ;;  %1587 = vmatprep.subr.bf16.mxu0 %v1736_v12  ;;  %v1756_v32 = vld [vmem:[%s1911_s29] ss:$16 sps:$4 sm:$0xff]   ;;  %v1758_v33 = vld [vmem:[%s1911_s29 + $0x4] ss:$16 sps:$4 sm:$0xff]   ;;  %v1759_v34 = vld [vmem:[%s1911_s29 + $0x8] ss:$16 sps:$4 sm:$0xff]  }
  0x1e   : > { %1645 = vmatprep.subr.bf16.mxu1 %v1737_v13  ;;  %v1761_v35 = vld [vmem:[%s1911_s29 + $0xc] ss:$16 sps:$4 sm:$0xff]   ;;  %896 = vmatprep.mubr.bf16.mxu0 %v1758_v33  ;;  %v1762_v36 = vld [vmem:[%s1911_s29 + $0x24] ss:$16 sps:$4 sm:$0xff]   ;;  %v1766_v38 = vld [vmem:[%s1911_s29 + $0x20] ss:$16 sps:$4 sm:$0xff]  }
  0x1f   : > { %984 = vmatprep.mubr.bf16.mxu1 %v1761_v35  ;;  %v1764_v37 = vld [vmem:[%s1911_s29 + $0x2c] ss:$16 sps:$4 sm:$0xff]   ;;  %v1767_v39 = vld [vmem:[%s1911_s29 + $0x28] ss:$16 sps:$4 sm:$0xff]   ;;  %v1768_v40 = vld [vmem:[%s1911_s29 + $0x44] ss:$16 sps:$4 sm:$0xff]  }
  0x20   : > { %1588 = vmatpush3.bf16.msra.mxu0 %v1738_v14  ;;  %v1770_v41 = vld [vmem:[%s1911_s29 + $0x4c] ss:$16 sps:$4 sm:$0xff]   ;;  %v1772_v42 = vld [vmem:[%s1911_s29 + $0x40] ss:$16 sps:$4 sm:$0xff]   ;;  %v1773_v43 = vld [vmem:[%s1911_s29 + $0x48] ss:$16 sps:$4 sm:$0xff]  }
  0x21   : > { %1646 = vmatpush3.bf16.msra.mxu1 %v1739_v15  ;;  %1589 = vmatprep.subr.bf16.mxu0 %v1740_v16  ;;  %v1774_v44 = vld [vmem:[%s1911_s29 + $0x64] ss:$16 sps:$4 sm:$0xff]   ;;  %v1776_v45 = vld [vmem:[%s1911_s29 + $0x6c] ss:$16 sps:$4 sm:$0xff]   ;;  %v1778_v46 = vld [vmem:[%s1911_s29 + $0x60] ss:$16 sps:$4 sm:$0xff]  }
  0x22   : > { %1647 = vmatprep.subr.bf16.mxu1 %v1741_v17  ;;  %v1779_v47 = vld [vmem:[%s1911_s29 + $0x68] ss:$16 sps:$4 sm:$0xff]   ;;  %v1780_v48 = vld [vmem:[%s1911_s29 + $0x84] ss:$16 sps:$4 sm:$0xff]   ;;  %v1782_v49 = vld [vmem:[%s1911_s29 + $0x8c] ss:$16 sps:$4 sm:$0xff]  }
  0x23   : > { %v1784_v50 = vld [vmem:[%s1911_s29 + $0x80] ss:$16 sps:$4 sm:$0xff]   ;;  %v1785_v51 = vld [vmem:[%s1911_s29 + $0x88] ss:$16 sps:$4 sm:$0xff]   ;;  %v1786_v52 = vld [vmem:[%s1911_s29 + $0xa4] ss:$16 sps:$4 sm:$0xff]  }
  0x24   : > { %1590 = vmatpush3.bf16.msra.mxu0 %v1742_v18  ;;  %v1788_v53 = vld [vmem:[%s1911_s29 + $0xac] ss:$16 sps:$4 sm:$0xff]   ;;  %v1790_v56 = vld [vmem:[%s1911_s29 + $0xa0] ss:$16 sps:$4 sm:$0xff]   ;;  %v1791_v57 = vld [vmem:[%s1911_s29 + $0xa8] ss:$16 sps:$4 sm:$0xff]  }
  0x25   : > { %1648 = vmatpush3.bf16.msra.mxu1 %v1743_v19  ;;  %1591 = vmatprep.subr.bf16.mxu0 %v1744_v20  ;;  %v436_v13 = vld [vmem:[#allocation2 + $0x8] sm:$0xff] }
  0x26   : > { %1649 = vmatprep.subr.bf16.mxu1 %v1745_v21 }
  0x28   : > { %1592 = vmatpush3.bf16.msra.mxu0 %v1746_v22 }
  0x29   : > { %1650 = vmatpush3.bf16.msra.mxu1 %v1747_v23  ;;  %1593 = vmatprep.subr.bf16.mxu0 %v1748_v24 }
  0x2a   : > { %1651 = vmatprep.subr.bf16.mxu1 %v1749_v25 }
  0x2c   : > { %1594 = vmatpush3.bf16.msra.mxu0 %v1750_v26  ;;  %v437_v26 = vld [vmem:[#allocation2 + $0x10] sm:$0xff] }
  0x2d   : > { %1652 = vmatpush3.bf16.msra.mxu1 %v1751_v27  ;;  %1595 = vmatprep.subr.bf16.mxu0 %v1752_v28 }
  0x2e   : > { %1653 = vmatprep.subr.bf16.mxu1 %v1753_v29 }
  0x30   : > { %1596 = vmatpush3.bf16.msra.mxu0 %v1754_v30 }
  0x31   : > { %1654 = vmatpush3.bf16.msra.mxu1 %v1755_v31  ;;  %v1960_v31 = vld [vmem:[%s2071_s2] ss:$0 sm:$0xff] }
  0x33   : > { %897 = vmatmul.mubr.bf16.vlgmr.msra.gmra.mrb[0].mxu0 %v1756_v32  ;;  %v438_v32 = vld [vmem:[#allocation2 + $0x18] sm:$0xff] }
  0x34   : > { %985 = vmatmul.mubr.bf16.vlgmr.msra.gmra.mrb[0].mxu1 %v1759_v34  ;;  %904 = vmatprep.mubr.bf16.mxu0 %v1762_v36 }
  0x35   : > { %992 = vmatprep.mubr.bf16.mxu1 %v1764_v37 }
  0x3b   : > { %905 = vmatmul.mubr.bf16.gmra.mrb[4].mxu0 %v1766_v38 }
  0x3c   : > { %993 = vmatmul.mubr.bf16.gmra.mrb[4].mxu1 %v1767_v39  ;;  %912 = vmatprep.mubr.bf16.mxu0 %v1768_v40 }
  0x3d   : > { %1000 = vmatprep.mubr.bf16.mxu1 %v1770_v41 }
  0x43   : > { %913 = vmatmul.mubr.bf16.gmra.mrb[8].mxu0 %v1772_v42 }
  0x44   : > { %1001 = vmatmul.mubr.bf16.gmra.mrb[8].mxu1 %v1773_v43  ;;  %920 = vmatprep.mubr.bf16.mxu0 %v1774_v44 }
  0x45   : > { %1008 = vmatprep.mubr.bf16.mxu1 %v1776_v45 }
  0x4b   : > { %921 = vmatmul.mubr.bf16.gmra.mrb[12].mxu0 %v1778_v46 }
  0x4c   : > { %1009 = vmatmul.mubr.bf16.gmra.mrb[12].mxu1 %v1779_v47  ;;  %928 = vmatprep.mubr.bf16.mxu0 %v1780_v48 }
  0x4d   : > { %1016 = vmatprep.mubr.bf16.mxu1 %v1782_v49 }
  0x53   : > { %929 = vmatmul.mubr.bf16.gmra.mrb[16].mxu0 %v1784_v50  ;;  %v439_v50 = vld [vmem:[#allocation2 + $0x20] sm:$0xff] }
  0x54   : > { %1017 = vmatmul.mubr.bf16.gmra.mrb[16].mxu1 %v1785_v51  ;;  %936 = vmatprep.mubr.bf16.mxu0 %v1786_v52 }
  0x55   : > { %1024 = vmatprep.mubr.bf16.mxu1 %v1788_v53 }
  0x5b   : > { %937 = vmatmul.mubr.bf16.gmra.mrb[20].mxu0 %v1790_v56  ;;  %v440_v56 = vld [vmem:[#allocation2 + $0x28] sm:$0xff] }
  0x5c   : > { %1025 = vmatmul.mubr.bf16.gmra.mrb[20].mxu1 %v1791_v57  ;;  %944 = vmatprep.mubr.bf16.mxu0 %v1516_v58 }
  0x5d   : > { %1032 = vmatprep.mubr.bf16.mxu1 %v1518_v59 }
  0x63   : > { %945 = vmatmul.mubr.bf16.gmra.mrb[24].mxu0 %v1515_v60 }
  0x64   : > { %1033 = vmatmul.mubr.bf16.gmra.mrb[24].mxu1 %v1517_v61 }
 0x106   : > { %v1597_v63 = vpop.f32.mrb[0].mxu0 }
 0x107   : > { %v1655_v0 = vpop.f32.mrb[0].mxu1  ;;  %v1598_v1 = vpop.f32.mrb[1].mxu0 }
 0x108   : > { %v1599_v2 = vadd.f32 %v1598_v1, %v1597_v63  ;;  %v1656_v3 = vpop.f32.mrb[1].mxu1  ;;  %v1600_v4 = vpop.f32.mrb[2].mxu0 }
 0x109   : > { %v1657_v5 = vadd.f32 %v1656_v3, %v1655_v0  ;;  %v1658_v6 = vpop.f32.mrb[2].mxu1  ;;  %v1601_v7 = vpop.f32.mrb[3].mxu0 }
 0x10a   : > { %v1602_v9 = vadd.f32 %v1601_v7, %v1600_v4  ;;  %v1659_v10 = vpop.f32.mrb[3].mxu1 }
 0x10b   : > { %v987_v11 = vadd.f32 %v1657_v5, %v1599_v2  ;;  %v1660_v12 = vadd.f32 %v1659_v10, %v1658_v6  ;;  %v441_v10 = vld [vmem:[#allocation2 + $0x30] sm:$0xff] }
 0x10d   : > { %v1040_v14 = vadd.f32 %v987_v11, %v435_v8  ;;  %v990_v15 = vadd.f32 %v1660_v12, %v1602_v9 }
 0x10e   : > { %v1603_v16 = vpop.f32.mrb[4].mxu0 }
 0x10f   : > { %1054 = vst.msk [vmem:[#allocation2] sm:$0xff] %vm420_vm0, %v1040_v14  ;;  %v1041_v17 = vadd.f32 %v990_v15, %v436_v13  ;;  %v1661_v18 = vpop.f32.mrb[4].mxu1  ;;  %v1604_v19 = vpop.f32.mrb[5].mxu0  ;;  %v442_v15 = vld [vmem:[#allocation2 + $0x38] sm:$0xff] }
 0x110   : > { %v1605_v20 = vadd.f32 %v1604_v19, %v1603_v16  ;;  %v1662_v21 = vpop.f32.mrb[5].mxu1  ;;  %v1606_v22 = vpop.f32.mrb[6].mxu0 }
 0x111   : > { %1055 = vst.msk [vmem:[#allocation2 + $0x8] sm:$0xff] %vm420_vm0, %v1041_v17  ;;  %v1663_v23 = vadd.f32 %v1662_v21, %v1661_v18  ;;  %v1664_v24 = vpop.f32.mrb[6].mxu1  ;;  %v1607_v25 = vpop.f32.mrb[7].mxu0 }
 0x112   : > { %v1608_v27 = vadd.f32 %v1607_v25, %v1606_v22  ;;  %v1665_v28 = vpop.f32.mrb[7].mxu1 }
 0x113   : > { %v995_v29 = vadd.f32 %v1663_v23, %v1605_v20  ;;  %v1666_v30 = vadd.f32 %v1665_v28, %v1664_v24 }
 0x115   : > { %v1042_v33 = vadd.f32 %v995_v29, %v437_v26  ;;  %v998_v34 = vadd.f32 %v1666_v30, %v1608_v27 }
 0x116   : > { %v1071_v35 = vld [vmem:[#allocation2] sm:$0xff]  ;;  %v1609_v36 = vpop.f32.mrb[8].mxu0 }
 0x117   : > { %v1963_v37 = vadd.f32 %v1960_v31, %v1071_v35  ;;  %1056 = vst.msk [vmem:[#allocation2 + $0x10] sm:$0xff] %vm420_vm0, %v1042_v33  ;;  %v1043_v38 = vadd.f32 %v998_v34, %v438_v32  ;;  %v1667_v39 = vpop.f32.mrb[8].mxu1  ;;  %v1610_v40 = vpop.f32.mrb[9].mxu0 }
 0x118   : > { %v1072_v41 = vld [vmem:[#allocation2 + $0x8] sm:$0xff]  ;;  %v1611_v42 = vadd.f32 %v1610_v40, %v1609_v36  ;;  %v1668_v43 = vpop.f32.mrb[9].mxu1  ;;  %v1612_v44 = vpop.f32.mrb[10].mxu0 }
 0x119   : > { %v1568_v45 = vpack.c.bf16 %v1963_v37, %v1963_v37  ;;  %v1092_v46 = vadd.f32 %v1960_v31, %v1072_v41  ;;  %1057 = vst.msk [vmem:[#allocation2 + $0x18] sm:$0xff] %vm420_vm0, %v1043_v38  ;;  %v1669_v47 = vadd.f32 %v1668_v43, %v1667_v39  ;;  %v1670_v48 = vpop.f32.mrb[10].mxu1  ;;  %v1613_v49 = vpop.f32.mrb[11].mxu0  ;;  %v1137_v22 = vmul.f32 %v1963_v37, %v1963_v37 }
 0x11a   : > { %v1614_v51 = vadd.f32 %v1613_v49, %v1612_v44  ;;  %v1671_v52 = vpop.f32.mrb[11].mxu1  ;;  %v1104_v34 = vsel %vm420_vm0, %v1963_v37, 0.0 }
 0x11b   : > { %1236 = vst.msk [vmem:[%s1969_s10] sm:$0xf] %vm1235_vm2, %v1568_v45  ;;  %v1569_v53 = vpack.c.bf16 %v1092_v46, %v1092_v46  ;;  %v1003_v54 = vadd.f32 %v1669_v47, %v1611_v42  ;;  %v1672_v55 = vadd.f32 %v1671_v52, %v1670_v48  ;;  %v1138_v19 = vmul.f32 %v1092_v46, %v1092_v46  ;;  %v443_v42 = vld [vmem:[#allocation2 + $0x40] sm:$0xff] }
 0x11c   : > { %v1105_v27 = vsel %vm420_vm0, %v1092_v46, 0.0  ;;  %v1150_v46 = vsel %vm420_vm0, %v1137_v22, 0.0 }
 0x11d   : > { %1237 = vst.msk [vmem:[%s1969_s10 + $0x4] sm:$0xf] %vm1235_vm2, %v1569_v53  ;;  %v1044_v57 = vadd.f32 %v1003_v54, %v439_v50  ;;  %v1006_v58 = vadd.f32 %v1672_v55, %v1614_v51  ;;  %v1151_v41 = vsel %vm420_vm0, %v1138_v19, 0.0  ;;  %v1106_v45 = vadd.f32 %v1105_v27, %v1104_v34  ;;  %v444_v51 = vld [vmem:[#allocation2 + $0x48] sm:$0xff] }
 0x11e   : > { %v1073_v59 = vld [vmem:[#allocation2 + $0x10] sm:$0xff]  ;;  %v1615_v60 = vpop.f32.mrb[12].mxu0  ;;  %v1152_v53 = vadd.f32 %v1151_v41, %v1150_v46 }
 0x11f   : > { %v1093_v61 = vadd.f32 %v1960_v31, %v1073_v59  ;;  %1058 = vst.msk [vmem:[#allocation2 + $0x20] sm:$0xff] %vm420_vm0, %v1044_v57  ;;  %v1045_v62 = vadd.f32 %v1006_v58, %v440_v56  ;;  %v1673_v63 = vpop.f32.mrb[12].mxu1  ;;  %v1616_v0 = vpop.f32.mrb[13].mxu0 }
 0x120   : > { %v1074_v1 = vld [vmem:[#allocation2 + $0x18] sm:$0xff]  ;;  %v1617_v2 = vadd.f32 %v1616_v0, %v1615_v60  ;;  %v1674_v3 = vpop.f32.mrb[13].mxu1  ;;  %v1618_v4 = vpop.f32.mrb[14].mxu0 }
 0x121   : > { %v1570_v5 = vpack.c.bf16 %v1093_v61, %v1093_v61  ;;  %1059 = vst.msk [vmem:[#allocation2 + $0x28] sm:$0xff] %vm420_vm0, %v1045_v62  ;;  %v1675_v6 = vadd.f32 %v1674_v3, %v1673_v63  ;;  %v1676_v7 = vpop.f32.mrb[14].mxu1  ;;  %v1619_v8 = vpop.f32.mrb[15].mxu0  ;;  %v1094_v9 = vadd.f32 %v1960_v31, %v1074_v1  ;;  %v1139_v28 = vmul.f32 %v1093_v61, %v1093_v61 }
 0x122   : > { %v1620_v11 = vadd.f32 %v1619_v8, %v1618_v4  ;;  %v1677_v12 = vpop.f32.mrb[15].mxu1  ;;  %v1107_v40 = vsel %vm420_vm0, %v1093_v61, 0.0 }
 0x123   : > { %1238 = vst.msk [vmem:[%s1969_s10 + $0x8] sm:$0xf] %vm1235_vm2, %v1570_v5  ;;  %v1011_v13 = vadd.f32 %v1675_v6, %v1617_v2  ;;  %v1678_v14 = vadd.f32 %v1677_v12, %v1676_v7  ;;  %v1571_v16 = vpack.c.bf16 %v1094_v9, %v1094_v9  ;;  %v1140_v49 = vmul.f32 %v1094_v9, %v1094_v9 }
 0x124   : > { %v1153_v50 = vsel %vm420_vm0, %v1139_v28, 0.0  ;;  %v1108_v52 = vadd.f32 %v1107_v40, %v1106_v45  ;;  %v1109_v57 = vsel %vm420_vm0, %v1094_v9, 0.0 }
 0x125   : > { %v1046_v17 = vadd.f32 %v1011_v13, %v441_v10  ;;  %v1014_v18 = vadd.f32 %v1678_v14, %v1620_v11  ;;  %1239 = vst.msk [vmem:[%s1969_s10 + $0xc] sm:$0xf] %vm1235_vm2, %v1571_v16  ;;  %v1154_v61 = vadd.f32 %v1153_v50, %v1152_v53  ;;  %v1155_v3 = vsel %vm420_vm0, %v1140_v49, 0.0 }
 0x126   : > { %v1621_v20 = vpop.f32.mrb[16].mxu0  ;;  %v1075_v21 = vld [vmem:[#allocation2 + $0x20] sm:$0xff]  ;;  %v1110_v8 = vadd.f32 %v1109_v57, %v1108_v52 }
 0x127   : > { %1060 = vst.msk [vmem:[#allocation2 + $0x30] sm:$0xff] %vm420_vm0, %v1046_v17  ;;  %v1047_v23 = vadd.f32 %v1014_v18, %v442_v15  ;;  %v1679_v24 = vpop.f32.mrb[16].mxu1  ;;  %v1622_v25 = vpop.f32.mrb[17].mxu0  ;;  %v1095_v26 = vadd.f32 %v1960_v31, %v1075_v21  ;;  %v445_v15 = vld [vmem:[#allocation2 + $0x50] sm:$0xff]  ;;  %v1156_v19 = vadd.f32 %v1155_v3, %v1154_v61 }
 0x128   : > { %v1623_v29 = vadd.f32 %v1622_v25, %v1621_v20  ;;  %v1680_v30 = vpop.f32.mrb[17].mxu1  ;;  %v1624_v32 = vpop.f32.mrb[18].mxu0  ;;  %v1076_v33 = vld [vmem:[#allocation2 + $0x28] sm:$0xff]  ;;  %v446_v25 = vld [vmem:[#allocation2 + $0x58] sm:$0xff] }
 0x129   : > { %1061 = vst.msk [vmem:[#allocation2 + $0x38] sm:$0xff] %vm420_vm0, %v1047_v23  ;;  %v1681_v35 = vadd.f32 %v1680_v30, %v1679_v24  ;;  %v1682_v36 = vpop.f32.mrb[18].mxu1  ;;  %v1625_v38 = vpop.f32.mrb[19].mxu0  ;;  %v1096_v39 = vadd.f32 %v1960_v31, %v1076_v33  ;;  %v1572_v47 = vpack.c.bf16 %v1095_v26, %v1095_v26  ;;  %v1141_v58 = vmul.f32 %v1095_v26, %v1095_v26 }
 0x12a   : > { %v1626_v43 = vadd.f32 %v1625_v38, %v1624_v32  ;;  %v1683_v44 = vpop.f32.mrb[19].mxu1  ;;  %v1111_v2 = vsel %vm420_vm0, %v1095_v26, 0.0 }
 0x12b   : > { %v1019_v37 = vadd.f32 %v1681_v35, %v1623_v29  ;;  %v1684_v48 = vadd.f32 %v1683_v44, %v1682_v36  ;;  %v1573_v54 = vpack.c.bf16 %v1096_v39, %v1096_v39  ;;  %1240 = vst.msk [vmem:[%s1969_s10 + $0x10] sm:$0xf] %vm1235_vm2, %v1572_v47  ;;  %v1142_v13 = vmul.f32 %v1096_v39, %v1096_v39 }
 0x12c   : > { %v1157_v14 = vsel %vm420_vm0, %v1141_v58, 0.0  ;;  %v1112_v18 = vadd.f32 %v1111_v2, %v1110_v8  ;;  %v1113_v23 = vsel %vm420_vm0, %v1096_v39, 0.0 }
 0x12d   : > { %v1048_v55 = vadd.f32 %v1019_v37, %v443_v42  ;;  %v1022_v56 = vadd.f32 %v1684_v48, %v1626_v43  ;;  %1241 = vst.msk [vmem:[%s1969_s10 + $0x14] sm:$0xf] %vm1235_vm2, %v1573_v54  ;;  %v1158_v26 = vadd.f32 %v1157_v14, %v1156_v19  ;;  %v1159_v32 = vsel %vm420_vm0, %v1142_v13, 0.0  ;;  %v447_v54 = vld [vmem:[#allocation2 + $0x60] sm:$0x3] }
 0x12e   : > { %v1627_v59 = vpop.f32.mrb[20].mxu0  ;;  %v1077_v60 = vld [vmem:[#allocation2 + $0x30] sm:$0xff]  ;;  %v1114_v35 = vadd.f32 %v1113_v23, %v1112_v18 }
 0x12f   : > { %1062 = vst.msk [vmem:[#allocation2 + $0x40] sm:$0xff] %vm420_vm0, %v1048_v55  ;;  %v1049_v62 = vadd.f32 %v1022_v56, %v444_v51  ;;  %v1685_v63 = vpop.f32.mrb[20].mxu1  ;;  %v1628_v0 = vpop.f32.mrb[21].mxu0  ;;  %v1097_v1 = vadd.f32 %v1960_v31, %v1077_v60  ;;  %v1160_v47 = vadd.f32 %v1159_v32, %v1158_v26 }
 0x130   : > { %v1629_v4 = vadd.f32 %v1628_v0, %v1627_v59  ;;  %v1686_v5 = vpop.f32.mrb[21].mxu1  ;;  %v1630_v6 = vpop.f32.mrb[22].mxu0  ;;  %v1078_v7 = vld [vmem:[#allocation2 + $0x38] sm:$0xff] }
 0x131   : > { %1063 = vst.msk [vmem:[#allocation2 + $0x48] sm:$0xff] %vm420_vm0, %v1049_v62  ;;  %v1687_v9 = vadd.f32 %v1686_v5, %v1685_v63  ;;  %v1688_v10 = vpop.f32.mrb[22].mxu1  ;;  %v1631_v11 = vpop.f32.mrb[23].mxu0  ;;  %v1098_v12 = vadd.f32 %v1960_v31, %v1078_v7  ;;  %v1574_v20 = vpack.c.bf16 %v1097_v1, %v1097_v1  ;;  %v1143_v24 = vmul.f32 %v1097_v1, %v1097_v1 }
 0x132   : > { %v1632_v16 = vadd.f32 %v1631_v11, %v1630_v6  ;;  %v1689_v17 = vpop.f32.mrb[23].mxu1  ;;  %v1115_v30 = vsel %vm420_vm0, %v1097_v1, 0.0 }
 0x133   : > { %v1027_v21 = vadd.f32 %v1687_v9, %v1629_v4  ;;  %v1690_v22 = vadd.f32 %v1689_v17, %v1688_v10  ;;  %v1575_v27 = vpack.c.bf16 %v1098_v12, %v1098_v12  ;;  %1242 = vst.msk [vmem:[%s1969_s10 + $0x18] sm:$0xf] %vm1235_vm2, %v1574_v20  ;;  %v1144_v41 = vmul.f32 %v1098_v12, %v1098_v12 }
 0x134   : > { %v1161_v42 = vsel %vm420_vm0, %v1143_v24, 0.0  ;;  %v1116_v46 = vadd.f32 %v1115_v30, %v1114_v35  ;;  %v1117_v50 = vsel %vm420_vm0, %v1098_v12, 0.0 }
 0x135   : > { %v1050_v28 = vadd.f32 %v1027_v21, %v445_v15  ;;  %v1030_v29 = vadd.f32 %v1690_v22, %v1632_v16  ;;  %1243 = vst.msk [vmem:[%s1969_s10 + $0x1c] sm:$0xf] %vm1235_vm2, %v1575_v27  ;;  %v1162_v55 = vadd.f32 %v1161_v42, %v1160_v47  ;;  %v1163_v60 = vsel %vm420_vm0, %v1144_v41, 0.0 }
 0x136   : > { %v1633_v33 = vpop.f32.mrb[24].mxu0  ;;  %v1079_v34 = vld [vmem:[#allocation2 + $0x40] sm:$0xff]  ;;  %v1118_v61 = vadd.f32 %v1117_v50, %v1116_v46 }
 0x137   : > { %1064 = vst.msk [vmem:[#allocation2 + $0x50] sm:$0xff] %vm420_vm0, %v1050_v28  ;;  %v1051_v36 = vadd.f32 %v1030_v29, %v446_v25  ;;  %v1691_v38 = vpop.f32.mrb[24].mxu1  ;;  %v1634_v39 = vpop.f32.mrb[25].mxu0  ;;  %v1099_v40 = vadd.f32 %v1960_v31, %v1079_v34  ;;  %v1164_v4 = vadd.f32 %v1163_v60, %v1162_v55 }
 0x138   : > { %v1635_v43 = vadd.f32 %v1634_v39, %v1633_v33  ;;  %v1692_v44 = vpop.f32.mrb[25].mxu1  ;;  %v1080_v45 = vld [vmem:[#allocation2 + $0x48] sm:$0xff]  ;;  %v1636_v37 = vpop.f32.mrb[26].mxu0 }
 0x139   : > { %1065 = vst.msk [vmem:[#allocation2 + $0x58] sm:$0xff] %vm420_vm0, %v1051_v36  ;;  %v1693_v48 = vadd.f32 %v1692_v44, %v1691_v38  ;;  %v1100_v49 = vadd.f32 %v1960_v31, %v1080_v45  ;;  %v1145_v51 = vmul.f32 %v1099_v40, %v1099_v40  ;;  %v1694_v52 = vpop.f32.mrb[26].mxu1  ;;  %v1637_v53 = vpop.f32.mrb[27].mxu0  ;;  %v1576_v56 = vpack.c.bf16 %v1099_v40, %v1099_v40 }
 0x13a   : > { %v1695_v57 = vpop.f32.mrb[27].mxu1  ;;  %v1119_v59 = vsel %vm420_vm0, %v1099_v40, 0.0 }
 0x13b   : > { %v1035_v58 = vadd.f32 %v1693_v48, %v1635_v43  ;;  %v1146_v62 = vmul.f32 %v1100_v49, %v1100_v49  ;;  %v1577_v63 = vpack.c.bf16 %v1100_v49, %v1100_v49  ;;  %1244 = vst.msk [vmem:[%s1969_s10 + $0x20] sm:$0xf] %vm1235_vm2, %v1576_v56  ;;  %v1165_v1 = vsel %vm420_vm0, %v1145_v51, 0.0 }
 0x13c   : > { %v1120_v3 = vadd.f32 %v1119_v59, %v1118_v61  ;;  %v1121_v6 = vsel %vm420_vm0, %v1100_v49, 0.0  ;;  %v1166_v8 = vadd.f32 %v1165_v1, %v1164_v4 }
 0x13d   : > { %v1052_v0 = vadd.f32 %v1035_v58, %v447_v54  ;;  %1245 = vst.msk [vmem:[%s1969_s10 + $0x24] sm:$0xf] %vm1235_vm2, %v1577_v63  ;;  %v1167_v9 = vsel %vm420_vm0, %v1146_v62, 0.0 }
 0x13e   : > { %v1081_v2 = vld [vmem:[#allocation2 + $0x50] sm:$0xff]  ;;  %v1122_v14 = vadd.f32 %v1121_v6, %v1120_v3  ;;  %v1168_v19 = vadd.f32 %v1167_v9, %v1166_v8 }
 0x13f   : > { %1067 = vst.msk [vmem:[#allocation2 + $0x60] sm:$0x3] %vm433_vm1, %v1052_v0  ;;  %v1101_v5 = vadd.f32 %v1960_v31, %v1081_v2 }
 0x140   : > { %v1082_v7 = vld [vmem:[#allocation2 + $0x58] sm:$0xff] }
 0x141   : > { %v1102_v10 = vadd.f32 %v1960_v31, %v1082_v7  ;;  %v1123_v11 = vsel %vm420_vm0, %v1101_v5, 0.0  ;;  %v1147_v12 = vmul.f32 %v1101_v5, %v1101_v5  ;;  %v1578_v13 = vpack.c.bf16 %v1101_v5, %v1101_v5 }
 0x142   : > { %v1124_v18 = vadd.f32 %v1123_v11, %v1122_v14 }
 0x143   : > { %v1148_v15 = vmul.f32 %v1102_v10, %v1102_v10  ;;  %v1169_v16 = vsel %vm420_vm0, %v1147_v12, 0.0  ;;  %v1579_v17 = vpack.c.bf16 %v1102_v10, %v1102_v10  ;;  %1246 = vst.msk [vmem:[%s1969_s10 + $0x28] sm:$0xf] %vm1235_vm2, %v1578_v13  ;;  %v1125_v20 = vsel %vm420_vm0, %v1102_v10, 0.0 }
 0x144   : > { %v1170_v22 = vadd.f32 %v1169_v16, %v1168_v19  ;;  %v1126_v25 = vadd.f32 %v1125_v20, %v1124_v18 }
 0x145   : > { %1247 = vst.msk [vmem:[%s1969_s10 + $0x2c] sm:$0xf] %vm1235_vm2, %v1579_v17  ;;  %v1171_v24 = vsel %vm420_vm0, %v1148_v15, 0.0 }
 0x146   : > { %v1083_v21 = vld [vmem:[#allocation2 + $0x60] sm:$0x3]  ;;  %v1172_v30 = vadd.f32 %v1171_v24, %v1170_v22 }
 0x147   : > { %v1103_v23 = vadd.f32 %v1960_v31, %v1083_v21 }
 0x149   : > { %v1127_v26 = vsel %vm433_vm1, %v1103_v23, 0.0  ;;  %v1149_v27 = vmul.f32 %v1103_v23, %v1103_v23  ;;  %v1580_v28 = vpack.c.bf16 %v1103_v23, %v1103_v23 }
 0x14a   : > { %v1128_v29 = vadd.f32 %v1127_v26, %v1126_v25 }
 0x14b   : > { %v1173_v32 = vsel %vm433_vm1, %v1149_v27, 0.0  ;;  %1248 = vst.msk [vmem:[%s1969_s10 + $0x30] sm:$0x1] %vm1135_vm3, %v1580_v28 }
 0x14c   : > { %v1129_v33 = vrot.slane %v1128_v29, 4  ;;  %v1174_v34 = vadd.f32 %v1173_v32, %v1172_v30 }
 0x14e   : > { %v1130_v35 = vadd.f32 %v1129_v33, %v1128_v29  ;;  %v1175_v31 = vrot.slane %v1174_v34, 4 }
 0x150   : > { %v1131_v36 = vrot.slane %v1130_v35, 2  ;;  %v1176_v38 = vadd.f32 %v1175_v31, %v1174_v34 }
 0x152   : > { %v1132_v39 = vadd.f32 %v1131_v36, %v1130_v35  ;;  %v1177_v40 = vrot.slane %v1176_v38, 2 }
 0x154   : > { %v1133_v41 = vrot.slane %v1132_v39, 1  ;;  %v1178_v42 = vadd.f32 %v1177_v40, %v1176_v38 }
 0x156   : > { %v1134_v43 = vadd.f32 %v1133_v41, %v1132_v39  ;;  %v1179_v44 = vrot.slane %v1178_v42, 1 }
 0x158   : > { %1136 = vst.msk [vmem:[%s405_s13] sm:$0x1] %vm1135_vm3, %v1134_v43  ;;  %v1180_v45 = vadd.f32 %v1179_v44, %v1178_v42 }
 0x15a   : > { %1181 = vst.msk [vmem:[%s414_s16] sm:$0x1] %vm1135_vm3, %v1180_v45 }
 0x15b PF: > { %s16_s20 = sadd.s32 1, %s1818_s20   ;;  %s2075_s18 = smov %s1814_s19 }
 0x15c   : > { %p13_p5 = scmp.ge.s32.totalorder %s16_s20, 6   ;;  %s2076_s19 = smov %s2078_s21 }
 0x15e   :  { %15 = sbr.rel (!%p13_p5) target bundleno = 2 (0x2), region = 100 }

// kernel: decoder_forward.8
= control target key start
LH: loop header
LB: loop body
LE: loop exit
PB: predicated region body
PF: predicated region fallthrough
CT: control target
= control target key end

     0   :  { %vm470_vm0 = vcmask 519168   ;;  %s1142_s0 = inlined_call_operand.vmem [shape: bf16[392,64], index: 0, kind: input, shape index: {}]   ;;  %s1143_s1 = inlined_call_operand.vmem [shape: f32[1,64], index: 1, kind: input, shape index: {}]   ;;  %s1144_s2 = inlined_call_operand.vmem [shape: f32[1,64], index: 2, kind: input, shape index: {}]   ;;  %s1145_s3 = inlined_call_operand.vmem [shape: bf16[392,64], index: 3, kind: output, shape index: {}]  }
   0x1   :  { %v625_v0 = vld [vmem:[%s1142_s0] sm:$0xff]   ;;  %v720_v4 = vld [vmem:[%s1142_s0 + $0x8] sm:$0xff]   ;;  %v721_v5 = vld [vmem:[%s1142_s0 + $0x10] sm:$0xff]  }
   0x2   :  { %v769_v1 = vld [vmem:[%s1143_s1] ss:$0 sm:$0xff]  ;;  %v626_v2 = vunpack.c.l.bf16 %v625_v0  ;;  %v627_v3 = vunpack.c.h.bf16 %v625_v0  ;;  %v722_v6 = vld [vmem:[%s1142_s0 + $0x18] sm:$0xff]   ;;  %v630_v8 = vunpack.c.l.bf16 %v720_v4  ;;  %v631_v9 = vunpack.c.h.bf16 %v720_v4  ;;  %v724_v41 = vld [vmem:[%s1142_s0 + $0x28] sm:$0xff]  }
   0x3   :  { %v783_v7 = vld [vmem:[%s1144_s2] ss:$0 sm:$0xff]  ;;  %v634_v10 = vunpack.c.l.bf16 %v721_v5  ;;  %v635_v11 = vunpack.c.h.bf16 %v721_v5  ;;  %v638_v14 = vunpack.c.l.bf16 %v722_v6  ;;  %v639_v15 = vunpack.c.h.bf16 %v722_v6  ;;  %v725_v42 = vld [vmem:[%s1142_s0 + $0x30] sm:$0xff]   ;;  %v726_v47 = vld [vmem:[%s1142_s0 + $0x38] sm:$0xff]  }
   0x4   :  { %v119_v12 = vmul.f32 %v626_v2, %v769_v1  ;;  %v120_v13 = vmul.f32 %v627_v3, %v769_v1  ;;  %v121_v16 = vmul.f32 %v630_v8, %v769_v1  ;;  %v122_v17 = vmul.f32 %v631_v9, %v769_v1  ;;  %v723_v36 = vld [vmem:[%s1142_s0 + $0x20] sm:$0xff]  }
   0x5   :  { %v123_v18 = vmul.f32 %v634_v10, %v769_v1  ;;  %v124_v19 = vmul.f32 %v635_v11, %v769_v1  ;;  %v125_v22 = vmul.f32 %v638_v14, %v769_v1  ;;  %v126_v23 = vmul.f32 %v639_v15, %v769_v1 }
   0x6   :  { %v175_v20 = vadd.f32 %v783_v7, %v119_v12  ;;  %v176_v21 = vadd.f32 %v783_v7, %v120_v13  ;;  %v177_v24 = vadd.f32 %v783_v7, %v121_v16  ;;  %v178_v25 = vadd.f32 %v783_v7, %v122_v17 }
   0x7   :  { %v179_v26 = vadd.f32 %v783_v7, %v123_v18  ;;  %v180_v27 = vadd.f32 %v783_v7, %v124_v19  ;;  %v181_v30 = vadd.f32 %v783_v7, %v125_v22  ;;  %v182_v31 = vadd.f32 %v783_v7, %v126_v23  ;;  %v727_v18 = vld [vmem:[%s1142_s0 + $0x40] sm:$0xff]   ;;  %v728_v23 = vld [vmem:[%s1142_s0 + $0x48] sm:$0xff]  }
   0x8   :  { %v224_v28 = vmax.f32 %v175_v20, 0.0  ;;  %v225_v29 = vmax.f32 %v176_v21, 0.0  ;;  %v226_v32 = vmax.f32 %v177_v24, 0.0  ;;  %v227_v33 = vmax.f32 %v178_v25, 0.0  ;;  %v729_v24 = vld [vmem:[%s1142_s0 + $0x50] sm:$0xff]  }
   0x9   :  { %v228_v34 = vmax.f32 %v179_v26, 0.0  ;;  %v229_v35 = vmax.f32 %v180_v27, 0.0  ;;  %v230_v39 = vmax.f32 %v181_v30, 0.0  ;;  %v231_v40 = vmax.f32 %v182_v31, 0.0 }
   0xa   :  { %v575_v37 = vpack.c.bf16 %v224_v28, %v224_v28  ;;  %v576_v38 = vpack.c.bf16 %v225_v29, %v225_v29  ;;  %v577_v43 = vpack.c.bf16 %v226_v32, %v226_v32  ;;  %v578_v44 = vpack.c.bf16 %v227_v33, %v227_v33  ;;  %v730_v29 = vld [vmem:[%s1142_s0 + $0x58] sm:$0xff]  }
   0xb   :  { %v579_v45 = vpack.c.bf16 %v228_v34, %v228_v34  ;;  %v580_v46 = vpack.c.bf16 %v229_v35, %v229_v35  ;;  %v581_v48 = vpack.c.bf16 %v230_v39, %v230_v39  ;;  %v582_v49 = vpack.c.bf16 %v231_v40, %v231_v40 }
   0xc   :  { %471 = vst.msk [vmem:[%s1145_s3] sm:$0xf] %vm470_vm0, %v575_v37  ;;  %472 = vst.msk [vmem:[%s1145_s3 + $0x4] sm:$0xf] %vm470_vm0, %v576_v38  ;;  %v642_v50 = vunpack.c.l.bf16 %v723_v36  ;;  %v643_v51 = vunpack.c.h.bf16 %v723_v36  ;;  %v646_v52 = vunpack.c.l.bf16 %v724_v41  ;;  %v647_v53 = vunpack.c.h.bf16 %v724_v41 }
   0xd   :  { %473 = vst.msk [vmem:[%s1145_s3 + $0x8] sm:$0xf] %vm470_vm0, %v577_v43  ;;  %474 = vst.msk [vmem:[%s1145_s3 + $0xc] sm:$0xf] %vm470_vm0, %v578_v44  ;;  %v650_v54 = vunpack.c.l.bf16 %v725_v42  ;;  %v651_v55 = vunpack.c.h.bf16 %v725_v42  ;;  %v654_v58 = vunpack.c.l.bf16 %v726_v47  ;;  %v655_v59 = vunpack.c.h.bf16 %v726_v47 }
   0xe   :  { %475 = vst.msk [vmem:[%s1145_s3 + $0x10] sm:$0xf] %vm470_vm0, %v579_v45  ;;  %476 = vst.msk [vmem:[%s1145_s3 + $0x14] sm:$0xf] %vm470_vm0, %v580_v46  ;;  %v127_v56 = vmul.f32 %v642_v50, %v769_v1  ;;  %v128_v57 = vmul.f32 %v643_v51, %v769_v1  ;;  %v129_v60 = vmul.f32 %v646_v52, %v769_v1  ;;  %v658_v32 = vunpack.c.l.bf16 %v727_v18 }
   0xf   :  { %477 = vst.msk [vmem:[%s1145_s3 + $0x18] sm:$0xf] %vm470_vm0, %v581_v48  ;;  %478 = vst.msk [vmem:[%s1145_s3 + $0x1c] sm:$0xf] %vm470_vm0, %v582_v49  ;;  %v130_v61 = vmul.f32 %v647_v53, %v769_v1  ;;  %v131_v62 = vmul.f32 %v650_v54, %v769_v1  ;;  %v132_v63 = vmul.f32 %v651_v55, %v769_v1  ;;  %v659_v33 = vunpack.c.h.bf16 %v727_v18 }
  0x10   :  { %v183_v0 = vadd.f32 %v783_v7, %v127_v56  ;;  %v184_v2 = vadd.f32 %v783_v7, %v128_v57  ;;  %v133_v3 = vmul.f32 %v654_v58, %v769_v1  ;;  %v134_v4 = vmul.f32 %v655_v59, %v769_v1 }
  0x11   :  { %v185_v5 = vadd.f32 %v783_v7, %v129_v60  ;;  %v186_v6 = vadd.f32 %v783_v7, %v130_v61  ;;  %v187_v8 = vadd.f32 %v783_v7, %v131_v62  ;;  %v188_v9 = vadd.f32 %v783_v7, %v132_v63  ;;  %v731_v62 = vld [vmem:[%s1142_s0 + $0x60] sm:$0xff]  }
  0x12   :  { %v232_v10 = vmax.f32 %v183_v0, 0.0  ;;  %v233_v11 = vmax.f32 %v184_v2, 0.0  ;;  %v189_v12 = vadd.f32 %v783_v7, %v133_v3  ;;  %v190_v13 = vadd.f32 %v783_v7, %v134_v4  ;;  %v732_v4 = vld [vmem:[%s1142_s0 + $0x68] sm:$0xff]  }
  0x13   :  { %v234_v14 = vmax.f32 %v185_v5, 0.0  ;;  %v235_v15 = vmax.f32 %v186_v6, 0.0  ;;  %v236_v16 = vmax.f32 %v187_v8, 0.0  ;;  %v237_v17 = vmax.f32 %v188_v9, 0.0  ;;  %v733_v5 = vld [vmem:[%s1142_s0 + $0x70] sm:$0xff]  }
  0x14   :  { %v583_v19 = vpack.c.bf16 %v232_v10, %v232_v10  ;;  %v584_v20 = vpack.c.bf16 %v233_v11, %v233_v11  ;;  %v238_v21 = vmax.f32 %v189_v12, 0.0  ;;  %v239_v22 = vmax.f32 %v190_v13, 0.0  ;;  %v734_v11 = vld [vmem:[%s1142_s0 + $0x78] sm:$0xff]  }
  0x15   :  { %v585_v25 = vpack.c.bf16 %v234_v14, %v234_v14  ;;  %v586_v26 = vpack.c.bf16 %v235_v15, %v235_v15  ;;  %v587_v27 = vpack.c.bf16 %v236_v16, %v236_v16  ;;  %v588_v28 = vpack.c.bf16 %v237_v17, %v237_v17 }
  0x16   :  { %479 = vst.msk [vmem:[%s1145_s3 + $0x20] sm:$0xf] %vm470_vm0, %v583_v19  ;;  %480 = vst.msk [vmem:[%s1145_s3 + $0x24] sm:$0xf] %vm470_vm0, %v584_v20  ;;  %v589_v30 = vpack.c.bf16 %v238_v21, %v238_v21  ;;  %v590_v31 = vpack.c.bf16 %v239_v22, %v239_v22  ;;  %v662_v34 = vunpack.c.l.bf16 %v728_v23  ;;  %v663_v35 = vunpack.c.h.bf16 %v728_v23 }
  0x17   :  { %481 = vst.msk [vmem:[%s1145_s3 + $0x28] sm:$0xf] %vm470_vm0, %v585_v25  ;;  %482 = vst.msk [vmem:[%s1145_s3 + $0x2c] sm:$0xf] %vm470_vm0, %v586_v26  ;;  %v666_v36 = vunpack.c.l.bf16 %v729_v24  ;;  %v667_v37 = vunpack.c.h.bf16 %v729_v24  ;;  %v135_v38 = vmul.f32 %v658_v32, %v769_v1  ;;  %v136_v39 = vmul.f32 %v659_v33, %v769_v1 }
  0x18   :  { %483 = vst.msk [vmem:[%s1145_s3 + $0x30] sm:$0xf] %vm470_vm0, %v587_v27  ;;  %484 = vst.msk [vmem:[%s1145_s3 + $0x34] sm:$0xf] %vm470_vm0, %v588_v28  ;;  %v670_v40 = vunpack.c.l.bf16 %v730_v29  ;;  %v671_v41 = vunpack.c.h.bf16 %v730_v29  ;;  %v137_v42 = vmul.f32 %v662_v34, %v769_v1  ;;  %v138_v43 = vmul.f32 %v663_v35, %v769_v1 }
  0x19   :  { %485 = vst.msk [vmem:[%s1145_s3 + $0x38] sm:$0xf] %vm470_vm0, %v589_v30  ;;  %486 = vst.msk [vmem:[%s1145_s3 + $0x3c] sm:$0xf] %vm470_vm0, %v590_v31  ;;  %v139_v44 = vmul.f32 %v666_v36, %v769_v1  ;;  %v140_v45 = vmul.f32 %v667_v37, %v769_v1  ;;  %v191_v46 = vadd.f32 %v783_v7, %v135_v38  ;;  %v674_v14 = vunpack.c.l.bf16 %v731_v62 }
  0x1a   :  { %v192_v47 = vadd.f32 %v783_v7, %v136_v39  ;;  %v141_v48 = vmul.f32 %v670_v40, %v769_v1  ;;  %v142_v49 = vmul.f32 %v671_v41, %v769_v1  ;;  %v193_v50 = vadd.f32 %v783_v7, %v137_v42 }
  0x1b   :  { %v194_v51 = vadd.f32 %v783_v7, %v138_v43  ;;  %v195_v52 = vadd.f32 %v783_v7, %v139_v44  ;;  %v196_v53 = vadd.f32 %v783_v7, %v140_v45  ;;  %v240_v54 = vmax.f32 %v191_v46, 0.0  ;;  %v735_v44 = vld [vmem:[%s1142_s0 + $0x80] sm:$0xff]  }
  0x1c   :  { %v241_v55 = vmax.f32 %v192_v47, 0.0  ;;  %v197_v56 = vadd.f32 %v783_v7, %v141_v48  ;;  %v198_v57 = vadd.f32 %v783_v7, %v142_v49  ;;  %v242_v58 = vmax.f32 %v193_v50, 0.0  ;;  %v736_v49 = vld [vmem:[%s1142_s0 + $0x88] sm:$0xff]   ;;  %v737_v50 = vld [vmem:[%s1142_s0 + $0x90] sm:$0xff]  }
  0x1d   :  { %v243_v59 = vmax.f32 %v194_v51, 0.0  ;;  %v244_v60 = vmax.f32 %v195_v52, 0.0  ;;  %v245_v61 = vmax.f32 %v196_v53, 0.0  ;;  %v591_v63 = vpack.c.bf16 %v240_v54, %v240_v54 }
  0x1e   :  { %v592_v0 = vpack.c.bf16 %v241_v55, %v241_v55  ;;  %v246_v2 = vmax.f32 %v197_v56, 0.0  ;;  %v247_v3 = vmax.f32 %v198_v57, 0.0  ;;  %v593_v6 = vpack.c.bf16 %v242_v58, %v242_v58  ;;  %v738_v55 = vld [vmem:[%s1142_s0 + $0x98] sm:$0xff]  }
  0x1f   :  { %v594_v8 = vpack.c.bf16 %v243_v59, %v243_v59  ;;  %v595_v9 = vpack.c.bf16 %v244_v60, %v244_v60  ;;  %v596_v10 = vpack.c.bf16 %v245_v61, %v245_v61  ;;  %487 = vst.msk [vmem:[%s1145_s3 + $0x40] sm:$0xf] %vm470_vm0, %v591_v63  ;;  %v675_v15 = vunpack.c.h.bf16 %v731_v62 }
  0x20   :  { %488 = vst.msk [vmem:[%s1145_s3 + $0x44] sm:$0xf] %vm470_vm0, %v592_v0  ;;  %v597_v12 = vpack.c.bf16 %v246_v2, %v246_v2  ;;  %v598_v13 = vpack.c.bf16 %v247_v3, %v247_v3  ;;  %489 = vst.msk [vmem:[%s1145_s3 + $0x48] sm:$0xf] %vm470_vm0, %v593_v6  ;;  %v678_v16 = vunpack.c.l.bf16 %v732_v4  ;;  %v679_v17 = vunpack.c.h.bf16 %v732_v4 }
  0x21   :  { %490 = vst.msk [vmem:[%s1145_s3 + $0x4c] sm:$0xf] %vm470_vm0, %v594_v8  ;;  %491 = vst.msk [vmem:[%s1145_s3 + $0x50] sm:$0xf] %vm470_vm0, %v595_v9  ;;  %v682_v18 = vunpack.c.l.bf16 %v733_v5  ;;  %v683_v19 = vunpack.c.h.bf16 %v733_v5  ;;  %v143_v20 = vmul.f32 %v674_v14, %v769_v1  ;;  %v144_v21 = vmul.f32 %v675_v15, %v769_v1 }
  0x22   :  { %492 = vst.msk [vmem:[%s1145_s3 + $0x54] sm:$0xf] %vm470_vm0, %v596_v10  ;;  %493 = vst.msk [vmem:[%s1145_s3 + $0x58] sm:$0xf] %vm470_vm0, %v597_v12  ;;  %v686_v22 = vunpack.c.l.bf16 %v734_v11  ;;  %v687_v23 = vunpack.c.h.bf16 %v734_v11  ;;  %v145_v24 = vmul.f32 %v678_v16, %v769_v1  ;;  %v146_v25 = vmul.f32 %v679_v17, %v769_v1 }
  0x23   :  { %494 = vst.msk [vmem:[%s1145_s3 + $0x5c] sm:$0xf] %vm470_vm0, %v598_v13  ;;  %v147_v26 = vmul.f32 %v682_v18, %v769_v1  ;;  %v148_v27 = vmul.f32 %v683_v19, %v769_v1  ;;  %v199_v28 = vadd.f32 %v783_v7, %v143_v20  ;;  %v200_v29 = vadd.f32 %v783_v7, %v144_v21 }
  0x24   :  { %v149_v30 = vmul.f32 %v686_v22, %v769_v1  ;;  %v150_v31 = vmul.f32 %v687_v23, %v769_v1  ;;  %v201_v32 = vadd.f32 %v783_v7, %v145_v24  ;;  %v202_v33 = vadd.f32 %v783_v7, %v146_v25 }
  0x25   :  { %v203_v34 = vadd.f32 %v783_v7, %v147_v26  ;;  %v204_v35 = vadd.f32 %v783_v7, %v148_v27  ;;  %v248_v36 = vmax.f32 %v199_v28, 0.0  ;;  %v249_v37 = vmax.f32 %v200_v29, 0.0  ;;  %v739_v26 = vld [vmem:[%s1142_s0 + $0xa0] sm:$0xff]  }
  0x26   :  { %v205_v38 = vadd.f32 %v783_v7, %v149_v30  ;;  %v206_v39 = vadd.f32 %v783_v7, %v150_v31  ;;  %v250_v40 = vmax.f32 %v201_v32, 0.0  ;;  %v251_v41 = vmax.f32 %v202_v33, 0.0  ;;  %v740_v31 = vld [vmem:[%s1142_s0 + $0xa8] sm:$0xff]   ;;  %v741_v32 = vld [vmem:[%s1142_s0 + $0xb0] sm:$0xff]  }
  0x27   :  { %v252_v42 = vmax.f32 %v203_v34, 0.0  ;;  %v253_v43 = vmax.f32 %v204_v35, 0.0  ;;  %v599_v45 = vpack.c.bf16 %v248_v36, %v248_v36  ;;  %v600_v46 = vpack.c.bf16 %v249_v37, %v249_v37  ;;  %v742_v37 = vld [vmem:[%s1142_s0 + $0xb8] sm:$0xff]  }
  0x28   :  { %v254_v47 = vmax.f32 %v205_v38, 0.0  ;;  %v255_v48 = vmax.f32 %v206_v39, 0.0  ;;  %v601_v51 = vpack.c.bf16 %v250_v40, %v250_v40  ;;  %v602_v52 = vpack.c.bf16 %v251_v41, %v251_v41 }
  0x29   :  { %v603_v53 = vpack.c.bf16 %v252_v42, %v252_v42  ;;  %v604_v54 = vpack.c.bf16 %v253_v43, %v253_v43  ;;  %495 = vst.msk [vmem:[%s1145_s3 + $0x60] sm:$0xf] %vm470_vm0, %v599_v45  ;;  %496 = vst.msk [vmem:[%s1145_s3 + $0x64] sm:$0xf] %vm470_vm0, %v600_v46  ;;  %v690_v58 = vunpack.c.l.bf16 %v735_v44  ;;  %v691_v59 = vunpack.c.h.bf16 %v735_v44 }
  0x2a   :  { %v605_v56 = vpack.c.bf16 %v254_v47, %v254_v47  ;;  %v606_v57 = vpack.c.bf16 %v255_v48, %v255_v48  ;;  %497 = vst.msk [vmem:[%s1145_s3 + $0x68] sm:$0xf] %vm470_vm0, %v601_v51  ;;  %498 = vst.msk [vmem:[%s1145_s3 + $0x6c] sm:$0xf] %vm470_vm0, %v602_v52  ;;  %v694_v60 = vunpack.c.l.bf16 %v736_v49  ;;  %v695_v61 = vunpack.c.h.bf16 %v736_v49 }
  0x2b   :  { %499 = vst.msk [vmem:[%s1145_s3 + $0x70] sm:$0xf] %vm470_vm0, %v603_v53  ;;  %500 = vst.msk [vmem:[%s1145_s3 + $0x74] sm:$0xf] %vm470_vm0, %v604_v54  ;;  %v698_v62 = vunpack.c.l.bf16 %v737_v50  ;;  %v699_v63 = vunpack.c.h.bf16 %v737_v50  ;;  %v151_v0 = vmul.f32 %v690_v58, %v769_v1  ;;  %v152_v2 = vmul.f32 %v691_v59, %v769_v1 }
  0x2c   :  { %501 = vst.msk [vmem:[%s1145_s3 + $0x78] sm:$0xf] %vm470_vm0, %v605_v56  ;;  %502 = vst.msk [vmem:[%s1145_s3 + $0x7c] sm:$0xf] %vm470_vm0, %v606_v57  ;;  %v702_v3 = vunpack.c.l.bf16 %v738_v55  ;;  %v703_v4 = vunpack.c.h.bf16 %v738_v55  ;;  %v153_v5 = vmul.f32 %v694_v60, %v769_v1  ;;  %v154_v6 = vmul.f32 %v695_v61, %v769_v1 }
  0x2d   :  { %v155_v8 = vmul.f32 %v698_v62, %v769_v1  ;;  %v156_v9 = vmul.f32 %v699_v63, %v769_v1  ;;  %v207_v10 = vadd.f32 %v783_v7, %v151_v0  ;;  %v208_v11 = vadd.f32 %v783_v7, %v152_v2 }
  0x2e   :  { %v157_v12 = vmul.f32 %v702_v3, %v769_v1  ;;  %v158_v13 = vmul.f32 %v703_v4, %v769_v1  ;;  %v209_v14 = vadd.f32 %v783_v7, %v153_v5  ;;  %v210_v15 = vadd.f32 %v783_v7, %v154_v6 }
  0x2f   :  { %v211_v16 = vadd.f32 %v783_v7, %v155_v8  ;;  %v212_v17 = vadd.f32 %v783_v7, %v156_v9  ;;  %v256_v18 = vmax.f32 %v207_v10, 0.0  ;;  %v257_v19 = vmax.f32 %v208_v11, 0.0  ;;  %v62_v8 = vld [vmem:[%s1142_s0 + $0xc0] sm:$0xf] }
  0x30   :  { %v213_v20 = vadd.f32 %v783_v7, %v157_v12  ;;  %v214_v21 = vadd.f32 %v783_v7, %v158_v13  ;;  %v258_v22 = vmax.f32 %v209_v14, 0.0  ;;  %v259_v23 = vmax.f32 %v210_v15, 0.0 }
  0x31   :  { %v260_v24 = vmax.f32 %v211_v16, 0.0  ;;  %v261_v25 = vmax.f32 %v212_v17, 0.0  ;;  %v607_v27 = vpack.c.bf16 %v256_v18, %v256_v18  ;;  %v608_v28 = vpack.c.bf16 %v257_v19, %v257_v19 }
  0x32   :  { %v262_v29 = vmax.f32 %v213_v20, 0.0  ;;  %v263_v30 = vmax.f32 %v214_v21, 0.0  ;;  %v609_v33 = vpack.c.bf16 %v258_v22, %v258_v22  ;;  %v610_v34 = vpack.c.bf16 %v259_v23, %v259_v23 }
  0x33   :  { %v611_v35 = vpack.c.bf16 %v260_v24, %v260_v24  ;;  %v612_v36 = vpack.c.bf16 %v261_v25, %v261_v25  ;;  %503 = vst.msk [vmem:[%s1145_s3 + $0x80] sm:$0xf] %vm470_vm0, %v607_v27  ;;  %504 = vst.msk [vmem:[%s1145_s3 + $0x84] sm:$0xf] %vm470_vm0, %v608_v28  ;;  %v706_v40 = vunpack.c.l.bf16 %v739_v26  ;;  %v707_v41 = vunpack.c.h.bf16 %v739_v26 }
  0x34   :  { %v613_v38 = vpack.c.bf16 %v262_v29, %v262_v29  ;;  %v614_v39 = vpack.c.bf16 %v263_v30, %v263_v30  ;;  %505 = vst.msk [vmem:[%s1145_s3 + $0x88] sm:$0xf] %vm470_vm0, %v609_v33  ;;  %506 = vst.msk [vmem:[%s1145_s3 + $0x8c] sm:$0xf] %vm470_vm0, %v610_v34  ;;  %v710_v42 = vunpack.c.l.bf16 %v740_v31  ;;  %v711_v43 = vunpack.c.h.bf16 %v740_v31 }
  0x35   :  { %507 = vst.msk [vmem:[%s1145_s3 + $0x90] sm:$0xf] %vm470_vm0, %v611_v35  ;;  %508 = vst.msk [vmem:[%s1145_s3 + $0x94] sm:$0xf] %vm470_vm0, %v612_v36  ;;  %v714_v44 = vunpack.c.l.bf16 %v741_v32  ;;  %v715_v45 = vunpack.c.h.bf16 %v741_v32  ;;  %v159_v46 = vmul.f32 %v706_v40, %v769_v1  ;;  %v160_v47 = vmul.f32 %v707_v41, %v769_v1 }
  0x36   :  { %509 = vst.msk [vmem:[%s1145_s3 + $0x98] sm:$0xf] %vm470_vm0, %v613_v38  ;;  %510 = vst.msk [vmem:[%s1145_s3 + $0x9c] sm:$0xf] %vm470_vm0, %v614_v39  ;;  %v718_v48 = vunpack.c.l.bf16 %v742_v37  ;;  %v719_v49 = vunpack.c.h.bf16 %v742_v37  ;;  %v161_v50 = vmul.f32 %v710_v42, %v769_v1  ;;  %v162_v51 = vmul.f32 %v711_v43, %v769_v1 }
  0x37   :  { %v163_v52 = vmul.f32 %v714_v44, %v769_v1  ;;  %v164_v53 = vmul.f32 %v715_v45, %v769_v1  ;;  %v215_v54 = vadd.f32 %v783_v7, %v159_v46  ;;  %v216_v55 = vadd.f32 %v783_v7, %v160_v47 }
  0x38   :  { %v165_v56 = vmul.f32 %v718_v48, %v769_v1  ;;  %v166_v57 = vmul.f32 %v719_v49, %v769_v1  ;;  %v217_v58 = vadd.f32 %v783_v7, %v161_v50  ;;  %v218_v59 = vadd.f32 %v783_v7, %v162_v51 }
  0x39   :  { %v219_v60 = vadd.f32 %v783_v7, %v163_v52  ;;  %v220_v61 = vadd.f32 %v783_v7, %v164_v53  ;;  %v264_v62 = vmax.f32 %v215_v54, 0.0  ;;  %v265_v63 = vmax.f32 %v216_v55, 0.0 }
  0x3a   :  { %v221_v0 = vadd.f32 %v783_v7, %v165_v56  ;;  %v222_v2 = vadd.f32 %v783_v7, %v166_v57  ;;  %v266_v3 = vmax.f32 %v217_v58, 0.0  ;;  %v267_v4 = vmax.f32 %v218_v59, 0.0 }
  0x3b   :  { %v268_v5 = vmax.f32 %v219_v60, 0.0  ;;  %v269_v6 = vmax.f32 %v220_v61, 0.0  ;;  %v615_v9 = vpack.c.bf16 %v264_v62, %v264_v62  ;;  %v616_v10 = vpack.c.bf16 %v265_v63, %v265_v63 }
  0x3c   :  { %v270_v11 = vmax.f32 %v221_v0, 0.0  ;;  %v271_v12 = vmax.f32 %v222_v2, 0.0  ;;  %v617_v13 = vpack.c.bf16 %v266_v3, %v266_v3  ;;  %v618_v14 = vpack.c.bf16 %v267_v4, %v267_v4 }
  0x3d   :  { %v619_v15 = vpack.c.bf16 %v268_v5, %v268_v5  ;;  %v620_v16 = vpack.c.bf16 %v269_v6, %v269_v6  ;;  %511 = vst.msk [vmem:[%s1145_s3 + $0xa0] sm:$0xf] %vm470_vm0, %v615_v9  ;;  %512 = vst.msk [vmem:[%s1145_s3 + $0xa4] sm:$0xf] %vm470_vm0, %v616_v10  ;;  %v111_v19 = vunpack.c.l.bf16 %v62_v8 }
  0x3e   :  { %v621_v17 = vpack.c.bf16 %v270_v11, %v270_v11  ;;  %v622_v18 = vpack.c.bf16 %v271_v12, %v271_v12  ;;  %513 = vst.msk [vmem:[%s1145_s3 + $0xa8] sm:$0xf] %vm470_vm0, %v617_v13  ;;  %514 = vst.msk [vmem:[%s1145_s3 + $0xac] sm:$0xf] %vm470_vm0, %v618_v14 }
  0x3f   :  { %515 = vst.msk [vmem:[%s1145_s3 + $0xb0] sm:$0xf] %vm470_vm0, %v619_v15  ;;  %516 = vst.msk [vmem:[%s1145_s3 + $0xb4] sm:$0xf] %vm470_vm0, %v620_v16  ;;  %v167_v20 = vmul.f32 %v769_v1, %v111_v19 }
  0x40   :  { %517 = vst.msk [vmem:[%s1145_s3 + $0xb8] sm:$0xf] %vm470_vm0, %v621_v17  ;;  %518 = vst.msk [vmem:[%s1145_s3 + $0xbc] sm:$0xf] %vm470_vm0, %v622_v18 }
  0x41   :  { %v223_v21 = vadd.f32 %v783_v7, %v167_v20 }
  0x43   :  { %v272_v22 = vmax.f32 %v223_v21, 0.0 }
  0x45   :  { %v623_v23 = vpack.c.bf16 %v272_v22, %v272_v22 }
  0x47   :  { %519 = vst.msk [vmem:[%s1145_s3 + $0xc0] sm:$0xf] %vm470_vm0, %v623_v23 }

// kernel: decoder_forward.9
= control target key start
LH: loop header
LB: loop body
LE: loop exit
PB: predicated region body
PF: predicated region fallthrough
CT: control target
= control target key end

     0   :  { %s2504_s18 = smov 0   ;;  %s2506_s19 = smov 0   ;;  %s3270_s0 = inlined_call_operand.vmem [shape: bf16[4,392,256], index: 0, kind: input, shape index: {}]   ;;  %s3271_s1 = inlined_call_operand.vmem [shape: bf16[4,256,32], index: 1, kind: input, shape index: {}]   ;;  %s3272_s2 = inlined_call_operand.vmem [shape: f32[1,32], index: 2, kind: input, shape index: {}]   ;;  %s3273_s3 = inlined_call_operand.vmem [shape: bf16[4,392,32], index: 3, kind: output, shape index: {0}]   ;;  %s3274_s4 = inlined_call_operand.vmem [shape: f32[4,1,1,32], index: 4, kind: output, shape index: {1}]   ;;  %s3275_s5 = inlined_call_operand.vmem [shape: f32[4,1,1,32], index: 5, kind: output, shape index: {2}]  }
   0x1   :  { %s2508_s20 = smov 0  }
   0x2 LB: > { %s34_s21 = sadd.s32 1, %s2466_s19  ;;  %p2124_p0 = scmp.ge.s32.totalorder %s2470_s20, 1  ;;  %s2470_s20 = sphi %s2508_s20, %s16_s20   ;;  %s2466_s19 = sphi %s2506_s19, %s3277_s19   ;;  %s2462_s18 = sphi %s2504_s18, %s3276_s18  }
   0x3   : > { %p36_p1 = scmp.ge.s32.totalorder %s34_s21, 4  ;;  %p275_p2 = scmp.lt.s32.totalorder %s2470_s20, 5 }
   0x5   : > { %s3279_s21 = smov (%p36_p1, %s34_s21), 0  ;;  %p276_p3 = pnand %p2124_p0, %p275_p2 }
   0x6   : > { %p354_p4 = scmp.lt.s32.totalorder (!%p276_p3), %s2462_s18, 3  ;;  %v2472_v0 = vmov (!%p276_p3), 0   ;;  %vm420_vm0 = vcmask (!%p276_p3), 261120   ;;  %v2473_v13 = vmov (!%p276_p3), 0.0   ;;  %vm1837_vm1 = vcmask (!%p276_p3), 257024  }
   0x7   : > { %279 = sbr.rel (%p276_p3) target bundleno = 467 (0x1d3), region = 32  ;;  %943 = vmatprep.subr.bf16.mxu0 (!%p276_p3), %v2472_v0  ;;  %2297 = vmatprep.subr.bf16.mxu1 (!%p276_p3), %v2472_v0  ;;  %421 = vst.msk [vmem:[#allocation2] sm:$0xff] (!%p276_p3), %vm420_vm0, %v2473_v13  ;;  %422 = vst.msk [vmem:[#allocation2 + $0x8] sm:$0xff] (!%p276_p3), %vm420_vm0, %v2473_v13  ;;  %vm1485_vm2 = vcmask (!%p276_p3), 253952  }
   0x8   : > { %423 = vst.msk [vmem:[#allocation2 + $0x10] sm:$0xff] (!%p276_p3), %vm420_vm0, %v2473_v13  ;;  %424 = vst.msk [vmem:[#allocation2 + $0x18] sm:$0xff] (!%p276_p3), %vm420_vm0, %v2473_v13 }
   0x9   : > { %425 = vst.msk [vmem:[#allocation2 + $0x20] sm:$0xff] (!%p276_p3), %vm420_vm0, %v2473_v13  ;;  %426 = vst.msk [vmem:[#allocation2 + $0x28] sm:$0xff] (!%p276_p3), %vm420_vm0, %v2473_v13 }
   0xa   : > { %427 = vst.msk [vmem:[#allocation2 + $0x30] sm:$0xff] (!%p276_p3), %vm420_vm0, %v2473_v13  ;;  %428 = vst.msk [vmem:[#allocation2 + $0x38] sm:$0xff] (!%p276_p3), %vm420_vm0, %v2473_v13 }
   0xb   : > { %429 = vst.msk [vmem:[#allocation2 + $0x40] sm:$0xff] (!%p276_p3), %vm420_vm0, %v2473_v13  ;;  %430 = vst.msk [vmem:[#allocation2 + $0x48] sm:$0xff] (!%p276_p3), %vm420_vm0, %v2473_v13 }
   0xc   : > { %431 = vst.msk [vmem:[#allocation2 + $0x50] sm:$0xff] (!%p276_p3), %vm420_vm0, %v2473_v13  ;;  %432 = vst.msk [vmem:[#allocation2 + $0x58] sm:$0xff] (!%p276_p3), %vm420_vm0, %v2473_v13 }
   0xd   : > { %433 = vst.msk [vmem:[#allocation2 + $0x60] sm:$0xff] (!%p276_p3), %vm420_vm0, %v2473_v13  ;;  %434 = vst.msk [vmem:[#allocation2 + $0x68] sm:$0xff] (!%p276_p3), %vm420_vm0, %v2473_v13 }
   0xe   : > { %s3281_s18 = smov (!%p354_p4, %s2462_s18), 3  ;;  %435 = vst.msk [vmem:[#allocation2 + $0x70] sm:$0xff] %vm420_vm0, %v2473_v13  ;;  %436 = vst.msk [vmem:[#allocation2 + $0x78] sm:$0xff] %vm420_vm0, %v2473_v13 }
   0xf   : > { %s2247_s22 = sshll.u32 %s3281_s18, 7  ;;  %s2329_s26 = smul.u32 392, %s3281_s18  ;;  %437 = vst.msk [vmem:[#allocation2 + $0x80] sm:$0xff] %vm420_vm0, %v2473_v13  ;;  %438 = vst.msk [vmem:[#allocation2 + $0x88] sm:$0xff] %vm420_vm0, %v2473_v13 }
  0x10   : > { %s2530_s25 = scalar_lea.vmem %s3271_s1, %s2247_s22  ;;  %439 = vst.msk [vmem:[#allocation2 + $0x90] sm:$0xff] %vm420_vm0, %v2473_v13  ;;  %440 = vst.msk [vmem:[#allocation2 + $0x98] sm:$0xff] %vm420_vm0, %v2473_v13  ;;  %s2330_s30 = smul.u32 196, %s3281_s18 }
  0x11   : > { %v2357_v1 = vld [vmem:[%s2530_s25] sm:$0xff]   ;;  %v2358_v2 = vld [vmem:[%s2530_s25 + $0x8] sm:$0xff]   ;;  %v2359_v3 = vld [vmem:[%s2530_s25 + $0x10] sm:$0xff]   ;;  %s2546_s29 = scalar_lea.vmem %s3270_s0, %s2329_s26  ;;  %441 = vst.msk [vmem:[#allocation2 + $0xa0] sm:$0xff] %vm420_vm0, %v2473_v13  ;;  %s405_s15 = scalar_lea.vmem %s3274_s4, %s3281_s18 }
  0x12   : > { %944 = vmatpush1.bf16.msra.mxu0 %v2357_v1  ;;  %2313 = vmatpush1.bf16.msra.mxu1 %v2357_v1  ;;  %v2360_v4 = vld [vmem:[%s2530_s25 + $0x18] sm:$0xff]   ;;  %v2361_v5 = vld [vmem:[%s2530_s25 + $0x20] sm:$0xff]   ;;  %v2362_v7 = vld [vmem:[%s2530_s25 + $0x28] sm:$0xff]   ;;  %442 = vst.msk [vmem:[#allocation2 + $0xa8] sm:$0xff] %vm420_vm0, %v2473_v13  ;;  %s2703_s10 = scalar_lea.vmem %s3273_s3, %s2330_s30  ;;  %s414_s22 = scalar_lea.vmem %s3275_s5, %s3281_s18 }
  0x13   : > { %945 = vmatprep.subr.bf16.mxu0 %v2472_v0  ;;  %2298 = vmatprep.subr.bf16.mxu1 %v2472_v0  ;;  %v2375_v6 = vld [vmem:[%s2546_s29 + $0x4] ss:$8 sps:$4 sm:$0xff]   ;;  %v2363_v8 = vld [vmem:[%s2530_s25 + $0x30] sm:$0xff]   ;;  %v2364_v9 = vld [vmem:[%s2530_s25 + $0x38] sm:$0xff]   ;;  %443 = vst.msk [vmem:[#allocation2 + $0xb0] sm:$0xff] %vm420_vm0, %v2473_v13 }
  0x14   : > { %975 = vmatprep.mubr.bf16.mxu0 %v2375_v6  ;;  %v2396_v10 = vld [vmem:[%s2546_s29 + $0xd4] ss:$8 sps:$4 sm:$0xff]   ;;  %v2365_v11 = vld [vmem:[%s2530_s25 + $0x40] sm:$0xff]   ;;  %v2366_v12 = vld [vmem:[%s2530_s25 + $0x48] sm:$0xff]   ;;  %444 = vst.msk [vmem:[#allocation2 + $0xb8] sm:$0xff] %vm420_vm0, %v2473_v13 }
  0x15   : > { %1079 = vmatprep.mubr.bf16.mxu1 %v2396_v10  ;;  %445 = vst.msk [vmem:[#allocation2 + $0xc0] sm:$0xff] %vm420_vm0, %v2473_v13  ;;  %446 = vst.msk [vmem:[#allocation2 + $0xc8] sm:$0xff] %vm420_vm0, %v2473_v13  ;;  %v2367_v14 = vld [vmem:[%s2530_s25 + $0x50] sm:$0xff]   ;;  %v2368_v15 = vld [vmem:[%s2530_s25 + $0x58] sm:$0xff]  }
  0x16   : > { %946 = vmatpush1.bf16.msra.mxu0 %v2358_v2  ;;  %2314 = vmatpush1.bf16.msra.mxu1 %v2358_v2  ;;  %447 = vst.msk [vmem:[#allocation2 + $0xd0] sm:$0xff] %vm420_vm0, %v2473_v13  ;;  %448 = vst.msk [vmem:[#allocation2 + $0xd8] sm:$0xff] %vm420_vm0, %v2473_v13  ;;  %v2369_v16 = vld [vmem:[%s2530_s25 + $0x60] sm:$0xff]   ;;  %v2370_v17 = vld [vmem:[%s2530_s25 + $0x68] sm:$0xff]  }
  0x17   : > { %947 = vmatprep.subr.bf16.mxu0 %v2472_v0  ;;  %2299 = vmatprep.subr.bf16.mxu1 %v2472_v0  ;;  %449 = vst.msk [vmem:[#allocation2 + $0xe0] sm:$0xff] %vm420_vm0, %v2473_v13  ;;  %450 = vst.msk [vmem:[#allocation2 + $0xe8] sm:$0xff] %vm420_vm0, %v2473_v13  ;;  %v2371_v18 = vld [vmem:[%s2530_s25 + $0x70] sm:$0xff]   ;;  %v2372_v19 = vld [vmem:[%s2530_s25 + $0x78] sm:$0xff]  }
  0x18   : > { %451 = vst.msk [vmem:[#allocation2 + $0xf0] sm:$0xff] %vm420_vm0, %v2473_v13  ;;  %452 = vst.msk [vmem:[#allocation2 + $0xf8] sm:$0xff] %vm420_vm0, %v2473_v13  ;;  %v2373_v20 = vld [vmem:[%s2546_s29] ss:$8 sps:$4 sm:$0xff]   ;;  %v2394_v21 = vld [vmem:[%s2546_s29 + $0xd0] ss:$8 sps:$4 sm:$0xff]  }
  0x19   : > { %453 = vst.msk [vmem:[#allocation2 + $0x100] sm:$0xff] %vm420_vm0, %v2473_v13  ;;  %454 = vst.msk [vmem:[#allocation2 + $0x108] sm:$0xff] %vm420_vm0, %v2473_v13  ;;  %v2376_v22 = vld [vmem:[%s2546_s29 + $0x14] ss:$8 sps:$4 sm:$0xff]   ;;  %v2400_v23 = vld [vmem:[%s2546_s29 + $0xe4] ss:$8 sps:$4 sm:$0xff]  }
  0x1a   : > { %948 = vmatpush1.bf16.msra.mxu0 %v2359_v3  ;;  %2315 = vmatpush1.bf16.msra.mxu1 %v2359_v3  ;;  %455 = vst.msk [vmem:[#allocation2 + $0x110] sm:$0xff] %vm420_vm0, %v2473_v13  ;;  %456 = vst.msk [vmem:[#allocation2 + $0x118] sm:$0xff] %vm420_vm0, %v2473_v13  ;;  %v2378_v24 = vld [vmem:[%s2546_s29 + $0x10] ss:$8 sps:$4 sm:$0xff]   ;;  %v2402_v25 = vld [vmem:[%s2546_s29 + $0xe0] ss:$8 sps:$4 sm:$0xff]  }
  0x1b   : > { %949 = vmatprep.subr.bf16.mxu0 %v2472_v0  ;;  %2300 = vmatprep.subr.bf16.mxu1 %v2472_v0  ;;  %457 = vst.msk [vmem:[#allocation2 + $0x120] sm:$0xff] %vm420_vm0, %v2473_v13  ;;  %458 = vst.msk [vmem:[#allocation2 + $0x128] sm:$0xff] %vm420_vm0, %v2473_v13  ;;  %v2379_v26 = vld [vmem:[%s2546_s29 + $0x24] ss:$8 sps:$4 sm:$0xff]   ;;  %v2406_v27 = vld [vmem:[%s2546_s29 + $0xf4] ss:$8 sps:$4 sm:$0xff]  }
  0x1c   : > { %459 = vst.msk [vmem:[#allocation2 + $0x130] sm:$0xff] %vm420_vm0, %v2473_v13  ;;  %460 = vst.msk [vmem:[#allocation2 + $0x138] sm:$0xff] %vm420_vm0, %v2473_v13  ;;  %v2381_v28 = vld [vmem:[%s2546_s29 + $0x20] ss:$8 sps:$4 sm:$0xff]   ;;  %v2408_v29 = vld [vmem:[%s2546_s29 + $0xf0] ss:$8 sps:$4 sm:$0xff]  }
  0x1d   : > { %461 = vst.msk [vmem:[#allocation2 + $0x140] sm:$0xff] %vm420_vm0, %v2473_v13  ;;  %462 = vst.msk [vmem:[#allocation2 + $0x148] sm:$0xff] %vm420_vm0, %v2473_v13  ;;  %v2382_v30 = vld [vmem:[%s2546_s29 + $0x34] ss:$8 sps:$4 sm:$0xff]   ;;  %v2412_v31 = vld [vmem:[%s2546_s29 + $0x104] ss:$8 sps:$4 sm:$0xff]  }
  0x1e   : > { %950 = vmatpush1.bf16.msra.mxu0 %v2360_v4  ;;  %2316 = vmatpush1.bf16.msra.mxu1 %v2360_v4  ;;  %463 = vst.msk [vmem:[#allocation2 + $0x150] sm:$0xff] %vm420_vm0, %v2473_v13  ;;  %464 = vst.msk [vmem:[#allocation2 + $0x158] sm:$0xff] %vm420_vm0, %v2473_v13  ;;  %v2384_v32 = vld [vmem:[%s2546_s29 + $0x30] ss:$8 sps:$4 sm:$0xff]   ;;  %v2414_v33 = vld [vmem:[%s2546_s29 + $0x100] ss:$8 sps:$4 sm:$0xff]  }
  0x1f   : > { %951 = vmatprep.subr.bf16.mxu0 %v2472_v0  ;;  %2301 = vmatprep.subr.bf16.mxu1 %v2472_v0  ;;  %465 = vst.msk [vmem:[#allocation2 + $0x160] sm:$0xff] %vm420_vm0, %v2473_v13  ;;  %466 = vst.msk [vmem:[#allocation2 + $0x168] sm:$0xff] %vm420_vm0, %v2473_v13  ;;  %v2385_v34 = vld [vmem:[%s2546_s29 + $0x44] ss:$8 sps:$4 sm:$0xff]   ;;  %v2418_v35 = vld [vmem:[%s2546_s29 + $0x114] ss:$8 sps:$4 sm:$0xff]  }
  0x20   : > { %467 = vst.msk [vmem:[#allocation2 + $0x170] sm:$0xff] %vm420_vm0, %v2473_v13  ;;  %468 = vst.msk [vmem:[#allocation2 + $0x178] sm:$0xff] %vm420_vm0, %v2473_v13  ;;  %v2387_v36 = vld [vmem:[%s2546_s29 + $0x40] ss:$8 sps:$4 sm:$0xff]   ;;  %v2420_v37 = vld [vmem:[%s2546_s29 + $0x110] ss:$8 sps:$4 sm:$0xff]  }
  0x21   : > { %469 = vst.msk [vmem:[#allocation2 + $0x180] sm:$0xff] %vm420_vm0, %v2473_v13  ;;  %v2388_v38 = vld [vmem:[%s2546_s29 + $0x54] ss:$8 sps:$4 sm:$0xff]   ;;  %v2424_v39 = vld [vmem:[%s2546_s29 + $0x124] ss:$8 sps:$4 sm:$0xff]  }
  0x22   : > { %952 = vmatpush1.bf16.msra.mxu0 %v2361_v5  ;;  %2317 = vmatpush1.bf16.msra.mxu1 %v2361_v5  ;;  %v2390_v40 = vld [vmem:[%s2546_s29 + $0x50] ss:$8 sps:$4 sm:$0xff]   ;;  %v2426_v41 = vld [vmem:[%s2546_s29 + $0x120] ss:$8 sps:$4 sm:$0xff]   ;;  %v2391_v42 = vld [vmem:[%s2546_s29 + $0x64] ss:$8 sps:$4 sm:$0xff]  }
  0x23   : > { %953 = vmatprep.subr.bf16.mxu0 %v2472_v0  ;;  %2302 = vmatprep.subr.bf16.mxu1 %v2472_v0  ;;  %v2430_v43 = vld [vmem:[%s2546_s29 + $0x134] ss:$8 sps:$4 sm:$0xff]   ;;  %v2393_v44 = vld [vmem:[%s2546_s29 + $0x60] ss:$8 sps:$4 sm:$0xff]   ;;  %v2432_v45 = vld [vmem:[%s2546_s29 + $0x130] ss:$8 sps:$4 sm:$0xff]  }
  0x24   : > { %v2397_v46 = vld [vmem:[%s2546_s29 + $0x74] ss:$8 sps:$4 sm:$0xff]   ;;  %v2433_v47 = vld [vmem:[%s2546_s29 + $0x144] ss:$8 sps:$4 sm:$0xff]   ;;  %v2399_v48 = vld [vmem:[%s2546_s29 + $0x70] ss:$8 sps:$4 sm:$0xff]  }
  0x25   : > { %v2435_v49 = vld [vmem:[%s2546_s29 + $0x140] ss:$8 sps:$4 sm:$0xff]   ;;  %v2403_v50 = vld [vmem:[%s2546_s29 + $0x84] ss:$8 sps:$4 sm:$0xff]   ;;  %v2436_v51 = vld [vmem:[%s2546_s29 + $0x154] ss:$8 sps:$4 sm:$0xff]  }
  0x26   : > { %954 = vmatpush1.bf16.msra.mxu0 %v2362_v7  ;;  %2318 = vmatpush1.bf16.msra.mxu1 %v2362_v7  ;;  %v2405_v52 = vld [vmem:[%s2546_s29 + $0x80] ss:$8 sps:$4 sm:$0xff]   ;;  %v2438_v53 = vld [vmem:[%s2546_s29 + $0x150] ss:$8 sps:$4 sm:$0xff]   ;;  %v2409_v54 = vld [vmem:[%s2546_s29 + $0x94] ss:$8 sps:$4 sm:$0xff]  }
  0x27   : > { %955 = vmatprep.subr.bf16.mxu0 %v2472_v0  ;;  %2303 = vmatprep.subr.bf16.mxu1 %v2472_v0  ;;  %v2439_v55 = vld [vmem:[%s2546_s29 + $0x164] ss:$8 sps:$4 sm:$0xff]   ;;  %v2411_v56 = vld [vmem:[%s2546_s29 + $0x90] ss:$8 sps:$4 sm:$0xff]   ;;  %v2441_v57 = vld [vmem:[%s2546_s29 + $0x160] ss:$8 sps:$4 sm:$0xff]  }
  0x28   : > { %v2415_v58 = vld [vmem:[%s2546_s29 + $0xa4] ss:$8 sps:$4 sm:$0xff]   ;;  %v2442_v59 = vld [vmem:[%s2546_s29 + $0x174] ss:$8 sps:$4 sm:$0xff]   ;;  %v2417_v61 = vld [vmem:[%s2546_s29 + $0xa0] ss:$8 sps:$4 sm:$0xff]  }
  0x29   : > { %v567_v60 = vld [vmem:[%s2546_s29 + $0x180] sm:$0xff]  ;;  %v2444_v62 = vld [vmem:[%s2546_s29 + $0x170] ss:$8 sps:$4 sm:$0xff]   ;;  %v2421_v63 = vld [vmem:[%s2546_s29 + $0xb4] ss:$8 sps:$4 sm:$0xff]  }
  0x2a   : > { %956 = vmatpush1.bf16.msra.mxu0 %v2363_v8  ;;  %2319 = vmatpush1.bf16.msra.mxu1 %v2363_v8  ;;  %v2423_v1 = vld [vmem:[%s2546_s29 + $0xb0] ss:$8 sps:$4 sm:$0xff]   ;;  %v2177_v2 = vcombine.low %v567_v60, %v567_v60  ;;  %v2427_v3 = vld [vmem:[%s2546_s29 + $0xc4] ss:$8 sps:$4 sm:$0xff]   ;;  %v2429_v4 = vld [vmem:[%s2546_s29 + $0xc0] ss:$8 sps:$4 sm:$0xff]  }
  0x2b   : > { %957 = vmatprep.subr.bf16.mxu0 %v2472_v0  ;;  %2304 = vmatprep.subr.bf16.mxu1 %v2472_v0  ;;  %v470_v5 = vld [vmem:[#allocation2] sm:$0xff]  ;;  %v496_v6 = vld [vmem:[#allocation2 + $0xd0] sm:$0xff]  ;;  %v471_v8 = vld [vmem:[#allocation2 + $0x8] sm:$0xff] }
  0x2c   : > { %v497_v10 = vld [vmem:[#allocation2 + $0xd8] sm:$0xff] }
  0x2e   : > { %958 = vmatpush1.bf16.msra.mxu0 %v2364_v9  ;;  %2320 = vmatpush1.bf16.msra.mxu1 %v2364_v9 }
  0x2f   : > { %959 = vmatprep.subr.bf16.mxu0 %v2472_v0  ;;  %2305 = vmatprep.subr.bf16.mxu1 %v2472_v0 }
  0x32   : > { %960 = vmatpush1.bf16.msra.mxu0 %v2365_v11  ;;  %2321 = vmatpush1.bf16.msra.mxu1 %v2365_v11 }
  0x33   : > { %961 = vmatprep.subr.bf16.mxu0 %v2472_v0  ;;  %2306 = vmatprep.subr.bf16.mxu1 %v2472_v0 }
  0x36   : > { %962 = vmatpush1.bf16.msra.mxu0 %v2366_v12  ;;  %2322 = vmatpush1.bf16.msra.mxu1 %v2366_v12 }
  0x37   : > { %963 = vmatprep.subr.bf16.mxu0 %v2472_v0  ;;  %2307 = vmatprep.subr.bf16.mxu1 %v2472_v0 }
  0x3a   : > { %964 = vmatpush1.bf16.msra.mxu0 %v2367_v14  ;;  %2323 = vmatpush1.bf16.msra.mxu1 %v2367_v14 }
  0x3b   : > { %965 = vmatprep.subr.bf16.mxu0 %v2472_v0  ;;  %2308 = vmatprep.subr.bf16.mxu1 %v2472_v0 }
  0x3e   : > { %966 = vmatpush1.bf16.msra.mxu0 %v2368_v15  ;;  %2324 = vmatpush1.bf16.msra.mxu1 %v2368_v15 }
  0x3f   : > { %967 = vmatprep.subr.bf16.mxu0 %v2472_v0  ;;  %2309 = vmatprep.subr.bf16.mxu1 %v2472_v0 }
  0x42   : > { %968 = vmatpush1.bf16.msra.mxu0 %v2369_v16  ;;  %2325 = vmatpush1.bf16.msra.mxu1 %v2369_v16 }
  0x43   : > { %969 = vmatprep.subr.bf16.mxu0 %v2472_v0  ;;  %2310 = vmatprep.subr.bf16.mxu1 %v2472_v0 }
  0x46   : > { %970 = vmatpush1.bf16.msra.mxu0 %v2370_v17  ;;  %2326 = vmatpush1.bf16.msra.mxu1 %v2370_v17 }
  0x47   : > { %971 = vmatprep.subr.bf16.mxu0 %v2472_v0  ;;  %2311 = vmatprep.subr.bf16.mxu1 %v2472_v0 }
  0x4a   : > { %972 = vmatpush1.bf16.msra.mxu0 %v2371_v18  ;;  %2327 = vmatpush1.bf16.msra.mxu1 %v2371_v18 }
  0x4b   : > { %973 = vmatprep.subr.bf16.mxu0 %v2472_v0  ;;  %2312 = vmatprep.subr.bf16.mxu1 %v2472_v0  ;;  %v2178_v0 = vcombine.high %v567_v60, %v567_v60 }
  0x4e   : > { %974 = vmatpush1.bf16.msra.mxu0 %v2372_v19  ;;  %2328 = vmatpush1.bf16.msra.mxu1 %v2372_v19 }
  0x51   : > { %976 = vmatmul.mubr.bf16.vlgmr.msra.gmra.mrb[0].mxu0 %v2373_v20  ;;  %1080 = vmatmul.mubr.bf16.vlgmr.msra.gmra.mrb[0].mxu1 %v2394_v21  ;;  %v472_v21 = vld [vmem:[#allocation2 + $0x10] sm:$0xff] }
  0x52   : > { %983 = vmatprep.mubr.bf16.mxu0 %v2376_v22  ;;  %1087 = vmatprep.mubr.bf16.mxu1 %v2400_v23  ;;  %v498_v22 = vld [vmem:[#allocation2 + $0xe0] sm:$0xff] }
  0x53   : > { %v2690_v23 = vld [vmem:[%s3272_s2] ss:$0 sm:$0xff] }
  0x59   : > { %984 = vmatmul.mubr.bf16.gmra.mrb[4].mxu0 %v2378_v24  ;;  %1088 = vmatmul.mubr.bf16.gmra.mrb[4].mxu1 %v2402_v25  ;;  %v473_v25 = vld [vmem:[#allocation2 + $0x18] sm:$0xff] }
  0x5a   : > { %991 = vmatprep.mubr.bf16.mxu0 %v2379_v26  ;;  %1095 = vmatprep.mubr.bf16.mxu1 %v2406_v27  ;;  %v499_v27 = vld [vmem:[#allocation2 + $0xe8] sm:$0xff] }
  0x61   : > { %992 = vmatmul.mubr.bf16.gmra.mrb[8].mxu0 %v2381_v28  ;;  %1096 = vmatmul.mubr.bf16.gmra.mrb[8].mxu1 %v2408_v29 }
  0x62   : > { %999 = vmatprep.mubr.bf16.mxu0 %v2382_v30  ;;  %1103 = vmatprep.mubr.bf16.mxu1 %v2412_v31 }
  0x69   : > { %1000 = vmatmul.mubr.bf16.gmra.mrb[12].mxu0 %v2384_v32  ;;  %1104 = vmatmul.mubr.bf16.gmra.mrb[12].mxu1 %v2414_v33 }
  0x6a   : > { %1007 = vmatprep.mubr.bf16.mxu0 %v2385_v34  ;;  %1111 = vmatprep.mubr.bf16.mxu1 %v2418_v35 }
  0x71   : > { %1008 = vmatmul.mubr.bf16.gmra.mrb[16].mxu0 %v2387_v36  ;;  %1112 = vmatmul.mubr.bf16.gmra.mrb[16].mxu1 %v2420_v37 }
  0x72   : > { %1015 = vmatprep.mubr.bf16.mxu0 %v2388_v38  ;;  %1119 = vmatprep.mubr.bf16.mxu1 %v2424_v39 }
  0x79   : > { %1016 = vmatmul.mubr.bf16.gmra.mrb[20].mxu0 %v2390_v40  ;;  %1120 = vmatmul.mubr.bf16.gmra.mrb[20].mxu1 %v2426_v41 }
  0x7a   : > { %1023 = vmatprep.mubr.bf16.mxu0 %v2391_v42  ;;  %1127 = vmatprep.mubr.bf16.mxu1 %v2430_v43 }
  0x81   : > { %1024 = vmatmul.mubr.bf16.gmra.mrb[24].mxu0 %v2393_v44  ;;  %1128 = vmatmul.mubr.bf16.gmra.mrb[24].mxu1 %v2432_v45 }
  0x82   : > { %1031 = vmatprep.mubr.bf16.mxu0 %v2397_v46  ;;  %1135 = vmatprep.mubr.bf16.mxu1 %v2433_v47  ;;  %v474_v46 = vld [vmem:[#allocation2 + $0x20] sm:$0xff] }
  0x89   : > { %1032 = vmatmul.mubr.bf16.gmra.mrb[28].mxu0 %v2399_v48  ;;  %1136 = vmatmul.mubr.bf16.gmra.mrb[28].mxu1 %v2435_v49  ;;  %v500_v49 = vld [vmem:[#allocation2 + $0xf0] sm:$0xff] }
  0x8a   : > { %1039 = vmatprep.mubr.bf16.mxu0 %v2403_v50  ;;  %1143 = vmatprep.mubr.bf16.mxu1 %v2436_v51 }
  0x91   : > { %1040 = vmatmul.mubr.bf16.gmra.mrb[32].mxu0 %v2405_v52  ;;  %1144 = vmatmul.mubr.bf16.gmra.mrb[32].mxu1 %v2438_v53  ;;  %v475_v52 = vld [vmem:[#allocation2 + $0x28] sm:$0xff] }
  0x92   : > { %1047 = vmatprep.mubr.bf16.mxu0 %v2409_v54  ;;  %1151 = vmatprep.mubr.bf16.mxu1 %v2439_v55  ;;  %v501_v54 = vld [vmem:[#allocation2 + $0xf8] sm:$0xff] }
  0x99   : > { %1048 = vmatmul.mubr.bf16.gmra.mrb[36].mxu0 %v2411_v56  ;;  %1152 = vmatmul.mubr.bf16.gmra.mrb[36].mxu1 %v2441_v57 }
  0x9a   : > { %1055 = vmatprep.mubr.bf16.mxu0 %v2415_v58  ;;  %1159 = vmatprep.mubr.bf16.mxu1 %v2442_v59 }
  0xa1   : > { %1056 = vmatmul.mubr.bf16.gmra.mrb[40].mxu0 %v2417_v61  ;;  %1160 = vmatmul.mubr.bf16.gmra.mrb[40].mxu1 %v2444_v62 }
  0xa2   : > { %1063 = vmatprep.mubr.bf16.mxu0 %v2421_v63  ;;  %1167 = vmatprep.mubr.bf16.mxu1 %v2178_v0 }
  0xa9   : > { %1064 = vmatmul.mubr.bf16.gmra.mrb[44].mxu0 %v2423_v1  ;;  %1168 = vmatmul.mubr.bf16.gmra.mrb[44].mxu1 %v2177_v2 }
  0xaa   : > { %1071 = vmatprep.mubr.bf16.mxu0 %v2427_v3 }
  0xb1   : > { %1072 = vmatmul.mubr.bf16.gmra.mrb[48].mxu0 %v2429_v4 }
 0x124   : > { %v977_v7 = vpop.f32.mrb[0].mxu0  ;;  %v1081_v9 = vpop.f32.mrb[0].mxu1 }
 0x125   : > { %v1175_v11 = vadd.f32 %v977_v7, %v470_v5  ;;  %v979_v12 = vpop.f32.mrb[1].mxu0  ;;  %v1201_v13 = vadd.f32 %v1081_v9, %v496_v6  ;;  %v1083_v14 = vpop.f32.mrb[1].mxu1 }
 0x126   : > { %v980_v15 = vpop.f32.mrb[2].mxu0  ;;  %v1084_v16 = vpop.f32.mrb[2].mxu1  ;;  %v502_v12 = vld [vmem:[#allocation2 + $0x100] sm:$0xff] }
 0x127   : > { %1225 = vst.msk [vmem:[#allocation2] sm:$0xff] %vm420_vm0, %v1175_v11  ;;  %v1176_v17 = vadd.f32 %v980_v15, %v471_v8  ;;  %v982_v18 = vpop.f32.mrb[3].mxu0  ;;  %1251 = vst.msk [vmem:[#allocation2 + $0xd0] sm:$0xff] %vm420_vm0, %v1201_v13  ;;  %v1202_v19 = vadd.f32 %v1084_v16, %v497_v10  ;;  %v1086_v20 = vpop.f32.mrb[3].mxu1  ;;  %v476_v10 = vld [vmem:[#allocation2 + $0x30] sm:$0xff]  ;;  %v477_v15 = vld [vmem:[#allocation2 + $0x38] sm:$0xff] }
 0x128   : > { %v503_v18 = vld [vmem:[#allocation2 + $0x108] sm:$0xff] }
 0x129   : > { %1226 = vst.msk [vmem:[#allocation2 + $0x8] sm:$0xff] %vm420_vm0, %v1176_v17  ;;  %1252 = vst.msk [vmem:[#allocation2 + $0xd8] sm:$0xff] %vm420_vm0, %v1202_v19 }
 0x12c   : > { %v985_v24 = vpop.f32.mrb[4].mxu0  ;;  %v1089_v26 = vpop.f32.mrb[4].mxu1 }
 0x12d   : > { %v1177_v28 = vadd.f32 %v985_v24, %v472_v21  ;;  %v987_v29 = vpop.f32.mrb[5].mxu0  ;;  %v1203_v30 = vadd.f32 %v1089_v26, %v498_v22  ;;  %v1091_v31 = vpop.f32.mrb[5].mxu1 }
 0x12e   : > { %v1277_v32 = vld [vmem:[#allocation2] sm:$0xff]  ;;  %v988_v33 = vpop.f32.mrb[6].mxu0  ;;  %v1303_v34 = vld [vmem:[#allocation2 + $0xd0] sm:$0xff]  ;;  %v1092_v35 = vpop.f32.mrb[6].mxu1 }
 0x12f   : > { %v2693_v36 = vadd.f32 %v2690_v23, %v1277_v32  ;;  %1227 = vst.msk [vmem:[#allocation2 + $0x10] sm:$0xff] %vm420_vm0, %v1177_v28  ;;  %v1178_v37 = vadd.f32 %v988_v33, %v473_v25  ;;  %v990_v38 = vpop.f32.mrb[7].mxu0  ;;  %v2697_v39 = vadd.f32 %v2690_v23, %v1303_v34  ;;  %1253 = vst.msk [vmem:[#allocation2 + $0xe0] sm:$0xff] %vm420_vm0, %v1203_v30  ;;  %v1094_v41 = vpop.f32.mrb[7].mxu1 }
 0x130   : > { %v1204_v40 = vadd.f32 %v1092_v35, %v499_v27  ;;  %v1278_v42 = vld [vmem:[#allocation2 + $0x8] sm:$0xff]  ;;  %v1304_v43 = vld [vmem:[#allocation2 + $0xd8] sm:$0xff]  ;;  %v478_v41 = vld [vmem:[#allocation2 + $0x40] sm:$0xff] }
 0x131   : > { %v2248_v44 = vpack.c.bf16 %v2693_v36, %v2693_v36  ;;  %v2708_v45 = vadd.f32 %v2690_v23, %v1278_v42  ;;  %1228 = vst.msk [vmem:[#allocation2 + $0x18] sm:$0xff] %vm420_vm0, %v1178_v37  ;;  %v2274_v47 = vpack.c.bf16 %v2697_v39, %v2697_v39  ;;  %v2715_v48 = vadd.f32 %v2690_v23, %v1304_v43  ;;  %v504_v43 = vld [vmem:[#allocation2 + $0x110] sm:$0xff] }
 0x132   : > { %1254 = vst.msk [vmem:[#allocation2 + $0xe8] sm:$0xff] %vm420_vm0, %v1204_v40 }
 0x133   : > { %1838 = vst.msk [vmem:[%s2703_s10] sm:$0xf] %vm1837_vm1, %v2248_v44  ;;  %v2249_v50 = vpack.c.bf16 %v2708_v45, %v2708_v45  ;;  %1864 = vst.msk [vmem:[%s2703_s10 + $0x68] sm:$0xf] %vm1837_vm1, %v2274_v47  ;;  %v2275_v57 = vpack.c.bf16 %v2715_v48, %v2715_v48  ;;  %v479_v47 = vld [vmem:[#allocation2 + $0x48] sm:$0xff] }
 0x134   : > { %v993_v51 = vpop.f32.mrb[8].mxu0  ;;  %v1097_v53 = vpop.f32.mrb[8].mxu1 }
 0x135   : > { %1839 = vst.msk [vmem:[%s2703_s10 + $0x4] sm:$0xf] %vm1837_vm1, %v2249_v50  ;;  %v1179_v55 = vadd.f32 %v993_v51, %v474_v46  ;;  %v995_v56 = vpop.f32.mrb[9].mxu0  ;;  %v1205_v58 = vadd.f32 %v1097_v53, %v500_v49  ;;  %v1099_v59 = vpop.f32.mrb[9].mxu1  ;;  %1865 = vst.msk [vmem:[%s2703_s10 + $0x6c] sm:$0xf] %vm1837_vm1, %v2275_v57 }
 0x136   : > { %v1279_v60 = vld [vmem:[#allocation2 + $0x10] sm:$0xff]  ;;  %v996_v61 = vpop.f32.mrb[10].mxu0  ;;  %v1305_v62 = vld [vmem:[#allocation2 + $0xe0] sm:$0xff]  ;;  %v1100_v63 = vpop.f32.mrb[10].mxu1  ;;  %v505_v51 = vld [vmem:[#allocation2 + $0x118] sm:$0xff]  ;;  %v1488_v56 = vmul.f32 %v2708_v45, %v2708_v45 }
 0x137   : > { %v2728_v0 = vadd.f32 %v2690_v23, %v1279_v60  ;;  %1229 = vst.msk [vmem:[#allocation2 + $0x20] sm:$0xff] %vm420_vm0, %v1179_v55  ;;  %v1180_v1 = vadd.f32 %v996_v61, %v475_v52  ;;  %v998_v2 = vpop.f32.mrb[11].mxu0  ;;  %v2734_v3 = vadd.f32 %v2690_v23, %v1305_v62  ;;  %1255 = vst.msk [vmem:[#allocation2 + $0xf0] sm:$0xff] %vm420_vm0, %v1205_v58  ;;  %v1102_v5 = vpop.f32.mrb[11].mxu1 }
 0x138   : > { %v1206_v4 = vadd.f32 %v1100_v63, %v501_v54  ;;  %v1280_v6 = vld [vmem:[#allocation2 + $0x18] sm:$0xff] }
 0x139   : > { %v2250_v7 = vpack.c.bf16 %v2728_v0, %v2728_v0  ;;  %v2740_v8 = vadd.f32 %v2690_v23, %v1280_v6  ;;  %1230 = vst.msk [vmem:[#allocation2 + $0x28] sm:$0xff] %vm420_vm0, %v1180_v1  ;;  %v1306_v9 = vld [vmem:[#allocation2 + $0xe8] sm:$0xff]  ;;  %v2276_v11 = vpack.c.bf16 %v2734_v3, %v2734_v3  ;;  %v1487_v6 = vmul.f32 %v2693_v36, %v2693_v36 }
 0x13a   : > { %1256 = vst.msk [vmem:[#allocation2 + $0xf8] sm:$0xff] %vm420_vm0, %v1206_v4  ;;  %v2753_v16 = vadd.f32 %v2690_v23, %v1306_v9  ;;  %v1383_v9 = vsel %vm420_vm0, %v2708_v45, 0.0  ;;  %v506_v45 = vld [vmem:[#allocation2 + $0x120] sm:$0xff] }
 0x13b   : > { %1840 = vst.msk [vmem:[%s2703_s10 + $0x8] sm:$0xf] %vm1837_vm1, %v2250_v7  ;;  %v2251_v13 = vpack.c.bf16 %v2740_v8, %v2740_v8  ;;  %1866 = vst.msk [vmem:[%s2703_s10 + $0x70] sm:$0xf] %vm1837_vm1, %v2276_v11 }
 0x13c   : > { %v1001_v14 = vpop.f32.mrb[12].mxu0  ;;  %v1105_v17 = vpop.f32.mrb[12].mxu1  ;;  %v2277_v26 = vpack.c.bf16 %v2753_v16, %v2753_v16 }
 0x13d   : > { %1841 = vst.msk [vmem:[%s2703_s10 + $0xc] sm:$0xf] %vm1837_vm1, %v2251_v13  ;;  %v1181_v19 = vadd.f32 %v1001_v14, %v476_v10  ;;  %v1003_v20 = vpop.f32.mrb[13].mxu0  ;;  %v1207_v21 = vadd.f32 %v1105_v17, %v502_v12  ;;  %v1107_v22 = vpop.f32.mrb[13].mxu1  ;;  %v1489_v10 = vmul.f32 %v2728_v0, %v2728_v0  ;;  %v480_v14 = vld [vmem:[#allocation2 + $0x50] sm:$0xff]  ;;  %v1382_v17 = vsel %vm420_vm0, %v2693_v36, 0.0 }
 0x13e   : > { %v1281_v24 = vld [vmem:[#allocation2 + $0x20] sm:$0xff]  ;;  %v1004_v25 = vpop.f32.mrb[14].mxu0  ;;  %v1307_v27 = vld [vmem:[#allocation2 + $0xf0] sm:$0xff]  ;;  %v1108_v28 = vpop.f32.mrb[14].mxu1  ;;  %1867 = vst.msk [vmem:[%s2703_s10 + $0x74] sm:$0xf] %vm1837_vm1, %v2277_v26  ;;  %v1384_v22 = vadd.f32 %v1383_v9, %v1382_v17 }
 0x13f   : > { %v2760_v29 = vadd.f32 %v2690_v23, %v1281_v24  ;;  %1231 = vst.msk [vmem:[#allocation2 + $0x30] sm:$0xff] %vm420_vm0, %v1181_v19  ;;  %v1182_v30 = vadd.f32 %v1004_v25, %v477_v15  ;;  %v1006_v31 = vpop.f32.mrb[15].mxu0  ;;  %v2764_v32 = vadd.f32 %v2690_v23, %v1307_v27  ;;  %1257 = vst.msk [vmem:[#allocation2 + $0x100] sm:$0xff] %vm420_vm0, %v1207_v21  ;;  %v1110_v34 = vpop.f32.mrb[15].mxu1  ;;  %v1385_v19 = vsel %vm420_vm0, %v2728_v0, 0.0  ;;  %v481_v25 = vld [vmem:[#allocation2 + $0x58] sm:$0xff] }
 0x140   : > { %v1208_v33 = vadd.f32 %v1108_v28, %v503_v18  ;;  %v1282_v35 = vld [vmem:[#allocation2 + $0x28] sm:$0xff]  ;;  %v1537_v18 = vsel %vm420_vm0, %v1488_v56, 0.0  ;;  %v1536_v21 = vsel %vm420_vm0, %v1487_v6, 0.0  ;;  %v1539_v28 = vsel %vm420_vm0, %v1489_v10, 0.0 }
 0x141   : > { %v2252_v37 = vpack.c.bf16 %v2760_v29, %v2760_v29  ;;  %v2772_v38 = vadd.f32 %v2690_v23, %v1282_v35  ;;  %1232 = vst.msk [vmem:[#allocation2 + $0x38] sm:$0xff] %vm420_vm0, %v1182_v30  ;;  %v1308_v40 = vld [vmem:[#allocation2 + $0xf8] sm:$0xff]  ;;  %v2278_v42 = vpack.c.bf16 %v2764_v32, %v2764_v32  ;;  %v507_v27 = vld [vmem:[#allocation2 + $0x128] sm:$0xff]  ;;  %v1490_v0 = vmul.f32 %v2740_v8, %v2740_v8 }
 0x142   : > { %1258 = vst.msk [vmem:[#allocation2 + $0x108] sm:$0xff] %vm420_vm0, %v1208_v33  ;;  %v2785_v49 = vadd.f32 %v2690_v23, %v1308_v40  ;;  %v1538_v35 = vadd.f32 %v1537_v18, %v1536_v21  ;;  %v1491_v40 = vmul.f32 %v2760_v29, %v2760_v29  ;;  %v1387_v56 = vsel %vm420_vm0, %v2740_v8, 0.0 }
 0x143   : > { %1842 = vst.msk [vmem:[%s2703_s10 + $0x10] sm:$0xf] %vm1837_vm1, %v2252_v37  ;;  %v2253_v44 = vpack.c.bf16 %v2772_v38, %v2772_v38  ;;  %1868 = vst.msk [vmem:[%s2703_s10 + $0x78] sm:$0xf] %vm1837_vm1, %v2278_v42  ;;  %v1386_v37 = vadd.f32 %v1385_v19, %v1384_v22  ;;  %v1389_v8 = vsel %vm420_vm0, %v2760_v29, 0.0  ;;  %v483_v29 = vld [vmem:[#allocation2 + $0x68] sm:$0xff] }
 0x144   : > { %v1009_v46 = vpop.f32.mrb[16].mxu0  ;;  %v1113_v50 = vpop.f32.mrb[16].mxu1  ;;  %v2279_v59 = vpack.c.bf16 %v2785_v49, %v2785_v49 }
 0x145   : > { %1843 = vst.msk [vmem:[%s2703_s10 + $0x14] sm:$0xf] %vm1837_vm1, %v2253_v44  ;;  %v1183_v52 = vadd.f32 %v1009_v46, %v478_v41  ;;  %v1011_v53 = vpop.f32.mrb[17].mxu0  ;;  %v1209_v54 = vadd.f32 %v1113_v50, %v504_v43  ;;  %v1115_v55 = vpop.f32.mrb[17].mxu1  ;;  %v1388_v6 = vadd.f32 %v1387_v56, %v1386_v37  ;;  %v510_v56 = vld [vmem:[#allocation2 + $0x140] sm:$0xff] }
 0x146   : > { %v1283_v57 = vld [vmem:[#allocation2 + $0x30] sm:$0xff]  ;;  %v1012_v58 = vpop.f32.mrb[18].mxu0  ;;  %v1309_v60 = vld [vmem:[#allocation2 + $0x100] sm:$0xff]  ;;  %v1116_v61 = vpop.f32.mrb[18].mxu1  ;;  %1869 = vst.msk [vmem:[%s2703_s10 + $0x7c] sm:$0xf] %vm1837_vm1, %v2279_v59  ;;  %v1540_v55 = vadd.f32 %v1539_v28, %v1538_v35 }
 0x147   : > { %v2794_v62 = vadd.f32 %v2690_v23, %v1283_v57  ;;  %1233 = vst.msk [vmem:[#allocation2 + $0x40] sm:$0xff] %vm420_vm0, %v1183_v52  ;;  %v1184_v63 = vadd.f32 %v1012_v58, %v479_v47  ;;  %v1014_v1 = vpop.f32.mrb[19].mxu0  ;;  %v2798_v2 = vadd.f32 %v2690_v23, %v1309_v60  ;;  %1259 = vst.msk [vmem:[#allocation2 + $0x110] sm:$0xff] %vm420_vm0, %v1209_v54  ;;  %v1118_v5 = vpop.f32.mrb[19].mxu1  ;;  %v1541_v58 = vsel %vm420_vm0, %v1490_v0, 0.0 }
 0x148   : > { %v1210_v4 = vadd.f32 %v1116_v61, %v505_v51  ;;  %v1284_v7 = vld [vmem:[#allocation2 + $0x38] sm:$0xff]  ;;  %v482_v1 = vld [vmem:[#allocation2 + $0x60] sm:$0xff]  ;;  %v508_v5 = vld [vmem:[#allocation2 + $0x130] sm:$0xff]  ;;  %v1542_v10 = vadd.f32 %v1541_v58, %v1540_v55 }
 0x149   : > { %v2254_v11 = vpack.c.bf16 %v2794_v62, %v2794_v62  ;;  %v2812_v12 = vadd.f32 %v2690_v23, %v1284_v7  ;;  %1234 = vst.msk [vmem:[#allocation2 + $0x48] sm:$0xff] %vm420_vm0, %v1184_v63  ;;  %v1310_v13 = vld [vmem:[#allocation2 + $0x108] sm:$0xff]  ;;  %v2280_v15 = vpack.c.bf16 %v2798_v2, %v2798_v2  ;;  %v1492_v63 = vmul.f32 %v2772_v38, %v2772_v38 }
 0x14a   : > { %1260 = vst.msk [vmem:[#allocation2 + $0x118] sm:$0xff] %vm420_vm0, %v1210_v4  ;;  %v2831_v26 = vadd.f32 %v2690_v23, %v1310_v13  ;;  %v1543_v7 = vsel %vm420_vm0, %v1491_v40, 0.0  ;;  %v1493_v17 = vmul.f32 %v2794_v62, %v2794_v62  ;;  %v1393_v40 = vsel %vm420_vm0, %v2794_v62, 0.0 }
 0x14b   : > { %1844 = vst.msk [vmem:[%s2703_s10 + $0x18] sm:$0xf] %vm1837_vm1, %v2254_v11  ;;  %v2255_v20 = vpack.c.bf16 %v2812_v12, %v2812_v12  ;;  %1870 = vst.msk [vmem:[%s2703_s10 + $0x80] sm:$0xf] %vm1837_vm1, %v2280_v15  ;;  %v509_v15 = vld [vmem:[#allocation2 + $0x138] sm:$0xff]  ;;  %v1544_v22 = vadd.f32 %v1543_v7, %v1542_v10 }
 0x14c   : > { %v1017_v24 = vpop.f32.mrb[20].mxu0  ;;  %v1121_v36 = vpop.f32.mrb[20].mxu1  ;;  %v2281_v43 = vpack.c.bf16 %v2831_v26, %v2831_v26 }
 0x14d   : > { %1845 = vst.msk [vmem:[%s2703_s10 + $0x1c] sm:$0xf] %vm1837_vm1, %v2255_v20  ;;  %v1185_v30 = vadd.f32 %v1017_v24, %v480_v14  ;;  %v1019_v31 = vpop.f32.mrb[21].mxu0  ;;  %v1211_v33 = vadd.f32 %v1121_v36, %v506_v45  ;;  %v1123_v34 = vpop.f32.mrb[21].mxu1  ;;  %v1390_v45 = vadd.f32 %v1389_v8, %v1388_v6  ;;  %v1391_v24 = vsel %vm420_vm0, %v2772_v38, 0.0  ;;  %v485_v8 = vld [vmem:[#allocation2 + $0x78] sm:$0xff] }
 0x14e   : > { %v1285_v41 = vld [vmem:[#allocation2 + $0x40] sm:$0xff]  ;;  %v1020_v42 = vpop.f32.mrb[22].mxu0  ;;  %v1311_v44 = vld [vmem:[#allocation2 + $0x110] sm:$0xff]  ;;  %v1124_v46 = vpop.f32.mrb[22].mxu1  ;;  %1871 = vst.msk [vmem:[%s2703_s10 + $0x84] sm:$0xf] %vm1837_vm1, %v2281_v43  ;;  %v1494_v43 = vmul.f32 %v2812_v12, %v2812_v12 }
 0x14f   : > { %v2843_v47 = vadd.f32 %v2690_v23, %v1285_v41  ;;  %1235 = vst.msk [vmem:[#allocation2 + $0x50] sm:$0xff] %vm420_vm0, %v1185_v30  ;;  %v1186_v50 = vadd.f32 %v1020_v42, %v481_v25  ;;  %v1022_v51 = vpop.f32.mrb[23].mxu0  ;;  %v2847_v52 = vadd.f32 %v2690_v23, %v1311_v44  ;;  %1261 = vst.msk [vmem:[#allocation2 + $0x120] sm:$0xff] %vm420_vm0, %v1211_v33  ;;  %v1126_v54 = vpop.f32.mrb[23].mxu1  ;;  %v1545_v25 = vsel %vm420_vm0, %v1492_v63, 0.0 }
 0x150   : > { %v1212_v53 = vadd.f32 %v1124_v46, %v507_v27  ;;  %v1286_v57 = vld [vmem:[#allocation2 + $0x48] sm:$0xff]  ;;  %v1547_v42 = vsel %vm420_vm0, %v1493_v17, 0.0  ;;  %v1392_v62 = vadd.f32 %v1391_v24, %v1390_v45  ;;  %v1546_v51 = vadd.f32 %v1545_v25, %v1544_v22  ;;  %v484_v54 = vld [vmem:[#allocation2 + $0x70] sm:$0xff] }
 0x151   : > { %v2256_v59 = vpack.c.bf16 %v2843_v47, %v2843_v47  ;;  %v2858_v60 = vadd.f32 %v2690_v23, %v1286_v57  ;;  %1236 = vst.msk [vmem:[#allocation2 + $0x58] sm:$0xff] %vm420_vm0, %v1186_v50  ;;  %v1312_v61 = vld [vmem:[#allocation2 + $0x118] sm:$0xff]  ;;  %v2282_v4 = vpack.c.bf16 %v2847_v52, %v2847_v52  ;;  %v1549_v6 = vsel %vm420_vm0, %v1494_v43, 0.0 }
 0x152   : > { %1262 = vst.msk [vmem:[#allocation2 + $0x128] sm:$0xff] %vm420_vm0, %v1212_v53  ;;  %v2876_v13 = vadd.f32 %v2690_v23, %v1312_v61  ;;  %v1495_v53 = vmul.f32 %v2843_v47, %v2843_v47  ;;  %v1394_v58 = vadd.f32 %v1393_v40, %v1392_v62  ;;  %v486_v40 = vld [vmem:[#allocation2 + $0x80] sm:$0xff] }
 0x153   : > { %1846 = vst.msk [vmem:[%s2703_s10 + $0x20] sm:$0xf] %vm1837_vm1, %v2256_v59  ;;  %v2257_v9 = vpack.c.bf16 %v2858_v60, %v2858_v60  ;;  %1872 = vst.msk [vmem:[%s2703_s10 + $0x88] sm:$0xf] %vm1837_vm1, %v2282_v4  ;;  %v1548_v59 = vadd.f32 %v1547_v42, %v1546_v51  ;;  %v511_v4 = vld [vmem:[#allocation2 + $0x148] sm:$0xff]  ;;  %v512_v42 = vld [vmem:[#allocation2 + $0x150] sm:$0xff] }
 0x154   : > { %v1025_v11 = vpop.f32.mrb[24].mxu0  ;;  %v1129_v14 = vpop.f32.mrb[24].mxu1  ;;  %v2283_v28 = vpack.c.bf16 %v2876_v13, %v2876_v13  ;;  %v1399_v43 = vsel %vm420_vm0, %v2858_v60, 0.0 }
 0x155   : > { %1847 = vst.msk [vmem:[%s2703_s10 + $0x24] sm:$0xf] %vm1837_vm1, %v2257_v9  ;;  %v1187_v18 = vadd.f32 %v1025_v11, %v482_v1  ;;  %v1027_v19 = vpop.f32.mrb[25].mxu0  ;;  %v1213_v20 = vadd.f32 %v1129_v14, %v508_v5  ;;  %v1131_v21 = vpop.f32.mrb[25].mxu1  ;;  %v1395_v5 = vsel %vm420_vm0, %v2812_v12, 0.0  ;;  %v1551_v14 = vsel %vm420_vm0, %v1495_v53, 0.0 }
 0x156   : > { %v1287_v36 = vld [vmem:[#allocation2 + $0x50] sm:$0xff]  ;;  %v1028_v27 = vpop.f32.mrb[26].mxu0  ;;  %v1313_v0 = vld [vmem:[#allocation2 + $0x120] sm:$0xff]  ;;  %v1132_v30 = vpop.f32.mrb[26].mxu1  ;;  %1873 = vst.msk [vmem:[%s2703_s10 + $0x8c] sm:$0xf] %vm1837_vm1, %v2283_v28 }
 0x157   : > { %v2888_v31 = vadd.f32 %v2690_v23, %v1287_v36  ;;  %1237 = vst.msk [vmem:[#allocation2 + $0x60] sm:$0xff] %vm420_vm0, %v1187_v18  ;;  %v1188_v33 = vadd.f32 %v1028_v27, %v483_v29  ;;  %v1030_v34 = vpop.f32.mrb[27].mxu0  ;;  %v2892_v35 = vadd.f32 %v2690_v23, %v1313_v0  ;;  %1263 = vst.msk [vmem:[#allocation2 + $0x130] sm:$0xff] %vm420_vm0, %v1213_v20  ;;  %v1134_v37 = vpop.f32.mrb[27].mxu1  ;;  %v1397_v29 = vsel %vm420_vm0, %v2843_v47, 0.0  ;;  %v487_v53 = vld [vmem:[#allocation2 + $0x88] sm:$0xff] }
 0x158   : > { %v1214_v38 = vadd.f32 %v1132_v30, %v509_v15  ;;  %v1288_v41 = vld [vmem:[#allocation2 + $0x58] sm:$0xff]  ;;  %v1496_v15 = vmul.f32 %v2858_v60, %v2858_v60  ;;  %v1396_v36 = vadd.f32 %v1395_v5, %v1394_v58  ;;  %v1550_v27 = vadd.f32 %v1549_v6, %v1548_v59 }
 0x159   : > { %v2258_v44 = vpack.c.bf16 %v2888_v31, %v2888_v31  ;;  %v2905_v46 = vadd.f32 %v2690_v23, %v1288_v41  ;;  %1238 = vst.msk [vmem:[#allocation2 + $0x68] sm:$0xff] %vm420_vm0, %v1188_v33  ;;  %v1314_v50 = vld [vmem:[#allocation2 + $0x128] sm:$0xff]  ;;  %v2284_v55 = vpack.c.bf16 %v2892_v35, %v2892_v35  ;;  %v1497_v0 = vmul.f32 %v2888_v31, %v2888_v31 }
 0x15a   : > { %1264 = vst.msk [vmem:[#allocation2 + $0x138] sm:$0xff] %vm420_vm0, %v1214_v38  ;;  %v2920_v63 = vadd.f32 %v2690_v23, %v1314_v50  ;;  %v1398_v38 = vadd.f32 %v1397_v29, %v1396_v36  ;;  %v1552_v37 = vadd.f32 %v1551_v14, %v1550_v27  ;;  %v1401_v62 = vsel %vm420_vm0, %v2888_v31, 0.0  ;;  %v488_v27 = vld [vmem:[#allocation2 + $0x90] sm:$0xff] }
 0x15b   : > { %1848 = vst.msk [vmem:[%s2703_s10 + $0x28] sm:$0xf] %vm1837_vm1, %v2258_v44  ;;  %v2259_v57 = vpack.c.bf16 %v2905_v46, %v2905_v46  ;;  %1874 = vst.msk [vmem:[%s2703_s10 + $0x90] sm:$0xf] %vm1837_vm1, %v2284_v55  ;;  %v1553_v44 = vsel %vm420_vm0, %v1496_v15, 0.0  ;;  %v1555_v60 = vsel %vm420_vm0, %v1497_v0, 0.0 }
 0x15c   : > { %v1033_v61 = vpop.f32.mrb[28].mxu0  ;;  %v1137_v1 = vpop.f32.mrb[28].mxu1  ;;  %v2285_v12 = vpack.c.bf16 %v2920_v63, %v2920_v63 }
 0x15d   : > { %1849 = vst.msk [vmem:[%s2703_s10 + $0x2c] sm:$0xf] %vm1837_vm1, %v2259_v57  ;;  %v1189_v7 = vadd.f32 %v1033_v61, %v484_v54  ;;  %v1035_v9 = vpop.f32.mrb[29].mxu0  ;;  %v1215_v10 = vadd.f32 %v1137_v1, %v510_v56  ;;  %v1139_v11 = vpop.f32.mrb[29].mxu1  ;;  %v513_v56 = vld [vmem:[#allocation2 + $0x158] sm:$0xff]  ;;  %v1498_v57 = vmul.f32 %v2905_v46, %v2905_v46  ;;  %v1554_v1 = vadd.f32 %v1553_v44, %v1552_v37 }
 0x15e   : > { %v1289_v45 = vld [vmem:[#allocation2 + $0x60] sm:$0xff]  ;;  %v1036_v17 = vpop.f32.mrb[30].mxu0  ;;  %v1315_v18 = vld [vmem:[#allocation2 + $0x130] sm:$0xff]  ;;  %v1140_v19 = vpop.f32.mrb[30].mxu1  ;;  %1875 = vst.msk [vmem:[%s2703_s10 + $0x94] sm:$0xf] %vm1837_vm1, %v2285_v12 }
 0x15f   : > { %v2935_v20 = vadd.f32 %v2690_v23, %v1289_v45  ;;  %1239 = vst.msk [vmem:[#allocation2 + $0x70] sm:$0xff] %vm420_vm0, %v1189_v7  ;;  %v1190_v21 = vadd.f32 %v1036_v17, %v485_v8  ;;  %v1038_v47 = vpop.f32.mrb[31].mxu0  ;;  %v2939_v22 = vadd.f32 %v2690_v23, %v1315_v18  ;;  %1265 = vst.msk [vmem:[#allocation2 + $0x140] sm:$0xff] %vm420_vm0, %v1215_v10  ;;  %v1142_v25 = vpop.f32.mrb[31].mxu1  ;;  %v1403_v18 = vsel %vm420_vm0, %v2905_v46, 0.0 }
 0x160   : > { %v1216_v24 = vadd.f32 %v1140_v19, %v511_v4  ;;  %v1290_v28 = vld [vmem:[#allocation2 + $0x68] sm:$0xff]  ;;  %v1400_v8 = vadd.f32 %v1399_v43, %v1398_v38  ;;  %v1556_v12 = vadd.f32 %v1555_v60, %v1554_v1 }
 0x161   : > { %v2260_v30 = vpack.c.bf16 %v2935_v20, %v2935_v20  ;;  %v2949_v33 = vadd.f32 %v2690_v23, %v1290_v28  ;;  %1240 = vst.msk [vmem:[#allocation2 + $0x78] sm:$0xff] %vm420_vm0, %v1190_v21  ;;  %v1316_v34 = vld [vmem:[#allocation2 + $0x138] sm:$0xff]  ;;  %v2286_v41 = vpack.c.bf16 %v2939_v22, %v2939_v22  ;;  %v1557_v21 = vsel %vm420_vm0, %v1498_v57, 0.0  ;;  %v514_v28 = vld [vmem:[#allocation2 + $0x160] sm:$0xff]  ;;  %v515_v43 = vld [vmem:[#allocation2 + $0x168] sm:$0xff] }
 0x162   : > { %1266 = vst.msk [vmem:[#allocation2 + $0x148] sm:$0xff] %vm420_vm0, %v1216_v24  ;;  %v2967_v54 = vadd.f32 %v2690_v23, %v1316_v34  ;;  %v1402_v17 = vadd.f32 %v1401_v62, %v1400_v8  ;;  %v1499_v47 = vmul.f32 %v2935_v20, %v2935_v20  ;;  %v1405_v0 = vsel %vm420_vm0, %v2935_v20, 0.0 }
 0x163   : > { %1850 = vst.msk [vmem:[%s2703_s10 + $0x30] sm:$0xf] %vm1837_vm1, %v2260_v30  ;;  %v2261_v50 = vpack.c.bf16 %v2949_v33, %v2949_v33  ;;  %1876 = vst.msk [vmem:[%s2703_s10 + $0x98] sm:$0xf] %vm1837_vm1, %v2286_v41  ;;  %v1558_v38 = vadd.f32 %v1557_v21, %v1556_v12  ;;  %v1500_v20 = vmul.f32 %v2949_v33, %v2949_v33 }
 0x164   : > { %v1041_v51 = vpop.f32.mrb[32].mxu0  ;;  %v1145_v55 = vpop.f32.mrb[32].mxu1  ;;  %v2287_v6 = vpack.c.bf16 %v2967_v54, %v2967_v54  ;;  %v1404_v34 = vadd.f32 %v1403_v18, %v1402_v17  ;;  %v1559_v44 = vsel %vm420_vm0, %v1499_v47, 0.0  ;;  %v516_v47 = vld [vmem:[#allocation2 + $0x170] sm:$0xff] }
 0x165   : > { %1851 = vst.msk [vmem:[%s2703_s10 + $0x34] sm:$0xf] %vm1837_vm1, %v2261_v50  ;;  %v1191_v58 = vadd.f32 %v1041_v51, %v486_v40  ;;  %v1043_v59 = vpop.f32.mrb[33].mxu0  ;;  %v1217_v61 = vadd.f32 %v1145_v55, %v512_v42  ;;  %v1147_v31 = vpop.f32.mrb[33].mxu1  ;;  %v489_v40 = vld [vmem:[#allocation2 + $0x98] sm:$0xff] }
 0x166   : > { %v1291_v4 = vld [vmem:[#allocation2 + $0x70] sm:$0xff]  ;;  %v1044_v5 = vpop.f32.mrb[34].mxu0  ;;  %v1317_v7 = vld [vmem:[#allocation2 + $0x140] sm:$0xff]  ;;  %v1148_v9 = vpop.f32.mrb[34].mxu1  ;;  %1877 = vst.msk [vmem:[%s2703_s10 + $0x9c] sm:$0xf] %vm1837_vm1, %v2287_v6  ;;  %v1406_v55 = vadd.f32 %v1405_v0, %v1404_v34 }
 0x167   : > { %v1347_v10 = vadd.f32 %v2690_v23, %v1291_v4  ;;  %1241 = vst.msk [vmem:[#allocation2 + $0x80] sm:$0xff] %vm420_vm0, %v1191_v58  ;;  %v1192_v11 = vadd.f32 %v1044_v5, %v487_v53  ;;  %v1046_v29 = vpop.f32.mrb[35].mxu0  ;;  %v2979_v14 = vadd.f32 %v2690_v23, %v1317_v7  ;;  %1267 = vst.msk [vmem:[#allocation2 + $0x150] sm:$0xff] %vm420_vm0, %v1217_v61  ;;  %v1150_v45 = vpop.f32.mrb[35].mxu1  ;;  %v517_v34 = vld [vmem:[#allocation2 + $0x178] sm:$0xff] }
 0x168   : > { %v1218_v15 = vadd.f32 %v1148_v9, %v513_v56  ;;  %v1292_v19 = vld [vmem:[#allocation2 + $0x78] sm:$0xff]  ;;  %v1407_v56 = vsel %vm420_vm0, %v2949_v33, 0.0  ;;  %v1560_v7 = vadd.f32 %v1559_v44, %v1558_v38 }
 0x169   : > { %v2262_v24 = vpack.c.bf16 %v1347_v10, %v1347_v10  ;;  %v2990_v25 = vadd.f32 %v2690_v23, %v1292_v19  ;;  %1242 = vst.msk [vmem:[#allocation2 + $0x88] sm:$0xff] %vm420_vm0, %v1192_v11  ;;  %v1318_v36 = vld [vmem:[#allocation2 + $0x148] sm:$0xff]  ;;  %v2288_v46 = vpack.c.bf16 %v2979_v14, %v2979_v14  ;;  %v1501_v60 = vmul.f32 %v1347_v10, %v1347_v10  ;;  %v490_v19 = vld [vmem:[#allocation2 + $0xa0] sm:$0xff] }
 0x16a   : > { %1268 = vst.msk [vmem:[#allocation2 + $0x158] sm:$0xff] %vm420_vm0, %v1218_v15  ;;  %v3005_v41 = vadd.f32 %v2690_v23, %v1318_v36  ;;  %v1561_v11 = vsel %vm420_vm0, %v1500_v20, 0.0  ;;  %v1409_v29 = vsel %vm420_vm0, %v1347_v10, 0.0  ;;  %v1408_v12 = vadd.f32 %v1407_v56, %v1406_v55 }
 0x16b   : > { %1852 = vst.msk [vmem:[%s2703_s10 + $0x38] sm:$0xf] %vm1837_vm1, %v2262_v24  ;;  %v2263_v30 = vpack.c.bf16 %v2990_v25, %v2990_v25  ;;  %1878 = vst.msk [vmem:[%s2703_s10 + $0xa0] sm:$0xf] %vm1837_vm1, %v2288_v46  ;;  %v1502_v18 = vmul.f32 %v2990_v25, %v2990_v25  ;;  %v1563_v10 = vsel %vm420_vm0, %v1501_v60, 0.0  ;;  %v1562_v36 = vadd.f32 %v1561_v11, %v1560_v7 }
 0x16c   : > { %v1049_v37 = vpop.f32.mrb[36].mxu0  ;;  %v1153_v42 = vpop.f32.mrb[36].mxu1  ;;  %v2289_v59 = vpack.c.bf16 %v3005_v41, %v3005_v41  ;;  %v1411_v38 = vsel %vm420_vm0, %v2990_v25, 0.0 }
 0x16d   : > { %1853 = vst.msk [vmem:[%s2703_s10 + $0x3c] sm:$0xf] %vm1837_vm1, %v2263_v30  ;;  %v1193_v50 = vadd.f32 %v1049_v37, %v488_v27  ;;  %v1051_v62 = vpop.f32.mrb[37].mxu0  ;;  %v1219_v51 = vadd.f32 %v1153_v42, %v514_v28  ;;  %v1155_v53 = vpop.f32.mrb[37].mxu1  ;;  %v1410_v27 = vadd.f32 %v1409_v29, %v1408_v12  ;;  %v491_v28 = vld [vmem:[#allocation2 + $0xa8] sm:$0xff]  ;;  %v1564_v20 = vadd.f32 %v1563_v10, %v1562_v36 }
 0x16e   : > { %v1293_v57 = vld [vmem:[#allocation2 + $0x80] sm:$0xff]  ;;  %v1052_v58 = vpop.f32.mrb[38].mxu0  ;;  %v1319_v61 = vld [vmem:[#allocation2 + $0x150] sm:$0xff]  ;;  %v1156_v31 = vpop.f32.mrb[38].mxu1  ;;  %1879 = vst.msk [vmem:[%s2703_s10 + $0xa4] sm:$0xf] %vm1837_vm1, %v2289_v59 }
 0x16f   : > { %v1349_v8 = vadd.f32 %v2690_v23, %v1293_v57  ;;  %1243 = vst.msk [vmem:[#allocation2 + $0x90] sm:$0xff] %vm420_vm0, %v1193_v50  ;;  %v1194_v1 = vadd.f32 %v1052_v58, %v489_v40  ;;  %v1054_v4 = vpop.f32.mrb[39].mxu0  ;;  %v3019_v5 = vadd.f32 %v2690_v23, %v1319_v61  ;;  %1269 = vst.msk [vmem:[#allocation2 + $0x160] sm:$0xff] %vm420_vm0, %v1219_v51  ;;  %v1158_v6 = vpop.f32.mrb[39].mxu1  ;;  %v1565_v50 = vsel %vm420_vm0, %v1502_v18, 0.0  ;;  %v518_v18 = vld [vmem:[#allocation2 + $0x180] sm:$0xff] }
 0x170   : > { %v1220_v33 = vadd.f32 %v1156_v31, %v515_v43  ;;  %v1294_v9 = vld [vmem:[#allocation2 + $0x88] sm:$0xff]  ;;  %v1566_v11 = vadd.f32 %v1565_v50, %v1564_v20 }
 0x171   : > { %v2264_v15 = vpack.c.bf16 %v1349_v8, %v1349_v8  ;;  %v1350_v45 = vadd.f32 %v2690_v23, %v1294_v9  ;;  %1244 = vst.msk [vmem:[#allocation2 + $0x98] sm:$0xff] %vm420_vm0, %v1194_v1  ;;  %v1320_v17 = vld [vmem:[#allocation2 + $0x158] sm:$0xff]  ;;  %v2290_v21 = vpack.c.bf16 %v3019_v5, %v3019_v5  ;;  %v1503_v37 = vmul.f32 %v1349_v8, %v1349_v8 }
 0x172   : > { %1270 = vst.msk [vmem:[#allocation2 + $0x168] sm:$0xff] %vm420_vm0, %v1220_v33  ;;  %v3039_v0 = vadd.f32 %v2690_v23, %v1320_v17  ;;  %v1413_v62 = vsel %vm420_vm0, %v1349_v8, 0.0  ;;  %v1412_v8 = vadd.f32 %v1411_v38, %v1410_v27  ;;  %v492_v17 = vld [vmem:[#allocation2 + $0xb0] sm:$0xff] }
 0x173   : > { %1854 = vst.msk [vmem:[%s2703_s10 + $0x40] sm:$0xf] %vm1837_vm1, %v2264_v15  ;;  %v2265_v24 = vpack.c.bf16 %v1350_v45, %v1350_v45  ;;  %1880 = vst.msk [vmem:[%s2703_s10 + $0xa8] sm:$0xf] %vm1837_vm1, %v2290_v21  ;;  %v1567_v4 = vsel %vm420_vm0, %v1503_v37, 0.0  ;;  %v1504_v33 = vmul.f32 %v1350_v45, %v1350_v45 }
 0x174   : > { %v1057_v46 = vpop.f32.mrb[40].mxu0  ;;  %v1161_v30 = vpop.f32.mrb[40].mxu1  ;;  %v2291_v55 = vpack.c.bf16 %v3039_v0, %v3039_v0  ;;  %v1414_v29 = vadd.f32 %v1413_v62, %v1412_v8 }
 0x175   : > { %1855 = vst.msk [vmem:[%s2703_s10 + $0x44] sm:$0xf] %vm1837_vm1, %v2265_v24  ;;  %v1195_v40 = vadd.f32 %v1057_v46, %v490_v19  ;;  %v1059_v42 = vpop.f32.mrb[41].mxu0  ;;  %v1221_v43 = vadd.f32 %v1161_v30, %v516_v47  ;;  %v1163_v44 = vpop.f32.mrb[41].mxu1  ;;  %v1415_v19 = vsel %vm420_vm0, %v1350_v45, 0.0  ;;  %v1568_v47 = vadd.f32 %v1567_v4, %v1566_v11  ;;  %v493_v24 = vld [vmem:[#allocation2 + $0xb8] sm:$0xff] }
 0x176   : > { %v1295_v51 = vld [vmem:[#allocation2 + $0x90] sm:$0xff]  ;;  %v1060_v53 = vpop.f32.mrb[42].mxu0  ;;  %v1321_v56 = vld [vmem:[#allocation2 + $0x160] sm:$0xff]  ;;  %v1164_v25 = vpop.f32.mrb[42].mxu1  ;;  %1881 = vst.msk [vmem:[%s2703_s10 + $0xac] sm:$0xf] %vm1837_vm1, %v2291_v55  ;;  %v1416_v37 = vadd.f32 %v1415_v19, %v1414_v29 }
 0x177   : > { %v1351_v60 = vadd.f32 %v2690_v23, %v1295_v51  ;;  %1245 = vst.msk [vmem:[#allocation2 + $0xa0] sm:$0xff] %vm420_vm0, %v1195_v40  ;;  %v1196_v57 = vadd.f32 %v1060_v53, %v491_v28  ;;  %v1062_v58 = vpop.f32.mrb[43].mxu0  ;;  %v3052_v59 = vadd.f32 %v2690_v23, %v1321_v56  ;;  %1271 = vst.msk [vmem:[#allocation2 + $0x170] sm:$0xff] %vm420_vm0, %v1221_v43  ;;  %v1166_v31 = vpop.f32.mrb[43].mxu1  ;;  %v1569_v46 = vsel %vm420_vm0, %v1504_v33, 0.0 }
 0x178   : > { %v1222_v61 = vadd.f32 %v1164_v25, %v517_v34  ;;  %v1296_v1 = vld [vmem:[#allocation2 + $0x98] sm:$0xff] }
 0x179   : > { %v2266_v6 = vpack.c.bf16 %v1351_v60, %v1351_v60  ;;  %v1352_v7 = vadd.f32 %v2690_v23, %v1296_v1  ;;  %1246 = vst.msk [vmem:[#allocation2 + $0xa8] sm:$0xff] %vm420_vm0, %v1196_v57  ;;  %v1322_v9 = vld [vmem:[#allocation2 + $0x168] sm:$0xff]  ;;  %v1505_v15 = vmul.f32 %v1351_v60, %v1351_v60  ;;  %v2292_v12 = vpack.c.bf16 %v3052_v59, %v3052_v59 }
 0x17a   : > { %1272 = vst.msk [vmem:[#allocation2 + $0x178] sm:$0xff] %vm420_vm0, %v1222_v61  ;;  %v3069_v36 = vadd.f32 %v2690_v23, %v1322_v9  ;;  %v1417_v28 = vsel %vm420_vm0, %v1351_v60, 0.0  ;;  %v1570_v60 = vadd.f32 %v1569_v46, %v1568_v47 }
 0x17b   : > { %1856 = vst.msk [vmem:[%s2703_s10 + $0x48] sm:$0xf] %vm1837_vm1, %v2266_v6  ;;  %v2267_v21 = vpack.c.bf16 %v1352_v7, %v1352_v7  ;;  %1882 = vst.msk [vmem:[%s2703_s10 + $0xb0] sm:$0xf] %vm1837_vm1, %v2292_v12  ;;  %v1571_v40 = vsel %vm420_vm0, %v1505_v15, 0.0  ;;  %v1506_v62 = vmul.f32 %v1352_v7, %v1352_v7  ;;  %v1418_v57 = vadd.f32 %v1417_v28, %v1416_v37  ;;  %v494_v6 = vld [vmem:[#allocation2 + $0xc0] sm:$0xff] }
 0x17c   : > { %v1065_v10 = vpop.f32.mrb[44].mxu0  ;;  %v1169_v27 = vpop.f32.mrb[44].mxu1  ;;  %v2293_v44 = vpack.c.bf16 %v3069_v36, %v3069_v36  ;;  %v1419_v61 = vsel %vm420_vm0, %v1352_v7, 0.0  ;;  %v1572_v33 = vadd.f32 %v1571_v40, %v1570_v60 }
 0x17d   : > { %1857 = vst.msk [vmem:[%s2703_s10 + $0x4c] sm:$0xf] %vm1837_vm1, %v2267_v21  ;;  %v1197_v30 = vadd.f32 %v1065_v10, %v492_v17  ;;  %v1067_v45 = vpop.f32.mrb[45].mxu0  ;;  %v1223_v34 = vadd.f32 %v1169_v27, %v518_v18  ;;  %v1171_v38 = vpop.f32.mrb[45].mxu1  ;;  %v1573_v11 = vsel %vm420_vm0, %v1506_v62, 0.0  ;;  %v1420_v15 = vadd.f32 %v1419_v61, %v1418_v57  ;;  %v495_v18 = vld [vmem:[#allocation2 + $0xc8] sm:$0xff] }
 0x17e   : > { %v1297_v42 = vld [vmem:[#allocation2 + $0xa0] sm:$0xff]  ;;  %v1068_v43 = vpop.f32.mrb[46].mxu0  ;;  %v1323_v20 = vld [vmem:[#allocation2 + $0x170] sm:$0xff]  ;;  %v1172_v50 = vpop.f32.mrb[46].mxu1  ;;  %1883 = vst.msk [vmem:[%s2703_s10 + $0xb4] sm:$0xf] %vm1837_vm1, %v2293_v44 }
 0x17f   : > { %v1353_v51 = vadd.f32 %v2690_v23, %v1297_v42  ;;  %1247 = vst.msk [vmem:[#allocation2 + $0xb0] sm:$0xff] %vm420_vm0, %v1197_v30  ;;  %v1198_v53 = vadd.f32 %v1068_v43, %v493_v24  ;;  %v1070_v55 = vpop.f32.mrb[47].mxu0  ;;  %v3081_v56 = vadd.f32 %v2690_v23, %v1323_v20  ;;  %1273 = vst.msk [vmem:[#allocation2 + $0x180] sm:$0xff] %vm420_vm0, %v1223_v34  ;;  %v1173_v25 = vpop.f32.mrb[47].mxu1 }
 0x180   : > { %v1298_v58 = vld [vmem:[#allocation2 + $0xa8] sm:$0xff]  ;;  %v1574_v24 = vadd.f32 %v1573_v11, %v1572_v33 }
 0x181   : > { %v1507_v31 = vmul.f32 %v1353_v51, %v1353_v51  ;;  %v2268_v8 = vpack.c.bf16 %v1353_v51, %v1353_v51  ;;  %v1354_v1 = vadd.f32 %v2690_v23, %v1298_v58  ;;  %1248 = vst.msk [vmem:[#allocation2 + $0xb8] sm:$0xff] %vm420_vm0, %v1198_v53  ;;  %v1324_v4 = vld [vmem:[#allocation2 + $0x178] sm:$0xff]  ;;  %v2294_v9 = vpack.c.bf16 %v3081_v56, %v3081_v56  ;;  %v2447_v53 = vld [vmem:[%s3272_s2] ss:$0 sm:$0xff] }
 0x182   : > { %v1421_v29 = vsel %vm420_vm0, %v1353_v51, 0.0  ;;  %v3098_v19 = vadd.f32 %v2690_v23, %v1324_v4 }
 0x183   : > { %1858 = vst.msk [vmem:[%s2703_s10 + $0x50] sm:$0xf] %vm1837_vm1, %v2268_v8  ;;  %v2269_v7 = vpack.c.bf16 %v1354_v1, %v1354_v1  ;;  %v1508_v17 = vmul.f32 %v1354_v1, %v1354_v1  ;;  %1884 = vst.msk [vmem:[%s2703_s10 + $0xb8] sm:$0xf] %vm1837_vm1, %v2294_v9  ;;  %v1575_v21 = vsel %vm420_vm0, %v1507_v31, 0.0  ;;  %v1422_v27 = vadd.f32 %v1421_v29, %v1420_v15 }
 0x184   : > { %v1073_v12 = vpop.f32.mrb[48].mxu0  ;;  %v2295_v30 = vpack.c.bf16 %v3098_v19, %v3098_v19  ;;  %v1423_v34 = vsel %vm420_vm0, %v1354_v1, 0.0  ;;  %v1576_v43 = vadd.f32 %v1575_v21, %v1574_v24 }
 0x185   : > { %1859 = vst.msk [vmem:[%s2703_s10 + $0x54] sm:$0xf] %vm1837_vm1, %v2269_v7  ;;  %v1199_v47 = vadd.f32 %v1073_v12, %v494_v6  ;;  %v1075_v10 = vpop.f32.mrb[49].mxu0  ;;  %v1577_v44 = vsel %vm420_vm0, %v1508_v17, 0.0  ;;  %v1513_v12 = vmul.f32 %v2697_v39, %v2697_v39 }
 0x186   : > { %v1299_v46 = vld [vmem:[#allocation2 + $0xb0] sm:$0xff]  ;;  %v1076_v28 = vpop.f32.mrb[50].mxu0  ;;  %v1325_v45 = vld [vmem:[#allocation2 + $0x180] sm:$0xff]  ;;  %1885 = vst.msk [vmem:[%s2703_s10 + $0xbc] sm:$0xf] %vm1837_vm1, %v2295_v30  ;;  %v1578_v61 = vadd.f32 %v1577_v44, %v1576_v43  ;;  %v1433_v30 = vsel %vm420_vm0, %v2697_v39, 0.0  ;;  %v1515_v44 = vmul.f32 %v2734_v3, %v2734_v3 }
 0x187   : > { %v1355_v38 = vadd.f32 %v2690_v23, %v1299_v46  ;;  %1249 = vst.msk [vmem:[#allocation2 + $0xc0] sm:$0xff] %vm420_vm0, %v1199_v47  ;;  %v1200_v37 = vadd.f32 %v1076_v28, %v495_v18  ;;  %v1078_v40 = vpop.f32.mrb[51].mxu0  ;;  %v3109_v42 = vadd.f32 %v2690_v23, %v1325_v45  ;;  %v1424_v23 = vadd.f32 %v1423_v34, %v1422_v27 }
 0x188   : > { %v1300_v20 = vld [vmem:[#allocation2 + $0xb8] sm:$0xff]  ;;  %v1514_v45 = vmul.f32 %v2715_v48, %v2715_v48  ;;  %v1587_v40 = vsel %vm420_vm0, %v1513_v12, 0.0  ;;  %v1435_v43 = vsel %vm420_vm0, %v2715_v48, 0.0  ;;  %v1439_v48 = vsel %vm420_vm0, %v2753_v16, 0.0 }
 0x189   : > { %v1425_v50 = vsel %vm420_vm0, %v1355_v38, 0.0  ;;  %v1509_v62 = vmul.f32 %v1355_v38, %v1355_v38  ;;  %v2270_v51 = vpack.c.bf16 %v1355_v38, %v1355_v38  ;;  %v1356_v55 = vadd.f32 %v2447_v53, %v1300_v20  ;;  %1250 = vst.msk [vmem:[#allocation2 + $0xc8] sm:$0xff] %vm420_vm0, %v1200_v37 }
 0x18a   : > { %v2296_v25 = vpack.c.bf16 %v3109_v42, %v3109_v42  ;;  %v1426_v31 = vadd.f32 %v1425_v50, %v1424_v23  ;;  %v1589_v39 = vsel %vm420_vm0, %v1514_v45, 0.0  ;;  %v1591_v23 = vsel %vm420_vm0, %v1515_v44, 0.0 }
 0x18b   : > { %v1579_v60 = vsel %vm420_vm0, %v1509_v62, 0.0  ;;  %1860 = vst.msk [vmem:[%s2703_s10 + $0x58] sm:$0xf] %vm1837_vm1, %v2270_v51  ;;  %v1510_v57 = vmul.f32 %v1356_v55, %v1356_v55  ;;  %v2271_v58 = vpack.c.bf16 %v1356_v55, %v1356_v55  ;;  %v1427_v8 = vsel %vm420_vm0, %v1356_v55, 0.0 }
 0x18c   : > { %1886 = vst.msk [vmem:[%s2703_s10 + $0xc0] sm:$0xf] %vm1837_vm1, %v2296_v25  ;;  %v1580_v1 = vadd.f32 %v1579_v60, %v1578_v61  ;;  %v1428_v9 = vadd.f32 %v1427_v8, %v1426_v31  ;;  %v1437_v62 = vsel %vm420_vm0, %v2734_v3, 0.0  ;;  %v1516_v51 = vmul.f32 %v2753_v16, %v2753_v16 }
 0x18d   : > { %1861 = vst.msk [vmem:[%s2703_s10 + $0x5c] sm:$0xf] %vm1837_vm1, %v2271_v58  ;;  %v1581_v33 = vsel %vm420_vm0, %v1510_v57, 0.0  ;;  %v1517_v25 = vmul.f32 %v2764_v32, %v2764_v32  ;;  %v1441_v3 = vsel %vm420_vm0, %v2764_v32, 0.0  ;;  %v1518_v61 = vmul.f32 %v2785_v49, %v2785_v49 }
 0x18e   : > { %v1301_v4 = vld [vmem:[#allocation2 + $0xc0] sm:$0xff]  ;;  %v1582_v18 = vadd.f32 %v1581_v33, %v1580_v1  ;;  %v1593_v58 = vsel %vm420_vm0, %v1516_v51, 0.0  ;;  %v1443_v16 = vsel %vm420_vm0, %v2785_v49, 0.0  ;;  %v1445_v32 = vsel %vm420_vm0, %v2798_v2, 0.0 }
 0x18f   : > { %v1357_v6 = vadd.f32 %v2447_v53, %v1301_v4  ;;  %v1595_v1 = vsel %vm420_vm0, %v1517_v25, 0.0  ;;  %v1519_v4 = vmul.f32 %v2798_v2, %v2798_v2  ;;  %v1447_v49 = vsel %vm420_vm0, %v2831_v26, 0.0 }
 0x190   : > { %v1302_v11 = vld [vmem:[#allocation2 + $0xc8] sm:$0xff]  ;;  %v1449_v2 = vsel %vm420_vm0, %v2847_v52, 0.0 }
 0x191   : > { %v1429_v29 = vsel %vm420_vm0, %v1357_v6, 0.0  ;;  %v1511_v7 = vmul.f32 %v1357_v6, %v1357_v6  ;;  %v2272_v15 = vpack.c.bf16 %v1357_v6, %v1357_v6  ;;  %v1358_v17 = vadd.f32 %v2447_v53, %v1302_v11 }
 0x192   : > { %v1430_v21 = vadd.f32 %v1429_v29, %v1428_v9  ;;  %v1597_v9 = vsel %vm420_vm0, %v1518_v61, 0.0  ;;  %v1520_v11 = vmul.f32 %v2831_v26, %v2831_v26  ;;  %v1451_v26 = vsel %vm420_vm0, %v2876_v13, 0.0 }
 0x193   : > { %v1583_v47 = vsel %vm420_vm0, %v1511_v7, 0.0  ;;  %1862 = vst.msk [vmem:[%s2703_s10 + $0x60] sm:$0xf] %vm1837_vm1, %v2272_v15  ;;  %v1431_v10 = vsel %vm420_vm0, %v1358_v17, 0.0  ;;  %v1512_v24 = vmul.f32 %v1358_v17, %v1358_v17  ;;  %v2273_v27 = vpack.c.bf16 %v1358_v17, %v1358_v17 }
 0x194   : > { %v1584_v46 = vadd.f32 %v1583_v47, %v1582_v18  ;;  %v1432_v28 = vadd.f32 %v1431_v10, %v1430_v21  ;;  %v1599_v15 = vsel %vm420_vm0, %v1519_v4, 0.0  ;;  %v1521_v17 = vmul.f32 %v2847_v52, %v2847_v52 }
 0x195   : > { %v1585_v34 = vsel %vm420_vm0, %v1512_v24, 0.0  ;;  %1863 = vst.msk [vmem:[%s2703_s10 + $0x64] sm:$0xf] %vm1837_vm1, %v2273_v27  ;;  %v1601_v21 = vsel %vm420_vm0, %v1520_v11, 0.0  ;;  %v1522_v47 = vmul.f32 %v2876_v13, %v2876_v13  ;;  %v1453_v52 = vsel %vm420_vm0, %v2892_v35, 0.0 }
 0x196   : > { %v1434_v38 = vadd.f32 %v1433_v30, %v1432_v28  ;;  %v1586_v37 = vadd.f32 %v1585_v34, %v1584_v46  ;;  %v1603_v27 = vsel %vm420_vm0, %v1521_v17, 0.0  ;;  %v1523_v46 = vmul.f32 %v2892_v35, %v2892_v35 }
 0x197   : > { %v1605_v45 = vsel %vm420_vm0, %v1522_v47, 0.0  ;;  %v1524_v34 = vmul.f32 %v2920_v63, %v2920_v63  ;;  %v1455_v13 = vsel %vm420_vm0, %v2920_v63, 0.0  ;;  %v1457_v35 = vsel %vm420_vm0, %v2939_v22, 0.0 }
 0x198   : > { %v1436_v20 = vadd.f32 %v1435_v43, %v1434_v38  ;;  %v1588_v50 = vadd.f32 %v1587_v40, %v1586_v37  ;;  %v1607_v40 = vsel %vm420_vm0, %v1523_v46, 0.0  ;;  %v1525_v43 = vmul.f32 %v2939_v22, %v2939_v22 }
 0x199   : > { %v1459_v63 = vsel %vm420_vm0, %v2967_v54, 0.0  ;;  %v1461_v22 = vsel %vm420_vm0, %v2979_v14, 0.0  ;;  %v1529_v61 = vmul.f32 %v3019_v5, %v3019_v5  ;;  %v1534_v47 = vmul.f32 %v3098_v19, %v3098_v19 }
 0x19a   : > { %v1438_v53 = vadd.f32 %v1437_v62, %v1436_v20  ;;  %v1590_v55 = vadd.f32 %v1589_v39, %v1588_v50  ;;  %v1609_v50 = vsel %vm420_vm0, %v1524_v34, 0.0  ;;  %v1526_v39 = vmul.f32 %v2967_v54, %v2967_v54 }
 0x19b   : > { %v1463_v54 = vsel %vm420_vm0, %v3005_v41, 0.0  ;;  %v1477_v46 = vsel %vm420_vm0, %v3109_v42, 0.0 }
 0x19c   : > { %v1440_v60 = vadd.f32 %v1439_v48, %v1438_v53  ;;  %v1592_v57 = vadd.f32 %v1591_v23, %v1590_v55  ;;  %v1611_v53 = vsel %vm420_vm0, %v1525_v43, 0.0  ;;  %v1527_v55 = vmul.f32 %v2979_v14, %v2979_v14 }
 0x19d   : > { %v1613_v25 = vsel %vm420_vm0, %v1526_v39, 0.0  ;;  %v1465_v14 = vsel %vm420_vm0, %v3019_v5, 0.0  ;;  %v1469_v5 = vsel %vm420_vm0, %v3052_v59, 0.0 }
 0x19e   : > { %v1442_v31 = vadd.f32 %v1441_v3, %v1440_v60  ;;  %v1594_v8 = vadd.f32 %v1593_v58, %v1592_v57  ;;  %v1528_v60 = vmul.f32 %v3005_v41, %v3005_v41  ;;  %v1615_v3 = vsel %vm420_vm0, %v1527_v55, 0.0 }
 0x19f   : > { %v1467_v41 = vsel %vm420_vm0, %v3039_v0, 0.0 }
 0x1a0   : > { %v1444_v33 = vadd.f32 %v1443_v16, %v1442_v31  ;;  %v1596_v6 = vadd.f32 %v1595_v1, %v1594_v8  ;;  %v1617_v1 = vsel %vm420_vm0, %v1528_v60, 0.0  ;;  %v1530_v16 = vmul.f32 %v3039_v0, %v3039_v0 }
 0x1a1   : > { %v1471_v0 = vsel %vm420_vm0, %v3069_v36, 0.0 }
 0x1a2   : > { %v1598_v29 = vadd.f32 %v1597_v9, %v1596_v6  ;;  %v1446_v7 = vadd.f32 %v1445_v32, %v1444_v33  ;;  %v1619_v6 = vsel %vm420_vm0, %v1529_v61, 0.0  ;;  %v1531_v9 = vmul.f32 %v3052_v59, %v3052_v59 }
 0x1a3   : > { %v1473_v59 = vsel %vm420_vm0, %v3081_v56, 0.0 }
 0x1a4   : > { %v1448_v12 = vadd.f32 %v1447_v49, %v1446_v7  ;;  %v1600_v18 = vadd.f32 %v1599_v15, %v1598_v29  ;;  %v1621_v29 = vsel %vm420_vm0, %v1530_v16, 0.0  ;;  %v1532_v7 = vmul.f32 %v3069_v36, %v3069_v36 }
 0x1a5   : > { %v1623_v17 = vsel %vm420_vm0, %v1531_v9, 0.0 }
 0x1a6   : > { %v1450_v10 = vadd.f32 %v1449_v2, %v1448_v12  ;;  %v1602_v24 = vadd.f32 %v1601_v21, %v1600_v18  ;;  %v1533_v12 = vmul.f32 %v3081_v56, %v3081_v56  ;;  %v1625_v2 = vsel %vm420_vm0, %v1532_v7, 0.0 }
 0x1a7   : > { %v1629_v56 = vsel %vm420_vm0, %v1534_v47, 0.0 }
 0x1a8   : > { %v1452_v28 = vadd.f32 %v1451_v26, %v1450_v10  ;;  %v1604_v30 = vadd.f32 %v1603_v27, %v1602_v24  ;;  %v1535_v10 = vmul.f32 %v3109_v42, %v3109_v42  ;;  %v1627_v36 = vsel %vm420_vm0, %v1533_v12, 0.0 }
 0x1a9   : > { %v1475_v26 = vsel %vm420_vm0, %v3098_v19, 0.0 }
 0x1aa   : > { %v1454_v38 = vadd.f32 %v1453_v52, %v1452_v28  ;;  %v1606_v37 = vadd.f32 %v1605_v45, %v1604_v30  ;;  %v1631_v45 = vsel %vm420_vm0, %v1535_v10, 0.0 }
 0x1ac   : > { %v1456_v44 = vadd.f32 %v1455_v13, %v1454_v38  ;;  %v1608_v20 = vadd.f32 %v1607_v40, %v1606_v37 }
 0x1ae   : > { %v1458_v62 = vadd.f32 %v1457_v35, %v1456_v44  ;;  %v1610_v51 = vadd.f32 %v1609_v50, %v1608_v20 }
 0x1b0   : > { %v1612_v23 = vadd.f32 %v1611_v53, %v1610_v51  ;;  %v1460_v48 = vadd.f32 %v1459_v63, %v1458_v62 }
 0x1b2   : > { %v1614_v57 = vadd.f32 %v1613_v25, %v1612_v23  ;;  %v1462_v58 = vadd.f32 %v1461_v22, %v1460_v48 }
 0x1b4   : > { %v1616_v31 = vadd.f32 %v1615_v3, %v1614_v57  ;;  %v1464_v8 = vadd.f32 %v1463_v54, %v1462_v58 }
 0x1b6   : > { %v1618_v4 = vadd.f32 %v1617_v1, %v1616_v31  ;;  %v1466_v33 = vadd.f32 %v1465_v14, %v1464_v8 }
 0x1b8   : > { %v1620_v32 = vadd.f32 %v1619_v6, %v1618_v4  ;;  %v1468_v11 = vadd.f32 %v1467_v41, %v1466_v33 }
 0x1ba   : > { %v1622_v15 = vadd.f32 %v1621_v29, %v1620_v32  ;;  %v1470_v49 = vadd.f32 %v1469_v5, %v1468_v11 }
 0x1bc   : > { %v1624_v18 = vadd.f32 %v1623_v17, %v1622_v15  ;;  %v1472_v21 = vadd.f32 %v1471_v0, %v1470_v49 }
 0x1be   : > { %v1626_v24 = vadd.f32 %v1625_v2, %v1624_v18  ;;  %v1474_v27 = vadd.f32 %v1473_v59, %v1472_v21 }
 0x1c0   : > { %v1628_v28 = vadd.f32 %v1627_v36, %v1626_v24  ;;  %v1476_v30 = vadd.f32 %v1475_v26, %v1474_v27 }
 0x1c2   : > { %v1630_v52 = vadd.f32 %v1629_v56, %v1628_v28  ;;  %v1478_v34 = vadd.f32 %v1477_v46, %v1476_v30 }
 0x1c4   : > { %v1479_v38 = vrot.slane %v1478_v34, 4  ;;  %v1632_v37 = vadd.f32 %v1631_v45, %v1630_v52 }
 0x1c6   : > { %v1480_v40 = vadd.f32 %v1479_v38, %v1478_v34  ;;  %v1633_v13 = vrot.slane %v1632_v37, 4 }
 0x1c8   : > { %v1481_v43 = vrot.slane %v1480_v40, 2  ;;  %v1634_v44 = vadd.f32 %v1633_v13, %v1632_v37 }
 0x1ca   : > { %v1482_v19 = vadd.f32 %v1481_v43, %v1480_v40  ;;  %v1635_v20 = vrot.slane %v1634_v44, 2 }
 0x1cc   : > { %v1483_v50 = vrot.slane %v1482_v19, 1  ;;  %v1636_v42 = vadd.f32 %v1635_v20, %v1634_v44 }
 0x1ce   : > { %v1484_v35 = vadd.f32 %v1483_v50, %v1482_v19  ;;  %v1637_v39 = vrot.slane %v1636_v42, 1 }
 0x1d0   : > { %1486 = vst.msk [vmem:[%s405_s15] sm:$0x1] %vm1485_vm2, %v1484_v35  ;;  %v1638_v62 = vadd.f32 %v1637_v39, %v1636_v42 }
 0x1d2   : > { %1639 = vst.msk [vmem:[%s414_s22] sm:$0x1] %vm1485_vm2, %v1638_v62 }
 0x1d3 PF: > { %s16_s20 = sadd.s32 1, %s2470_s20   ;;  %s3276_s18 = smov %s2466_s19 }
 0x1d4   : > { %p13_p5 = scmp.ge.s32.totalorder %s16_s20, 6   ;;  %s3277_s19 = smov %s3279_s21 }
 0x1d6   :  { %15 = sbr.rel (!%p13_p5) target bundleno = 2 (0x2), region = 100 }

// kernel: decoder_forward.10
= control target key start
LH: loop header
LB: loop body
LE: loop exit
PB: predicated region body
PF: predicated region fallthrough
CT: control target
= control target key end

     0   :  { %s1714_s12 = smov 0   ;;  %s2203_s0 = inlined_call_operand.vmem [shape: bf16[1568,32], index: 0, kind: input, shape index: {}]   ;;  %s2204_s1 = inlined_call_operand.vmem [shape: f32[1,32], index: 1, kind: input, shape index: {}]   ;;  %s2205_s2 = inlined_call_operand.vmem [shape: f32[1,32], index: 2, kind: input, shape index: {}]   ;;  %s2206_s3 = inlined_call_operand.vmem [shape: bf16[1568,32], index: 3, kind: output, shape index: {}]  }
   0x1 LB: > { %s1225_s13 = sadd.s32 4294967295, %s1692_s12   ;;  %p1229_p0 = scmp.ge.s32.totalorder %s1692_s12, 1  ;;  %s1692_s12 = sphi %s1714_s12, %s13_s12  }
   0x2   : > { %p138_p1 = scmp.lt.s32.totalorder %s1692_s12, 3 }
   0x4   : > { %p139_p2 = pnand %p1229_p0, %p138_p1 }
   0x5   : > { %s162_s14 = smul.u32 (!%p139_p2), 98, %s1225_s13  ;;  %v1735_v0 = vld [vmem:[%s2204_s1] ss:$0 sm:$0xff] (!%p139_p2)  ;;  %vm1070_vm0 = vcmask (!%p139_p2), 257024  }
   0x6   : > { %142 = sbr.rel (%p139_p2) target bundleno = 147 (0x93), region = 32  ;;  %v1744_v9 = vld [vmem:[%s2205_s2] ss:$0 sm:$0xff] (!%p139_p2) }
   0x7   : > { %p163_p3 = scmp.lt.s32.totalorder (!%p139_p2), %s162_s14, 195 }
   0xd   : > { %s2208_s14 = smov (!%p163_p3, %s162_s14), 195 }
   0xe   : > { %s1230_s15 = sshll.u32 %s2208_s14, 2 }
   0xf   : > { %s1730_s18 = scalar_lea.vmem %s2203_s0, %s1230_s15  ;;  %s1767_s25 = scalar_lea.vmem %s2206_s3, %s1230_s15 }
  0x10   : > { %v1433_v1 = vld [vmem:[%s1730_s18] sm:$0xff]   ;;  %v1628_v2 = vld [vmem:[%s1730_s18 + $0x8] sm:$0xff]   ;;  %v1629_v3 = vld [vmem:[%s1730_s18 + $0x10] sm:$0xff]  }
  0x11   : > { %v1434_v4 = vunpack.c.l.bf16 %v1433_v1  ;;  %v1435_v5 = vunpack.c.h.bf16 %v1433_v1  ;;  %v1438_v6 = vunpack.c.l.bf16 %v1628_v2  ;;  %v1439_v7 = vunpack.c.h.bf16 %v1628_v2  ;;  %v1630_v8 = vld [vmem:[%s1730_s18 + $0x18] sm:$0xff]   ;;  %v1631_v38 = vld [vmem:[%s1730_s18 + $0x20] sm:$0xff]   ;;  %v1632_v39 = vld [vmem:[%s1730_s18 + $0x28] sm:$0xff]  }
  0x12   : > { %v1442_v10 = vunpack.c.l.bf16 %v1629_v3  ;;  %v1443_v11 = vunpack.c.h.bf16 %v1629_v3  ;;  %v1446_v12 = vunpack.c.l.bf16 %v1630_v8  ;;  %v1447_v13 = vunpack.c.h.bf16 %v1630_v8  ;;  %v1633_v44 = vld [vmem:[%s1730_s18 + $0x30] sm:$0xff]   ;;  %v1634_v45 = vld [vmem:[%s1730_s18 + $0x38] sm:$0xff]  }
  0x13   : > { %v377_v14 = vmul.f32 %v1434_v4, %v1735_v0  ;;  %v378_v15 = vmul.f32 %v1435_v5, %v1735_v0  ;;  %v379_v16 = vmul.f32 %v1438_v6, %v1735_v0  ;;  %v380_v17 = vmul.f32 %v1439_v7, %v1735_v0 }
  0x14   : > { %v381_v18 = vmul.f32 %v1442_v10, %v1735_v0  ;;  %v382_v19 = vmul.f32 %v1443_v11, %v1735_v0  ;;  %v383_v20 = vmul.f32 %v1446_v12, %v1735_v0  ;;  %v384_v21 = vmul.f32 %v1447_v13, %v1735_v0 }
  0x15   : > { %v482_v22 = vadd.f32 %v1744_v9, %v377_v14  ;;  %v483_v23 = vadd.f32 %v1744_v9, %v378_v15  ;;  %v484_v24 = vadd.f32 %v1744_v9, %v379_v16  ;;  %v485_v25 = vadd.f32 %v1744_v9, %v380_v17 }
  0x16   : > { %v486_v26 = vadd.f32 %v1744_v9, %v381_v18  ;;  %v487_v27 = vadd.f32 %v1744_v9, %v382_v19  ;;  %v488_v28 = vadd.f32 %v1744_v9, %v383_v20  ;;  %v489_v29 = vadd.f32 %v1744_v9, %v384_v21  ;;  %v1635_v20 = vld [vmem:[%s1730_s18 + $0x40] sm:$0xff]   ;;  %v1636_v21 = vld [vmem:[%s1730_s18 + $0x48] sm:$0xff]  }
  0x17   : > { %v580_v30 = vmax.f32 %v482_v22, 0.0  ;;  %v581_v31 = vmax.f32 %v483_v23, 0.0  ;;  %v582_v32 = vmax.f32 %v484_v24, 0.0  ;;  %v583_v33 = vmax.f32 %v485_v25, 0.0 }
  0x18   : > { %v584_v34 = vmax.f32 %v486_v26, 0.0  ;;  %v585_v35 = vmax.f32 %v487_v27, 0.0  ;;  %v586_v36 = vmax.f32 %v488_v28, 0.0  ;;  %v587_v37 = vmax.f32 %v489_v29, 0.0  ;;  %v1637_v26 = vld [vmem:[%s1730_s18 + $0x50] sm:$0xff]   ;;  %v1638_v27 = vld [vmem:[%s1730_s18 + $0x58] sm:$0xff]  }
  0x19   : > { %v1334_v40 = vpack.c.bf16 %v580_v30, %v580_v30  ;;  %v1335_v41 = vpack.c.bf16 %v581_v31, %v581_v31  ;;  %v1336_v42 = vpack.c.bf16 %v582_v32, %v582_v32  ;;  %v1337_v43 = vpack.c.bf16 %v583_v33, %v583_v33 }
  0x1a   : > { %v1338_v46 = vpack.c.bf16 %v584_v34, %v584_v34  ;;  %v1339_v47 = vpack.c.bf16 %v585_v35, %v585_v35  ;;  %v1340_v48 = vpack.c.bf16 %v586_v36, %v586_v36  ;;  %v1341_v49 = vpack.c.bf16 %v587_v37, %v587_v37 }
  0x1b   : > { %1071 = vst.msk [vmem:[%s1767_s25] sm:$0xf] %vm1070_vm0, %v1334_v40  ;;  %1072 = vst.msk [vmem:[%s1767_s25 + $0x4] sm:$0xf] %vm1070_vm0, %v1335_v41  ;;  %v1450_v50 = vunpack.c.l.bf16 %v1631_v38  ;;  %v1451_v51 = vunpack.c.h.bf16 %v1631_v38  ;;  %v1454_v52 = vunpack.c.l.bf16 %v1632_v39  ;;  %v1455_v53 = vunpack.c.h.bf16 %v1632_v39 }
  0x1c   : > { %1073 = vst.msk [vmem:[%s1767_s25 + $0x8] sm:$0xf] %vm1070_vm0, %v1336_v42  ;;  %1074 = vst.msk [vmem:[%s1767_s25 + $0xc] sm:$0xf] %vm1070_vm0, %v1337_v43  ;;  %v1458_v54 = vunpack.c.l.bf16 %v1633_v44  ;;  %v1459_v55 = vunpack.c.h.bf16 %v1633_v44  ;;  %v1462_v56 = vunpack.c.l.bf16 %v1634_v45  ;;  %v1463_v57 = vunpack.c.h.bf16 %v1634_v45 }
  0x1d   : > { %1075 = vst.msk [vmem:[%s1767_s25 + $0x10] sm:$0xf] %vm1070_vm0, %v1338_v46  ;;  %1076 = vst.msk [vmem:[%s1767_s25 + $0x14] sm:$0xf] %vm1070_vm0, %v1339_v47  ;;  %v385_v58 = vmul.f32 %v1450_v50, %v1735_v0  ;;  %v386_v59 = vmul.f32 %v1451_v51, %v1735_v0  ;;  %v387_v60 = vmul.f32 %v1454_v52, %v1735_v0  ;;  %v1466_v32 = vunpack.c.l.bf16 %v1635_v20 }
  0x1e   : > { %1077 = vst.msk [vmem:[%s1767_s25 + $0x18] sm:$0xf] %vm1070_vm0, %v1340_v48  ;;  %1078 = vst.msk [vmem:[%s1767_s25 + $0x1c] sm:$0xf] %vm1070_vm0, %v1341_v49  ;;  %v388_v61 = vmul.f32 %v1455_v53, %v1735_v0  ;;  %v389_v62 = vmul.f32 %v1458_v54, %v1735_v0  ;;  %v390_v63 = vmul.f32 %v1459_v55, %v1735_v0  ;;  %v1467_v33 = vunpack.c.h.bf16 %v1635_v20 }
  0x1f   : > { %v391_v1 = vmul.f32 %v1462_v56, %v1735_v0  ;;  %v392_v2 = vmul.f32 %v1463_v57, %v1735_v0  ;;  %v490_v3 = vadd.f32 %v1744_v9, %v385_v58  ;;  %v491_v4 = vadd.f32 %v1744_v9, %v386_v59 }
  0x20   : > { %v492_v5 = vadd.f32 %v1744_v9, %v387_v60  ;;  %v493_v6 = vadd.f32 %v1744_v9, %v388_v61  ;;  %v494_v7 = vadd.f32 %v1744_v9, %v389_v62  ;;  %v495_v8 = vadd.f32 %v1744_v9, %v390_v63 }
  0x21   : > { %v496_v10 = vadd.f32 %v1744_v9, %v391_v1  ;;  %v497_v11 = vadd.f32 %v1744_v9, %v392_v2  ;;  %v588_v12 = vmax.f32 %v490_v3, 0.0  ;;  %v589_v13 = vmax.f32 %v491_v4, 0.0  ;;  %v1639_v1 = vld [vmem:[%s1730_s18 + $0x60] sm:$0xff]   ;;  %v1640_v2 = vld [vmem:[%s1730_s18 + $0x68] sm:$0xff]  }
  0x22   : > { %v590_v14 = vmax.f32 %v492_v5, 0.0  ;;  %v591_v15 = vmax.f32 %v493_v6, 0.0  ;;  %v592_v16 = vmax.f32 %v494_v7, 0.0  ;;  %v593_v17 = vmax.f32 %v495_v8, 0.0  ;;  %v1641_v7 = vld [vmem:[%s1730_s18 + $0x70] sm:$0xff]   ;;  %v1642_v8 = vld [vmem:[%s1730_s18 + $0x78] sm:$0xff]  }
  0x23   : > { %v594_v18 = vmax.f32 %v496_v10, 0.0  ;;  %v595_v19 = vmax.f32 %v497_v11, 0.0  ;;  %v1342_v22 = vpack.c.bf16 %v588_v12, %v588_v12  ;;  %v1343_v23 = vpack.c.bf16 %v589_v13, %v589_v13 }
  0x24   : > { %v1344_v24 = vpack.c.bf16 %v590_v14, %v590_v14  ;;  %v1345_v25 = vpack.c.bf16 %v591_v15, %v591_v15  ;;  %v1346_v28 = vpack.c.bf16 %v592_v16, %v592_v16  ;;  %v1347_v29 = vpack.c.bf16 %v593_v17, %v593_v17 }
  0x25   : > { %v1348_v30 = vpack.c.bf16 %v594_v18, %v594_v18  ;;  %v1349_v31 = vpack.c.bf16 %v595_v19, %v595_v19  ;;  %1079 = vst.msk [vmem:[%s1767_s25 + $0x20] sm:$0xf] %vm1070_vm0, %v1342_v22  ;;  %1080 = vst.msk [vmem:[%s1767_s25 + $0x24] sm:$0xf] %vm1070_vm0, %v1343_v23  ;;  %v1470_v34 = vunpack.c.l.bf16 %v1636_v21  ;;  %v1471_v35 = vunpack.c.h.bf16 %v1636_v21 }
  0x26   : > { %1081 = vst.msk [vmem:[%s1767_s25 + $0x28] sm:$0xf] %vm1070_vm0, %v1344_v24  ;;  %1082 = vst.msk [vmem:[%s1767_s25 + $0x2c] sm:$0xf] %vm1070_vm0, %v1345_v25  ;;  %v1474_v36 = vunpack.c.l.bf16 %v1637_v26  ;;  %v1475_v37 = vunpack.c.h.bf16 %v1637_v26  ;;  %v1478_v38 = vunpack.c.l.bf16 %v1638_v27  ;;  %v1479_v39 = vunpack.c.h.bf16 %v1638_v27 }
  0x27   : > { %1083 = vst.msk [vmem:[%s1767_s25 + $0x30] sm:$0xf] %vm1070_vm0, %v1346_v28  ;;  %1084 = vst.msk [vmem:[%s1767_s25 + $0x34] sm:$0xf] %vm1070_vm0, %v1347_v29  ;;  %v393_v40 = vmul.f32 %v1466_v32, %v1735_v0  ;;  %v394_v41 = vmul.f32 %v1467_v33, %v1735_v0  ;;  %v395_v42 = vmul.f32 %v1470_v34, %v1735_v0  ;;  %v1482_v14 = vunpack.c.l.bf16 %v1639_v1 }
  0x28   : > { %1085 = vst.msk [vmem:[%s1767_s25 + $0x38] sm:$0xf] %vm1070_vm0, %v1348_v30  ;;  %1086 = vst.msk [vmem:[%s1767_s25 + $0x3c] sm:$0xf] %vm1070_vm0, %v1349_v31  ;;  %v396_v43 = vmul.f32 %v1471_v35, %v1735_v0  ;;  %v397_v44 = vmul.f32 %v1474_v36, %v1735_v0  ;;  %v398_v45 = vmul.f32 %v1475_v37, %v1735_v0  ;;  %v1483_v15 = vunpack.c.h.bf16 %v1639_v1 }
  0x29   : > { %v399_v46 = vmul.f32 %v1478_v38, %v1735_v0  ;;  %v400_v47 = vmul.f32 %v1479_v39, %v1735_v0  ;;  %v498_v48 = vadd.f32 %v1744_v9, %v393_v40  ;;  %v499_v49 = vadd.f32 %v1744_v9, %v394_v41 }
  0x2a   : > { %v500_v50 = vadd.f32 %v1744_v9, %v395_v42  ;;  %v501_v51 = vadd.f32 %v1744_v9, %v396_v43  ;;  %v502_v52 = vadd.f32 %v1744_v9, %v397_v44  ;;  %v503_v53 = vadd.f32 %v1744_v9, %v398_v45 }
  0x2b   : > { %v504_v54 = vadd.f32 %v1744_v9, %v399_v46  ;;  %v505_v55 = vadd.f32 %v1744_v9, %v400_v47  ;;  %v596_v56 = vmax.f32 %v498_v48, 0.0  ;;  %v597_v57 = vmax.f32 %v499_v49, 0.0  ;;  %v1643_v46 = vld [vmem:[%s1730_s18 + $0x80] sm:$0xff]   ;;  %v1644_v47 = vld [vmem:[%s1730_s18 + $0x88] sm:$0xff]  }
  0x2c   : > { %v598_v58 = vmax.f32 %v500_v50, 0.0  ;;  %v599_v59 = vmax.f32 %v501_v51, 0.0  ;;  %v600_v60 = vmax.f32 %v502_v52, 0.0  ;;  %v601_v61 = vmax.f32 %v503_v53, 0.0  ;;  %v1645_v52 = vld [vmem:[%s1730_s18 + $0x90] sm:$0xff]   ;;  %v1646_v53 = vld [vmem:[%s1730_s18 + $0x98] sm:$0xff]  }
  0x2d   : > { %v602_v62 = vmax.f32 %v504_v54, 0.0  ;;  %v603_v63 = vmax.f32 %v505_v55, 0.0  ;;  %v1350_v3 = vpack.c.bf16 %v596_v56, %v596_v56  ;;  %v1351_v4 = vpack.c.bf16 %v597_v57, %v597_v57 }
  0x2e   : > { %v1352_v5 = vpack.c.bf16 %v598_v58, %v598_v58  ;;  %v1353_v6 = vpack.c.bf16 %v599_v59, %v599_v59  ;;  %v1354_v10 = vpack.c.bf16 %v600_v60, %v600_v60  ;;  %v1355_v11 = vpack.c.bf16 %v601_v61, %v601_v61 }
  0x2f   : > { %v1356_v12 = vpack.c.bf16 %v602_v62, %v602_v62  ;;  %v1357_v13 = vpack.c.bf16 %v603_v63, %v603_v63  ;;  %1087 = vst.msk [vmem:[%s1767_s25 + $0x40] sm:$0xf] %vm1070_vm0, %v1350_v3  ;;  %1088 = vst.msk [vmem:[%s1767_s25 + $0x44] sm:$0xf] %vm1070_vm0, %v1351_v4  ;;  %v1486_v16 = vunpack.c.l.bf16 %v1640_v2  ;;  %v1487_v17 = vunpack.c.h.bf16 %v1640_v2 }
  0x30   : > { %1089 = vst.msk [vmem:[%s1767_s25 + $0x48] sm:$0xf] %vm1070_vm0, %v1352_v5  ;;  %1090 = vst.msk [vmem:[%s1767_s25 + $0x4c] sm:$0xf] %vm1070_vm0, %v1353_v6  ;;  %v1490_v18 = vunpack.c.l.bf16 %v1641_v7  ;;  %v1491_v19 = vunpack.c.h.bf16 %v1641_v7  ;;  %v1494_v20 = vunpack.c.l.bf16 %v1642_v8  ;;  %v1495_v21 = vunpack.c.h.bf16 %v1642_v8 }
  0x31   : > { %1091 = vst.msk [vmem:[%s1767_s25 + $0x50] sm:$0xf] %vm1070_vm0, %v1354_v10  ;;  %1092 = vst.msk [vmem:[%s1767_s25 + $0x54] sm:$0xf] %vm1070_vm0, %v1355_v11  ;;  %v401_v22 = vmul.f32 %v1482_v14, %v1735_v0  ;;  %v402_v23 = vmul.f32 %v1483_v15, %v1735_v0  ;;  %v403_v24 = vmul.f32 %v1486_v16, %v1735_v0  ;;  %v1498_v58 = vunpack.c.l.bf16 %v1643_v46 }
  0x32   : > { %1093 = vst.msk [vmem:[%s1767_s25 + $0x58] sm:$0xf] %vm1070_vm0, %v1356_v12  ;;  %1094 = vst.msk [vmem:[%s1767_s25 + $0x5c] sm:$0xf] %vm1070_vm0, %v1357_v13  ;;  %v404_v25 = vmul.f32 %v1487_v17, %v1735_v0  ;;  %v405_v26 = vmul.f32 %v1490_v18, %v1735_v0  ;;  %v406_v27 = vmul.f32 %v1491_v19, %v1735_v0  ;;  %v1499_v59 = vunpack.c.h.bf16 %v1643_v46 }
  0x33   : > { %v407_v28 = vmul.f32 %v1494_v20, %v1735_v0  ;;  %v408_v29 = vmul.f32 %v1495_v21, %v1735_v0  ;;  %v506_v30 = vadd.f32 %v1744_v9, %v401_v22  ;;  %v507_v31 = vadd.f32 %v1744_v9, %v402_v23 }
  0x34   : > { %v508_v32 = vadd.f32 %v1744_v9, %v403_v24  ;;  %v509_v33 = vadd.f32 %v1744_v9, %v404_v25  ;;  %v510_v34 = vadd.f32 %v1744_v9, %v405_v26  ;;  %v511_v35 = vadd.f32 %v1744_v9, %v406_v27 }
  0x35   : > { %v512_v36 = vadd.f32 %v1744_v9, %v407_v28  ;;  %v513_v37 = vadd.f32 %v1744_v9, %v408_v29  ;;  %v604_v38 = vmax.f32 %v506_v30, 0.0  ;;  %v605_v39 = vmax.f32 %v507_v31, 0.0  ;;  %v1647_v28 = vld [vmem:[%s1730_s18 + $0xa0] sm:$0xff]   ;;  %v1648_v29 = vld [vmem:[%s1730_s18 + $0xa8] sm:$0xff]  }
  0x36   : > { %v606_v40 = vmax.f32 %v508_v32, 0.0  ;;  %v607_v41 = vmax.f32 %v509_v33, 0.0  ;;  %v608_v42 = vmax.f32 %v510_v34, 0.0  ;;  %v609_v43 = vmax.f32 %v511_v35, 0.0  ;;  %v1649_v34 = vld [vmem:[%s1730_s18 + $0xb0] sm:$0xff]   ;;  %v1650_v35 = vld [vmem:[%s1730_s18 + $0xb8] sm:$0xff]  }
  0x37   : > { %v610_v44 = vmax.f32 %v512_v36, 0.0  ;;  %v611_v45 = vmax.f32 %v513_v37, 0.0  ;;  %v1358_v48 = vpack.c.bf16 %v604_v38, %v604_v38  ;;  %v1359_v49 = vpack.c.bf16 %v605_v39, %v605_v39 }
  0x38   : > { %v1360_v50 = vpack.c.bf16 %v606_v40, %v606_v40  ;;  %v1361_v51 = vpack.c.bf16 %v607_v41, %v607_v41  ;;  %v1362_v54 = vpack.c.bf16 %v608_v42, %v608_v42  ;;  %v1363_v55 = vpack.c.bf16 %v609_v43, %v609_v43 }
  0x39   : > { %v1364_v56 = vpack.c.bf16 %v610_v44, %v610_v44  ;;  %v1365_v57 = vpack.c.bf16 %v611_v45, %v611_v45  ;;  %1095 = vst.msk [vmem:[%s1767_s25 + $0x60] sm:$0xf] %vm1070_vm0, %v1358_v48  ;;  %1096 = vst.msk [vmem:[%s1767_s25 + $0x64] sm:$0xf] %vm1070_vm0, %v1359_v49  ;;  %v1502_v60 = vunpack.c.l.bf16 %v1644_v47  ;;  %v1503_v61 = vunpack.c.h.bf16 %v1644_v47 }
  0x3a   : > { %1097 = vst.msk [vmem:[%s1767_s25 + $0x68] sm:$0xf] %vm1070_vm0, %v1360_v50  ;;  %1098 = vst.msk [vmem:[%s1767_s25 + $0x6c] sm:$0xf] %vm1070_vm0, %v1361_v51  ;;  %v1506_v62 = vunpack.c.l.bf16 %v1645_v52  ;;  %v1507_v63 = vunpack.c.h.bf16 %v1645_v52  ;;  %v1510_v1 = vunpack.c.l.bf16 %v1646_v53  ;;  %v1511_v2 = vunpack.c.h.bf16 %v1646_v53 }
  0x3b   : > { %1099 = vst.msk [vmem:[%s1767_s25 + $0x70] sm:$0xf] %vm1070_vm0, %v1362_v54  ;;  %1100 = vst.msk [vmem:[%s1767_s25 + $0x74] sm:$0xf] %vm1070_vm0, %v1363_v55  ;;  %v409_v3 = vmul.f32 %v1498_v58, %v1735_v0  ;;  %v410_v4 = vmul.f32 %v1499_v59, %v1735_v0  ;;  %v411_v5 = vmul.f32 %v1502_v60, %v1735_v0  ;;  %v1514_v40 = vunpack.c.l.bf16 %v1647_v28 }
  0x3c   : > { %1101 = vst.msk [vmem:[%s1767_s25 + $0x78] sm:$0xf] %vm1070_vm0, %v1364_v56  ;;  %1102 = vst.msk [vmem:[%s1767_s25 + $0x7c] sm:$0xf] %vm1070_vm0, %v1365_v57  ;;  %v412_v6 = vmul.f32 %v1503_v61, %v1735_v0  ;;  %v413_v7 = vmul.f32 %v1506_v62, %v1735_v0  ;;  %v414_v8 = vmul.f32 %v1507_v63, %v1735_v0  ;;  %v1515_v41 = vunpack.c.h.bf16 %v1647_v28 }
  0x3d   : > { %v415_v10 = vmul.f32 %v1510_v1, %v1735_v0  ;;  %v416_v11 = vmul.f32 %v1511_v2, %v1735_v0  ;;  %v514_v12 = vadd.f32 %v1744_v9, %v409_v3  ;;  %v515_v13 = vadd.f32 %v1744_v9, %v410_v4 }
  0x3e   : > { %v516_v14 = vadd.f32 %v1744_v9, %v411_v5  ;;  %v517_v15 = vadd.f32 %v1744_v9, %v412_v6  ;;  %v518_v16 = vadd.f32 %v1744_v9, %v413_v7  ;;  %v519_v17 = vadd.f32 %v1744_v9, %v414_v8 }
  0x3f   : > { %v520_v18 = vadd.f32 %v1744_v9, %v415_v10  ;;  %v521_v19 = vadd.f32 %v1744_v9, %v416_v11  ;;  %v612_v20 = vmax.f32 %v514_v12, 0.0  ;;  %v613_v21 = vmax.f32 %v515_v13, 0.0  ;;  %v1651_v10 = vld [vmem:[%s1730_s18 + $0xc0] sm:$0xff]   ;;  %v1652_v11 = vld [vmem:[%s1730_s18 + $0xc8] sm:$0xff]  }
  0x40   : > { %v614_v22 = vmax.f32 %v516_v14, 0.0  ;;  %v615_v23 = vmax.f32 %v517_v15, 0.0  ;;  %v616_v24 = vmax.f32 %v518_v16, 0.0  ;;  %v617_v25 = vmax.f32 %v519_v17, 0.0  ;;  %v1653_v16 = vld [vmem:[%s1730_s18 + $0xd0] sm:$0xff]   ;;  %v1654_v17 = vld [vmem:[%s1730_s18 + $0xd8] sm:$0xff]  }
  0x41   : > { %v618_v26 = vmax.f32 %v520_v18, 0.0  ;;  %v619_v27 = vmax.f32 %v521_v19, 0.0  ;;  %v1366_v30 = vpack.c.bf16 %v612_v20, %v612_v20  ;;  %v1367_v31 = vpack.c.bf16 %v613_v21, %v613_v21 }
  0x42   : > { %v1368_v32 = vpack.c.bf16 %v614_v22, %v614_v22  ;;  %v1369_v33 = vpack.c.bf16 %v615_v23, %v615_v23  ;;  %v1370_v36 = vpack.c.bf16 %v616_v24, %v616_v24  ;;  %v1371_v37 = vpack.c.bf16 %v617_v25, %v617_v25 }
  0x43   : > { %v1372_v38 = vpack.c.bf16 %v618_v26, %v618_v26  ;;  %v1373_v39 = vpack.c.bf16 %v619_v27, %v619_v27  ;;  %1103 = vst.msk [vmem:[%s1767_s25 + $0x80] sm:$0xf] %vm1070_vm0, %v1366_v30  ;;  %1104 = vst.msk [vmem:[%s1767_s25 + $0x84] sm:$0xf] %vm1070_vm0, %v1367_v31  ;;  %v1518_v42 = vunpack.c.l.bf16 %v1648_v29  ;;  %v1519_v43 = vunpack.c.h.bf16 %v1648_v29 }
  0x44   : > { %1105 = vst.msk [vmem:[%s1767_s25 + $0x88] sm:$0xf] %vm1070_vm0, %v1368_v32  ;;  %1106 = vst.msk [vmem:[%s1767_s25 + $0x8c] sm:$0xf] %vm1070_vm0, %v1369_v33  ;;  %v1522_v44 = vunpack.c.l.bf16 %v1649_v34  ;;  %v1523_v45 = vunpack.c.h.bf16 %v1649_v34  ;;  %v1526_v46 = vunpack.c.l.bf16 %v1650_v35  ;;  %v1527_v47 = vunpack.c.h.bf16 %v1650_v35 }
  0x45   : > { %1107 = vst.msk [vmem:[%s1767_s25 + $0x90] sm:$0xf] %vm1070_vm0, %v1370_v36  ;;  %1108 = vst.msk [vmem:[%s1767_s25 + $0x94] sm:$0xf] %vm1070_vm0, %v1371_v37  ;;  %v417_v48 = vmul.f32 %v1514_v40, %v1735_v0  ;;  %v418_v49 = vmul.f32 %v1515_v41, %v1735_v0  ;;  %v419_v50 = vmul.f32 %v1518_v42, %v1735_v0  ;;  %v1530_v22 = vunpack.c.l.bf16 %v1651_v10 }
  0x46   : > { %1109 = vst.msk [vmem:[%s1767_s25 + $0x98] sm:$0xf] %vm1070_vm0, %v1372_v38  ;;  %1110 = vst.msk [vmem:[%s1767_s25 + $0x9c] sm:$0xf] %vm1070_vm0, %v1373_v39  ;;  %v420_v51 = vmul.f32 %v1519_v43, %v1735_v0  ;;  %v421_v52 = vmul.f32 %v1522_v44, %v1735_v0  ;;  %v422_v53 = vmul.f32 %v1523_v45, %v1735_v0  ;;  %v1531_v23 = vunpack.c.h.bf16 %v1651_v10 }
  0x47   : > { %v423_v54 = vmul.f32 %v1526_v46, %v1735_v0  ;;  %v424_v55 = vmul.f32 %v1527_v47, %v1735_v0  ;;  %v522_v56 = vadd.f32 %v1744_v9, %v417_v48  ;;  %v523_v57 = vadd.f32 %v1744_v9, %v418_v49 }
  0x48   : > { %v524_v58 = vadd.f32 %v1744_v9, %v419_v50  ;;  %v525_v59 = vadd.f32 %v1744_v9, %v420_v51  ;;  %v526_v60 = vadd.f32 %v1744_v9, %v421_v52  ;;  %v527_v61 = vadd.f32 %v1744_v9, %v422_v53 }
  0x49   : > { %v528_v62 = vadd.f32 %v1744_v9, %v423_v54  ;;  %v529_v63 = vadd.f32 %v1744_v9, %v424_v55  ;;  %v620_v1 = vmax.f32 %v522_v56, 0.0  ;;  %v621_v2 = vmax.f32 %v523_v57, 0.0  ;;  %v1655_v54 = vld [vmem:[%s1730_s18 + $0xe0] sm:$0xff]   ;;  %v1656_v55 = vld [vmem:[%s1730_s18 + $0xe8] sm:$0xff]  }
  0x4a   : > { %v622_v3 = vmax.f32 %v524_v58, 0.0  ;;  %v623_v4 = vmax.f32 %v525_v59, 0.0  ;;  %v624_v5 = vmax.f32 %v526_v60, 0.0  ;;  %v625_v6 = vmax.f32 %v527_v61, 0.0  ;;  %v1657_v60 = vld [vmem:[%s1730_s18 + $0xf0] sm:$0xff]   ;;  %v1658_v61 = vld [vmem:[%s1730_s18 + $0xf8] sm:$0xff]  }
  0x4b   : > { %v626_v7 = vmax.f32 %v528_v62, 0.0  ;;  %v627_v8 = vmax.f32 %v529_v63, 0.0  ;;  %v1374_v12 = vpack.c.bf16 %v620_v1, %v620_v1  ;;  %v1375_v13 = vpack.c.bf16 %v621_v2, %v621_v2 }
  0x4c   : > { %v1376_v14 = vpack.c.bf16 %v622_v3, %v622_v3  ;;  %v1377_v15 = vpack.c.bf16 %v623_v4, %v623_v4  ;;  %v1378_v18 = vpack.c.bf16 %v624_v5, %v624_v5  ;;  %v1379_v19 = vpack.c.bf16 %v625_v6, %v625_v6 }
  0x4d   : > { %v1380_v20 = vpack.c.bf16 %v626_v7, %v626_v7  ;;  %v1381_v21 = vpack.c.bf16 %v627_v8, %v627_v8  ;;  %1111 = vst.msk [vmem:[%s1767_s25 + $0xa0] sm:$0xf] %vm1070_vm0, %v1374_v12  ;;  %1112 = vst.msk [vmem:[%s1767_s25 + $0xa4] sm:$0xf] %vm1070_vm0, %v1375_v13  ;;  %v1534_v24 = vunpack.c.l.bf16 %v1652_v11  ;;  %v1535_v25 = vunpack.c.h.bf16 %v1652_v11 }
  0x4e   : > { %1113 = vst.msk [vmem:[%s1767_s25 + $0xa8] sm:$0xf] %vm1070_vm0, %v1376_v14  ;;  %1114 = vst.msk [vmem:[%s1767_s25 + $0xac] sm:$0xf] %vm1070_vm0, %v1377_v15  ;;  %v1538_v26 = vunpack.c.l.bf16 %v1653_v16  ;;  %v1539_v27 = vunpack.c.h.bf16 %v1653_v16  ;;  %v1542_v28 = vunpack.c.l.bf16 %v1654_v17  ;;  %v1543_v29 = vunpack.c.h.bf16 %v1654_v17 }
  0x4f   : > { %1115 = vst.msk [vmem:[%s1767_s25 + $0xb0] sm:$0xf] %vm1070_vm0, %v1378_v18  ;;  %1116 = vst.msk [vmem:[%s1767_s25 + $0xb4] sm:$0xf] %vm1070_vm0, %v1379_v19  ;;  %v425_v30 = vmul.f32 %v1530_v22, %v1735_v0  ;;  %v426_v31 = vmul.f32 %v1531_v23, %v1735_v0  ;;  %v427_v32 = vmul.f32 %v1534_v24, %v1735_v0  ;;  %v1546_v3 = vunpack.c.l.bf16 %v1655_v54 }
  0x50   : > { %1117 = vst.msk [vmem:[%s1767_s25 + $0xb8] sm:$0xf] %vm1070_vm0, %v1380_v20  ;;  %1118 = vst.msk [vmem:[%s1767_s25 + $0xbc] sm:$0xf] %vm1070_vm0, %v1381_v21  ;;  %v428_v33 = vmul.f32 %v1535_v25, %v1735_v0  ;;  %v429_v34 = vmul.f32 %v1538_v26, %v1735_v0  ;;  %v430_v35 = vmul.f32 %v1539_v27, %v1735_v0  ;;  %v1547_v4 = vunpack.c.h.bf16 %v1655_v54 }
  0x51   : > { %v431_v36 = vmul.f32 %v1542_v28, %v1735_v0  ;;  %v432_v37 = vmul.f32 %v1543_v29, %v1735_v0  ;;  %v530_v38 = vadd.f32 %v1744_v9, %v425_v30  ;;  %v531_v39 = vadd.f32 %v1744_v9, %v426_v31 }
  0x52   : > { %v532_v40 = vadd.f32 %v1744_v9, %v427_v32  ;;  %v533_v41 = vadd.f32 %v1744_v9, %v428_v33  ;;  %v534_v42 = vadd.f32 %v1744_v9, %v429_v34  ;;  %v535_v43 = vadd.f32 %v1744_v9, %v430_v35 }
  0x53   : > { %v536_v44 = vadd.f32 %v1744_v9, %v431_v36  ;;  %v537_v45 = vadd.f32 %v1744_v9, %v432_v37  ;;  %v628_v46 = vmax.f32 %v530_v38, 0.0  ;;  %v629_v47 = vmax.f32 %v531_v39, 0.0  ;;  %v1659_v36 = vld [vmem:[%s1730_s18 + $0x100] sm:$0xff]   ;;  %v1660_v37 = vld [vmem:[%s1730_s18 + $0x108] sm:$0xff]  }
  0x54   : > { %v630_v48 = vmax.f32 %v532_v40, 0.0  ;;  %v631_v49 = vmax.f32 %v533_v41, 0.0  ;;  %v632_v50 = vmax.f32 %v534_v42, 0.0  ;;  %v633_v51 = vmax.f32 %v535_v43, 0.0  ;;  %v1661_v42 = vld [vmem:[%s1730_s18 + $0x110] sm:$0xff]   ;;  %v1662_v43 = vld [vmem:[%s1730_s18 + $0x118] sm:$0xff]  }
  0x55   : > { %v634_v52 = vmax.f32 %v536_v44, 0.0  ;;  %v635_v53 = vmax.f32 %v537_v45, 0.0  ;;  %v1382_v56 = vpack.c.bf16 %v628_v46, %v628_v46  ;;  %v1383_v57 = vpack.c.bf16 %v629_v47, %v629_v47 }
  0x56   : > { %v1384_v58 = vpack.c.bf16 %v630_v48, %v630_v48  ;;  %v1385_v59 = vpack.c.bf16 %v631_v49, %v631_v49  ;;  %v1386_v62 = vpack.c.bf16 %v632_v50, %v632_v50  ;;  %v1387_v63 = vpack.c.bf16 %v633_v51, %v633_v51 }
  0x57   : > { %v1388_v1 = vpack.c.bf16 %v634_v52, %v634_v52  ;;  %v1389_v2 = vpack.c.bf16 %v635_v53, %v635_v53  ;;  %1119 = vst.msk [vmem:[%s1767_s25 + $0xc0] sm:$0xf] %vm1070_vm0, %v1382_v56  ;;  %1120 = vst.msk [vmem:[%s1767_s25 + $0xc4] sm:$0xf] %vm1070_vm0, %v1383_v57  ;;  %v1550_v5 = vunpack.c.l.bf16 %v1656_v55  ;;  %v1551_v6 = vunpack.c.h.bf16 %v1656_v55 }
  0x58   : > { %1121 = vst.msk [vmem:[%s1767_s25 + $0xc8] sm:$0xf] %vm1070_vm0, %v1384_v58  ;;  %1122 = vst.msk [vmem:[%s1767_s25 + $0xcc] sm:$0xf] %vm1070_vm0, %v1385_v59  ;;  %v1554_v7 = vunpack.c.l.bf16 %v1657_v60  ;;  %v1555_v8 = vunpack.c.h.bf16 %v1657_v60  ;;  %v1558_v10 = vunpack.c.l.bf16 %v1658_v61  ;;  %v1559_v11 = vunpack.c.h.bf16 %v1658_v61 }
  0x59   : > { %1123 = vst.msk [vmem:[%s1767_s25 + $0xd0] sm:$0xf] %vm1070_vm0, %v1386_v62  ;;  %1124 = vst.msk [vmem:[%s1767_s25 + $0xd4] sm:$0xf] %vm1070_vm0, %v1387_v63  ;;  %v433_v12 = vmul.f32 %v1546_v3, %v1735_v0  ;;  %v434_v13 = vmul.f32 %v1547_v4, %v1735_v0  ;;  %v435_v14 = vmul.f32 %v1550_v5, %v1735_v0  ;;  %v1562_v48 = vunpack.c.l.bf16 %v1659_v36 }
  0x5a   : > { %1125 = vst.msk [vmem:[%s1767_s25 + $0xd8] sm:$0xf] %vm1070_vm0, %v1388_v1  ;;  %1126 = vst.msk [vmem:[%s1767_s25 + $0xdc] sm:$0xf] %vm1070_vm0, %v1389_v2  ;;  %v436_v15 = vmul.f32 %v1551_v6, %v1735_v0  ;;  %v437_v16 = vmul.f32 %v1554_v7, %v1735_v0  ;;  %v438_v17 = vmul.f32 %v1555_v8, %v1735_v0  ;;  %v1563_v49 = vunpack.c.h.bf16 %v1659_v36 }
  0x5b   : > { %v439_v18 = vmul.f32 %v1558_v10, %v1735_v0  ;;  %v440_v19 = vmul.f32 %v1559_v11, %v1735_v0  ;;  %v538_v20 = vadd.f32 %v1744_v9, %v433_v12  ;;  %v539_v21 = vadd.f32 %v1744_v9, %v434_v13 }
  0x5c   : > { %v540_v22 = vadd.f32 %v1744_v9, %v435_v14  ;;  %v541_v23 = vadd.f32 %v1744_v9, %v436_v15  ;;  %v542_v24 = vadd.f32 %v1744_v9, %v437_v16  ;;  %v543_v25 = vadd.f32 %v1744_v9, %v438_v17 }
  0x5d   : > { %v544_v26 = vadd.f32 %v1744_v9, %v439_v18  ;;  %v545_v27 = vadd.f32 %v1744_v9, %v440_v19  ;;  %v636_v28 = vmax.f32 %v538_v20, 0.0  ;;  %v637_v29 = vmax.f32 %v539_v21, 0.0  ;;  %v1663_v18 = vld [vmem:[%s1730_s18 + $0x120] sm:$0xff]   ;;  %v1664_v19 = vld [vmem:[%s1730_s18 + $0x128] sm:$0xff]  }
  0x5e   : > { %v638_v30 = vmax.f32 %v540_v22, 0.0  ;;  %v639_v31 = vmax.f32 %v541_v23, 0.0  ;;  %v640_v32 = vmax.f32 %v542_v24, 0.0  ;;  %v641_v33 = vmax.f32 %v543_v25, 0.0  ;;  %v1665_v24 = vld [vmem:[%s1730_s18 + $0x130] sm:$0xff]   ;;  %v1666_v25 = vld [vmem:[%s1730_s18 + $0x138] sm:$0xff]  }
  0x5f   : > { %v642_v34 = vmax.f32 %v544_v26, 0.0  ;;  %v643_v35 = vmax.f32 %v545_v27, 0.0  ;;  %v1390_v38 = vpack.c.bf16 %v636_v28, %v636_v28  ;;  %v1391_v39 = vpack.c.bf16 %v637_v29, %v637_v29 }
  0x60   : > { %v1392_v40 = vpack.c.bf16 %v638_v30, %v638_v30  ;;  %v1393_v41 = vpack.c.bf16 %v639_v31, %v639_v31  ;;  %v1394_v44 = vpack.c.bf16 %v640_v32, %v640_v32  ;;  %v1395_v45 = vpack.c.bf16 %v641_v33, %v641_v33 }
  0x61   : > { %v1396_v46 = vpack.c.bf16 %v642_v34, %v642_v34  ;;  %v1397_v47 = vpack.c.bf16 %v643_v35, %v643_v35  ;;  %1127 = vst.msk [vmem:[%s1767_s25 + $0xe0] sm:$0xf] %vm1070_vm0, %v1390_v38  ;;  %1128 = vst.msk [vmem:[%s1767_s25 + $0xe4] sm:$0xf] %vm1070_vm0, %v1391_v39  ;;  %v1566_v50 = vunpack.c.l.bf16 %v1660_v37  ;;  %v1567_v51 = vunpack.c.h.bf16 %v1660_v37 }
  0x62   : > { %1129 = vst.msk [vmem:[%s1767_s25 + $0xe8] sm:$0xf] %vm1070_vm0, %v1392_v40  ;;  %1130 = vst.msk [vmem:[%s1767_s25 + $0xec] sm:$0xf] %vm1070_vm0, %v1393_v41  ;;  %v1570_v52 = vunpack.c.l.bf16 %v1661_v42  ;;  %v1571_v53 = vunpack.c.h.bf16 %v1661_v42  ;;  %v1574_v54 = vunpack.c.l.bf16 %v1662_v43  ;;  %v1575_v55 = vunpack.c.h.bf16 %v1662_v43 }
  0x63   : > { %1131 = vst.msk [vmem:[%s1767_s25 + $0xf0] sm:$0xf] %vm1070_vm0, %v1394_v44  ;;  %1132 = vst.msk [vmem:[%s1767_s25 + $0xf4] sm:$0xf] %vm1070_vm0, %v1395_v45  ;;  %v441_v56 = vmul.f32 %v1562_v48, %v1735_v0  ;;  %v442_v57 = vmul.f32 %v1563_v49, %v1735_v0  ;;  %v443_v58 = vmul.f32 %v1566_v50, %v1735_v0  ;;  %v1578_v30 = vunpack.c.l.bf16 %v1663_v18 }
  0x64   : > { %1133 = vst.msk [vmem:[%s1767_s25 + $0xf8] sm:$0xf] %vm1070_vm0, %v1396_v46  ;;  %1134 = vst.msk [vmem:[%s1767_s25 + $0xfc] sm:$0xf] %vm1070_vm0, %v1397_v47  ;;  %v444_v59 = vmul.f32 %v1567_v51, %v1735_v0  ;;  %v445_v60 = vmul.f32 %v1570_v52, %v1735_v0  ;;  %v446_v61 = vmul.f32 %v1571_v53, %v1735_v0  ;;  %v1579_v31 = vunpack.c.h.bf16 %v1663_v18  ;;  %v2116_v18 = vld [vmem:[%s2204_s1] ss:$0 sm:$0xff] }
  0x65   : > { %v447_v62 = vmul.f32 %v1574_v54, %v1735_v0  ;;  %v448_v63 = vmul.f32 %v1575_v55, %v1735_v0  ;;  %v546_v1 = vadd.f32 %v1744_v9, %v441_v56  ;;  %v547_v2 = vadd.f32 %v1744_v9, %v442_v57 }
  0x66   : > { %v548_v3 = vadd.f32 %v1744_v9, %v443_v58  ;;  %v549_v4 = vadd.f32 %v1744_v9, %v444_v59  ;;  %v550_v5 = vadd.f32 %v1744_v9, %v445_v60  ;;  %v551_v6 = vadd.f32 %v1744_v9, %v446_v61  ;;  %v1667_v61 = vld [vmem:[%s1730_s18 + $0x140] sm:$0xff]  }
  0x67   : > { %v552_v7 = vadd.f32 %v1744_v9, %v447_v62  ;;  %v553_v8 = vadd.f32 %v1744_v9, %v448_v63  ;;  %v644_v10 = vmax.f32 %v546_v1, 0.0  ;;  %v645_v11 = vmax.f32 %v547_v2, 0.0  ;;  %v1668_v62 = vld [vmem:[%s1730_s18 + $0x148] sm:$0xff]  }
  0x68   : > { %v646_v12 = vmax.f32 %v548_v3, 0.0  ;;  %v647_v13 = vmax.f32 %v549_v4, 0.0  ;;  %v648_v14 = vmax.f32 %v550_v5, 0.0  ;;  %v649_v15 = vmax.f32 %v551_v6, 0.0  ;;  %v1669_v3 = vld [vmem:[%s1730_s18 + $0x150] sm:$0xff]   ;;  %v1670_v4 = vld [vmem:[%s1730_s18 + $0x158] sm:$0xff]  }
  0x69   : > { %v650_v16 = vmax.f32 %v552_v7, 0.0  ;;  %v651_v17 = vmax.f32 %v553_v8, 0.0  ;;  %v1398_v20 = vpack.c.bf16 %v644_v10, %v644_v10  ;;  %v1399_v21 = vpack.c.bf16 %v645_v11, %v645_v11 }
  0x6a   : > { %v1400_v22 = vpack.c.bf16 %v646_v12, %v646_v12  ;;  %v1401_v23 = vpack.c.bf16 %v647_v13, %v647_v13  ;;  %v1402_v26 = vpack.c.bf16 %v648_v14, %v648_v14  ;;  %v1403_v27 = vpack.c.bf16 %v649_v15, %v649_v15 }
  0x6b   : > { %v1404_v28 = vpack.c.bf16 %v650_v16, %v650_v16  ;;  %v1405_v29 = vpack.c.bf16 %v651_v17, %v651_v17  ;;  %1135 = vst.msk [vmem:[%s1767_s25 + $0x100] sm:$0xf] %vm1070_vm0, %v1398_v20  ;;  %1136 = vst.msk [vmem:[%s1767_s25 + $0x104] sm:$0xf] %vm1070_vm0, %v1399_v21  ;;  %v1582_v32 = vunpack.c.l.bf16 %v1664_v19  ;;  %v1583_v33 = vunpack.c.h.bf16 %v1664_v19 }
  0x6c   : > { %1137 = vst.msk [vmem:[%s1767_s25 + $0x108] sm:$0xf] %vm1070_vm0, %v1400_v22  ;;  %1138 = vst.msk [vmem:[%s1767_s25 + $0x10c] sm:$0xf] %vm1070_vm0, %v1401_v23  ;;  %v1586_v34 = vunpack.c.l.bf16 %v1665_v24  ;;  %v1587_v35 = vunpack.c.h.bf16 %v1665_v24  ;;  %v1590_v36 = vunpack.c.l.bf16 %v1666_v25  ;;  %v1591_v37 = vunpack.c.h.bf16 %v1666_v25 }
  0x6d   : > { %1139 = vst.msk [vmem:[%s1767_s25 + $0x110] sm:$0xf] %vm1070_vm0, %v1402_v26  ;;  %1140 = vst.msk [vmem:[%s1767_s25 + $0x114] sm:$0xf] %vm1070_vm0, %v1403_v27  ;;  %v449_v38 = vmul.f32 %v1578_v30, %v1735_v0  ;;  %v450_v39 = vmul.f32 %v1579_v31, %v1735_v0  ;;  %v451_v40 = vmul.f32 %v1582_v32, %v1735_v0  ;;  %v1594_v10 = vunpack.c.l.bf16 %v1667_v61  ;;  %v2129_v27 = vld [vmem:[%s2205_s2] ss:$0 sm:$0xff] }
  0x6e   : > { %1141 = vst.msk [vmem:[%s1767_s25 + $0x118] sm:$0xf] %vm1070_vm0, %v1404_v28  ;;  %1142 = vst.msk [vmem:[%s1767_s25 + $0x11c] sm:$0xf] %vm1070_vm0, %v1405_v29  ;;  %v452_v41 = vmul.f32 %v1583_v33, %v1735_v0  ;;  %v453_v42 = vmul.f32 %v1586_v34, %v1735_v0  ;;  %v454_v43 = vmul.f32 %v1587_v35, %v1735_v0  ;;  %v1595_v11 = vunpack.c.h.bf16 %v1667_v61 }
  0x6f   : > { %v455_v44 = vmul.f32 %v1590_v36, %v1735_v0  ;;  %v456_v45 = vmul.f32 %v1591_v37, %v1735_v0  ;;  %v554_v46 = vadd.f32 %v1744_v9, %v449_v38  ;;  %v555_v47 = vadd.f32 %v1744_v9, %v450_v39 }
  0x70   : > { %v556_v48 = vadd.f32 %v1744_v9, %v451_v40  ;;  %v557_v49 = vadd.f32 %v1744_v9, %v452_v41  ;;  %v558_v50 = vadd.f32 %v1744_v9, %v453_v42  ;;  %v559_v51 = vadd.f32 %v1744_v9, %v454_v43 }
  0x71   : > { %v560_v52 = vadd.f32 %v1744_v9, %v455_v44  ;;  %v561_v53 = vadd.f32 %v1744_v9, %v456_v45  ;;  %v652_v0 = vmax.f32 %v554_v46, 0.0  ;;  %v653_v54 = vmax.f32 %v555_v47, 0.0  ;;  %v1671_v44 = vld [vmem:[%s1730_s18 + $0x160] sm:$0xff]   ;;  %v1672_v45 = vld [vmem:[%s1730_s18 + $0x168] sm:$0xff]  }
  0x72   : > { %v654_v55 = vmax.f32 %v556_v48, 0.0  ;;  %v655_v56 = vmax.f32 %v557_v49, 0.0  ;;  %v656_v57 = vmax.f32 %v558_v50, 0.0  ;;  %v657_v58 = vmax.f32 %v559_v51, 0.0  ;;  %v1673_v50 = vld [vmem:[%s1730_s18 + $0x170] sm:$0xff]   ;;  %v1674_v51 = vld [vmem:[%s1730_s18 + $0x178] sm:$0xff]  }
  0x73   : > { %v658_v59 = vmax.f32 %v560_v52, 0.0  ;;  %v659_v60 = vmax.f32 %v561_v53, 0.0  ;;  %v1406_v63 = vpack.c.bf16 %v652_v0, %v652_v0  ;;  %v1407_v1 = vpack.c.bf16 %v653_v54, %v653_v54 }
  0x74   : > { %v1408_v2 = vpack.c.bf16 %v654_v55, %v654_v55  ;;  %v1409_v9 = vpack.c.bf16 %v655_v56, %v655_v56  ;;  %v1410_v5 = vpack.c.bf16 %v656_v57, %v656_v57  ;;  %v1411_v6 = vpack.c.bf16 %v657_v58, %v657_v58 }
  0x75   : > { %v1412_v7 = vpack.c.bf16 %v658_v59, %v658_v59  ;;  %v1413_v8 = vpack.c.bf16 %v659_v60, %v659_v60  ;;  %1143 = vst.msk [vmem:[%s1767_s25 + $0x120] sm:$0xf] %vm1070_vm0, %v1406_v63  ;;  %1144 = vst.msk [vmem:[%s1767_s25 + $0x124] sm:$0xf] %vm1070_vm0, %v1407_v1  ;;  %v1598_v12 = vunpack.c.l.bf16 %v1668_v62  ;;  %v1599_v13 = vunpack.c.h.bf16 %v1668_v62 }
  0x76   : > { %1145 = vst.msk [vmem:[%s1767_s25 + $0x128] sm:$0xf] %vm1070_vm0, %v1408_v2  ;;  %1146 = vst.msk [vmem:[%s1767_s25 + $0x12c] sm:$0xf] %vm1070_vm0, %v1409_v9  ;;  %v1602_v14 = vunpack.c.l.bf16 %v1669_v3  ;;  %v1603_v15 = vunpack.c.h.bf16 %v1669_v3  ;;  %v1606_v16 = vunpack.c.l.bf16 %v1670_v4  ;;  %v1607_v17 = vunpack.c.h.bf16 %v1670_v4 }
  0x77   : > { %1147 = vst.msk [vmem:[%s1767_s25 + $0x130] sm:$0xf] %vm1070_vm0, %v1410_v5  ;;  %1148 = vst.msk [vmem:[%s1767_s25 + $0x134] sm:$0xf] %vm1070_vm0, %v1411_v6  ;;  %v457_v19 = vmul.f32 %v2116_v18, %v1594_v10  ;;  %v458_v20 = vmul.f32 %v2116_v18, %v1595_v11  ;;  %v459_v21 = vmul.f32 %v2116_v18, %v1598_v12  ;;  %v1610_v55 = vunpack.c.l.bf16 %v1671_v44 }
  0x78   : > { %1149 = vst.msk [vmem:[%s1767_s25 + $0x138] sm:$0xf] %vm1070_vm0, %v1412_v7  ;;  %1150 = vst.msk [vmem:[%s1767_s25 + $0x13c] sm:$0xf] %vm1070_vm0, %v1413_v8  ;;  %v460_v22 = vmul.f32 %v2116_v18, %v1599_v13  ;;  %v461_v23 = vmul.f32 %v2116_v18, %v1602_v14  ;;  %v462_v24 = vmul.f32 %v2116_v18, %v1603_v15  ;;  %v1611_v56 = vunpack.c.h.bf16 %v1671_v44 }
  0x79   : > { %v463_v25 = vmul.f32 %v2116_v18, %v1606_v16  ;;  %v464_v26 = vmul.f32 %v2116_v18, %v1607_v17  ;;  %v562_v28 = vadd.f32 %v2129_v27, %v457_v19  ;;  %v563_v29 = vadd.f32 %v2129_v27, %v458_v20 }
  0x7a   : > { %v564_v30 = vadd.f32 %v2129_v27, %v459_v21  ;;  %v565_v31 = vadd.f32 %v2129_v27, %v460_v22  ;;  %v566_v32 = vadd.f32 %v2129_v27, %v461_v23  ;;  %v567_v33 = vadd.f32 %v2129_v27, %v462_v24 }
  0x7b   : > { %v568_v34 = vadd.f32 %v2129_v27, %v463_v25  ;;  %v569_v35 = vadd.f32 %v2129_v27, %v464_v26  ;;  %v660_v36 = vmax.f32 %v562_v28, 0.0  ;;  %v661_v37 = vmax.f32 %v563_v29, 0.0  ;;  %v1675_v25 = vld [vmem:[%s1730_s18 + $0x180] sm:$0xff]  }
  0x7c   : > { %v662_v38 = vmax.f32 %v564_v30, 0.0  ;;  %v663_v39 = vmax.f32 %v565_v31, 0.0  ;;  %v664_v40 = vmax.f32 %v566_v32, 0.0  ;;  %v665_v41 = vmax.f32 %v567_v33, 0.0 }
  0x7d   : > { %v666_v42 = vmax.f32 %v568_v34, 0.0  ;;  %v667_v43 = vmax.f32 %v569_v35, 0.0  ;;  %v1414_v46 = vpack.c.bf16 %v660_v36, %v660_v36  ;;  %v1415_v47 = vpack.c.bf16 %v661_v37, %v661_v37 }
  0x7e   : > { %v1416_v48 = vpack.c.bf16 %v662_v38, %v662_v38  ;;  %v1417_v49 = vpack.c.bf16 %v663_v39, %v663_v39  ;;  %v1418_v52 = vpack.c.bf16 %v664_v40, %v664_v40  ;;  %v1419_v53 = vpack.c.bf16 %v665_v41, %v665_v41 }
  0x7f   : > { %v1420_v0 = vpack.c.bf16 %v666_v42, %v666_v42  ;;  %v1421_v54 = vpack.c.bf16 %v667_v43, %v667_v43  ;;  %1151 = vst.msk [vmem:[%s1767_s25 + $0x140] sm:$0xf] %vm1070_vm0, %v1414_v46  ;;  %1152 = vst.msk [vmem:[%s1767_s25 + $0x144] sm:$0xf] %vm1070_vm0, %v1415_v47  ;;  %v1614_v57 = vunpack.c.l.bf16 %v1672_v45  ;;  %v1615_v58 = vunpack.c.h.bf16 %v1672_v45 }
  0x80   : > { %1153 = vst.msk [vmem:[%s1767_s25 + $0x148] sm:$0xf] %vm1070_vm0, %v1416_v48  ;;  %1154 = vst.msk [vmem:[%s1767_s25 + $0x14c] sm:$0xf] %vm1070_vm0, %v1417_v49  ;;  %v1618_v59 = vunpack.c.l.bf16 %v1673_v50  ;;  %v1619_v60 = vunpack.c.h.bf16 %v1673_v50  ;;  %v1622_v61 = vunpack.c.l.bf16 %v1674_v51  ;;  %v1623_v62 = vunpack.c.h.bf16 %v1674_v51 }
  0x81   : > { %1155 = vst.msk [vmem:[%s1767_s25 + $0x150] sm:$0xf] %vm1070_vm0, %v1418_v52  ;;  %1156 = vst.msk [vmem:[%s1767_s25 + $0x154] sm:$0xf] %vm1070_vm0, %v1419_v53  ;;  %v465_v63 = vmul.f32 %v2116_v18, %v1610_v55  ;;  %v466_v1 = vmul.f32 %v2116_v18, %v1611_v56  ;;  %v467_v2 = vmul.f32 %v2116_v18, %v1614_v57  ;;  %v1626_v35 = vunpack.c.l.bf16 %v1675_v25 }
  0x82   : > { %1157 = vst.msk [vmem:[%s1767_s25 + $0x158] sm:$0xf] %vm1070_vm0, %v1420_v0  ;;  %1158 = vst.msk [vmem:[%s1767_s25 + $0x15c] sm:$0xf] %vm1070_vm0, %v1421_v54  ;;  %v468_v9 = vmul.f32 %v2116_v18, %v1615_v58  ;;  %v469_v3 = vmul.f32 %v2116_v18, %v1618_v59  ;;  %v470_v4 = vmul.f32 %v2116_v18, %v1619_v60  ;;  %v1627_v36 = vunpack.c.h.bf16 %v1675_v25 }
  0x83   : > { %v471_v5 = vmul.f32 %v2116_v18, %v1622_v61  ;;  %v472_v6 = vmul.f32 %v2116_v18, %v1623_v62  ;;  %v570_v7 = vadd.f32 %v2129_v27, %v465_v63  ;;  %v571_v8 = vadd.f32 %v2129_v27, %v466_v1 }
  0x84   : > { %v572_v10 = vadd.f32 %v2129_v27, %v467_v2  ;;  %v573_v11 = vadd.f32 %v2129_v27, %v468_v9  ;;  %v574_v12 = vadd.f32 %v2129_v27, %v469_v3  ;;  %v575_v13 = vadd.f32 %v2129_v27, %v470_v4 }
  0x85   : > { %v576_v14 = vadd.f32 %v2129_v27, %v471_v5  ;;  %v577_v15 = vadd.f32 %v2129_v27, %v472_v6  ;;  %v668_v16 = vmax.f32 %v570_v7, 0.0  ;;  %v669_v17 = vmax.f32 %v571_v8, 0.0 }
  0x86   : > { %v670_v19 = vmax.f32 %v572_v10, 0.0  ;;  %v671_v20 = vmax.f32 %v573_v11, 0.0  ;;  %v672_v21 = vmax.f32 %v574_v12, 0.0  ;;  %v673_v22 = vmax.f32 %v575_v13, 0.0 }
  0x87   : > { %v674_v23 = vmax.f32 %v576_v14, 0.0  ;;  %v675_v24 = vmax.f32 %v577_v15, 0.0  ;;  %v1422_v26 = vpack.c.bf16 %v668_v16, %v668_v16  ;;  %v1423_v28 = vpack.c.bf16 %v669_v17, %v669_v17 }
  0x88   : > { %v1424_v29 = vpack.c.bf16 %v670_v19, %v670_v19  ;;  %v1425_v30 = vpack.c.bf16 %v671_v20, %v671_v20  ;;  %v1426_v31 = vpack.c.bf16 %v672_v21, %v672_v21  ;;  %v1427_v32 = vpack.c.bf16 %v673_v22, %v673_v22 }
  0x89   : > { %v1428_v33 = vpack.c.bf16 %v674_v23, %v674_v23  ;;  %v1429_v34 = vpack.c.bf16 %v675_v24, %v675_v24  ;;  %1159 = vst.msk [vmem:[%s1767_s25 + $0x160] sm:$0xf] %vm1070_vm0, %v1422_v26  ;;  %1160 = vst.msk [vmem:[%s1767_s25 + $0x164] sm:$0xf] %vm1070_vm0, %v1423_v28  ;;  %v473_v37 = vmul.f32 %v2116_v18, %v1626_v35 }
  0x8a   : > { %1161 = vst.msk [vmem:[%s1767_s25 + $0x168] sm:$0xf] %vm1070_vm0, %v1424_v29  ;;  %1162 = vst.msk [vmem:[%s1767_s25 + $0x16c] sm:$0xf] %vm1070_vm0, %v1425_v30  ;;  %v474_v38 = vmul.f32 %v2116_v18, %v1627_v36 }
  0x8b   : > { %1163 = vst.msk [vmem:[%s1767_s25 + $0x170] sm:$0xf] %vm1070_vm0, %v1426_v31  ;;  %1164 = vst.msk [vmem:[%s1767_s25 + $0x174] sm:$0xf] %vm1070_vm0, %v1427_v32  ;;  %v578_v39 = vadd.f32 %v2129_v27, %v473_v37 }
  0x8c   : > { %1165 = vst.msk [vmem:[%s1767_s25 + $0x178] sm:$0xf] %vm1070_vm0, %v1428_v33  ;;  %1166 = vst.msk [vmem:[%s1767_s25 + $0x17c] sm:$0xf] %vm1070_vm0, %v1429_v34  ;;  %v579_v40 = vadd.f32 %v2129_v27, %v474_v38 }
  0x8d   : > { %v676_v41 = vmax.f32 %v578_v39, 0.0 }
  0x8e   : > { %v677_v42 = vmax.f32 %v579_v40, 0.0 }
  0x8f   : > { %v1430_v43 = vpack.c.bf16 %v676_v41, %v676_v41 }
  0x90   : > { %v1431_v44 = vpack.c.bf16 %v677_v42, %v677_v42 }
  0x91   : > { %1167 = vst.msk [vmem:[%s1767_s25 + $0x180] sm:$0xf] %vm1070_vm0, %v1430_v43 }
  0x92   : > { %1168 = vst.msk [vmem:[%s1767_s25 + $0x184] sm:$0xf] %vm1070_vm0, %v1431_v44 }
  0x93 PF: > { %s13_s12 = sadd.s32 1, %s1692_s12  }
  0x94   : > { %p10_p4 = scmp.ge.s32.totalorder %s13_s12, 4  }
  0x96   :  { %12 = sbr.rel (!%p10_p4) target bundleno = 1 (0x1), region = 62 }

// kernel: decoder_forward.11
= control target key start
LH: loop header
LB: loop body
LE: loop exit
PB: predicated region body
PF: predicated region fallthrough
CT: control target
= control target key end

     0   :  { %s4420_s12 = smov 0   ;;  %s5316_s0 = inlined_call_operand.vmem [shape: bf16[1568,288], index: 0, kind: input, shape index: {}]   ;;  %s5317_s1 = inlined_call_operand.vmem [shape: bf16[288,128], index: 1, kind: input, shape index: {}]   ;;  %s5318_s2 = inlined_call_operand.vmem [shape: f32[1,128], index: 2, kind: input, shape index: {}]   ;;  %s5319_s3 = inlined_call_operand.vmem [shape: f32[1568,128], index: 3, kind: output, shape index: {}]  }
   0x1 LB: > { %s3000_s13 = sadd.s32 4294967295, %s4395_s12   ;;  %p3004_p0 = scmp.ge.s32.totalorder %s4395_s12, 1  ;;  %s4395_s12 = sphi %s4420_s12, %s13_s12  }
   0x2   : > { %p139_p1 = scmp.lt.s32.totalorder %s4395_s12, 3 }
   0x4   : > { %p140_p2 = pnand %p3004_p0, %p139_p1 }
   0x5   : > { %v3781_v0 = vld [vmem:[%s5317_s1] sm:$0xff] (!%p140_p2)   ;;  %v4397_v1 = vmov (!%p140_p2), 0   ;;  %v3782_v2 = vld [vmem:[%s5317_s1 + $0x8] sm:$0xff] (!%p140_p2)   ;;  %v4398_v3 = vmov (!%p140_p2), 0.0   ;;  %vm4399_vm0 = vmmov (!%p140_p2), 0   ;;  %s164_s18 = smul.u32 (!%p140_p2), 98, %s3000_s13 }
   0x6   : > { %143 = sbr.rel (%p140_p2) target bundleno = 699 (0x2bb), region = 32  ;;  %1408 = vmatprep.subr.bf16.mxu1 (!%p140_p2), %v4397_v1  ;;  %3373 = vmatprep.subr.bf16.mxu0 (!%p140_p2), %v4398_v3  ;;  %v3783_v4 = vld [vmem:[%s5317_s1 + $0x10] sm:$0xff] (!%p140_p2)   ;;  %v3784_v5 = vld [vmem:[%s5317_s1 + $0x18] sm:$0xff] (!%p140_p2)   ;;  %v3785_v6 = vld [vmem:[%s5317_s1 + $0x20] sm:$0xff] (!%p140_p2)   ;;  %vm1260_vm1 = vcmask (!%p140_p2), 261120  }
   0x7   : > { %1409 = vmatpush1.bf16.msra.mxu1 (!%p140_p2), %v3781_v0  ;;  %3377 = vmatprep.mubr.msk.bf16.mxu0 (!%p140_p2), %vm4399_vm0, %v4398_v3  ;;  %p165_p3 = scmp.lt.s32.totalorder (!%p140_p2), %s164_s18, 195  ;;  %v3795_v7 = vld [vmem:[%s5317_s1 + $0x80] sm:$0xff] (!%p140_p2)   ;;  %v3797_v8 = vld [vmem:[%s5317_s1 + $0x88] sm:$0xff] (!%p140_p2)   ;;  %v3787_v12 = vld [vmem:[%s5317_s1 + $0x30] sm:$0xff] (!%p140_p2)  }
   0x8   : > { %1410 = vmatprep.subr.bf16.mxu1 (!%p140_p2), %v4397_v1  ;;  %3374 = vmatpush3.bf16.msra.mxu0 (!%p140_p2), %v3795_v7  ;;  %v3786_v9 = vld [vmem:[%s5317_s1 + $0x28] sm:$0xff] (!%p140_p2)   ;;  %v3788_v13 = vld [vmem:[%s5317_s1 + $0x38] sm:$0xff] (!%p140_p2)   ;;  %v3789_v15 = vld [vmem:[%s5317_s1 + $0x40] sm:$0xff] (!%p140_p2)  }
   0x9   : > { %3375 = vmatprep.subr.bf16.mxu0 (!%p140_p2), %v4398_v3  ;;  %v3790_v16 = vld [vmem:[%s5317_s1 + $0x48] sm:$0xff] (!%p140_p2)   ;;  %v3791_v18 = vld [vmem:[%s5317_s1 + $0x50] sm:$0xff] (!%p140_p2)   ;;  %v3792_v19 = vld [vmem:[%s5317_s1 + $0x58] sm:$0xff] (!%p140_p2)  }
   0xa   : > { %v3793_v21 = vld [vmem:[%s5317_s1 + $0x60] sm:$0xff] (!%p140_p2)   ;;  %v3794_v22 = vld [vmem:[%s5317_s1 + $0x68] sm:$0xff] (!%p140_p2)   ;;  %v3796_v24 = vld [vmem:[%s5317_s1 + $0x70] sm:$0xff] (!%p140_p2)  }
   0xb   : > { %1411 = vmatpush1.bf16.msra.mxu1 (!%p140_p2), %v3782_v2  ;;  %v3798_v25 = vld [vmem:[%s5317_s1 + $0x78] sm:$0xff] (!%p140_p2)  }
   0xc   : > { %1412 = vmatprep.subr.bf16.mxu1 (!%p140_p2), %v4397_v1  ;;  %3376 = vmatpush3.bf16.msra.mxu0 (!%p140_p2), %v3797_v8 }
   0xd   : > { %s5321_s18 = smov (!%p165_p3, %s164_s18), 195 }
   0xe   : > { %s3769_s23 = smul.u32 12, %s5321_s18  ;;  %s3006_s6 = sshll.u32 %s5321_s18, 3 }
   0xf   : > { %1413 = vmatpush1.bf16.msra.mxu1 %v3783_v4  ;;  %s4775_s18 = scalar_lea.vmem %s5319_s3, %s3006_s6 }
  0x10   : > { %1414 = vmatprep.subr.bf16.mxu1 %v4397_v1  ;;  %s4463_s5 = scalar_lea.vmem %s5316_s0, %s3769_s23 }
  0x11   : > { %v3801_v10 = vld [vmem:[%s4463_s5 + $0x4] ss:$12 sps:$4 sm:$0xff]   ;;  %v3802_v11 = vld [vmem:[%s4463_s5 + $0x8] ss:$12 sps:$4 sm:$0xff]   ;;  %v3805_v14 = vld [vmem:[%s4463_s5 + $0x20] ss:$12 sps:$4 sm:$0xff]  }
  0x12   : > { %1440 = vmatprep.mubr.bf16.mxu1 %v3801_v10  ;;  %3378 = vmatmul.mubr.msk.bf16.vlgmr.msra.gmra.mrb[0].mxu0 %vm1260_vm1, %v3802_v11  ;;  %v3809_v17 = vld [vmem:[%s4463_s5 + $0x38] ss:$12 sps:$4 sm:$0xff]   ;;  %v3813_v20 = vld [vmem:[%s4463_s5 + $0x50] ss:$12 sps:$4 sm:$0xff]   ;;  %v3817_v23 = vld [vmem:[%s4463_s5 + $0x68] ss:$12 sps:$4 sm:$0xff]  }
  0x13   : > { %1415 = vmatpush1.bf16.msra.mxu1 %v3784_v5  ;;  %3381 = vmatprep.mubr.msk.bf16.mxu0 %vm4399_vm0, %v4398_v3  ;;  %v3821_v26 = vld [vmem:[%s4463_s5 + $0x80] ss:$12 sps:$4 sm:$0xff]   ;;  %v3803_v28 = vld [vmem:[%s4463_s5 + $0x1c] ss:$12 sps:$4 sm:$0xff]   ;;  %v3825_v29 = vld [vmem:[%s4463_s5 + $0x98] ss:$12 sps:$4 sm:$0xff]  }
  0x14   : > { %1416 = vmatprep.subr.bf16.mxu1 %v4397_v1  ;;  %v3799_v27 = vld [vmem:[%s4463_s5] ss:$12 sps:$4 sm:$0xff]   ;;  %v3806_v30 = vld [vmem:[%s4463_s5 + $0x18] ss:$12 sps:$4 sm:$0xff]   ;;  %v3829_v32 = vld [vmem:[%s4463_s5 + $0xb0] ss:$12 sps:$4 sm:$0xff]  }
  0x15   : > { %v3807_v31 = vld [vmem:[%s4463_s5 + $0x34] ss:$12 sps:$4 sm:$0xff]   ;;  %v3810_v33 = vld [vmem:[%s4463_s5 + $0x30] ss:$12 sps:$4 sm:$0xff]   ;;  %v3811_v34 = vld [vmem:[%s4463_s5 + $0x4c] ss:$12 sps:$4 sm:$0xff]  }
  0x16   : > { %v3833_v35 = vld [vmem:[%s4463_s5 + $0xc8] ss:$12 sps:$4 sm:$0xff]   ;;  %v3815_v37 = vld [vmem:[%s4463_s5 + $0x64] ss:$12 sps:$4 sm:$0xff]   ;;  %v3837_v38 = vld [vmem:[%s4463_s5 + $0xe0] ss:$12 sps:$4 sm:$0xff]  }
  0x17   : > { %1417 = vmatpush1.bf16.msra.mxu1 %v3785_v6  ;;  %v3814_v36 = vld [vmem:[%s4463_s5 + $0x48] ss:$12 sps:$4 sm:$0xff]   ;;  %v3818_v39 = vld [vmem:[%s4463_s5 + $0x60] ss:$12 sps:$4 sm:$0xff]   ;;  %v3841_v41 = vld [vmem:[%s4463_s5 + $0xf8] ss:$12 sps:$4 sm:$0xff]  }
  0x18   : > { %1418 = vmatprep.subr.bf16.mxu1 %v4397_v1  ;;  %v3819_v40 = vld [vmem:[%s4463_s5 + $0x7c] ss:$12 sps:$4 sm:$0xff]   ;;  %v3822_v42 = vld [vmem:[%s4463_s5 + $0x78] ss:$12 sps:$4 sm:$0xff]   ;;  %v3823_v43 = vld [vmem:[%s4463_s5 + $0x94] ss:$12 sps:$4 sm:$0xff]  }
  0x19   : > { %v3845_v44 = vld [vmem:[%s4463_s5 + $0x110] ss:$12 sps:$4 sm:$0xff]   ;;  %v3827_v46 = vld [vmem:[%s4463_s5 + $0xac] ss:$12 sps:$4 sm:$0xff]   ;;  %v3849_v47 = vld [vmem:[%s4463_s5 + $0x128] ss:$12 sps:$4 sm:$0xff]  }
  0x1a   : > { %3382 = vmatmul.mubr.msk.bf16.gmra.mrb[4].mxu0 %vm1260_vm1, %v3805_v14  ;;  %v3826_v45 = vld [vmem:[%s4463_s5 + $0x90] ss:$12 sps:$4 sm:$0xff]   ;;  %v3830_v48 = vld [vmem:[%s4463_s5 + $0xa8] ss:$12 sps:$4 sm:$0xff]   ;;  %v3853_v50 = vld [vmem:[%s4463_s5 + $0x140] ss:$12 sps:$4 sm:$0xff]  }
  0x1b   : > { %1419 = vmatpush1.bf16.msra.mxu1 %v3786_v9  ;;  %3385 = vmatprep.mubr.msk.bf16.mxu0 %vm4399_vm0, %v4398_v3  ;;  %v3831_v49 = vld [vmem:[%s4463_s5 + $0xc4] ss:$12 sps:$4 sm:$0xff]   ;;  %v3834_v51 = vld [vmem:[%s4463_s5 + $0xc0] ss:$12 sps:$4 sm:$0xff]   ;;  %v3835_v52 = vld [vmem:[%s4463_s5 + $0xdc] ss:$12 sps:$4 sm:$0xff]  }
  0x1c   : > { %1420 = vmatprep.subr.bf16.mxu1 %v4397_v1  ;;  %v3857_v53 = vld [vmem:[%s4463_s5 + $0x158] ss:$12 sps:$4 sm:$0xff]   ;;  %v3839_v55 = vld [vmem:[%s4463_s5 + $0xf4] ss:$12 sps:$4 sm:$0xff]   ;;  %v3861_v56 = vld [vmem:[%s4463_s5 + $0x170] ss:$12 sps:$4 sm:$0xff]  }
  0x1d   : > { %v3838_v54 = vld [vmem:[%s4463_s5 + $0xd8] ss:$12 sps:$4 sm:$0xff]   ;;  %v3842_v57 = vld [vmem:[%s4463_s5 + $0xf0] ss:$12 sps:$4 sm:$0xff]   ;;  %v3865_v59 = vld [vmem:[%s4463_s5 + $0x188] ss:$12 sps:$4 sm:$0xff]  }
  0x1e   : > { %v3843_v58 = vld [vmem:[%s4463_s5 + $0x10c] ss:$12 sps:$4 sm:$0xff]   ;;  %v3846_v60 = vld [vmem:[%s4463_s5 + $0x108] ss:$12 sps:$4 sm:$0xff]   ;;  %v3847_v61 = vld [vmem:[%s4463_s5 + $0x124] ss:$12 sps:$4 sm:$0xff]  }
  0x1f   : > { %1421 = vmatpush1.bf16.msra.mxu1 %v3787_v12  ;;  %v3869_v62 = vld [vmem:[%s4463_s5 + $0x1a0] ss:$12 sps:$4 sm:$0xff]   ;;  %v3851_v0 = vld [vmem:[%s4463_s5 + $0x13c] ss:$12 sps:$4 sm:$0xff]   ;;  %v3854_v2 = vld [vmem:[%s4463_s5 + $0x138] ss:$12 sps:$4 sm:$0xff]  }
  0x20   : > { %1422 = vmatprep.subr.bf16.mxu1 %v4397_v1  ;;  %v3850_v63 = vld [vmem:[%s4463_s5 + $0x120] ss:$12 sps:$4 sm:$0xff]   ;;  %v3877_v5 = vld [vmem:[%s4463_s5 + $0x1d0] ss:$12 sps:$4 sm:$0xff]   ;;  %v3881_v8 = vld [vmem:[%s4463_s5 + $0x1e8] ss:$12 sps:$4 sm:$0xff]  }
  0x21   : > { %v3855_v4 = vld [vmem:[%s4463_s5 + $0x154] ss:$12 sps:$4 sm:$0xff]   ;;  %v3858_v6 = vld [vmem:[%s4463_s5 + $0x150] ss:$12 sps:$4 sm:$0xff]   ;;  %v3859_v7 = vld [vmem:[%s4463_s5 + $0x16c] ss:$12 sps:$4 sm:$0xff]  }
  0x22   : > { %3386 = vmatmul.mubr.msk.bf16.gmra.mrb[8].mxu0 %vm1260_vm1, %v3809_v17  ;;  %v3862_v9 = vld [vmem:[%s4463_s5 + $0x168] ss:$12 sps:$4 sm:$0xff]   ;;  %v3863_v10 = vld [vmem:[%s4463_s5 + $0x184] ss:$12 sps:$4 sm:$0xff]   ;;  %v3885_v11 = vld [vmem:[%s4463_s5 + $0x200] ss:$12 sps:$4 sm:$0xff]  }
  0x23   : > { %1423 = vmatpush1.bf16.msra.mxu1 %v3788_v13  ;;  %3389 = vmatprep.mubr.msk.bf16.mxu0 %vm4399_vm0, %v4398_v3  ;;  %v3866_v12 = vld [vmem:[%s4463_s5 + $0x180] ss:$12 sps:$4 sm:$0xff]   ;;  %v3867_v13 = vld [vmem:[%s4463_s5 + $0x19c] ss:$12 sps:$4 sm:$0xff]   ;;  %v3889_v14 = vld [vmem:[%s4463_s5 + $0x218] ss:$12 sps:$4 sm:$0xff]  }
  0x24   : > { %1424 = vmatprep.subr.bf16.mxu1 %v4397_v1  ;;  %v3893_v17 = vld [vmem:[%s4463_s5 + $0x230] ss:$12 sps:$4 sm:$0xff]  }
  0x27   : > { %1425 = vmatpush1.bf16.msra.mxu1 %v3789_v15  ;;  %v3870_v15 = vld [vmem:[%s4463_s5 + $0x198] ss:$12 sps:$4 sm:$0xff]  }
  0x28   : > { %1426 = vmatprep.subr.bf16.mxu1 %v4397_v1 }
  0x2a   : > { %3390 = vmatmul.mubr.msk.bf16.gmra.mrb[12].mxu0 %vm1260_vm1, %v3813_v20  ;;  %v3897_v20 = vld [vmem:[%s4463_s5 + $0x248] ss:$12 sps:$4 sm:$0xff]  }
  0x2b   : > { %1427 = vmatpush1.bf16.msra.mxu1 %v3790_v16  ;;  %3393 = vmatprep.mubr.msk.bf16.mxu0 %vm4399_vm0, %v4398_v3  ;;  %v3871_v16 = vld [vmem:[%s4463_s5 + $0x1b4] ss:$12 sps:$4 sm:$0xff]  }
  0x2c   : > { %1428 = vmatprep.subr.bf16.mxu1 %v4397_v1 }
  0x2f   : > { %1429 = vmatpush1.bf16.msra.mxu1 %v3791_v18  ;;  %v3874_v18 = vld [vmem:[%s4463_s5 + $0x1b0] ss:$12 sps:$4 sm:$0xff]  }
  0x30   : > { %1430 = vmatprep.subr.bf16.mxu1 %v4397_v1 }
  0x32   : > { %3394 = vmatmul.mubr.msk.bf16.gmra.mrb[16].mxu0 %vm1260_vm1, %v3817_v23  ;;  %v3901_v23 = vld [vmem:[%s4463_s5 + $0x260] ss:$12 sps:$4 sm:$0xff]  }
  0x33   : > { %1431 = vmatpush1.bf16.msra.mxu1 %v3792_v19  ;;  %3397 = vmatprep.mubr.msk.bf16.mxu0 %vm4399_vm0, %v4398_v3  ;;  %v3875_v19 = vld [vmem:[%s4463_s5 + $0x1cc] ss:$12 sps:$4 sm:$0xff]  }
  0x34   : > { %1432 = vmatprep.subr.bf16.mxu1 %v4397_v1 }
  0x37   : > { %1433 = vmatpush1.bf16.msra.mxu1 %v3793_v21  ;;  %v3878_v21 = vld [vmem:[%s4463_s5 + $0x1c8] ss:$12 sps:$4 sm:$0xff]  }
  0x38   : > { %1434 = vmatprep.subr.bf16.mxu1 %v4397_v1 }
  0x3a   : > { %3398 = vmatmul.mubr.msk.bf16.gmra.mrb[20].mxu0 %vm1260_vm1, %v3821_v26  ;;  %v3905_v26 = vld [vmem:[%s4463_s5 + $0x278] ss:$12 sps:$4 sm:$0xff]  }
  0x3b   : > { %1435 = vmatpush1.bf16.msra.mxu1 %v3794_v22  ;;  %3401 = vmatprep.mubr.msk.bf16.mxu0 %vm4399_vm0, %v4398_v3  ;;  %v3879_v22 = vld [vmem:[%s4463_s5 + $0x1e4] ss:$12 sps:$4 sm:$0xff]  }
  0x3c   : > { %1436 = vmatprep.subr.bf16.mxu1 %v4397_v1 }
  0x3f   : > { %1437 = vmatpush1.bf16.msra.mxu1 %v3796_v24  ;;  %v3882_v24 = vld [vmem:[%s4463_s5 + $0x1e0] ss:$12 sps:$4 sm:$0xff]  }
  0x40   : > { %1438 = vmatprep.subr.bf16.mxu1 %v4397_v1  ;;  %v3873_v1 = vld [vmem:[%s4463_s5 + $0x1b8] ss:$12 sps:$4 sm:$0xff]  }
  0x42   : > { %3402 = vmatmul.mubr.msk.bf16.gmra.mrb[24].mxu0 %vm1260_vm1, %v3825_v29 }
  0x43   : > { %1439 = vmatpush1.bf16.msra.mxu1 %v3798_v25  ;;  %3405 = vmatprep.mubr.msk.bf16.mxu0 %vm4399_vm0, %v4398_v3  ;;  %v3883_v25 = vld [vmem:[%s4463_s5 + $0x1fc] ss:$12 sps:$4 sm:$0xff]  }
  0x46   : > { %1441 = vmatmul.mubr.bf16.vlgmr.msra.gmra.mrb[0].mxu1 %v3799_v27  ;;  %v3886_v27 = vld [vmem:[%s4463_s5 + $0x1f8] ss:$12 sps:$4 sm:$0xff]  }
  0x47   : > { %1448 = vmatprep.mubr.bf16.mxu1 %v3803_v28  ;;  %v3887_v28 = vld [vmem:[%s4463_s5 + $0x214] ss:$12 sps:$4 sm:$0xff]  }
  0x4a   : > { %3406 = vmatmul.mubr.msk.bf16.gmra.mrb[28].mxu0 %vm1260_vm1, %v3829_v32 }
  0x4b   : > { %3409 = vmatprep.mubr.msk.bf16.mxu0 %vm4399_vm0, %v4398_v3 }
  0x4e   : > { %1449 = vmatmul.mubr.bf16.gmra.mrb[4].mxu1 %v3806_v30 }
  0x4f   : > { %1456 = vmatprep.mubr.bf16.mxu1 %v3807_v31  ;;  %v3909_v31 = vld [vmem:[%s4463_s5 + $0x290] ss:$12 sps:$4 sm:$0xff]  }
  0x52   : > { %3410 = vmatmul.mubr.msk.bf16.gmra.mrb[32].mxu0 %vm1260_vm1, %v3833_v35  ;;  %v3891_v35 = vld [vmem:[%s4463_s5 + $0x22c] ss:$12 sps:$4 sm:$0xff]  }
  0x53   : > { %3413 = vmatprep.mubr.msk.bf16.mxu0 %vm4399_vm0, %v4398_v3 }
  0x56   : > { %1457 = vmatmul.mubr.bf16.gmra.mrb[8].mxu1 %v3810_v33  ;;  %v3890_v33 = vld [vmem:[%s4463_s5 + $0x210] ss:$12 sps:$4 sm:$0xff]  }
  0x57   : > { %1464 = vmatprep.mubr.bf16.mxu1 %v3811_v34 }
  0x5a   : > { %3414 = vmatmul.mubr.msk.bf16.gmra.mrb[36].mxu0 %vm1260_vm1, %v3837_v38  ;;  %v3913_v38 = vld [vmem:[%s4463_s5 + $0x2a8] ss:$12 sps:$4 sm:$0xff]  }
  0x5b   : > { %3417 = vmatprep.mubr.msk.bf16.mxu0 %vm4399_vm0, %v4398_v3 }
  0x5e   : > { %1465 = vmatmul.mubr.bf16.gmra.mrb[12].mxu1 %v3814_v36 }
  0x5f   : > { %1472 = vmatprep.mubr.bf16.mxu1 %v3815_v37 }
  0x62   : > { %3418 = vmatmul.mubr.msk.bf16.gmra.mrb[40].mxu0 %vm1260_vm1, %v3841_v41 }
  0x63   : > { %3421 = vmatprep.mubr.msk.bf16.mxu0 %vm4399_vm0, %v4398_v3 }
  0x66   : > { %1473 = vmatmul.mubr.bf16.gmra.mrb[16].mxu1 %v3818_v39 }
  0x67   : > { %1480 = vmatprep.mubr.bf16.mxu1 %v3819_v40  ;;  %v3894_v40 = vld [vmem:[%s4463_s5 + $0x228] ss:$12 sps:$4 sm:$0xff]  }
  0x6a   : > { %3422 = vmatmul.mubr.msk.bf16.gmra.mrb[44].mxu0 %vm1260_vm1, %v3845_v44 }
  0x6b   : > { %3425 = vmatprep.mubr.msk.bf16.mxu0 %vm4399_vm0, %v4398_v3 }
  0x6e   : > { %1481 = vmatmul.mubr.bf16.gmra.mrb[20].mxu1 %v3822_v42  ;;  %v3895_v42 = vld [vmem:[%s4463_s5 + $0x244] ss:$12 sps:$4 sm:$0xff]  }
  0x6f   : > { %1488 = vmatprep.mubr.bf16.mxu1 %v3823_v43 }
  0x72   : > { %3426 = vmatmul.mubr.msk.bf16.gmra.mrb[48].mxu0 %vm1260_vm1, %v3849_v47  ;;  %v3898_v47 = vld [vmem:[%s4463_s5 + $0x240] ss:$12 sps:$4 sm:$0xff]  }
  0x73   : > { %3429 = vmatprep.mubr.msk.bf16.mxu0 %vm4399_vm0, %v4398_v3 }
  0x76   : > { %1489 = vmatmul.mubr.bf16.gmra.mrb[24].mxu1 %v3826_v45  ;;  %v3917_v45 = vld [vmem:[%s4463_s5 + $0x2c0] ss:$12 sps:$4 sm:$0xff]  }
  0x77   : > { %1496 = vmatprep.mubr.bf16.mxu1 %v3827_v46 }
  0x7a   : > { %3430 = vmatmul.mubr.msk.bf16.gmra.mrb[52].mxu0 %vm1260_vm1, %v3853_v50 }
  0x7b   : > { %3433 = vmatprep.mubr.msk.bf16.mxu0 %vm4399_vm0, %v4398_v3 }
  0x7e   : > { %1497 = vmatmul.mubr.bf16.gmra.mrb[28].mxu1 %v3830_v48 }
  0x7f   : > { %1504 = vmatprep.mubr.bf16.mxu1 %v3831_v49  ;;  %v3899_v49 = vld [vmem:[%s4463_s5 + $0x25c] ss:$12 sps:$4 sm:$0xff]  }
  0x82   : > { %3434 = vmatmul.mubr.msk.bf16.gmra.mrb[56].mxu0 %vm1260_vm1, %v3857_v53 }
  0x83   : > { %3437 = vmatprep.mubr.msk.bf16.mxu0 %vm4399_vm0, %v4398_v3 }
  0x86   : > { %1505 = vmatmul.mubr.bf16.gmra.mrb[32].mxu1 %v3834_v51 }
  0x87   : > { %1512 = vmatprep.mubr.bf16.mxu1 %v3835_v52  ;;  %v3921_v52 = vld [vmem:[%s4463_s5 + $0x2d8] ss:$12 sps:$4 sm:$0xff]  }
  0x8a   : > { %3438 = vmatmul.mubr.msk.bf16.gmra.mrb[60].mxu0 %vm1260_vm1, %v3861_v56  ;;  %v3903_v56 = vld [vmem:[%s4463_s5 + $0x274] ss:$12 sps:$4 sm:$0xff]  }
  0x8b   : > { %3441 = vmatprep.mubr.msk.bf16.mxu0 %vm4399_vm0, %v4398_v3 }
  0x8e   : > { %1513 = vmatmul.mubr.bf16.gmra.mrb[36].mxu1 %v3838_v54  ;;  %v3902_v54 = vld [vmem:[%s4463_s5 + $0x258] ss:$12 sps:$4 sm:$0xff]  }
  0x8f   : > { %1520 = vmatprep.mubr.bf16.mxu1 %v3839_v55 }
  0x92   : > { %3442 = vmatmul.mubr.msk.bf16.gmra.mrb[64].mxu0 %vm1260_vm1, %v3865_v59  ;;  %v3925_v59 = vld [vmem:[%s4463_s5 + $0x2f0] ss:$12 sps:$4 sm:$0xff]  }
  0x93   : > { %3445 = vmatprep.mubr.msk.bf16.mxu0 %vm4399_vm0, %v4398_v3 }
  0x96   : > { %1521 = vmatmul.mubr.bf16.gmra.mrb[40].mxu1 %v3842_v57 }
  0x97   : > { %1528 = vmatprep.mubr.bf16.mxu1 %v3843_v58 }
  0x9a   : > { %3446 = vmatmul.mubr.msk.bf16.gmra.mrb[68].mxu0 %vm1260_vm1, %v3869_v62 }
  0x9b   : > { %3449 = vmatprep.mubr.msk.bf16.mxu0 %vm4399_vm0, %v4398_v3 }
  0x9e   : > { %1529 = vmatmul.mubr.bf16.gmra.mrb[44].mxu1 %v3846_v60 }
  0x9f   : > { %1536 = vmatprep.mubr.bf16.mxu1 %v3847_v61  ;;  %v3906_v61 = vld [vmem:[%s4463_s5 + $0x270] ss:$12 sps:$4 sm:$0xff]  }
  0xa2   : > { %3450 = vmatmul.mubr.msk.bf16.gmra.mrb[72].mxu0 %vm1260_vm1, %v3873_v1 }
  0xa3   : > { %3453 = vmatprep.mubr.msk.bf16.mxu0 %vm4399_vm0, %v4398_v3 }
  0xa6   : > { %1537 = vmatmul.mubr.bf16.gmra.mrb[48].mxu1 %v3850_v63  ;;  %v3907_v63 = vld [vmem:[%s4463_s5 + $0x28c] ss:$12 sps:$4 sm:$0xff]  }
  0xa7   : > { %1544 = vmatprep.mubr.bf16.mxu1 %v3851_v0  ;;  %v4716_v0 = vld [vmem:[%s5318_s2] ss:$0 sm:$0xff] }
  0xaa   : > { %3454 = vmatmul.mubr.msk.bf16.gmra.mrb[76].mxu0 %vm1260_vm1, %v3877_v5 }
  0xab   : > { %3457 = vmatprep.mubr.msk.bf16.mxu0 %vm4399_vm0, %v4398_v3 }
  0xae   : > { %1545 = vmatmul.mubr.bf16.gmra.mrb[52].mxu1 %v3854_v2 }
  0xaf   : > { %1552 = vmatprep.mubr.bf16.mxu1 %v3855_v4  ;;  %v3929_v4 = vld [vmem:[%s4463_s5 + $0x308] ss:$12 sps:$4 sm:$0xff]  }
  0xb2   : > { %3458 = vmatmul.mubr.msk.bf16.gmra.mrb[80].mxu0 %vm1260_vm1, %v3881_v8 }
  0xb3   : > { %3461 = vmatprep.mubr.msk.bf16.mxu0 %vm4399_vm0, %v4398_v3 }
  0xb6   : > { %1553 = vmatmul.mubr.bf16.gmra.mrb[56].mxu1 %v3858_v6 }
  0xb7   : > { %1560 = vmatprep.mubr.bf16.mxu1 %v3859_v7 }
  0xba   : > { %3462 = vmatmul.mubr.msk.bf16.gmra.mrb[84].mxu0 %vm1260_vm1, %v3885_v11 }
  0xbb   : > { %3465 = vmatprep.mubr.msk.bf16.mxu0 %vm4399_vm0, %v4398_v3 }
  0xbe   : > { %1561 = vmatmul.mubr.bf16.gmra.mrb[60].mxu1 %v3862_v9  ;;  %v3910_v9 = vld [vmem:[%s4463_s5 + $0x288] ss:$12 sps:$4 sm:$0xff]  }
  0xbf   : > { %1568 = vmatprep.mubr.bf16.mxu1 %v3863_v10 }
  0xc2   : > { %3466 = vmatmul.mubr.msk.bf16.gmra.mrb[88].mxu0 %vm1260_vm1, %v3889_v14 }
  0xc3   : > { %3469 = vmatprep.mubr.msk.bf16.mxu0 %vm4399_vm0, %v4398_v3 }
  0xc6   : > { %1569 = vmatmul.mubr.bf16.gmra.mrb[64].mxu1 %v3866_v12  ;;  %v3911_v12 = vld [vmem:[%s4463_s5 + $0x2a4] ss:$12 sps:$4 sm:$0xff]  }
  0xc7   : > { %1576 = vmatprep.mubr.bf16.mxu1 %v3867_v13 }
  0xca   : > { %3470 = vmatmul.mubr.msk.bf16.gmra.mrb[92].mxu0 %vm1260_vm1, %v3893_v17 }
  0xcb   : > { %3473 = vmatprep.mubr.msk.bf16.mxu0 %vm4399_vm0, %v4398_v3 }
  0xce   : > { %1577 = vmatmul.mubr.bf16.gmra.mrb[68].mxu1 %v3870_v15 }
  0xcf   : > { %1584 = vmatprep.mubr.bf16.mxu1 %v3871_v16 }
  0xd2   : > { %3474 = vmatmul.mubr.msk.bf16.gmra.mrb[96].mxu0 %vm1260_vm1, %v3897_v20 }
  0xd3   : > { %3477 = vmatprep.mubr.msk.bf16.mxu0 %vm4399_vm0, %v4398_v3 }
  0xd6   : > { %1585 = vmatmul.mubr.bf16.gmra.mrb[72].mxu1 %v3874_v18 }
  0xd7   : > { %1592 = vmatprep.mubr.bf16.mxu1 %v3875_v19 }
  0xda   : > { %3478 = vmatmul.mubr.msk.bf16.gmra.mrb[100].mxu0 %vm1260_vm1, %v3901_v23 }
  0xdb   : > { %3481 = vmatprep.mubr.msk.bf16.mxu0 %vm4399_vm0, %v4398_v3 }
  0xde   : > { %1593 = vmatmul.mubr.bf16.gmra.mrb[76].mxu1 %v3878_v21  ;;  %v3933_v21 = vld [vmem:[%s4463_s5 + $0x320] ss:$12 sps:$4 sm:$0xff]  }
  0xdf   : > { %1600 = vmatprep.mubr.bf16.mxu1 %v3879_v22 }
  0xe2   : > { %3482 = vmatmul.mubr.msk.bf16.gmra.mrb[104].mxu0 %vm1260_vm1, %v3905_v26  ;;  %v3914_v26 = vld [vmem:[%s4463_s5 + $0x2a0] ss:$12 sps:$4 sm:$0xff]  }
  0xe3   : > { %3485 = vmatprep.mubr.msk.bf16.mxu0 %vm4399_vm0, %v4398_v3 }
  0xe5   : > { %v4663_v29 = vpop.f32.mrb[0].mxu0 }
  0xe6   : > { %1601 = vmatmul.mubr.bf16.gmra.mrb[80].mxu1 %v3882_v24  ;;  %v3379_v30 = vpop.f32.mrb[1].mxu0 }
  0xe7   : > { %1608 = vmatprep.mubr.bf16.mxu1 %v3883_v25  ;;  %v4666_v32 = vpop.f32.mrb[2].mxu0 }
  0xe8   : > { %v3380_v34 = vpop.f32.mrb[3].mxu0 }
  0xea   : > { %3486 = vmatmul.mubr.msk.bf16.gmra.mrb[108].mxu0 %vm1260_vm1, %v3909_v31 }
  0xeb   : > { %3489 = vmatprep.mubr.msk.bf16.mxu0 %vm4399_vm0, %v4398_v3 }
  0xed   : > { %v4673_v36 = vpop.f32.mrb[4].mxu0 }
  0xee   : > { %1609 = vmatmul.mubr.bf16.gmra.mrb[84].mxu1 %v3886_v27  ;;  %v3383_v37 = vpop.f32.mrb[5].mxu0 }
  0xef   : > { %1616 = vmatprep.mubr.bf16.mxu1 %v3887_v28  ;;  %v4676_v39 = vpop.f32.mrb[6].mxu0 }
  0xf0   : > { %v3384_v41 = vpop.f32.mrb[7].mxu0 }
  0xf2   : > { %3490 = vmatmul.mubr.msk.bf16.gmra.mrb[112].mxu0 %vm1260_vm1, %v3913_v38  ;;  %v3937_v38 = vld [vmem:[%s4463_s5 + $0x338] ss:$12 sps:$4 sm:$0xff]  }
  0xf3   : > { %3493 = vmatprep.mubr.msk.bf16.mxu0 %vm4399_vm0, %v4398_v3 }
  0xf5   : > { %v4683_v43 = vpop.f32.mrb[8].mxu0 }
  0xf6   : > { %1617 = vmatmul.mubr.bf16.gmra.mrb[88].mxu1 %v3890_v33  ;;  %v3387_v44 = vpop.f32.mrb[9].mxu0 }
  0xf7   : > { %1624 = vmatprep.mubr.bf16.mxu1 %v3891_v35  ;;  %v4686_v46 = vpop.f32.mrb[10].mxu0 }
  0xf8   : > { %v3388_v48 = vpop.f32.mrb[11].mxu0 }
  0xfa   : > { %3494 = vmatmul.mubr.msk.bf16.gmra.mrb[116].mxu0 %vm1260_vm1, %v3917_v45 }
  0xfb   : > { %3497 = vmatprep.mubr.msk.bf16.mxu0 %vm4399_vm0, %v4398_v3 }
  0xfd   : > { %v4693_v50 = vpop.f32.mrb[12].mxu0 }
  0xfe   : > { %1625 = vmatmul.mubr.bf16.gmra.mrb[92].mxu1 %v3894_v40  ;;  %v3391_v51 = vpop.f32.mrb[13].mxu0 }
  0xff   : > { %1632 = vmatprep.mubr.bf16.mxu1 %v3895_v42  ;;  %v4696_v53 = vpop.f32.mrb[14].mxu0  ;;  %v3919_v51 = vld [vmem:[%s4463_s5 + $0x2d4] ss:$12 sps:$4 sm:$0xff]  }
 0x100   : > { %v3392_v55 = vpop.f32.mrb[15].mxu0 }
 0x102   : > { %3498 = vmatmul.mubr.msk.bf16.gmra.mrb[120].mxu0 %vm1260_vm1, %v3921_v52 }
 0x103   : > { %3501 = vmatprep.mubr.msk.bf16.mxu0 %vm4399_vm0, %v4398_v3 }
 0x105   : > { %v4703_v57 = vpop.f32.mrb[16].mxu0 }
 0x106   : > { %1633 = vmatmul.mubr.bf16.gmra.mrb[96].mxu1 %v3898_v47  ;;  %v3395_v58 = vpop.f32.mrb[17].mxu0  ;;  %v3918_v47 = vld [vmem:[%s4463_s5 + $0x2b8] ss:$12 sps:$4 sm:$0xff]  }
 0x107   : > { %1640 = vmatprep.mubr.bf16.mxu1 %v3899_v49  ;;  %v4706_v60 = vpop.f32.mrb[18].mxu0 }
 0x108   : > { %v3396_v62 = vpop.f32.mrb[19].mxu0 }
 0x10a   : > { %3502 = vmatmul.mubr.msk.bf16.gmra.mrb[124].mxu0 %vm1260_vm1, %v3925_v59 }
 0x10b   : > { %3505 = vmatprep.mubr.msk.bf16.mxu0 %vm4399_vm0, %v4398_v3 }
 0x10d   : > { %v4718_v1 = vpop.f32.mrb[20].mxu0 }
 0x10e   : > { %1641 = vmatmul.mubr.bf16.gmra.mrb[100].mxu1 %v3902_v54  ;;  %v3399_v2 = vpop.f32.mrb[21].mxu0 }
 0x10f   : > { %1648 = vmatprep.mubr.bf16.mxu1 %v3903_v56  ;;  %v4721_v6 = vpop.f32.mrb[22].mxu0  ;;  %v3941_v2 = vld [vmem:[%s4463_s5 + $0x350] ss:$12 sps:$4 sm:$0xff]  }
 0x110   : > { %v3400_v10 = vpop.f32.mrb[23].mxu0 }
 0x112   : > { %3506 = vmatmul.mubr.msk.bf16.gmra.mrb[128].mxu0 %vm1260_vm1, %v3929_v4 }
 0x113   : > { %3509 = vmatprep.mubr.msk.bf16.mxu0 %vm4399_vm0, %v4398_v3 }
 0x115   : > { %v4732_v18 = vpop.f32.mrb[24].mxu0 }
 0x116   : > { %1649 = vmatmul.mubr.bf16.gmra.mrb[104].mxu1 %v3906_v61  ;;  %v3403_v20 = vpop.f32.mrb[25].mxu0 }
 0x117   : > { %1656 = vmatprep.mubr.bf16.mxu1 %v3907_v63  ;;  %v4735_v23 = vpop.f32.mrb[26].mxu0 }
 0x118   : > { %v3404_v27 = vpop.f32.mrb[27].mxu0 }
 0x119   : > { %v1442_v5 = vpop.f32.mrb[0].mxu1 }
 0x11a   : > { %v1443_v7 = vadd.f32 %v4716_v0, %v1442_v5  ;;  %v1444_v8 = vpop.f32.mrb[1].mxu1  ;;  %3510 = vmatmul.mubr.msk.bf16.gmra.mrb[132].mxu0 %vm1260_vm1, %v3933_v21 }
 0x11b   : > { %v1445_v11 = vpop.f32.mrb[2].mxu1  ;;  %3513 = vmatprep.mubr.msk.bf16.mxu0 %vm4399_vm0, %v4398_v3 }
 0x11c   : > { %v1868_v13 = vadd.f32 %v4663_v29, %v1443_v7  ;;  %v1446_v14 = vadd.f32 %v4716_v0, %v1445_v11  ;;  %v1447_v15 = vpop.f32.mrb[3].mxu1  ;;  %v3915_v29 = vld [vmem:[%s4463_s5 + $0x2bc] ss:$12 sps:$4 sm:$0xff]  }
 0x11d   : > { %v4746_v35 = vpop.f32.mrb[28].mxu0 }
 0x11e   : > { %v3222_v16 = vmul.f32 -1.442695, %v1868_v13  ;;  %v1871_v17 = vadd.f32 %v4666_v32, %v1446_v14  ;;  %1657 = vmatmul.mubr.bf16.gmra.mrb[108].mxu1 %v3910_v9  ;;  %v3922_v9 = vld [vmem:[%s4463_s5 + $0x2d0] ss:$12 sps:$4 sm:$0xff]   ;;  %v3923_v13 = vld [vmem:[%s4463_s5 + $0x2ec] ss:$12 sps:$4 sm:$0xff]  }
 0x11f   : > { %1664 = vmatprep.mubr.bf16.mxu1 %v3911_v12 }
 0x120   : > { %3995 = vpow2.f32 %v3222_v16  ;;  %v3223_v19 = vmul.f32 -1.442695, %v1871_v17 }
 0x121   : > { %v1450_v22 = vpop.f32.mrb[4].mxu1 }
 0x122   : > { %3997 = vpow2.f32 %v3223_v19  ;;  %v1451_v24 = vadd.f32 %v4716_v0, %v1450_v22  ;;  %v1452_v25 = vpop.f32.mrb[5].mxu1  ;;  %3514 = vmatmul.mubr.msk.bf16.gmra.mrb[136].mxu0 %vm1260_vm1, %v3937_v38 }
 0x123   : > { %v1453_v28 = vpop.f32.mrb[6].mxu1  ;;  %3517 = vmatprep.mubr.msk.bf16.mxu0 %vm4399_vm0, %v4398_v3 }
 0x124   : > { %v1876_v30 = vadd.f32 %v4673_v36, %v1451_v24  ;;  %v1454_v31 = vadd.f32 %v4716_v0, %v1453_v28  ;;  %v1455_v32 = vpop.f32.mrb[7].mxu1  ;;  %v3407_v36 = vpop.f32.mrb[29].mxu0 }
 0x125   : > { %v4749_v41 = vpop.f32.mrb[30].mxu0  ;;  %v3926_v32 = vld [vmem:[%s4463_s5 + $0x2e8] ss:$12 sps:$4 sm:$0xff]   ;;  %v3927_v36 = vld [vmem:[%s4463_s5 + $0x304] ss:$12 sps:$4 sm:$0xff]  }
 0x126   : > { %v3224_v33 = vmul.f32 -1.442695, %v1876_v30  ;;  %v1879_v34 = vadd.f32 %v4676_v39, %v1454_v31  ;;  %1665 = vmatmul.mubr.bf16.gmra.mrb[112].mxu1 %v3914_v26  ;;  %v3408_v48 = vpop.f32.mrb[31].mxu0  ;;  %v3945_v26 = vld [vmem:[%s4463_s5 + $0x368] ss:$12 sps:$4 sm:$0xff]  }
 0x127   : > { %1672 = vmatprep.mubr.bf16.mxu1 %v3915_v29 }
 0x128   : > { %3999 = vpow2.f32 %v3224_v33  ;;  %v3225_v37 = vmul.f32 -1.442695, %v1879_v34 }
 0x129   : > { %v1458_v40 = vpop.f32.mrb[8].mxu1 }
 0x12a   : > { %v3996_v42 = vpop.eup %3995  ;;  %4001 = vpow2.f32 %v3225_v37  ;;  %v1459_v44 = vadd.f32 %v4716_v0, %v1458_v40  ;;  %v1460_v45 = vpop.f32.mrb[9].mxu1  ;;  %3518 = vmatmul.mubr.msk.bf16.gmra.mrb[140].mxu0 %vm1260_vm1, %v3941_v2 }
 0x12b   : > { %v2552_v39 = vadd.f32 1.0, %v3996_v42  ;;  %v1461_v49 = vpop.f32.mrb[10].mxu1  ;;  %3521 = vmatprep.mubr.msk.bf16.mxu0 %vm4399_vm0, %v4398_v3 }
 0x12c   : > { %v3998_v52 = vpop.eup %3997  ;;  %v1884_v54 = vadd.f32 %v4683_v43, %v1459_v44  ;;  %v1462_v55 = vadd.f32 %v4716_v0, %v1461_v49  ;;  %v1463_v56 = vpop.f32.mrb[11].mxu1 }
 0x12d   : > { %4003 = vrcp.f32 %v2552_v39  ;;  %v2553_v58 = vadd.f32 1.0, %v3998_v52  ;;  %v4760_v43 = vpop.f32.mrb[32].mxu0  ;;  %v3949_v52 = vld [vmem:[%s4463_s5 + $0x380] ss:$12 sps:$4 sm:$0xff]  }
 0x12e   : > { %v3226_v59 = vmul.f32 -1.442695, %v1884_v54  ;;  %v1887_v61 = vadd.f32 %v4686_v46, %v1462_v55  ;;  %1673 = vmatmul.mubr.bf16.gmra.mrb[116].mxu1 %v3918_v47  ;;  %v3411_v63 = vpop.f32.mrb[33].mxu0 }
 0x12f   : > { %4005 = vrcp.f32 %v2553_v58  ;;  %1680 = vmatprep.mubr.bf16.mxu1 %v3919_v51  ;;  %v4763_v5 = vpop.f32.mrb[34].mxu0 }
 0x130   : > { %4007 = vpow2.f32 %v3226_v59  ;;  %v3227_v62 = vmul.f32 -1.442695, %v1887_v61  ;;  %v3412_v10 = vpop.f32.mrb[35].mxu0  ;;  %v3930_v61 = vld [vmem:[%s4463_s5 + $0x300] ss:$12 sps:$4 sm:$0xff]  }
 0x131   : > { %v1466_v4 = vpop.f32.mrb[12].mxu1  ;;  %v4780_v22 = vpop.f32.mrb[36].mxu0 }
 0x132   : > { %v4000_v7 = vpop.eup %3999  ;;  %4009 = vpow2.f32 %v3227_v62  ;;  %v1467_v8 = vadd.f32 %v4716_v0, %v1466_v4  ;;  %v1468_v46 = vpop.f32.mrb[13].mxu1  ;;  %3522 = vmatmul.mubr.msk.bf16.gmra.mrb[144].mxu0 %vm1260_vm1, %v3945_v26  ;;  %v3931_v4 = vld [vmem:[%s4463_s5 + $0x31c] ss:$12 sps:$4 sm:$0xff]  }
 0x133   : > { %v2554_v11 = vadd.f32 1.0, %v4000_v7  ;;  %v1469_v12 = vpop.f32.mrb[14].mxu1  ;;  %v3415_v25 = vpop.f32.mrb[37].mxu0  ;;  %3525 = vmatprep.mubr.msk.bf16.mxu0 %vm4399_vm0, %v4398_v3 }
 0x134   : > { %v4002_v14 = vpop.eup %4001  ;;  %v1892_v15 = vadd.f32 %v4693_v50, %v1467_v8  ;;  %v1470_v16 = vadd.f32 %v4716_v0, %v1469_v12  ;;  %v1471_v17 = vpop.f32.mrb[15].mxu1 }
 0x135   : > { %4011 = vrcp.f32 %v2554_v11  ;;  %v2555_v19 = vadd.f32 1.0, %v4002_v14  ;;  %v4784_v29 = vpop.f32.mrb[38].mxu0 }
 0x136   : > { %v3228_v20 = vmul.f32 -1.442695, %v1892_v15  ;;  %v1895_v50 = vadd.f32 %v4696_v53, %v1470_v16  ;;  %1681 = vmatmul.mubr.bf16.gmra.mrb[120].mxu1 %v3922_v9  ;;  %v3416_v33 = vpop.f32.mrb[39].mxu0  ;;  %v3953_v16 = vld [vmem:[%s4463_s5 + $0x398] ss:$12 sps:$4 sm:$0xff]  }
 0x137   : > { %v4004_v21 = vpop.eup %4003  ;;  %4013 = vrcp.f32 %v2555_v19  ;;  %1688 = vmatprep.mubr.bf16.mxu1 %v3923_v13 }
 0x138   : > { %2846 = vst [vmem:[%s4775_s18] sm:$0xff] %v4004_v21  ;;  %4015 = vpow2.f32 %v3228_v20  ;;  %v3229_v24 = vmul.f32 -1.442695, %v1895_v50 }
 0x139   : > { %v4006_v27 = vpop.eup %4005  ;;  %v1474_v28 = vpop.f32.mrb[16].mxu1 }
 0x13a   : > { %v4008_v30 = vpop.eup %4007  ;;  %2847 = vst [vmem:[%s4775_s18 + $0x8] sm:$0xff] %v4006_v27  ;;  %4017 = vpow2.f32 %v3229_v24  ;;  %v1475_v53 = vadd.f32 %v4716_v0, %v1474_v28  ;;  %v1476_v31 = vpop.f32.mrb[17].mxu1  ;;  %3526 = vmatmul.mubr.msk.bf16.gmra.mrb[148].mxu0 %vm1260_vm1, %v3949_v52  ;;  %v3934_v24 = vld [vmem:[%s4463_s5 + $0x318] ss:$12 sps:$4 sm:$0xff]   ;;  %v3935_v28 = vld [vmem:[%s4463_s5 + $0x334] ss:$12 sps:$4 sm:$0xff]  }
 0x13b   : > { %v2556_v34 = vadd.f32 1.0, %v4008_v30  ;;  %v1477_v37 = vpop.f32.mrb[18].mxu1  ;;  %3529 = vmatprep.mubr.msk.bf16.mxu0 %vm4399_vm0, %v4398_v3 }
 0x13c   : > { %v4010_v38 = vpop.eup %4009  ;;  %v1900_v40 = vadd.f32 %v4703_v57, %v1475_v53  ;;  %v1478_v42 = vadd.f32 %v4716_v0, %v1477_v37  ;;  %v1479_v44 = vpop.f32.mrb[19].mxu1 }
 0x13d   : > { %4019 = vrcp.f32 %v2556_v34  ;;  %v2557_v45 = vadd.f32 1.0, %v4010_v38  ;;  %v4796_v57 = vpop.f32.mrb[40].mxu0 }
 0x13e   : > { %v3230_v47 = vmul.f32 -1.442695, %v1900_v40  ;;  %v1903_v48 = vadd.f32 %v4706_v60, %v1478_v42  ;;  %1689 = vmatmul.mubr.bf16.gmra.mrb[124].mxu1 %v3926_v32  ;;  %v3419_v51 = vpop.f32.mrb[41].mxu0  ;;  %v3957_v42 = vld [vmem:[%s4463_s5 + $0x3b0] ss:$12 sps:$4 sm:$0xff]  }
 0x13f   : > { %v4012_v39 = vpop.eup %4011  ;;  %4021 = vrcp.f32 %v2557_v45  ;;  %1696 = vmatprep.mubr.bf16.mxu1 %v3927_v36  ;;  %v4800_v56 = vpop.f32.mrb[42].mxu0 }
 0x140   : > { %2848 = vst [vmem:[%s4775_s18 + $0x10] sm:$0xff] %v4012_v39  ;;  %4023 = vpow2.f32 %v3230_v47  ;;  %v3231_v49 = vmul.f32 -1.442695, %v1903_v48  ;;  %v3420_v62 = vpop.f32.mrb[43].mxu0 }
 0x141   : > { %v4014_v54 = vpop.eup %4013  ;;  %v1482_v55 = vpop.f32.mrb[20].mxu1 }
 0x142   : > { %v4016_v58 = vpop.eup %4015  ;;  %2849 = vst [vmem:[%s4775_s18 + $0x18] sm:$0xff] %v4014_v54  ;;  %4025 = vpow2.f32 %v3231_v49  ;;  %v1483_v60 = vadd.f32 %v4716_v0, %v1482_v55  ;;  %v1484_v59 = vpop.f32.mrb[21].mxu1  ;;  %3530 = vmatmul.mubr.msk.bf16.gmra.mrb[152].mxu0 %vm1260_vm1, %v3953_v16  ;;  %v3938_v49 = vld [vmem:[%s4463_s5 + $0x330] ss:$12 sps:$4 sm:$0xff]   ;;  %v3939_v55 = vld [vmem:[%s4463_s5 + $0x34c] ss:$12 sps:$4 sm:$0xff]  }
 0x143   : > { %v2558_v63 = vadd.f32 1.0, %v4016_v58  ;;  %v1485_v2 = vpop.f32.mrb[22].mxu1  ;;  %3533 = vmatprep.mubr.msk.bf16.mxu0 %vm4399_vm0, %v4398_v3 }
 0x144   : > { %v4018_v7 = vpop.eup %4017  ;;  %v1908_v8 = vadd.f32 %v4718_v1, %v1483_v60  ;;  %v1486_v46 = vadd.f32 %v4716_v0, %v1485_v2  ;;  %v1487_v9 = vpop.f32.mrb[23].mxu1 }
 0x145   : > { %4027 = vrcp.f32 %v2558_v63  ;;  %v2559_v10 = vadd.f32 1.0, %v4018_v7  ;;  %v4812_v1 = vpop.f32.mrb[44].mxu0 }
 0x146   : > { %v3232_v11 = vmul.f32 -1.442695, %v1908_v8  ;;  %v1911_v12 = vadd.f32 %v4721_v6, %v1486_v46  ;;  %1697 = vmatmul.mubr.bf16.gmra.mrb[128].mxu1 %v3930_v61  ;;  %v3423_v15 = vpop.f32.mrb[45].mxu0  ;;  %v3961_v46 = vld [vmem:[%s4463_s5 + $0x3c8] ss:$12 sps:$4 sm:$0xff]  }
 0x147   : > { %v4020_v13 = vpop.eup %4019  ;;  %4029 = vrcp.f32 %v2559_v10  ;;  %1704 = vmatprep.mubr.bf16.mxu1 %v3931_v4  ;;  %v4816_v20 = vpop.f32.mrb[46].mxu0 }
 0x148   : > { %2850 = vst [vmem:[%s4775_s18 + $0x20] sm:$0xff] %v4020_v13  ;;  %4031 = vpow2.f32 %v3232_v11  ;;  %v3233_v14 = vmul.f32 -1.442695, %v1911_v12  ;;  %v3424_v25 = vpop.f32.mrb[47].mxu0 }
 0x149   : > { %v4022_v17 = vpop.eup %4021  ;;  %v1490_v19 = vpop.f32.mrb[24].mxu1 }
 0x14a   : > { %v4024_v50 = vpop.eup %4023  ;;  %2851 = vst [vmem:[%s4775_s18 + $0x28] sm:$0xff] %v4022_v17  ;;  %4033 = vpow2.f32 %v3233_v14  ;;  %v1491_v6 = vadd.f32 %v4716_v0, %v1490_v19  ;;  %v1492_v21 = vpop.f32.mrb[25].mxu1  ;;  %3534 = vmatmul.mubr.msk.bf16.gmra.mrb[156].mxu0 %vm1260_vm1, %v3957_v42  ;;  %v3942_v14 = vld [vmem:[%s4463_s5 + $0x348] ss:$12 sps:$4 sm:$0xff]   ;;  %v3943_v19 = vld [vmem:[%s4463_s5 + $0x364] ss:$12 sps:$4 sm:$0xff]  }
 0x14b   : > { %v2560_v26 = vadd.f32 1.0, %v4024_v50  ;;  %v1493_v27 = vpop.f32.mrb[26].mxu1  ;;  %3537 = vmatprep.mubr.msk.bf16.mxu0 %vm4399_vm0, %v4398_v3 }
 0x14c   : > { %v4026_v30 = vpop.eup %4025  ;;  %v1916_v53 = vadd.f32 %v4732_v18, %v1491_v6  ;;  %v1494_v31 = vadd.f32 %v4716_v0, %v1493_v27  ;;  %v1495_v32 = vpop.f32.mrb[27].mxu1 }
 0x14d   : > { %4035 = vrcp.f32 %v2560_v26  ;;  %v2561_v33 = vadd.f32 1.0, %v4026_v30  ;;  %v4828_v18 = vpop.f32.mrb[48].mxu0 }
 0x14e   : > { %v3234_v34 = vmul.f32 -1.442695, %v1916_v53  ;;  %v1919_v37 = vadd.f32 %v4735_v23, %v1494_v31  ;;  %1705 = vmatmul.mubr.bf16.gmra.mrb[132].mxu1 %v3934_v24  ;;  %v3427_v40 = vpop.f32.mrb[49].mxu0  ;;  %v3965_v31 = vld [vmem:[%s4463_s5 + $0x3e0] ss:$12 sps:$4 sm:$0xff]  }
 0x14f   : > { %v4028_v36 = vpop.eup %4027  ;;  %4037 = vrcp.f32 %v2561_v33  ;;  %1712 = vmatprep.mubr.bf16.mxu1 %v3935_v28  ;;  %v4832_v47 = vpop.f32.mrb[50].mxu0 }
 0x150   : > { %2852 = vst [vmem:[%s4775_s18 + $0x30] sm:$0xff] %v4028_v36  ;;  %4039 = vpow2.f32 %v3234_v34  ;;  %v3235_v38 = vmul.f32 -1.442695, %v1919_v37  ;;  %v3428_v51 = vpop.f32.mrb[51].mxu0 }
 0x151   : > { %v4030_v44 = vpop.eup %4029  ;;  %v1498_v45 = vpop.f32.mrb[28].mxu1 }
 0x152   : > { %v4032_v48 = vpop.eup %4031  ;;  %2853 = vst [vmem:[%s4775_s18 + $0x38] sm:$0xff] %v4030_v44  ;;  %4041 = vpow2.f32 %v3235_v38  ;;  %v1499_v23 = vadd.f32 %v4716_v0, %v1498_v45  ;;  %v1500_v39 = vpop.f32.mrb[29].mxu1  ;;  %3538 = vmatmul.mubr.msk.bf16.gmra.mrb[160].mxu0 %vm1260_vm1, %v3961_v46  ;;  %v3946_v38 = vld [vmem:[%s4463_s5 + $0x360] ss:$12 sps:$4 sm:$0xff]   ;;  %v3947_v45 = vld [vmem:[%s4463_s5 + $0x37c] ss:$12 sps:$4 sm:$0xff]  }
 0x153   : > { %v2562_v52 = vadd.f32 1.0, %v4032_v48  ;;  %v1501_v54 = vpop.f32.mrb[30].mxu1  ;;  %3541 = vmatprep.mubr.msk.bf16.mxu0 %vm4399_vm0, %v4398_v3 }
 0x154   : > { %v4034_v58 = vpop.eup %4033  ;;  %v1924_v60 = vadd.f32 %v4746_v35, %v1499_v23  ;;  %v1502_v59 = vadd.f32 %v4716_v0, %v1501_v54  ;;  %v1503_v61 = vpop.f32.mrb[31].mxu1 }
 0x155   : > { %4043 = vrcp.f32 %v2562_v52  ;;  %v2563_v62 = vadd.f32 1.0, %v4034_v58  ;;  %v4844_v35 = vpop.f32.mrb[52].mxu0 }
 0x156   : > { %v3236_v63 = vmul.f32 -1.442695, %v1924_v60  ;;  %v1927_v2 = vadd.f32 %v4749_v41, %v1502_v59  ;;  %1713 = vmatmul.mubr.bf16.gmra.mrb[136].mxu1 %v3938_v49  ;;  %v3431_v8 = vpop.f32.mrb[53].mxu0  ;;  %v3969_v59 = vld [vmem:[%s4463_s5 + $0x3f8] ss:$12 sps:$4 sm:$0xff]  }
 0x157   : > { %v4036_v4 = vpop.eup %4035  ;;  %4045 = vrcp.f32 %v2563_v62  ;;  %1720 = vmatprep.mubr.bf16.mxu1 %v3939_v55  ;;  %v4848_v11 = vpop.f32.mrb[54].mxu0 }
 0x158   : > { %2854 = vst [vmem:[%s4775_s18 + $0x40] sm:$0xff] %v4036_v4  ;;  %4047 = vpow2.f32 %v3236_v63  ;;  %v3237_v7 = vmul.f32 -1.442695, %v1927_v2  ;;  %v3432_v15 = vpop.f32.mrb[55].mxu0 }
 0x159   : > { %v4038_v9 = vpop.eup %4037  ;;  %v1506_v10 = vpop.f32.mrb[32].mxu1 }
 0x15a   : > { %v4040_v12 = vpop.eup %4039  ;;  %2855 = vst [vmem:[%s4775_s18 + $0x48] sm:$0xff] %v4038_v9  ;;  %4049 = vpow2.f32 %v3237_v7  ;;  %v1507_v41 = vadd.f32 %v4716_v0, %v1506_v10  ;;  %v1508_v13 = vpop.f32.mrb[33].mxu1  ;;  %3542 = vmatmul.mubr.msk.bf16.gmra.mrb[164].mxu0 %vm1260_vm1, %v3965_v31  ;;  %v3950_v7 = vld [vmem:[%s4463_s5 + $0x378] ss:$12 sps:$4 sm:$0xff]   ;;  %v3951_v10 = vld [vmem:[%s4463_s5 + $0x394] ss:$12 sps:$4 sm:$0xff]  }
 0x15b   : > { %v2564_v16 = vadd.f32 1.0, %v4040_v12  ;;  %v1509_v17 = vpop.f32.mrb[34].mxu1  ;;  %3545 = vmatprep.mubr.msk.bf16.mxu0 %vm4399_vm0, %v4398_v3 }
 0x15c   : > { %v4042_v50 = vpop.eup %4041  ;;  %v1932_v6 = vadd.f32 %v4760_v43, %v1507_v41  ;;  %v1510_v21 = vadd.f32 %v4716_v0, %v1509_v17  ;;  %v1511_v24 = vpop.f32.mrb[35].mxu1 }
 0x15d   : > { %4051 = vrcp.f32 %v2564_v16  ;;  %v2565_v25 = vadd.f32 1.0, %v4042_v50  ;;  %v4860_v43 = vpop.f32.mrb[56].mxu0 }
 0x15e   : > { %v3238_v26 = vmul.f32 -1.442695, %v1932_v6  ;;  %v1935_v27 = vadd.f32 %v4763_v5, %v1510_v21  ;;  %1721 = vmatmul.mubr.bf16.gmra.mrb[140].mxu1 %v3942_v14  ;;  %v3435_v53 = vpop.f32.mrb[57].mxu0  ;;  %v3973_v21 = vld [vmem:[%s4463_s5 + $0x410] ss:$12 sps:$4 sm:$0xff]  }
 0x15f   : > { %v4044_v28 = vpop.eup %4043  ;;  %4053 = vrcp.f32 %v2565_v25  ;;  %1728 = vmatprep.mubr.bf16.mxu1 %v3943_v19  ;;  %v4864_v34 = vpop.f32.mrb[58].mxu0 }
 0x160   : > { %2856 = vst [vmem:[%s4775_s18 + $0x50] sm:$0xff] %v4044_v28  ;;  %4055 = vpow2.f32 %v3238_v26  ;;  %v3239_v30 = vmul.f32 -1.442695, %v1935_v27  ;;  %v3436_v40 = vpop.f32.mrb[59].mxu0 }
 0x161   : > { %v4046_v32 = vpop.eup %4045  ;;  %v1514_v33 = vpop.f32.mrb[36].mxu1 }
 0x162   : > { %v4048_v37 = vpop.eup %4047  ;;  %2857 = vst [vmem:[%s4775_s18 + $0x58] sm:$0xff] %v4046_v32  ;;  %4057 = vpow2.f32 %v3239_v30  ;;  %v1515_v5 = vadd.f32 %v4716_v0, %v1514_v33  ;;  %v1516_v36 = vpop.f32.mrb[37].mxu1  ;;  %3546 = vmatmul.mubr.msk.bf16.gmra.mrb[168].mxu0 %vm1260_vm1, %v3969_v59  ;;  %v3954_v30 = vld [vmem:[%s4463_s5 + $0x390] ss:$12 sps:$4 sm:$0xff]   ;;  %v3955_v33 = vld [vmem:[%s4463_s5 + $0x3ac] ss:$12 sps:$4 sm:$0xff]  }
 0x163   : > { %v2566_v42 = vadd.f32 1.0, %v4048_v37  ;;  %v1517_v44 = vpop.f32.mrb[38].mxu1  ;;  %3549 = vmatprep.mubr.msk.bf16.mxu0 %vm4399_vm0, %v4398_v3 }
 0x164   : > { %v4050_v48 = vpop.eup %4049  ;;  %v1940_v23 = vadd.f32 %v4780_v22, %v1515_v5  ;;  %v1518_v39 = vadd.f32 %v4716_v0, %v1517_v44  ;;  %v1519_v49 = vpop.f32.mrb[39].mxu1 }
 0x165   : > { %4059 = vrcp.f32 %v2566_v42  ;;  %v2567_v51 = vadd.f32 1.0, %v4050_v48  ;;  %v4876_v22 = vpop.f32.mrb[60].mxu0 }
 0x166   : > { %v3240_v52 = vmul.f32 -1.442695, %v1940_v23  ;;  %v1943_v54 = vadd.f32 %v4784_v29, %v1518_v39  ;;  %1729 = vmatmul.mubr.bf16.gmra.mrb[144].mxu1 %v3946_v38  ;;  %v3439_v60 = vpop.f32.mrb[61].mxu0  ;;  %v3977_v39 = vld [vmem:[%s4463_s5 + $0x428] ss:$12 sps:$4 sm:$0xff]  }
 0x167   : > { %v4052_v55 = vpop.eup %4051  ;;  %4061 = vrcp.f32 %v2567_v51  ;;  %1736 = vmatprep.mubr.bf16.mxu1 %v3947_v45  ;;  %v4880_v63 = vpop.f32.mrb[62].mxu0 }
 0x168   : > { %2858 = vst [vmem:[%s4775_s18 + $0x60] sm:$0xff] %v4052_v55  ;;  %4063 = vpow2.f32 %v3240_v52  ;;  %v3241_v58 = vmul.f32 -1.442695, %v1943_v54  ;;  %v3440_v8 = vpop.f32.mrb[63].mxu0 }
 0x169   : > { %v4054_v61 = vpop.eup %4053  ;;  %v1522_v62 = vpop.f32.mrb[40].mxu1 }
 0x16a   : > { %v4056_v2 = vpop.eup %4055  ;;  %2859 = vst [vmem:[%s4775_s18 + $0x68] sm:$0xff] %v4054_v61  ;;  %4065 = vpow2.f32 %v3241_v58  ;;  %v1523_v29 = vadd.f32 %v4716_v0, %v1522_v62  ;;  %v1524_v4 = vpop.f32.mrb[41].mxu1  ;;  %3550 = vmatmul.mubr.msk.bf16.gmra.mrb[172].mxu0 %vm1260_vm1, %v3973_v21  ;;  %v3958_v58 = vld [vmem:[%s4463_s5 + $0x3a8] ss:$12 sps:$4 sm:$0xff]   ;;  %v3959_v62 = vld [vmem:[%s4463_s5 + $0x3c4] ss:$12 sps:$4 sm:$0xff]  }
 0x16b   : > { %v2568_v46 = vadd.f32 1.0, %v4056_v2  ;;  %v1525_v9 = vpop.f32.mrb[42].mxu1  ;;  %3553 = vmatprep.mubr.msk.bf16.mxu0 %vm4399_vm0, %v4398_v3 }
 0x16c   : > { %v4058_v12 = vpop.eup %4057  ;;  %v1948_v41 = vadd.f32 %v4796_v57, %v1523_v29  ;;  %v1526_v13 = vadd.f32 %v4716_v0, %v1525_v9  ;;  %v1527_v14 = vpop.f32.mrb[43].mxu1 }
 0x16d   : > { %4067 = vrcp.f32 %v2568_v46  ;;  %v2569_v15 = vadd.f32 1.0, %v4058_v12  ;;  %v4892_v57 = vpop.f32.mrb[64].mxu0 }
 0x16e   : > { %v3242_v16 = vmul.f32 -1.442695, %v1948_v41  ;;  %v1951_v17 = vadd.f32 %v4800_v56, %v1526_v13  ;;  %1737 = vmatmul.mubr.bf16.gmra.mrb[148].mxu1 %v3950_v7  ;;  %v3443_v6 = vpop.f32.mrb[65].mxu0  ;;  %v3981_v13 = vld [vmem:[%s4463_s5 + $0x440] ss:$12 sps:$4 sm:$0xff]  }
 0x16f   : > { %v4060_v19 = vpop.eup %4059  ;;  %4069 = vrcp.f32 %v2569_v15  ;;  %1744 = vmatprep.mubr.bf16.mxu1 %v3951_v10  ;;  %v4896_v26 = vpop.f32.mrb[66].mxu0 }
 0x170   : > { %2860 = vst [vmem:[%s4775_s18 + $0x70] sm:$0xff] %v4060_v19  ;;  %4071 = vpow2.f32 %v3242_v16  ;;  %v3243_v50 = vmul.f32 -1.442695, %v1951_v17  ;;  %v3444_v53 = vpop.f32.mrb[67].mxu0 }
 0x171   : > { %v4062_v24 = vpop.eup %4061  ;;  %v1530_v25 = vpop.f32.mrb[44].mxu1 }
 0x172   : > { %v4064_v27 = vpop.eup %4063  ;;  %2861 = vst [vmem:[%s4775_s18 + $0x78] sm:$0xff] %v4062_v24  ;;  %4073 = vpow2.f32 %v3243_v50  ;;  %v1531_v56 = vadd.f32 %v4716_v0, %v1530_v25  ;;  %v1532_v28 = vpop.f32.mrb[45].mxu1  ;;  %3554 = vmatmul.mubr.msk.bf16.gmra.mrb[176].mxu0 %vm1260_vm1, %v3977_v39  ;;  %v3962_v50 = vld [vmem:[%s4463_s5 + $0x3c0] ss:$12 sps:$4 sm:$0xff]   ;;  %v3963_v25 = vld [vmem:[%s4463_s5 + $0x3dc] ss:$12 sps:$4 sm:$0xff]  }
 0x173   : > { %v2570_v31 = vadd.f32 1.0, %v4064_v27  ;;  %v1533_v32 = vpop.f32.mrb[46].mxu1  ;;  %3557 = vmatprep.mubr.msk.bf16.mxu0 %vm4399_vm0, %v4398_v3 }
 0x174   : > { %v4066_v37 = vpop.eup %4065  ;;  %v1956_v5 = vadd.f32 %v4812_v1, %v1531_v56  ;;  %v1534_v36 = vadd.f32 %v4716_v0, %v1533_v32  ;;  %v1535_v38 = vpop.f32.mrb[47].mxu1 }
 0x175   : > { %4075 = vrcp.f32 %v2570_v31  ;;  %v2571_v40 = vadd.f32 1.0, %v4066_v37  ;;  %v4908_v1 = vpop.f32.mrb[68].mxu0 }
 0x176   : > { %v3244_v42 = vmul.f32 -1.442695, %v1956_v5  ;;  %v1959_v44 = vadd.f32 %v4816_v20, %v1534_v36  ;;  %1745 = vmatmul.mubr.bf16.gmra.mrb[152].mxu1 %v3954_v30  ;;  %v3447_v23 = vpop.f32.mrb[69].mxu0  ;;  %v3985_v36 = vld [vmem:[%s4463_s5 + $0x458] ss:$12 sps:$4 sm:$0xff]  }
 0x177   : > { %v4068_v45 = vpop.eup %4067  ;;  %4077 = vrcp.f32 %v2571_v40  ;;  %1752 = vmatprep.mubr.bf16.mxu1 %v3955_v33  ;;  %v4912_v52 = vpop.f32.mrb[70].mxu0 }
 0x178   : > { %2862 = vst [vmem:[%s4775_s18 + $0x80] sm:$0xff] %v4068_v45  ;;  %4079 = vpow2.f32 %v3244_v42  ;;  %v3245_v48 = vmul.f32 -1.442695, %v1959_v44  ;;  %v3448_v60 = vpop.f32.mrb[71].mxu0 }
 0x179   : > { %v4070_v49 = vpop.eup %4069  ;;  %v1538_v51 = vpop.f32.mrb[48].mxu1 }
 0x17a   : > { %v4072_v54 = vpop.eup %4071  ;;  %2863 = vst [vmem:[%s4775_s18 + $0x88] sm:$0xff] %v4070_v49  ;;  %4081 = vpow2.f32 %v3245_v48  ;;  %v1539_v20 = vadd.f32 %v4716_v0, %v1538_v51  ;;  %v1540_v55 = vpop.f32.mrb[49].mxu1  ;;  %3558 = vmatmul.mubr.msk.bf16.gmra.mrb[180].mxu0 %vm1260_vm1, %v3981_v13  ;;  %v3966_v48 = vld [vmem:[%s4463_s5 + $0x3d8] ss:$12 sps:$4 sm:$0xff]   ;;  %v3967_v51 = vld [vmem:[%s4463_s5 + $0x3f4] ss:$12 sps:$4 sm:$0xff]  }
 0x17b   : > { %v2572_v59 = vadd.f32 1.0, %v4072_v54  ;;  %v1541_v61 = vpop.f32.mrb[50].mxu1  ;;  %3561 = vmatprep.mubr.msk.bf16.mxu0 %vm4399_vm0, %v4398_v3 }
 0x17c   : > { %v4074_v2 = vpop.eup %4073  ;;  %v1964_v29 = vadd.f32 %v4828_v18, %v1539_v20  ;;  %v1542_v4 = vadd.f32 %v4716_v0, %v1541_v61  ;;  %v1543_v7 = vpop.f32.mrb[51].mxu1 }
 0x17d   : > { %4083 = vrcp.f32 %v2572_v59  ;;  %v2573_v8 = vadd.f32 1.0, %v4074_v2  ;;  %v4924_v18 = vpop.f32.mrb[72].mxu0 }
 0x17e   : > { %v3246_v46 = vmul.f32 -1.442695, %v1964_v29  ;;  %v1967_v9 = vadd.f32 %v4832_v47, %v1542_v4  ;;  %1753 = vmatmul.mubr.bf16.gmra.mrb[156].mxu1 %v3958_v58  ;;  %v3451_v41 = vpop.f32.mrb[73].mxu0  ;;  %v3989_v4 = vld [vmem:[%s4463_s5 + $0x470] ss:$12 sps:$4 sm:$0xff]  }
 0x17f   : > { %v4076_v10 = vpop.eup %4075  ;;  %4085 = vrcp.f32 %v2573_v8  ;;  %1760 = vmatprep.mubr.bf16.mxu1 %v3959_v62  ;;  %v4928_v16 = vpop.f32.mrb[74].mxu0 }
 0x180   : > { %2864 = vst [vmem:[%s4775_s18 + $0x90] sm:$0xff] %v4076_v10  ;;  %4087 = vpow2.f32 %v3246_v46  ;;  %v3247_v12 = vmul.f32 -1.442695, %v1967_v9  ;;  %v3452_v6 = vpop.f32.mrb[75].mxu0 }
 0x181   : > { %v4078_v14 = vpop.eup %4077  ;;  %v1546_v15 = vpop.f32.mrb[52].mxu1 }
 0x182   : > { %v4080_v17 = vpop.eup %4079  ;;  %2865 = vst [vmem:[%s4775_s18 + $0x98] sm:$0xff] %v4078_v14  ;;  %4089 = vpow2.f32 %v3247_v12  ;;  %v1547_v47 = vadd.f32 %v4716_v0, %v1546_v15  ;;  %v1548_v19 = vpop.f32.mrb[53].mxu1  ;;  %3562 = vmatmul.mubr.msk.bf16.gmra.mrb[184].mxu0 %vm1260_vm1, %v3985_v36  ;;  %v3970_v12 = vld [vmem:[%s4463_s5 + $0x3f0] ss:$12 sps:$4 sm:$0xff]   ;;  %v3971_v15 = vld [vmem:[%s4463_s5 + $0x40c] ss:$12 sps:$4 sm:$0xff]  }
 0x183   : > { %v2574_v21 = vadd.f32 1.0, %v4080_v17  ;;  %v1549_v24 = vpop.f32.mrb[54].mxu1  ;;  %3565 = vmatprep.mubr.msk.bf16.mxu0 %vm4399_vm0, %v4398_v3 }
 0x184   : > { %v4082_v27 = vpop.eup %4081  ;;  %v1972_v56 = vadd.f32 %v4844_v35, %v1547_v47  ;;  %v1550_v28 = vadd.f32 %v4716_v0, %v1549_v24  ;;  %v1551_v30 = vpop.f32.mrb[55].mxu1 }
 0x185   : > { %4091 = vrcp.f32 %v2574_v21  ;;  %v2575_v53 = vadd.f32 1.0, %v4082_v27  ;;  %v4940_v35 = vpop.f32.mrb[76].mxu0 }
 0x186   : > { %v3248_v31 = vmul.f32 -1.442695, %v1972_v56  ;;  %v1975_v32 = vadd.f32 %v4848_v11, %v1550_v28  ;;  %1761 = vmatmul.mubr.bf16.gmra.mrb[160].mxu1 %v3962_v50  ;;  %v3455_v5 = vpop.f32.mrb[77].mxu0  ;;  %v3993_v56 = vld [vmem:[%s4463_s5 + $0x488] ss:$12 sps:$4 sm:$0xff]  }
 0x187   : > { %v4084_v33 = vpop.eup %4083  ;;  %4093 = vrcp.f32 %v2575_v53  ;;  %1768 = vmatprep.mubr.bf16.mxu1 %v3963_v25  ;;  %v4944_v42 = vpop.f32.mrb[78].mxu0 }
 0x188   : > { %2866 = vst [vmem:[%s4775_s18 + $0xa0] sm:$0xff] %v4084_v33  ;;  %4095 = vpow2.f32 %v3248_v31  ;;  %v3249_v37 = vmul.f32 -1.442695, %v1975_v32  ;;  %v3456_v23 = vpop.f32.mrb[79].mxu0  ;;  %v3974_v33 = vld [vmem:[%s4463_s5 + $0x408] ss:$12 sps:$4 sm:$0xff]  }
 0x189   : > { %v4086_v38 = vpop.eup %4085  ;;  %v1554_v40 = vpop.f32.mrb[56].mxu1 }
 0x18a   : > { %v4088_v44 = vpop.eup %4087  ;;  %2867 = vst [vmem:[%s4775_s18 + $0xa8] sm:$0xff] %v4086_v38  ;;  %4097 = vpow2.f32 %v3249_v37  ;;  %v1555_v11 = vadd.f32 %v4716_v0, %v1554_v40  ;;  %v1556_v45 = vpop.f32.mrb[57].mxu1  ;;  %3566 = vmatmul.mubr.msk.bf16.gmra.mrb[188].mxu0 %vm1260_vm1, %v3989_v4  ;;  %v3975_v38 = vld [vmem:[%s4463_s5 + $0x424] ss:$12 sps:$4 sm:$0xff]   ;;  %v3979_v4 = vld [vmem:[%s4463_s5 + $0x43c] ss:$12 sps:$4 sm:$0xff]  }
 0x18b   : > { %v2576_v39 = vadd.f32 1.0, %v4088_v44  ;;  %v1557_v49 = vpop.f32.mrb[58].mxu1  ;;  %3569 = vmatprep.mubr.msk.bf16.mxu0 %vm4399_vm0, %v4398_v3 }
 0x18c   : > { %v4090_v54 = vpop.eup %4089  ;;  %v1980_v20 = vadd.f32 %v4860_v43, %v1555_v11  ;;  %v1558_v55 = vadd.f32 %v4716_v0, %v1557_v49  ;;  %v1559_v58 = vpop.f32.mrb[59].mxu1 }
 0x18d   : > { %4099 = vrcp.f32 %v2576_v39  ;;  %v2577_v60 = vadd.f32 1.0, %v4090_v54  ;;  %v4956_v43 = vpop.f32.mrb[80].mxu0 }
 0x18e   : > { %v3250_v59 = vmul.f32 -1.442695, %v1980_v20  ;;  %v1983_v61 = vadd.f32 %v4864_v34, %v1558_v55  ;;  %1769 = vmatmul.mubr.bf16.gmra.mrb[164].mxu1 %v3966_v48  ;;  %v3459_v29 = vpop.f32.mrb[81].mxu0 }
 0x18f   : > { %v4092_v62 = vpop.eup %4091  ;;  %4101 = vrcp.f32 %v2577_v60  ;;  %1776 = vmatprep.mubr.bf16.mxu1 %v3967_v51  ;;  %v4960_v46 = vpop.f32.mrb[82].mxu0 }
 0x190   : > { %2868 = vst [vmem:[%s4775_s18 + $0xb0] sm:$0xff] %v4092_v62  ;;  %4103 = vpow2.f32 %v3250_v59  ;;  %v3251_v2 = vmul.f32 -1.442695, %v1983_v61  ;;  %v3460_v41 = vpop.f32.mrb[83].mxu0  ;;  %v3978_v61 = vld [vmem:[%s4463_s5 + $0x420] ss:$12 sps:$4 sm:$0xff]  }
 0x191   : > { %v4094_v7 = vpop.eup %4093  ;;  %v1562_v8 = vpop.f32.mrb[60].mxu1 }
 0x192   : > { %v4096_v9 = vpop.eup %4095  ;;  %2869 = vst [vmem:[%s4775_s18 + $0xb8] sm:$0xff] %v4094_v7  ;;  %4105 = vpow2.f32 %v3251_v2  ;;  %v1563_v34 = vadd.f32 %v4716_v0, %v1562_v8  ;;  %v1564_v10 = vpop.f32.mrb[61].mxu1  ;;  %3570 = vmatmul.mubr.msk.bf16.gmra.mrb[192].mxu0 %vm1260_vm1, %v3993_v56 }
 0x193   : > { %v2578_v13 = vadd.f32 1.0, %v4096_v9  ;;  %v1565_v14 = vpop.f32.mrb[62].mxu1 }
 0x194   : > { %v4098_v17 = vpop.eup %4097  ;;  %v1988_v47 = vadd.f32 %v4876_v22, %v1563_v34  ;;  %v1566_v19 = vadd.f32 %v4716_v0, %v1565_v14  ;;  %v1567_v50 = vpop.f32.mrb[63].mxu1 }
 0x195   : > { %4107 = vrcp.f32 %v2578_v13  ;;  %v2579_v6 = vadd.f32 1.0, %v4098_v17  ;;  %v4972_v22 = vpop.f32.mrb[84].mxu0 }
 0x196   : > { %v3252_v21 = vmul.f32 -1.442695, %v1988_v47  ;;  %v1991_v24 = vadd.f32 %v4880_v63, %v1566_v19  ;;  %1777 = vmatmul.mubr.bf16.gmra.mrb[168].mxu1 %v3970_v12  ;;  %v3463_v27 = vpop.f32.mrb[85].mxu0  ;;  %v4982_v63 = vld [vmem:[%s5318_s2] ss:$0 sm:$0xff] }
 0x197   : > { %v4100_v25 = vpop.eup %4099  ;;  %4109 = vrcp.f32 %v2579_v6  ;;  %1784 = vmatprep.mubr.bf16.mxu1 %v3971_v15  ;;  %v4976_v3 = vpop.f32.mrb[86].mxu0  ;;  %v3983_v27 = vld [vmem:[%s4463_s5 + $0x454] ss:$12 sps:$4 sm:$0xff]  }
 0x198   : > { %2870 = vst [vmem:[%s4775_s18 + $0xc0] sm:$0xff] %v4100_v25  ;;  %4111 = vpow2.f32 %v3252_v21  ;;  %v3253_v0 = vmul.f32 -1.442695, %v1991_v24  ;;  %v3464_v37 = vpop.f32.mrb[87].mxu0  ;;  %v3982_v21 = vld [vmem:[%s4463_s5 + $0x438] ss:$12 sps:$4 sm:$0xff]  }
 0x199   : > { %v4102_v28 = vpop.eup %4101  ;;  %v1570_v30 = vpop.f32.mrb[64].mxu1 }
 0x19a   : > { %v4104_v53 = vpop.eup %4103  ;;  %2871 = vst [vmem:[%s4775_s18 + $0xc8] sm:$0xff] %v4102_v28  ;;  %4113 = vpow2.f32 %v3253_v0  ;;  %v1571_v31 = vadd.f32 %v4982_v63, %v1570_v30  ;;  %v1572_v32 = vpop.f32.mrb[65].mxu1 }
 0x19b   : > { %v2580_v5 = vadd.f32 1.0, %v4104_v53  ;;  %v1573_v36 = vpop.f32.mrb[66].mxu1  ;;  %v4991_v51 = vpop.f32.mrb[88].mxu0 }
 0x19c   : > { %v4106_v40 = vpop.eup %4105  ;;  %v1996_v44 = vadd.f32 %v4892_v57, %v1571_v31  ;;  %v1574_v11 = vadd.f32 %v4982_v63, %v1573_v36  ;;  %v1575_v45 = vpop.f32.mrb[67].mxu1 }
 0x19d   : > { %4115 = vrcp.f32 %v2580_v5  ;;  %v2581_v48 = vadd.f32 1.0, %v4106_v40  ;;  %v3467_v54 = vpop.f32.mrb[89].mxu0 }
 0x19e   : > { %v3254_v23 = vmul.f32 -1.442695, %v1996_v44  ;;  %v1999_v39 = vadd.f32 %v4896_v26, %v1574_v11  ;;  %1785 = vmatmul.mubr.bf16.gmra.mrb[172].mxu1 %v3974_v33  ;;  %v4994_v58 = vpop.f32.mrb[90].mxu0 }
 0x19f   : > { %v4108_v49 = vpop.eup %4107  ;;  %4117 = vrcp.f32 %v2581_v48  ;;  %1792 = vmatprep.mubr.bf16.mxu1 %v3975_v38  ;;  %v3468_v62 = vpop.f32.mrb[91].mxu0  ;;  %v3986_v48 = vld [vmem:[%s4463_s5 + $0x450] ss:$12 sps:$4 sm:$0xff]  }
 0x1a0   : > { %2872 = vst [vmem:[%s4775_s18 + $0xd0] sm:$0xff] %v4108_v49  ;;  %4119 = vpow2.f32 %v3254_v23  ;;  %v3255_v57 = vmul.f32 -1.442695, %v1999_v39  ;;  %v5003_v14 = vpop.f32.mrb[92].mxu0 }
 0x1a1   : > { %v4110_v20 = vpop.eup %4109  ;;  %v1578_v55 = vpop.f32.mrb[68].mxu1 }
 0x1a2   : > { %v4112_v60 = vpop.eup %4111  ;;  %2873 = vst [vmem:[%s4775_s18 + $0xd8] sm:$0xff] %v4110_v20  ;;  %4121 = vpow2.f32 %v3255_v57  ;;  %v1579_v26 = vadd.f32 %v4982_v63, %v1578_v55  ;;  %v1580_v59 = vpop.f32.mrb[69].mxu1  ;;  %v3987_v57 = vld [vmem:[%s4463_s5 + $0x46c] ss:$12 sps:$4 sm:$0xff]  }
 0x1a3   : > { %v2582_v2 = vadd.f32 1.0, %v4112_v60  ;;  %v1581_v29 = vpop.f32.mrb[70].mxu1  ;;  %v3471_v15 = vpop.f32.mrb[93].mxu0 }
 0x1a4   : > { %v4114_v7 = vpop.eup %4113  ;;  %v2004_v8 = vadd.f32 %v4908_v1, %v1579_v26  ;;  %v1582_v9 = vadd.f32 %v4982_v63, %v1581_v29  ;;  %v1583_v34 = vpop.f32.mrb[71].mxu1 }
 0x1a5   : > { %4123 = vrcp.f32 %v2582_v2  ;;  %v2583_v10 = vadd.f32 1.0, %v4114_v7  ;;  %v5006_v19 = vpop.f32.mrb[94].mxu0 }
 0x1a6   : > { %v3256_v12 = vmul.f32 -1.442695, %v2004_v8  ;;  %v2007_v41 = vadd.f32 %v4912_v52, %v1582_v9  ;;  %1793 = vmatmul.mubr.bf16.gmra.mrb[176].mxu1 %v3978_v61  ;;  %v3472_v24 = vpop.f32.mrb[95].mxu0 }
 0x1a7   : > { %v4116_v13 = vpop.eup %4115  ;;  %4125 = vrcp.f32 %v2583_v10  ;;  %1800 = vmatprep.mubr.bf16.mxu1 %v3979_v4  ;;  %v5015_v5 = vpop.f32.mrb[96].mxu0  ;;  %v3990_v10 = vld [vmem:[%s4463_s5 + $0x468] ss:$12 sps:$4 sm:$0xff]  }
 0x1a8   : > { %2874 = vst [vmem:[%s4775_s18 + $0xe0] sm:$0xff] %v4116_v13  ;;  %4127 = vpow2.f32 %v3256_v12  ;;  %v3257_v1 = vmul.f32 -1.442695, %v2007_v41  ;;  %v3475_v36 = vpop.f32.mrb[97].mxu0 }
 0x1a9   : > { %v4118_v17 = vpop.eup %4117  ;;  %v1586_v47 = vpop.f32.mrb[72].mxu1 }
 0x1aa   : > { %v4120_v50 = vpop.eup %4119  ;;  %2875 = vst [vmem:[%s4775_s18 + $0xe8] sm:$0xff] %v4118_v17  ;;  %4129 = vpow2.f32 %v3257_v1  ;;  %v1587_v52 = vadd.f32 %v4982_v63, %v1586_v47  ;;  %v1588_v6 = vpop.f32.mrb[73].mxu1  ;;  %v3991_v1 = vld [vmem:[%s4463_s5 + $0x484] ss:$12 sps:$4 sm:$0xff]  }
 0x1ab   : > { %v2584_v25 = vadd.f32 1.0, %v4120_v50  ;;  %v1589_v0 = vpop.f32.mrb[74].mxu1  ;;  %v5018_v44 = vpop.f32.mrb[98].mxu0 }
 0x1ac   : > { %v4122_v56 = vpop.eup %4121  ;;  %v2012_v28 = vadd.f32 %v4924_v18, %v1587_v52  ;;  %v1590_v30 = vadd.f32 %v4982_v63, %v1589_v0  ;;  %v1591_v53 = vpop.f32.mrb[75].mxu1 }
 0x1ad   : > { %4131 = vrcp.f32 %v2584_v25  ;;  %v2585_v31 = vadd.f32 1.0, %v4122_v56  ;;  %v3476_v23 = vpop.f32.mrb[99].mxu0 }
 0x1ae   : > { %v3258_v32 = vmul.f32 -1.442695, %v2012_v28  ;;  %v2015_v33 = vadd.f32 %v4928_v16, %v1590_v30  ;;  %1801 = vmatmul.mubr.bf16.gmra.mrb[180].mxu1 %v3982_v21  ;;  %v5027_v2 = vpop.f32.mrb[100].mxu0 }
 0x1af   : > { %v4124_v37 = vpop.eup %4123  ;;  %4133 = vrcp.f32 %v2585_v31  ;;  %1808 = vmatprep.mubr.bf16.mxu1 %v3983_v27  ;;  %v3479_v29 = vpop.f32.mrb[101].mxu0  ;;  %v3994_v31 = vld [vmem:[%s4463_s5 + $0x480] ss:$12 sps:$4 sm:$0xff]  }
 0x1b0   : > { %2876 = vst [vmem:[%s4775_s18 + $0xf0] sm:$0xff] %v4124_v37  ;;  %4135 = vpow2.f32 %v3258_v32  ;;  %v3259_v18 = vmul.f32 -1.442695, %v2015_v33  ;;  %v5030_v8 = vpop.f32.mrb[102].mxu0 }
 0x1b1   : > { %v4126_v38 = vpop.eup %4125  ;;  %v1594_v40 = vpop.f32.mrb[76].mxu1 }
 0x1b2   : > { %v4128_v11 = vpop.eup %4127  ;;  %2877 = vst [vmem:[%s4775_s18 + $0xf8] sm:$0xff] %v4126_v38  ;;  %4137 = vpow2.f32 %v3259_v18  ;;  %v1595_v16 = vadd.f32 %v4982_v63, %v1594_v40  ;;  %v1596_v45 = vpop.f32.mrb[77].mxu1 }
 0x1b3   : > { %v2586_v39 = vadd.f32 1.0, %v4128_v11  ;;  %v1597_v49 = vpop.f32.mrb[78].mxu1  ;;  %v3480_v12 = vpop.f32.mrb[103].mxu0 }
 0x1b4   : > { %v4130_v54 = vpop.eup %4129  ;;  %v2020_v20 = vadd.f32 %v4940_v35, %v1595_v16  ;;  %v1598_v55 = vadd.f32 %v4982_v63, %v1597_v49  ;;  %v1599_v60 = vpop.f32.mrb[79].mxu1 }
 0x1b5   : > { %4139 = vrcp.f32 %v2586_v39  ;;  %v2587_v26 = vadd.f32 1.0, %v4130_v54  ;;  %v5039_v25 = vpop.f32.mrb[104].mxu0 }
 0x1b6   : > { %v3260_v59 = vmul.f32 -1.442695, %v2020_v20  ;;  %v2023_v61 = vadd.f32 %v4944_v42, %v1598_v55  ;;  %1809 = vmatmul.mubr.bf16.gmra.mrb[184].mxu1 %v3986_v48 }
 0x1b7   : > { %v4132_v62 = vpop.eup %4131  ;;  %4141 = vrcp.f32 %v2587_v26  ;;  %1816 = vmatprep.mubr.bf16.mxu1 %v3987_v57 }
 0x1b8   : > { %2878 = vst [vmem:[%s4775_s18 + $0x100] sm:$0xff] %v4132_v62  ;;  %4143 = vpow2.f32 %v3260_v59  ;;  %v3261_v35 = vmul.f32 -1.442695, %v2023_v61 }
 0x1b9   : > { %v4134_v4 = vpop.eup %4133  ;;  %v1602_v7 = vpop.f32.mrb[80].mxu1 }
 0x1ba   : > { %v4136_v9 = vpop.eup %4135  ;;  %2879 = vst [vmem:[%s4775_s18 + $0x108] sm:$0xff] %v4134_v4  ;;  %4145 = vpow2.f32 %v3261_v35  ;;  %v1603_v42 = vadd.f32 %v4982_v63, %v1602_v7  ;;  %v1604_v34 = vpop.f32.mrb[81].mxu1 }
 0x1bb   : > { %v2588_v41 = vadd.f32 1.0, %v4136_v9  ;;  %v1605_v13 = vpop.f32.mrb[82].mxu1 }
 0x1bc   : > { %v4138_v15 = vpop.eup %4137  ;;  %v2028_v17 = vadd.f32 %v4956_v43, %v1603_v42  ;;  %v1606_v47 = vadd.f32 %v4982_v63, %v1605_v13  ;;  %v1607_v50 = vpop.f32.mrb[83].mxu1 }
 0x1bd   : > { %4147 = vrcp.f32 %v2588_v41  ;;  %v2589_v52 = vadd.f32 1.0, %v4138_v15  ;;  %v3483_v43 = vpop.f32.mrb[105].mxu0 }
 0x1be   : > { %v3262_v6 = vmul.f32 -1.442695, %v2028_v17  ;;  %v2031_v21 = vadd.f32 %v4960_v46, %v1606_v47  ;;  %1817 = vmatmul.mubr.bf16.gmra.mrb[188].mxu1 %v3990_v10  ;;  %v5042_v28 = vpop.f32.mrb[106].mxu0 }
 0x1bf   : > { %v4140_v24 = vpop.eup %4139  ;;  %4149 = vrcp.f32 %v2589_v52  ;;  %1824 = vmatprep.mubr.bf16.mxu1 %v3991_v1  ;;  %v3484_v32 = vpop.f32.mrb[107].mxu0 }
 0x1c0   : > { %2880 = vst [vmem:[%s4775_s18 + $0x110] sm:$0xff] %v4140_v24  ;;  %4151 = vpow2.f32 %v3262_v6  ;;  %v3263_v0 = vmul.f32 -1.442695, %v2031_v21  ;;  %v5050_v23 = vpop.f32.mrb[108].mxu0 }
 0x1c1   : > { %v4142_v27 = vpop.eup %4141  ;;  %v1610_v56 = vpop.f32.mrb[84].mxu1 }
 0x1c2   : > { %v4144_v30 = vpop.eup %4143  ;;  %2881 = vst [vmem:[%s4775_s18 + $0x118] sm:$0xff] %v4142_v27  ;;  %4153 = vpow2.f32 %v3263_v0  ;;  %v1611_v46 = vadd.f32 %v4982_v63, %v1610_v56  ;;  %v1612_v53 = vpop.f32.mrb[85].mxu1 }
 0x1c3   : > { %v2590_v33 = vadd.f32 1.0, %v4144_v30  ;;  %v1613_v37 = vpop.f32.mrb[86].mxu1  ;;  %v3487_v49 = vpop.f32.mrb[109].mxu0 }
 0x1c4   : > { %v4146_v18 = vpop.eup %4145  ;;  %v2036_v36 = vadd.f32 %v4972_v22, %v1611_v46  ;;  %v1614_v38 = vadd.f32 %v4982_v63, %v1613_v37  ;;  %v1615_v40 = vpop.f32.mrb[87].mxu1 }
 0x1c5   : > { %4155 = vrcp.f32 %v2590_v33  ;;  %v2591_v11 = vadd.f32 1.0, %v4146_v18  ;;  %v5053_v54 = vpop.f32.mrb[110].mxu0 }
 0x1c6   : > { %v3264_v16 = vmul.f32 -1.442695, %v2036_v36  ;;  %v2039_v45 = vadd.f32 %v4976_v3, %v1614_v38  ;;  %1825 = vmatmul.mubr.bf16.gmra.mrb[192].mxu1 %v3994_v31  ;;  %v3488_v60 = vpop.f32.mrb[111].mxu0 }
 0x1c7   : > { %v4148_v48 = vpop.eup %4147  ;;  %4157 = vrcp.f32 %v2591_v11  ;;  %v5060_v34 = vpop.f32.mrb[112].mxu0 }
 0x1c8   : > { %2882 = vst [vmem:[%s4775_s18 + $0x120] sm:$0xff] %v4148_v48  ;;  %4159 = vpow2.f32 %v3264_v16  ;;  %v3265_v39 = vmul.f32 -1.442695, %v2039_v45  ;;  %v3491_v12 = vpop.f32.mrb[113].mxu0 }
 0x1c9   : > { %v4150_v57 = vpop.eup %4149  ;;  %v1618_v22 = vpop.f32.mrb[88].mxu1 }
 0x1ca   : > { %v4152_v20 = vpop.eup %4151  ;;  %2883 = vst [vmem:[%s4775_s18 + $0x128] sm:$0xff] %v4150_v57  ;;  %4161 = vpow2.f32 %v3265_v39  ;;  %v1619_v55 = vadd.f32 %v4982_v63, %v1618_v22  ;;  %v1620_v3 = vpop.f32.mrb[89].mxu1 }
 0x1cb   : > { %v2592_v26 = vadd.f32 1.0, %v4152_v20  ;;  %v1621_v59 = vpop.f32.mrb[90].mxu1 }
 0x1cc   : > { %v4154_v61 = vpop.eup %4153  ;;  %v2044_v62 = vadd.f32 %v4991_v51, %v1619_v55  ;;  %v1622_v35 = vadd.f32 %v4982_v63, %v1621_v59  ;;  %v1623_v29 = vpop.f32.mrb[91].mxu1 }
 0x1cd   : > { %4163 = vrcp.f32 %v2592_v26  ;;  %v2593_v4 = vadd.f32 1.0, %v4154_v61  ;;  %v5063_v51 = vpop.f32.mrb[114].mxu0 }
 0x1ce   : > { %v3266_v7 = vmul.f32 -1.442695, %v2044_v62  ;;  %v2047_v9 = vadd.f32 %v4994_v58, %v1622_v35  ;;  %v3492_v58 = vpop.f32.mrb[115].mxu0 }
 0x1cf   : > { %v4156_v42 = vpop.eup %4155  ;;  %4165 = vrcp.f32 %v2593_v4  ;;  %v5070_v30 = vpop.f32.mrb[116].mxu0 }
 0x1d0   : > { %2884 = vst [vmem:[%s4775_s18 + $0x130] sm:$0xff] %v4156_v42  ;;  %4167 = vpow2.f32 %v3266_v7  ;;  %v3267_v10 = vmul.f32 -1.442695, %v2047_v9  ;;  %v3495_v53 = vpop.f32.mrb[117].mxu0 }
 0x1d1   : > { %v4158_v41 = vpop.eup %4157  ;;  %v1626_v13 = vpop.f32.mrb[92].mxu1 }
 0x1d2   : > { %v4160_v1 = vpop.eup %4159  ;;  %2885 = vst [vmem:[%s4775_s18 + $0x138] sm:$0xff] %v4158_v41  ;;  %4169 = vpow2.f32 %v3267_v10  ;;  %v1627_v15 = vadd.f32 %v4982_v63, %v1626_v13  ;;  %v1628_v17 = vpop.f32.mrb[93].mxu1 }
 0x1d3   : > { %v2594_v47 = vadd.f32 1.0, %v4160_v1  ;;  %v1629_v50 = vpop.f32.mrb[94].mxu1 }
 0x1d4   : > { %v4162_v52 = vpop.eup %4161  ;;  %v2052_v6 = vadd.f32 %v5003_v14, %v1627_v15  ;;  %v1630_v21 = vadd.f32 %v4982_v63, %v1629_v50  ;;  %v1631_v24 = vpop.f32.mrb[95].mxu1 }
 0x1d5   : > { %4171 = vrcp.f32 %v2594_v47  ;;  %v2595_v0 = vadd.f32 1.0, %v4162_v52  ;;  %v5073_v14 = vpop.f32.mrb[118].mxu0 }
 0x1d6   : > { %v3268_v43 = vmul.f32 -1.442695, %v2052_v6  ;;  %v2055_v27 = vadd.f32 %v5006_v19, %v1630_v21  ;;  %v3496_v19 = vpop.f32.mrb[119].mxu0 }
 0x1d7   : > { %v4164_v56 = vpop.eup %4163  ;;  %4173 = vrcp.f32 %v2595_v0  ;;  %v5080_v22 = vpop.f32.mrb[120].mxu0 }
 0x1d8   : > { %2886 = vst [vmem:[%s4775_s18 + $0x140] sm:$0xff] %v4164_v56  ;;  %4175 = vpow2.f32 %v3268_v43  ;;  %v3269_v46 = vmul.f32 -1.442695, %v2055_v27  ;;  %v3499_v55 = vpop.f32.mrb[121].mxu0 }
 0x1d9   : > { %v4166_v31 = vpop.eup %4165  ;;  %v1634_v32 = vpop.f32.mrb[96].mxu1 }
 0x1da   : > { %v4168_v33 = vpop.eup %4167  ;;  %2887 = vst [vmem:[%s4775_s18 + $0x148] sm:$0xff] %v4166_v31  ;;  %4177 = vpow2.f32 %v3269_v46  ;;  %v1635_v37 = vadd.f32 %v4982_v63, %v1634_v32  ;;  %v1636_v18 = vpop.f32.mrb[97].mxu1 }
 0x1db   : > { %v2596_v36 = vadd.f32 1.0, %v4168_v33  ;;  %v1637_v38 = vpop.f32.mrb[98].mxu1 }
 0x1dc   : > { %v4170_v40 = vpop.eup %4169  ;;  %v2060_v11 = vadd.f32 %v5015_v5, %v1635_v37  ;;  %v1638_v16 = vadd.f32 %v4982_v63, %v1637_v38  ;;  %v1639_v45 = vpop.f32.mrb[99].mxu1 }
 0x1dd   : > { %4179 = vrcp.f32 %v2596_v36  ;;  %v2597_v48 = vadd.f32 1.0, %v4170_v40  ;;  %v5083_v5 = vpop.f32.mrb[122].mxu0 }
 0x1de   : > { %v3270_v39 = vmul.f32 -1.442695, %v2060_v11  ;;  %v2063_v49 = vadd.f32 %v5018_v44, %v1638_v16  ;;  %v3500_v44 = vpop.f32.mrb[123].mxu0 }
 0x1df   : > { %v4172_v57 = vpop.eup %4171  ;;  %4181 = vrcp.f32 %v2597_v48  ;;  %v5090_v13 = vpop.f32.mrb[124].mxu0 }
 0x1e0   : > { %2888 = vst [vmem:[%s4775_s18 + $0x150] sm:$0xff] %v4172_v57  ;;  %4183 = vpow2.f32 %v3270_v39  ;;  %v3271_v20 = vmul.f32 -1.442695, %v2063_v49  ;;  %v3503_v15 = vpop.f32.mrb[125].mxu0 }
 0x1e1   : > { %v4174_v3 = vpop.eup %4173  ;;  %v1642_v60 = vpop.f32.mrb[100].mxu1 }
 0x1e2   : > { %v4176_v26 = vpop.eup %4175  ;;  %2889 = vst [vmem:[%s4775_s18 + $0x158] sm:$0xff] %v4174_v3  ;;  %4185 = vpow2.f32 %v3271_v20  ;;  %v1643_v59 = vadd.f32 %v4982_v63, %v1642_v60  ;;  %v1644_v61 = vpop.f32.mrb[101].mxu1 }
 0x1e3   : > { %v2598_v62 = vadd.f32 1.0, %v4176_v26  ;;  %v1645_v35 = vpop.f32.mrb[102].mxu1 }
 0x1e4   : > { %v4178_v29 = vpop.eup %4177  ;;  %v2068_v4 = vadd.f32 %v5027_v2, %v1643_v59  ;;  %v1646_v7 = vadd.f32 %v4982_v63, %v1645_v35  ;;  %v1647_v9 = vpop.f32.mrb[103].mxu1 }
 0x1e5   : > { %4187 = vrcp.f32 %v2598_v62  ;;  %v2599_v42 = vadd.f32 1.0, %v4178_v29  ;;  %v5093_v2 = vpop.f32.mrb[126].mxu0 }
 0x1e6   : > { %v3272_v10 = vmul.f32 -1.442695, %v2068_v4  ;;  %v2071_v12 = vadd.f32 %v5030_v8, %v1646_v7  ;;  %v3504_v8 = vpop.f32.mrb[127].mxu0 }
 0x1e7   : > { %v4180_v41 = vpop.eup %4179  ;;  %4189 = vrcp.f32 %v2599_v42  ;;  %v5100_v32 = vpop.f32.mrb[128].mxu0 }
 0x1e8   : > { %2890 = vst [vmem:[%s4775_s18 + $0x160] sm:$0xff] %v4180_v41  ;;  %4191 = vpow2.f32 %v3272_v10  ;;  %v3273_v1 = vmul.f32 -1.442695, %v2071_v12  ;;  %v3507_v37 = vpop.f32.mrb[129].mxu0 }
 0x1e9   : > { %v4182_v17 = vpop.eup %4181  ;;  %v1650_v58 = vpop.f32.mrb[104].mxu1 }
 0x1ea   : > { %v4184_v47 = vpop.eup %4183  ;;  %2891 = vst [vmem:[%s4775_s18 + $0x168] sm:$0xff] %v4182_v17  ;;  %4193 = vpow2.f32 %v3273_v1  ;;  %v1651_v50 = vadd.f32 %v4982_v63, %v1650_v58  ;;  %v1652_v52 = vpop.f32.mrb[105].mxu1 }
 0x1eb   : > { %v2600_v6 = vadd.f32 1.0, %v4184_v47  ;;  %v1653_v21 = vpop.f32.mrb[106].mxu1 }
 0x1ec   : > { %v4186_v24 = vpop.eup %4185  ;;  %v2076_v0 = vadd.f32 %v5039_v25, %v1651_v50  ;;  %v1654_v43 = vadd.f32 %v4982_v63, %v1653_v21  ;;  %v1655_v27 = vpop.f32.mrb[107].mxu1 }
 0x1ed   : > { %4195 = vrcp.f32 %v2600_v6  ;;  %v2601_v56 = vadd.f32 1.0, %v4186_v24  ;;  %v5103_v25 = vpop.f32.mrb[130].mxu0 }
 0x1ee   : > { %v3274_v46 = vmul.f32 -1.442695, %v2076_v0  ;;  %v2079_v53 = vadd.f32 %v5042_v28, %v1654_v43  ;;  %v3508_v28 = vpop.f32.mrb[131].mxu0 }
 0x1ef   : > { %v4188_v31 = vpop.eup %4187  ;;  %4197 = vrcp.f32 %v2601_v56  ;;  %v5110_v60 = vpop.f32.mrb[132].mxu0 }
 0x1f0   : > { %2892 = vst [vmem:[%s4775_s18 + $0x170] sm:$0xff] %v4188_v31  ;;  %4199 = vpow2.f32 %v3274_v46  ;;  %v3275_v33 = vmul.f32 -1.442695, %v2079_v53  ;;  %v3511_v59 = vpop.f32.mrb[133].mxu0 }
 0x1f1   : > { %v4190_v18 = vpop.eup %4189  ;;  %v1658_v19 = vpop.f32.mrb[108].mxu1 }
 0x1f2   : > { %v4192_v36 = vpop.eup %4191  ;;  %2893 = vst [vmem:[%s4775_s18 + $0x178] sm:$0xff] %v4190_v18  ;;  %4201 = vpow2.f32 %v3275_v33  ;;  %v1659_v38 = vadd.f32 %v4982_v63, %v1658_v19  ;;  %v1660_v40 = vpop.f32.mrb[109].mxu1 }
 0x1f3   : > { %v2602_v11 = vadd.f32 1.0, %v4192_v36  ;;  %v1661_v16 = vpop.f32.mrb[110].mxu1 }
 0x1f4   : > { %v4194_v45 = vpop.eup %4193  ;;  %v2084_v48 = vadd.f32 %v5050_v23, %v1659_v38  ;;  %v1662_v39 = vadd.f32 %v4982_v63, %v1661_v16  ;;  %v1663_v49 = vpop.f32.mrb[111].mxu1 }
 0x1f5   : > { %4203 = vrcp.f32 %v2602_v11  ;;  %v2603_v57 = vadd.f32 1.0, %v4194_v45  ;;  %v5113_v23 = vpop.f32.mrb[134].mxu0 }
 0x1f6   : > { %v3276_v20 = vmul.f32 -1.442695, %v2084_v48  ;;  %v2087_v55 = vadd.f32 %v5053_v54, %v1662_v39  ;;  %v3512_v54 = vpop.f32.mrb[135].mxu0 }
 0x1f7   : > { %v4196_v3 = vpop.eup %4195  ;;  %4205 = vrcp.f32 %v2603_v57  ;;  %v5120_v58 = vpop.f32.mrb[136].mxu0 }
 0x1f8   : > { %2894 = vst [vmem:[%s4775_s18 + $0x180] sm:$0xff] %v4196_v3  ;;  %4207 = vpow2.f32 %v3276_v20  ;;  %v3277_v26 = vmul.f32 -1.442695, %v2087_v55  ;;  %v3515_v50 = vpop.f32.mrb[137].mxu0 }
 0x1f9   : > { %v4198_v61 = vpop.eup %4197  ;;  %v1666_v44 = vpop.f32.mrb[112].mxu1 }
 0x1fa   : > { %v4200_v62 = vpop.eup %4199  ;;  %2895 = vst [vmem:[%s4775_s18 + $0x188] sm:$0xff] %v4198_v61  ;;  %4209 = vpow2.f32 %v3277_v26  ;;  %v1667_v35 = vadd.f32 %v4982_v63, %v1666_v44  ;;  %v1668_v29 = vpop.f32.mrb[113].mxu1 }
 0x1fb   : > { %v2604_v4 = vadd.f32 1.0, %v4200_v62  ;;  %v1669_v7 = vpop.f32.mrb[114].mxu1 }
 0x1fc   : > { %v4202_v9 = vpop.eup %4201  ;;  %v2092_v42 = vadd.f32 %v5060_v34, %v1667_v35  ;;  %v1670_v10 = vadd.f32 %v4982_v63, %v1669_v7  ;;  %v1671_v12 = vpop.f32.mrb[115].mxu1 }
 0x1fd   : > { %4211 = vrcp.f32 %v2604_v4  ;;  %v2605_v41 = vadd.f32 1.0, %v4202_v9  ;;  %v5123_v34 = vpop.f32.mrb[138].mxu0 }
 0x1fe   : > { %v3278_v1 = vmul.f32 -1.442695, %v2092_v42  ;;  %v2095_v15 = vadd.f32 %v5063_v51, %v1670_v10  ;;  %v3516_v51 = vpop.f32.mrb[139].mxu0 }
 0x1ff   : > { %v4204_v17 = vpop.eup %4203  ;;  %4213 = vrcp.f32 %v2605_v41  ;;  %v5130_v19 = vpop.f32.mrb[140].mxu0 }
 0x200   : > { %2896 = vst [vmem:[%s4775_s18 + $0x190] sm:$0xff] %v4204_v17  ;;  %4215 = vpow2.f32 %v3278_v1  ;;  %v3279_v47 = vmul.f32 -1.442695, %v2095_v15  ;;  %v3519_v38 = vpop.f32.mrb[141].mxu0 }
 0x201   : > { %v4206_v52 = vpop.eup %4205  ;;  %v1674_v8 = vpop.f32.mrb[116].mxu1 }
 0x202   : > { %v4208_v6 = vpop.eup %4207  ;;  %2897 = vst [vmem:[%s4775_s18 + $0x198] sm:$0xff] %v4206_v52  ;;  %4217 = vpow2.f32 %v3279_v47  ;;  %v1675_v21 = vadd.f32 %v4982_v63, %v1674_v8  ;;  %v1676_v24 = vpop.f32.mrb[117].mxu1 }
 0x203   : > { %v2606_v0 = vadd.f32 1.0, %v4208_v6  ;;  %v1677_v43 = vpop.f32.mrb[118].mxu1 }
 0x204   : > { %v4210_v27 = vpop.eup %4209  ;;  %v2100_v56 = vadd.f32 %v5070_v30, %v1675_v21  ;;  %v1678_v46 = vadd.f32 %v4982_v63, %v1677_v43  ;;  %v1679_v53 = vpop.f32.mrb[119].mxu1 }
 0x205   : > { %4219 = vrcp.f32 %v2606_v0  ;;  %v2607_v31 = vadd.f32 1.0, %v4210_v27  ;;  %v5133_v30 = vpop.f32.mrb[142].mxu0 }
 0x206   : > { %v3280_v33 = vmul.f32 -1.442695, %v2100_v56  ;;  %v2103_v37 = vadd.f32 %v5073_v14, %v1678_v46  ;;  %v3520_v14 = vpop.f32.mrb[143].mxu0 }
 0x207   : > { %v4212_v18 = vpop.eup %4211  ;;  %4221 = vrcp.f32 %v2607_v31  ;;  %v5140_v44 = vpop.f32.mrb[144].mxu0 }
 0x208   : > { %2898 = vst [vmem:[%s4775_s18 + $0x1a0] sm:$0xff] %v4212_v18  ;;  %4223 = vpow2.f32 %v3280_v33  ;;  %v3281_v36 = vmul.f32 -1.442695, %v2103_v37  ;;  %v3523_v35 = vpop.f32.mrb[145].mxu0 }
 0x209   : > { %v4214_v40 = vpop.eup %4213  ;;  %v1682_v28 = vpop.f32.mrb[120].mxu1 }
 0x20a   : > { %v4216_v11 = vpop.eup %4215  ;;  %2899 = vst [vmem:[%s4775_s18 + $0x1a8] sm:$0xff] %v4214_v40  ;;  %4225 = vpow2.f32 %v3281_v36  ;;  %v1683_v16 = vadd.f32 %v4982_v63, %v1682_v28  ;;  %v1684_v45 = vpop.f32.mrb[121].mxu1 }
 0x20b   : > { %v2608_v48 = vadd.f32 1.0, %v4216_v11  ;;  %v1685_v39 = vpop.f32.mrb[122].mxu1 }
 0x20c   : > { %v4218_v49 = vpop.eup %4217  ;;  %v2108_v57 = vadd.f32 %v5080_v22, %v1683_v16  ;;  %v1686_v20 = vadd.f32 %v4982_v63, %v1685_v39  ;;  %v1687_v55 = vpop.f32.mrb[123].mxu1 }
 0x20d   : > { %4227 = vrcp.f32 %v2608_v48  ;;  %v2609_v3 = vadd.f32 1.0, %v4218_v49  ;;  %v5143_v22 = vpop.f32.mrb[146].mxu0 }
 0x20e   : > { %v3282_v26 = vmul.f32 -1.442695, %v2108_v57  ;;  %v2111_v59 = vadd.f32 %v5083_v5, %v1686_v20  ;;  %v3524_v5 = vpop.f32.mrb[147].mxu0 }
 0x20f   : > { %v4220_v61 = vpop.eup %4219  ;;  %4229 = vrcp.f32 %v2609_v3  ;;  %v5150_v8 = vpop.f32.mrb[148].mxu0 }
 0x210   : > { %2900 = vst [vmem:[%s4775_s18 + $0x1b0] sm:$0xff] %v4220_v61  ;;  %4231 = vpow2.f32 %v3282_v26  ;;  %v3283_v62 = vmul.f32 -1.442695, %v2111_v59  ;;  %v3527_v21 = vpop.f32.mrb[149].mxu0 }
 0x211   : > { %v4222_v29 = vpop.eup %4221  ;;  %v1690_v54 = vpop.f32.mrb[124].mxu1 }
 0x212   : > { %v4224_v4 = vpop.eup %4223  ;;  %2901 = vst [vmem:[%s4775_s18 + $0x1b8] sm:$0xff] %v4222_v29  ;;  %4233 = vpow2.f32 %v3283_v62  ;;  %v1691_v7 = vadd.f32 %v4982_v63, %v1690_v54  ;;  %v1692_v9 = vpop.f32.mrb[125].mxu1 }
 0x213   : > { %v2610_v42 = vadd.f32 1.0, %v4224_v4  ;;  %v1693_v10 = vpop.f32.mrb[126].mxu1 }
 0x214   : > { %v4226_v12 = vpop.eup %4225  ;;  %v2116_v41 = vadd.f32 %v5090_v13, %v1691_v7  ;;  %v1694_v1 = vadd.f32 %v4982_v63, %v1693_v10  ;;  %v1695_v15 = vpop.f32.mrb[127].mxu1 }
 0x215   : > { %4235 = vrcp.f32 %v2610_v42  ;;  %v2611_v17 = vadd.f32 1.0, %v4226_v12  ;;  %v5153_v13 = vpop.f32.mrb[150].mxu0 }
 0x216   : > { %v3284_v47 = vmul.f32 -1.442695, %v2116_v41  ;;  %v2119_v50 = vadd.f32 %v5093_v2, %v1694_v1  ;;  %v3528_v2 = vpop.f32.mrb[151].mxu0 }
 0x217   : > { %v4228_v52 = vpop.eup %4227  ;;  %4237 = vrcp.f32 %v2611_v17  ;;  %v5160_v28 = vpop.f32.mrb[152].mxu0 }
 0x218   : > { %2902 = vst [vmem:[%s4775_s18 + $0x1c0] sm:$0xff] %v4228_v52  ;;  %4239 = vpow2.f32 %v3284_v47  ;;  %v3285_v6 = vmul.f32 -1.442695, %v2119_v50  ;;  %v3531_v16 = vpop.f32.mrb[153].mxu0 }
 0x219   : > { %v4230_v24 = vpop.eup %4229  ;;  %v1698_v51 = vpop.f32.mrb[128].mxu1 }
 0x21a   : > { %v4232_v0 = vpop.eup %4231  ;;  %2903 = vst [vmem:[%s4775_s18 + $0x1c8] sm:$0xff] %v4230_v24  ;;  %4241 = vpow2.f32 %v3285_v6  ;;  %v1699_v43 = vadd.f32 %v4982_v63, %v1698_v51  ;;  %v1700_v27 = vpop.f32.mrb[129].mxu1 }
 0x21b   : > { %v2612_v56 = vadd.f32 1.0, %v4232_v0  ;;  %v1701_v46 = vpop.f32.mrb[130].mxu1 }
 0x21c   : > { %v4234_v53 = vpop.eup %4233  ;;  %v2124_v31 = vadd.f32 %v5100_v32, %v1699_v43  ;;  %v1702_v33 = vadd.f32 %v4982_v63, %v1701_v46  ;;  %v1703_v37 = vpop.f32.mrb[131].mxu1 }
 0x21d   : > { %4243 = vrcp.f32 %v2612_v56  ;;  %v2613_v18 = vadd.f32 1.0, %v4234_v53  ;;  %v5163_v32 = vpop.f32.mrb[154].mxu0  ;;  %v5189_v56 = vld [vmem:[%s5318_s2] ss:$0 sm:$0xff] }
 0x21e   : > { %v3286_v36 = vmul.f32 -1.442695, %v2124_v31  ;;  %v2127_v38 = vadd.f32 %v5103_v25, %v1702_v33  ;;  %v3532_v25 = vpop.f32.mrb[155].mxu0 }
 0x21f   : > { %v4236_v40 = vpop.eup %4235  ;;  %4245 = vrcp.f32 %v2613_v18  ;;  %v5170_v54 = vpop.f32.mrb[156].mxu0 }
 0x220   : > { %2904 = vst [vmem:[%s4775_s18 + $0x1d0] sm:$0xff] %v4236_v40  ;;  %4247 = vpow2.f32 %v3286_v36  ;;  %v3287_v11 = vmul.f32 -1.442695, %v2127_v38  ;;  %v3535_v7 = vpop.f32.mrb[157].mxu0 }
 0x221   : > { %v4238_v45 = vpop.eup %4237  ;;  %v1706_v14 = vpop.f32.mrb[132].mxu1 }
 0x222   : > { %v4240_v48 = vpop.eup %4239  ;;  %2905 = vst [vmem:[%s4775_s18 + $0x1d8] sm:$0xff] %v4238_v45  ;;  %4249 = vpow2.f32 %v3287_v11  ;;  %v1707_v39 = vadd.f32 %v4982_v63, %v1706_v14  ;;  %v1708_v49 = vpop.f32.mrb[133].mxu1 }
 0x223   : > { %v2614_v57 = vadd.f32 1.0, %v4240_v48  ;;  %v1709_v20 = vpop.f32.mrb[134].mxu1 }
 0x224   : > { %v4242_v55 = vpop.eup %4241  ;;  %v2132_v3 = vadd.f32 %v5110_v60, %v1707_v39  ;;  %v1710_v26 = vadd.f32 %v4982_v63, %v1709_v20  ;;  %v1711_v59 = vpop.f32.mrb[135].mxu1 }
 0x225   : > { %4251 = vrcp.f32 %v2614_v57  ;;  %v2615_v61 = vadd.f32 1.0, %v4242_v55  ;;  %v5173_v60 = vpop.f32.mrb[158].mxu0 }
 0x226   : > { %v3288_v62 = vmul.f32 -1.442695, %v2132_v3  ;;  %v2135_v35 = vadd.f32 %v5113_v23, %v1710_v26  ;;  %v3536_v23 = vpop.f32.mrb[159].mxu0 }
 0x227   : > { %v4244_v29 = vpop.eup %4243  ;;  %4253 = vrcp.f32 %v2615_v61  ;;  %v5180_v51 = vpop.f32.mrb[160].mxu0 }
 0x228   : > { %2906 = vst [vmem:[%s4775_s18 + $0x1e0] sm:$0xff] %v4244_v29  ;;  %4255 = vpow2.f32 %v3288_v62  ;;  %v3289_v4 = vmul.f32 -1.442695, %v2135_v35  ;;  %v3539_v43 = vpop.f32.mrb[161].mxu0 }
 0x229   : > { %v4246_v9 = vpop.eup %4245  ;;  %v1714_v5 = vpop.f32.mrb[136].mxu1 }
 0x22a   : > { %v4248_v42 = vpop.eup %4247  ;;  %2907 = vst [vmem:[%s4775_s18 + $0x1e8] sm:$0xff] %v4246_v9  ;;  %4257 = vpow2.f32 %v3289_v4  ;;  %v1715_v10 = vadd.f32 %v4982_v63, %v1714_v5  ;;  %v1716_v12 = vpop.f32.mrb[137].mxu1 }
 0x22b   : > { %v2616_v41 = vadd.f32 1.0, %v4248_v42  ;;  %v1717_v1 = vpop.f32.mrb[138].mxu1 }
 0x22c   : > { %v4250_v15 = vpop.eup %4249  ;;  %v2140_v17 = vadd.f32 %v5120_v58, %v1715_v10  ;;  %v1718_v47 = vadd.f32 %v4982_v63, %v1717_v1  ;;  %v1719_v50 = vpop.f32.mrb[139].mxu1 }
 0x22d   : > { %4259 = vrcp.f32 %v2616_v41  ;;  %v2617_v52 = vadd.f32 1.0, %v4250_v15  ;;  %v5183_v58 = vpop.f32.mrb[162].mxu0 }
 0x22e   : > { %v3290_v6 = vmul.f32 -1.442695, %v2140_v17  ;;  %v2143_v21 = vadd.f32 %v5123_v34, %v1718_v47  ;;  %v3540_v53 = vpop.f32.mrb[163].mxu0 }
 0x22f   : > { %v4252_v24 = vpop.eup %4251  ;;  %4261 = vrcp.f32 %v2617_v52  ;;  %v5195_v14 = vpop.f32.mrb[164].mxu0 }
 0x230   : > { %2908 = vst [vmem:[%s4775_s18 + $0x1f0] sm:$0xff] %v4252_v24  ;;  %4263 = vpow2.f32 %v3290_v6  ;;  %v3291_v0 = vmul.f32 -1.442695, %v2143_v21  ;;  %v3543_v39 = vpop.f32.mrb[165].mxu0 }
 0x231   : > { %v4254_v27 = vpop.eup %4253  ;;  %v1722_v2 = vpop.f32.mrb[140].mxu1 }
 0x232   : > { %v4256_v63 = vpop.eup %4255  ;;  %2909 = vst [vmem:[%s4775_s18 + $0x1f8] sm:$0xff] %v4254_v27  ;;  %4265 = vpow2.f32 %v3291_v0  ;;  %v1723_v34 = vadd.f32 %v5189_v56, %v1722_v2  ;;  %v1724_v46 = vpop.f32.mrb[141].mxu1 }
 0x233   : > { %v2618_v31 = vadd.f32 1.0, %v4256_v63  ;;  %v1725_v33 = vpop.f32.mrb[142].mxu1 }
 0x234   : > { %v4258_v37 = vpop.eup %4257  ;;  %v2148_v18 = vadd.f32 %v5130_v19, %v1723_v34  ;;  %v1726_v36 = vadd.f32 %v5189_v56, %v1725_v33  ;;  %v1727_v38 = vpop.f32.mrb[143].mxu1 }
 0x235   : > { %4267 = vrcp.f32 %v2618_v31  ;;  %v2619_v40 = vadd.f32 1.0, %v4258_v37  ;;  %v5198_v19 = vpop.f32.mrb[166].mxu0 }
 0x236   : > { %v3292_v11 = vmul.f32 -1.442695, %v2148_v18  ;;  %v2151_v16 = vadd.f32 %v5133_v30, %v1726_v36  ;;  %v3544_v30 = vpop.f32.mrb[167].mxu0 }
 0x237   : > { %v4260_v45 = vpop.eup %4259  ;;  %4269 = vrcp.f32 %v2619_v40  ;;  %v5205_v5 = vpop.f32.mrb[168].mxu0 }
 0x238   : > { %2910 = vst [vmem:[%s4775_s18 + $0x200] sm:$0xff] %v4260_v45  ;;  %4271 = vpow2.f32 %v3292_v11  ;;  %v3293_v48 = vmul.f32 -1.442695, %v2151_v16  ;;  %v3547_v10 = vpop.f32.mrb[169].mxu0 }
 0x239   : > { %v4262_v49 = vpop.eup %4261  ;;  %v1730_v25 = vpop.f32.mrb[144].mxu1 }
 0x23a   : > { %v4264_v57 = vpop.eup %4263  ;;  %2911 = vst [vmem:[%s4775_s18 + $0x208] sm:$0xff] %v4262_v49  ;;  %4273 = vpow2.f32 %v3293_v48  ;;  %v1731_v20 = vadd.f32 %v5189_v56, %v1730_v25  ;;  %v1732_v55 = vpop.f32.mrb[145].mxu1 }
 0x23b   : > { %v2620_v3 = vadd.f32 1.0, %v4264_v57  ;;  %v1733_v26 = vpop.f32.mrb[146].mxu1 }
 0x23c   : > { %v4266_v59 = vpop.eup %4265  ;;  %v2156_v61 = vadd.f32 %v5140_v44, %v1731_v20  ;;  %v1734_v62 = vadd.f32 %v5189_v56, %v1733_v26  ;;  %v1735_v35 = vpop.f32.mrb[147].mxu1 }
 0x23d   : > { %4275 = vrcp.f32 %v2620_v3  ;;  %v2621_v29 = vadd.f32 1.0, %v4266_v59  ;;  %v5208_v44 = vpop.f32.mrb[170].mxu0 }
 0x23e   : > { %v3294_v4 = vmul.f32 -1.442695, %v2156_v61  ;;  %v2159_v7 = vadd.f32 %v5143_v22, %v1734_v62  ;;  %v3548_v22 = vpop.f32.mrb[171].mxu0 }
 0x23f   : > { %v4268_v9 = vpop.eup %4267  ;;  %4277 = vrcp.f32 %v2621_v29  ;;  %v5215_v2 = vpop.f32.mrb[172].mxu0 }
 0x240   : > { %2912 = vst [vmem:[%s4775_s18 + $0x210] sm:$0xff] %v4268_v9  ;;  %4279 = vpow2.f32 %v3294_v4  ;;  %v3295_v42 = vmul.f32 -1.442695, %v2159_v7  ;;  %v3551_v34 = vpop.f32.mrb[173].mxu0 }
 0x241   : > { %v4270_v12 = vpop.eup %4269  ;;  %v1738_v23 = vpop.f32.mrb[148].mxu1 }
 0x242   : > { %v4272_v41 = vpop.eup %4271  ;;  %2913 = vst [vmem:[%s4775_s18 + $0x218] sm:$0xff] %v4270_v12  ;;  %4281 = vpow2.f32 %v3295_v42  ;;  %v1739_v1 = vadd.f32 %v5189_v56, %v1738_v23  ;;  %v1740_v15 = vpop.f32.mrb[149].mxu1 }
 0x243   : > { %v2622_v17 = vadd.f32 1.0, %v4272_v41  ;;  %v1741_v47 = vpop.f32.mrb[150].mxu1 }
 0x244   : > { %v4274_v50 = vpop.eup %4273  ;;  %v2164_v52 = vadd.f32 %v5150_v8, %v1739_v1  ;;  %v1742_v6 = vadd.f32 %v5189_v56, %v1741_v47  ;;  %v1743_v21 = vpop.f32.mrb[151].mxu1 }
 0x245   : > { %4283 = vrcp.f32 %v2622_v17  ;;  %v2623_v24 = vadd.f32 1.0, %v4274_v50  ;;  %v5218_v8 = vpop.f32.mrb[174].mxu0 }
 0x246   : > { %v3296_v0 = vmul.f32 -1.442695, %v2164_v52  ;;  %v2167_v43 = vadd.f32 %v5153_v13, %v1742_v6  ;;  %v3552_v13 = vpop.f32.mrb[175].mxu0 }
 0x247   : > { %v4276_v27 = vpop.eup %4275  ;;  %4285 = vrcp.f32 %v2623_v24  ;;  %v5225_v25 = vpop.f32.mrb[176].mxu0 }
 0x248   : > { %2914 = vst [vmem:[%s4775_s18 + $0x220] sm:$0xff] %v4276_v27  ;;  %4287 = vpow2.f32 %v3296_v0  ;;  %v3297_v63 = vmul.f32 -1.442695, %v2167_v43  ;;  %v3555_v20 = vpop.f32.mrb[177].mxu0 }
 0x249   : > { %v4278_v46 = vpop.eup %4277  ;;  %v1746_v53 = vpop.f32.mrb[152].mxu1 }
 0x24a   : > { %v4280_v31 = vpop.eup %4279  ;;  %2915 = vst [vmem:[%s4775_s18 + $0x228] sm:$0xff] %v4278_v46  ;;  %4289 = vpow2.f32 %v3297_v63  ;;  %v1747_v33 = vadd.f32 %v5189_v56, %v1746_v53  ;;  %v1748_v37 = vpop.f32.mrb[153].mxu1 }
 0x24b   : > { %v2624_v18 = vadd.f32 1.0, %v4280_v31  ;;  %v1749_v36 = vpop.f32.mrb[154].mxu1 }
 0x24c   : > { %v4282_v38 = vpop.eup %4281  ;;  %v2172_v40 = vadd.f32 %v5160_v28, %v1747_v33  ;;  %v1750_v11 = vadd.f32 %v5189_v56, %v1749_v36  ;;  %v1751_v16 = vpop.f32.mrb[155].mxu1 }
 0x24d   : > { %4291 = vrcp.f32 %v2624_v18  ;;  %v2625_v45 = vadd.f32 1.0, %v4282_v38  ;;  %v5228_v28 = vpop.f32.mrb[178].mxu0 }
 0x24e   : > { %v3298_v48 = vmul.f32 -1.442695, %v2172_v40  ;;  %v2175_v39 = vadd.f32 %v5163_v32, %v1750_v11  ;;  %v3556_v32 = vpop.f32.mrb[179].mxu0 }
 0x24f   : > { %v4284_v49 = vpop.eup %4283  ;;  %4293 = vrcp.f32 %v2625_v45  ;;  %v5235_v23 = vpop.f32.mrb[180].mxu0 }
 0x250   : > { %2916 = vst [vmem:[%s4775_s18 + $0x230] sm:$0xff] %v4284_v49  ;;  %4295 = vpow2.f32 %v3298_v48  ;;  %v3299_v57 = vmul.f32 -1.442695, %v2175_v39  ;;  %v3559_v1 = vpop.f32.mrb[181].mxu0 }
 0x251   : > { %v4286_v55 = vpop.eup %4285  ;;  %v1754_v30 = vpop.f32.mrb[156].mxu1 }
 0x252   : > { %v4288_v3 = vpop.eup %4287  ;;  %2917 = vst [vmem:[%s4775_s18 + $0x238] sm:$0xff] %v4286_v55  ;;  %4297 = vpow2.f32 %v3299_v57  ;;  %v1755_v26 = vadd.f32 %v5189_v56, %v1754_v30  ;;  %v1756_v59 = vpop.f32.mrb[157].mxu1 }
 0x253   : > { %v2626_v61 = vadd.f32 1.0, %v4288_v3  ;;  %v1757_v62 = vpop.f32.mrb[158].mxu1 }
 0x254   : > { %v4290_v35 = vpop.eup %4289  ;;  %v2180_v29 = vadd.f32 %v5170_v54, %v1755_v26  ;;  %v1758_v4 = vadd.f32 %v5189_v56, %v1757_v62  ;;  %v1759_v7 = vpop.f32.mrb[159].mxu1 }
 0x255   : > { %4299 = vrcp.f32 %v2626_v61  ;;  %v2627_v9 = vadd.f32 1.0, %v4290_v35  ;;  %v5238_v54 = vpop.f32.mrb[182].mxu0 }
 0x256   : > { %v3300_v42 = vmul.f32 -1.442695, %v2180_v29  ;;  %v2183_v10 = vadd.f32 %v5173_v60, %v1758_v4  ;;  %v3560_v60 = vpop.f32.mrb[183].mxu0 }
 0x257   : > { %v4292_v12 = vpop.eup %4291  ;;  %4301 = vrcp.f32 %v2627_v9  ;;  %v5245_v53 = vpop.f32.mrb[184].mxu0 }
 0x258   : > { %2918 = vst [vmem:[%s4775_s18 + $0x240] sm:$0xff] %v4292_v12  ;;  %4303 = vpow2.f32 %v3300_v42  ;;  %v3301_v41 = vmul.f32 -1.442695, %v2183_v10  ;;  %v3563_v33 = vpop.f32.mrb[185].mxu0 }
 0x259   : > { %v4294_v15 = vpop.eup %4293  ;;  %v1762_v22 = vpop.f32.mrb[160].mxu1 }
 0x25a   : > { %v4296_v17 = vpop.eup %4295  ;;  %2919 = vst [vmem:[%s4775_s18 + $0x248] sm:$0xff] %v4294_v15  ;;  %4305 = vpow2.f32 %v3301_v41  ;;  %v1763_v47 = vadd.f32 %v5189_v56, %v1762_v22  ;;  %v1764_v50 = vpop.f32.mrb[161].mxu1 }
 0x25b   : > { %v2628_v52 = vadd.f32 1.0, %v4296_v17  ;;  %v1765_v6 = vpop.f32.mrb[162].mxu1 }
 0x25c   : > { %v4298_v21 = vpop.eup %4297  ;;  %v2188_v24 = vadd.f32 %v5180_v51, %v1763_v47  ;;  %v1766_v0 = vadd.f32 %v5189_v56, %v1765_v6  ;;  %v1767_v43 = vpop.f32.mrb[163].mxu1 }
 0x25d   : > { %4307 = vrcp.f32 %v2628_v52  ;;  %v2629_v27 = vadd.f32 1.0, %v4298_v21  ;;  %v5248_v51 = vpop.f32.mrb[186].mxu0 }
 0x25e   : > { %v3302_v63 = vmul.f32 -1.442695, %v2188_v24  ;;  %v2191_v34 = vadd.f32 %v5183_v58, %v1766_v0  ;;  %v3564_v58 = vpop.f32.mrb[187].mxu0 }
 0x25f   : > { %v4300_v46 = vpop.eup %4299  ;;  %4309 = vrcp.f32 %v2629_v27  ;;  %v5255_v30 = vpop.f32.mrb[188].mxu0 }
 0x260   : > { %2920 = vst [vmem:[%s4775_s18 + $0x250] sm:$0xff] %v4300_v46  ;;  %4311 = vpow2.f32 %v3302_v63  ;;  %v3303_v31 = vmul.f32 -1.442695, %v2191_v34  ;;  %v3567_v26 = vpop.f32.mrb[189].mxu0 }
 0x261   : > { %v4302_v37 = vpop.eup %4301  ;;  %v1770_v13 = vpop.f32.mrb[164].mxu1 }
 0x262   : > { %v4304_v18 = vpop.eup %4303  ;;  %2921 = vst [vmem:[%s4775_s18 + $0x258] sm:$0xff] %v4302_v37  ;;  %4313 = vpow2.f32 %v3303_v31  ;;  %v1771_v36 = vadd.f32 %v5189_v56, %v1770_v13  ;;  %v1772_v38 = vpop.f32.mrb[165].mxu1 }
 0x263   : > { %v2630_v40 = vadd.f32 1.0, %v4304_v18  ;;  %v1773_v11 = vpop.f32.mrb[166].mxu1 }
 0x264   : > { %v4306_v16 = vpop.eup %4305  ;;  %v2196_v45 = vadd.f32 %v5195_v14, %v1771_v36  ;;  %v1774_v48 = vadd.f32 %v5189_v56, %v1773_v11  ;;  %v1775_v39 = vpop.f32.mrb[167].mxu1 }
 0x265   : > { %4315 = vrcp.f32 %v2630_v40  ;;  %v2631_v49 = vadd.f32 1.0, %v4306_v16  ;;  %v5258_v14 = vpop.f32.mrb[190].mxu0 }
 0x266   : > { %v3304_v57 = vmul.f32 -1.442695, %v2196_v45  ;;  %v2199_v20 = vadd.f32 %v5198_v19, %v1774_v48  ;;  %v3568_v19 = vpop.f32.mrb[191].mxu0 }
 0x267   : > { %v4308_v55 = vpop.eup %4307  ;;  %4317 = vrcp.f32 %v2631_v49  ;;  %v5265_v22 = vpop.f32.mrb[192].mxu0 }
 0x268   : > { %2922 = vst [vmem:[%s4775_s18 + $0x260] sm:$0xff] %v4308_v55  ;;  %4319 = vpow2.f32 %v3304_v57  ;;  %v3305_v3 = vmul.f32 -1.442695, %v2199_v20  ;;  %v3571_v47 = vpop.f32.mrb[193].mxu0 }
 0x269   : > { %v4310_v59 = vpop.eup %4309  ;;  %v1778_v32 = vpop.f32.mrb[168].mxu1 }
 0x26a   : > { %v4312_v61 = vpop.eup %4311  ;;  %2923 = vst [vmem:[%s4775_s18 + $0x268] sm:$0xff] %v4310_v59  ;;  %4321 = vpow2.f32 %v3305_v3  ;;  %v1779_v62 = vadd.f32 %v5189_v56, %v1778_v32  ;;  %v1780_v35 = vpop.f32.mrb[169].mxu1 }
 0x26b   : > { %v2632_v29 = vadd.f32 1.0, %v4312_v61  ;;  %v1781_v4 = vpop.f32.mrb[170].mxu1 }
 0x26c   : > { %v4314_v7 = vpop.eup %4313  ;;  %v2204_v9 = vadd.f32 %v5205_v5, %v1779_v62  ;;  %v1782_v42 = vadd.f32 %v5189_v56, %v1781_v4  ;;  %v1783_v10 = vpop.f32.mrb[171].mxu1 }
 0x26d   : > { %4323 = vrcp.f32 %v2632_v29  ;;  %v2633_v12 = vadd.f32 1.0, %v4314_v7  ;;  %v5268_v5 = vpop.f32.mrb[194].mxu0 }
 0x26e   : > { %v3306_v41 = vmul.f32 -1.442695, %v2204_v9  ;;  %v2207_v1 = vadd.f32 %v5208_v44, %v1782_v42  ;;  %v3572_v44 = vpop.f32.mrb[195].mxu0 }
 0x26f   : > { %v4316_v15 = vpop.eup %4315  ;;  %4325 = vrcp.f32 %v2633_v12 }
 0x270   : > { %2924 = vst [vmem:[%s4775_s18 + $0x270] sm:$0xff] %v4316_v15  ;;  %4327 = vpow2.f32 %v3306_v41  ;;  %v3307_v17 = vmul.f32 -1.442695, %v2207_v1 }
 0x271   : > { %v4318_v50 = vpop.eup %4317  ;;  %v1786_v60 = vpop.f32.mrb[172].mxu1 }
 0x272   : > { %v4320_v52 = vpop.eup %4319  ;;  %2925 = vst [vmem:[%s4775_s18 + $0x278] sm:$0xff] %v4318_v50  ;;  %4329 = vpow2.f32 %v3307_v17  ;;  %v1787_v6 = vadd.f32 %v5189_v56, %v1786_v60  ;;  %v1788_v21 = vpop.f32.mrb[173].mxu1 }
 0x273   : > { %v2634_v24 = vadd.f32 1.0, %v4320_v52  ;;  %v1789_v0 = vpop.f32.mrb[174].mxu1 }
 0x274   : > { %v4322_v43 = vpop.eup %4321  ;;  %v2212_v27 = vadd.f32 %v5215_v2, %v1787_v6  ;;  %v1790_v63 = vadd.f32 %v5189_v56, %v1789_v0  ;;  %v1791_v34 = vpop.f32.mrb[175].mxu1 }
 0x275   : > { %4331 = vrcp.f32 %v2634_v24  ;;  %v2635_v46 = vadd.f32 1.0, %v4322_v43 }
 0x276   : > { %v3308_v31 = vmul.f32 -1.442695, %v2212_v27  ;;  %v2215_v33 = vadd.f32 %v5218_v8, %v1790_v63 }
 0x277   : > { %v4324_v37 = vpop.eup %4323  ;;  %4333 = vrcp.f32 %v2635_v46 }
 0x278   : > { %2926 = vst [vmem:[%s4775_s18 + $0x280] sm:$0xff] %v4324_v37  ;;  %4335 = vpow2.f32 %v3308_v31  ;;  %v3309_v13 = vmul.f32 -1.442695, %v2215_v33 }
 0x279   : > { %v4326_v18 = vpop.eup %4325  ;;  %v1794_v36 = vpop.f32.mrb[176].mxu1 }
 0x27a   : > { %v4328_v38 = vpop.eup %4327  ;;  %2927 = vst [vmem:[%s4775_s18 + $0x288] sm:$0xff] %v4326_v18  ;;  %4337 = vpow2.f32 %v3309_v13  ;;  %v1795_v2 = vadd.f32 %v5189_v56, %v1794_v36  ;;  %v1796_v58 = vpop.f32.mrb[177].mxu1 }
 0x27b   : > { %v2636_v40 = vadd.f32 1.0, %v4328_v38  ;;  %v1797_v11 = vpop.f32.mrb[178].mxu1 }
 0x27c   : > { %v4330_v16 = vpop.eup %4329  ;;  %v2220_v8 = vadd.f32 %v5225_v25, %v1795_v2  ;;  %v1798_v45 = vadd.f32 %v5189_v56, %v1797_v11  ;;  %v1799_v48 = vpop.f32.mrb[179].mxu1 }
 0x27d   : > { %4339 = vrcp.f32 %v2636_v40  ;;  %v2637_v39 = vadd.f32 1.0, %v4330_v16 }
 0x27e   : > { %v3310_v49 = vmul.f32 -1.442695, %v2220_v8  ;;  %v2223_v57 = vadd.f32 %v5228_v28, %v1798_v45 }
 0x27f   : > { %v4332_v20 = vpop.eup %4331  ;;  %4341 = vrcp.f32 %v2637_v39 }
 0x280   : > { %2928 = vst [vmem:[%s4775_s18 + $0x290] sm:$0xff] %v4332_v20  ;;  %4343 = vpow2.f32 %v3310_v49  ;;  %v3311_v55 = vmul.f32 -1.442695, %v2223_v57 }
 0x281   : > { %v4334_v3 = vpop.eup %4333  ;;  %v1802_v26 = vpop.f32.mrb[180].mxu1 }
 0x282   : > { %v4336_v59 = vpop.eup %4335  ;;  %2929 = vst [vmem:[%s4775_s18 + $0x298] sm:$0xff] %v4334_v3  ;;  %4345 = vpow2.f32 %v3311_v55  ;;  %v1803_v25 = vadd.f32 %v5189_v56, %v1802_v26  ;;  %v1804_v32 = vpop.f32.mrb[181].mxu1 }
 0x283   : > { %v2638_v61 = vadd.f32 1.0, %v4336_v59  ;;  %v1805_v62 = vpop.f32.mrb[182].mxu1 }
 0x284   : > { %v4338_v35 = vpop.eup %4337  ;;  %v2228_v28 = vadd.f32 %v5235_v23, %v1803_v25  ;;  %v1806_v19 = vadd.f32 %v5189_v56, %v1805_v62  ;;  %v1807_v29 = vpop.f32.mrb[183].mxu1 }
 0x285   : > { %4347 = vrcp.f32 %v2638_v61  ;;  %v2639_v4 = vadd.f32 1.0, %v4338_v35 }
 0x286   : > { %v3312_v7 = vmul.f32 -1.442695, %v2228_v28  ;;  %v2231_v9 = vadd.f32 %v5238_v54, %v1806_v19 }
 0x287   : > { %v4340_v42 = vpop.eup %4339  ;;  %4349 = vrcp.f32 %v2639_v4 }
 0x288   : > { %2930 = vst [vmem:[%s4775_s18 + $0x2a0] sm:$0xff] %v4340_v42  ;;  %4351 = vpow2.f32 %v3312_v7  ;;  %v3313_v10 = vmul.f32 -1.442695, %v2231_v9 }
 0x289   : > { %v4342_v12 = vpop.eup %4341  ;;  %v1810_v41 = vpop.f32.mrb[184].mxu1 }
 0x28a   : > { %v4344_v1 = vpop.eup %4343  ;;  %2931 = vst [vmem:[%s4775_s18 + $0x2a8] sm:$0xff] %v4342_v12  ;;  %4353 = vpow2.f32 %v3313_v10  ;;  %v1811_v23 = vadd.f32 %v5189_v56, %v1810_v41  ;;  %v1812_v15 = vpop.f32.mrb[185].mxu1 }
 0x28b   : > { %v2640_v17 = vadd.f32 1.0, %v4344_v1  ;;  %v1813_v47 = vpop.f32.mrb[186].mxu1 }
 0x28c   : > { %v4346_v50 = vpop.eup %4345  ;;  %v2236_v54 = vadd.f32 %v5245_v53, %v1811_v23  ;;  %v1814_v60 = vadd.f32 %v5189_v56, %v1813_v47  ;;  %v1815_v52 = vpop.f32.mrb[187].mxu1 }
 0x28d   : > { %4355 = vrcp.f32 %v2640_v17  ;;  %v2641_v6 = vadd.f32 1.0, %v4346_v50 }
 0x28e   : > { %v3314_v21 = vmul.f32 -1.442695, %v2236_v54  ;;  %v2239_v44 = vadd.f32 %v5248_v51, %v1814_v60 }
 0x28f   : > { %v4348_v24 = vpop.eup %4347  ;;  %4357 = vrcp.f32 %v2641_v6 }
 0x290   : > { %2932 = vst [vmem:[%s4775_s18 + $0x2b0] sm:$0xff] %v4348_v24  ;;  %4359 = vpow2.f32 %v3314_v21  ;;  %v3315_v0 = vmul.f32 -1.442695, %v2239_v44 }
 0x291   : > { %v4350_v43 = vpop.eup %4349  ;;  %v1818_v27 = vpop.f32.mrb[188].mxu1 }
 0x292   : > { %v4352_v63 = vpop.eup %4351  ;;  %2933 = vst [vmem:[%s4775_s18 + $0x2b8] sm:$0xff] %v4350_v43  ;;  %4361 = vpow2.f32 %v3315_v0  ;;  %v1819_v53 = vadd.f32 %v5189_v56, %v1818_v27  ;;  %v1820_v34 = vpop.f32.mrb[189].mxu1 }
 0x293   : > { %v2642_v46 = vadd.f32 1.0, %v4352_v63  ;;  %v1821_v31 = vpop.f32.mrb[190].mxu1 }
 0x294   : > { %v4354_v33 = vpop.eup %4353  ;;  %v2244_v51 = vadd.f32 %v5255_v30, %v1819_v53  ;;  %v1822_v37 = vadd.f32 %v5189_v56, %v1821_v31  ;;  %v1823_v13 = vpop.f32.mrb[191].mxu1 }
 0x295   : > { %4363 = vrcp.f32 %v2642_v46  ;;  %v2643_v18 = vadd.f32 1.0, %v4354_v33 }
 0x296   : > { %v3316_v36 = vmul.f32 -1.442695, %v2244_v51  ;;  %v2247_v38 = vadd.f32 %v5258_v14, %v1822_v37 }
 0x297   : > { %v4356_v2 = vpop.eup %4355  ;;  %4365 = vrcp.f32 %v2643_v18 }
 0x298   : > { %2934 = vst [vmem:[%s4775_s18 + $0x2c0] sm:$0xff] %v4356_v2  ;;  %4367 = vpow2.f32 %v3316_v36  ;;  %v3317_v58 = vmul.f32 -1.442695, %v2247_v38 }
 0x299   : > { %v4358_v40 = vpop.eup %4357  ;;  %v1826_v11 = vpop.f32.mrb[192].mxu1 }
 0x29a   : > { %v4360_v16 = vpop.eup %4359  ;;  %2935 = vst [vmem:[%s4775_s18 + $0x2c8] sm:$0xff] %v4358_v40  ;;  %4369 = vpow2.f32 %v3317_v58  ;;  %v1827_v30 = vadd.f32 %v5189_v56, %v1826_v11  ;;  %v1828_v8 = vpop.f32.mrb[193].mxu1 }
 0x29b   : > { %v2644_v45 = vadd.f32 1.0, %v4360_v16  ;;  %v1829_v48 = vpop.f32.mrb[194].mxu1 }
 0x29c   : > { %v4362_v39 = vpop.eup %4361  ;;  %v2252_v14 = vadd.f32 %v5265_v22, %v1827_v30  ;;  %v1830_v49 = vadd.f32 %v5189_v56, %v1829_v48  ;;  %v1831_v57 = vpop.f32.mrb[195].mxu1 }
 0x29d   : > { %4371 = vrcp.f32 %v2644_v45  ;;  %v2645_v20 = vadd.f32 1.0, %v4362_v39 }
 0x29e   : > { %v3318_v55 = vmul.f32 -1.442695, %v2252_v14  ;;  %v2255_v3 = vadd.f32 %v5268_v5, %v1830_v49 }
 0x29f   : > { %v4364_v26 = vpop.eup %4363  ;;  %4373 = vrcp.f32 %v2645_v20 }
 0x2a0   : > { %2936 = vst [vmem:[%s4775_s18 + $0x2d0] sm:$0xff] %v4364_v26  ;;  %4375 = vpow2.f32 %v3318_v55  ;;  %v3319_v59 = vmul.f32 -1.442695, %v2255_v3 }
 0x2a1   : > { %v4366_v25 = vpop.eup %4365 }
 0x2a2   : > { %v4368_v32 = vpop.eup %4367  ;;  %2937 = vst [vmem:[%s4775_s18 + $0x2d8] sm:$0xff] %v4366_v25  ;;  %4377 = vpow2.f32 %v3319_v59 }
 0x2a3   : > { %v2646_v22 = vadd.f32 1.0, %v4368_v32 }
 0x2a4   : > { %v4370_v56 = vpop.eup %4369 }
 0x2a5   : > { %4379 = vrcp.f32 %v2646_v22  ;;  %v2647_v61 = vadd.f32 1.0, %v4370_v56 }
 0x2a7   : > { %v4372_v62 = vpop.eup %4371  ;;  %4381 = vrcp.f32 %v2647_v61 }
 0x2a8   : > { %2938 = vst [vmem:[%s4775_s18 + $0x2e0] sm:$0xff] %v4372_v62 }
 0x2a9   : > { %v4374_v5 = vpop.eup %4373 }
 0x2aa   : > { %v4376_v35 = vpop.eup %4375  ;;  %2939 = vst [vmem:[%s4775_s18 + $0x2e8] sm:$0xff] %v4374_v5 }
 0x2ab   : > { %v2648_v28 = vadd.f32 1.0, %v4376_v35 }
 0x2ac   : > { %v4378_v19 = vpop.eup %4377 }
 0x2ad   : > { %4383 = vrcp.f32 %v2648_v28  ;;  %v2649_v29 = vadd.f32 1.0, %v4378_v19 }
 0x2af   : > { %v4380_v4 = vpop.eup %4379  ;;  %4385 = vrcp.f32 %v2649_v29 }
 0x2b0   : > { %2940 = vst [vmem:[%s4775_s18 + $0x2f0] sm:$0xff] %v4380_v4 }
 0x2b1   : > { %v4382_v7 = vpop.eup %4381 }
 0x2b2   : > { %2941 = vst [vmem:[%s4775_s18 + $0x2f8] sm:$0xff] %v4382_v7 }
 0x2b7   : > { %v4384_v9 = vpop.eup %4383 }
 0x2b8   : > { %2942 = vst [vmem:[%s4775_s18 + $0x300] sm:$0xff] %v4384_v9 }
 0x2b9   : > { %v4386_v42 = vpop.eup %4385 }
 0x2ba   : > { %2943 = vst [vmem:[%s4775_s18 + $0x308] sm:$0xff] %v4386_v42 }
 0x2bb PF: > { %s13_s12 = sadd.s32 1, %s4395_s12  }
 0x2bc   : > { %p10_p4 = scmp.ge.s32.totalorder %s13_s12, 4  }
 0x2be   :  { %12 = sbr.rel (!%p10_p4) target bundleno = 1 (0x1), region = 62 }

</bundles_post_ra>
